<compile_context>
chip_gen: v7x
topology: tpu7x:2x2x1
jax: 0.10.0
libtpu: 0.0.40
codegen_flags: <defaults>
</compile_context>

<pallas_src>
import functools

import jax
import jax.numpy as jnp
from jax.experimental import pallas as pl
from jax.experimental.pallas import tpu as pltpu

EPS = 1e-5   # nn.BatchNorm2d default
C = 128      # lane-dense channel padding used for every stage


def _shift_slices(d, size):
  """Source/dest ranges for write-side im2col along one spatial dim.

  For kernel tap d in {0,1,2} (displacement d-1, padding=1), activation index
  u contributes to im2col row u-(d-1); out-of-range rows stay zero.
  """
  if d == 0:
    return slice(0, size - 1), slice(1, size)      # dest row 0 stays zero
  if d == 1:
    return slice(0, size), slice(0, size)
  return slice(1, size), slice(0, size - 1)        # dest row size-1 stays zero


def _estimate_kernel(p1_ref, w1_ref, b1_ref,
                     w2_ref, b2_ref, g1_ref, be1_ref,
                     w3_ref, b3_ref, g2_ref, be2_ref,
                     w4_ref, b4_ref,
                     o_ref, col_ref, act_ref, *, B, H, W):
  N = B * H * W
  f32 = jnp.float32
  bf16 = jnp.bfloat16

  # BN batch statistics on the MXU (it has slack; keeps the row-reduction off
  # the VPU/XLU critical path).  8 identical rows: the MXU processes >=8
  # sublanes anyway and this avoids an M=1 edge case.
  scale = jnp.full((8, N), 1.0 / N, f32)

  def batch_norm_relu(y, g_ref, be_ref):
    # Training-mode BatchNorm2d over all (B,H,W) rows, biased variance, f32.
    mean = jnp.dot(scale, y, preferred_element_type=f32)[0:1]
    mean_sq = jnp.dot(scale, y * y, preferred_element_type=f32)[0:1]
    var = mean_sq - mean * mean
    inv = jax.lax.rsqrt(var + EPS)
    return jnp.maximum((y - mean) * (inv * g_ref[...]) + be_ref[...], 0.0)

  def scatter_im2col(h):
    # Write-side im2col: h (N, 128) f32 -> col_ref (B, H, W, 9*128) bf16.
    # Block k = dy*3+dx holds the activation shifted by (dy-1, dx-1); border
    # rows/cols that are never written stay zero (= conv zero padding).
    act_ref[...] = h.astype(bf16).reshape(B, H, W, C)
    for dy in range(3):
      sy, ty = _shift_slices(dy, H)
      for dx in range(3):
        sx, tx = _shift_slices(dx, W)
        k = dy * 3 + dx
        col_ref[:, ty, tx, k * C:(k + 1) * C] = act_ref[:, sy, sx, :]

  def conv3x3(w_ref, b_ref):
    # One bf16 MXU matmul per conv: (N, 9*128) x (9*128, 128), f32 acc.
    cols = col_ref[...].reshape(N, 9 * C)
    return jnp.dot(cols, w_ref[...], preferred_element_type=f32) + b_ref[...]

  # One-time zero fill of the shared im2col scratch; all three convs rewrite
  # the same interior regions, so the zero border blocks persist.
  col_ref[...] = jnp.zeros_like(col_ref)

  # conv1 (Cin=3): im2col precomputed lane-dense (zero-padded) in the wrapper.
  h = jnp.dot(p1_ref[...], w1_ref[...],
              preferred_element_type=f32) + b1_ref[...]

  # conv2 -> BN1 -> ReLU
  scatter_im2col(h)
  h = batch_norm_relu(conv3x3(w2_ref, b2_ref), g1_ref, be1_ref)

  # conv3 -> BN2 -> ReLU
  scatter_im2col(h)
  h = batch_norm_relu(conv3x3(w3_ref, b3_ref), g2_ref, be2_ref)

  # conv4 -> tanh (output channels zero-padded to 128 -> lane-dense store)
  scatter_im2col(h)
  o_ref[...] = jnp.tanh(conv3x3(w4_ref, b4_ref))


@jax.jit
def estimate_forward(x, w1, b1, w2, b2, g1, be1, w3, b3, g2, be2, w4, b4):
  """Estimate forward. x: (B, 3, H, W) NCHW; w*: (3, 3, Cin, Cout) HWIO."""
  B, cin, H, W = x.shape
  N = B * H * W
  f32, bf16 = jnp.float32, jnp.bfloat16

  # conv1 im2col on the wrapper side (tiny: Cin=3), zero-padded to 128 lanes.
  x_nhwc = jnp.transpose(x, (0, 2, 3, 1)).astype(f32)
  xp = jnp.pad(x_nhwc, ((0, 0), (1, 1), (1, 1), (0, 0)))
  cols = [xp[:, dy:dy + H, dx:dx + W, :] for dy in range(3) for dx in range(3)]
  patches1 = jnp.concatenate(cols, axis=-1).reshape(N, 9 * cin)
  patches1 = jnp.pad(patches1, ((0, 0), (0, C - 9 * cin))).astype(bf16)

  def pad_w(w):
    # (3, 3, ci, co) -> zero-pad channels to 128/128 -> (9*128, 128) bf16.
    ci, co = w.shape[2], w.shape[3]
    wp = jnp.pad(w, ((0, 0), (0, 0), (0, C - ci), (0, C - co)))
    return wp.reshape(9 * C, C).astype(bf16)

  def pad_v(v):
    return jnp.pad(v, (0, C - v.shape[0])).reshape(1, C).astype(f32)

  # conv1 weight: pad the flattened (27, 64) to (128, 128) to match patches1.
  w1r = jnp.pad(w1.reshape(9 * cin, w1.shape[3]),
                ((0, C - 9 * cin), (0, C - w1.shape[3]))).astype(bf16)

  operands = (patches1, w1r, pad_v(b1),
              pad_w(w2), pad_v(b2), pad_v(g1), pad_v(be1),
              pad_w(w3), pad_v(b3), pad_v(g2), pad_v(be2),
              pad_w(w4), pad_v(b4))

  def full(shape):
    return pl.BlockSpec(shape, lambda i: (0,) * len(shape))

  grid_spec = pltpu.PrefetchScalarGridSpec(
      num_scalar_prefetch=0,
      grid=(1,),
      in_specs=[full(op.shape) for op in operands],
      out_specs=full((N, C)),
      scratch_shapes=[
          pltpu.VMEM((B, H, W, 9 * C), bf16),   # shared write-side im2col
          pltpu.VMEM((B, H, W, C), bf16),       # staging for the 9 shifts
      ],
  )

  out_flat = pl.pallas_call(
      functools.partial(_estimate_kernel, B=B, H=H, W=W),
      out_shape=jax.ShapeDtypeStruct((N, C), f32),
      grid_spec=grid_spec,
      compiler_params=pltpu.CompilerParams(
          dimension_semantics=("arbitrary",),
          vmem_limit_bytes=32 * 1024 * 1024),
  )(*operands)

  return out_flat[:, :3].reshape(B, H, W, 3).transpose(0, 3, 1, 2)


def _reference(x, w1, b1, w2, b2, g1, be1, w3, b3, g2, be2, w4, b4):
  # Pure-JAX f32 reference of the same Estimate forward (training-mode BN).
  h = jnp.transpose(x, (0, 2, 3, 1)).astype(jnp.float32)

  def conv(h, w, b):
    return jax.lax.conv_general_dilated(
        h, w, (1, 1), ((1, 1), (1, 1)),
        dimension_numbers=("NHWC", "HWIO", "NHWC")) + b.reshape(1, 1, 1, -1)

  def bn(h, g, be):
    mean = h.mean(axis=(0, 1, 2), keepdims=True)
    var = ((h - mean) ** 2).mean(axis=(0, 1, 2), keepdims=True)
    return (h - mean) * jax.lax.rsqrt(var + EPS) * g.reshape(1, 1, 1, -1) \
        + be.reshape(1, 1, 1, -1)

  h = conv(h, w1, b1)
  h = jnp.maximum(bn(conv(h, w2, b2), g1, be1), 0.0)
  h = jnp.maximum(bn(conv(h, w3, b3), g2, be2), 0.0)
  return jnp.tanh(conv(h, w4, b4)).transpose(0, 3, 1, 2)


if __name__ == "__main__":
  B, H, W = 2, 16, 16
  key = jax.random.PRNGKey(0)
  keys = jax.random.split(key, 13)

  x = jax.random.normal(keys[0], (B, 3, H, W), jnp.float32)
  w1 = jax.random.normal(keys[1], (3, 3, 3, 64), jnp.float32) * 0.1
  b1 = jax.random.normal(keys[2], (64,), jnp.float32) * 0.1
  w2 = jax.random.normal(keys[3], (3, 3, 64, 64), jnp.float32) * 0.1
  b2 = jax.random.normal(keys[4], (64,), jnp.float32) * 0.1
  g1 = 1.0 + jax.random.normal(keys[5], (64,), jnp.float32) * 0.1
  be1 = jax.random.normal(keys[6], (64,), jnp.float32) * 0.1
  w3 = jax.random.normal(keys[7], (3, 3, 64, 128), jnp.float32) * 0.1
  b3 = jax.random.normal(keys[8], (128,), jnp.float32) * 0.1
  g2 = 1.0 + jax.random.normal(keys[9], (128,), jnp.float32) * 0.1
  be2 = jax.random.normal(keys[10], (128,), jnp.float32) * 0.1
  w4 = jax.random.normal(keys[11], (3, 3, 128, 3), jnp.float32) * 0.1
  b4 = jax.random.normal(keys[12], (3,), jnp.float32) * 0.1

  args = (x, w1, b1, w2, b2, g1, be1, w3, b3, g2, be2, w4, b4)
  out = jax.block_until_ready(estimate_forward(*args))
  ref = jax.block_until_ready(_reference(*args))

  assert out.shape == (B, 3, H, W)
  # Tolerance accounts for bf16 MXU operands (f32 accumulation) vs the pure
  # f32 reference accumulated over 4 conv layers; logic bugs (wrong tap /
  # wrong BN) would produce errors >~ 0.3.
  err = jnp.max(jnp.abs(out - ref))
  assert jnp.allclose(out, ref, atol=4e-2, rtol=4e-2), f"max err {err}"
  print("KERNEL_OK")
</pallas_src>

<mosaic_0001>
module attributes {stable_mosaic.version = 11 : i64} {
  func.func @_estimate_kernel(%arg0: i32, %arg1: memref<512x128xbf16, #tpu.memory_space<vmem>>, %arg2: memref<128x128xbf16, #tpu.memory_space<vmem>>, %arg3: memref<1x128xf32, #tpu.memory_space<vmem>>, %arg4: memref<1152x128xbf16, #tpu.memory_space<vmem>>, %arg5: memref<1x128xf32, #tpu.memory_space<vmem>>, %arg6: memref<1x128xf32, #tpu.memory_space<vmem>>, %arg7: memref<1x128xf32, #tpu.memory_space<vmem>>, %arg8: memref<1152x128xbf16, #tpu.memory_space<vmem>>, %arg9: memref<1x128xf32, #tpu.memory_space<vmem>>, %arg10: memref<1x128xf32, #tpu.memory_space<vmem>>, %arg11: memref<1x128xf32, #tpu.memory_space<vmem>>, %arg12: memref<1152x128xbf16, #tpu.memory_space<vmem>>, %arg13: memref<1x128xf32, #tpu.memory_space<vmem>>, %arg14: memref<512x128xf32, #tpu.memory_space<vmem>>, %arg15: memref<2x16x16x1152xbf16, #tpu.memory_space<vmem>>, %arg16: memref<2x16x16x128xbf16, #tpu.memory_space<vmem>>) attributes {dimension_semantics = [#tpu.dimension_semantics<arbitrary>], iteration_bounds = array<i64: 1>, scalar_prefetch = 0 : i64, scratch_operands = 2 : i64, tpu.core_type = #tpu.core_type<tc>, window_params = [{pipeline_mode = #tpu.pipeline_mode<synchronous>, transform_indices = @transform_0, window_bounds = array<i64: 512, 128>}, {pipeline_mode = #tpu.pipeline_mode<synchronous>, transform_indices = @transform_1, window_bounds = array<i64: 128, 128>}, {pipeline_mode = #tpu.pipeline_mode<synchronous>, transform_indices = @transform_2, window_bounds = array<i64: 1, 128>}, {pipeline_mode = #tpu.pipeline_mode<synchronous>, transform_indices = @transform_3, window_bounds = array<i64: 1152, 128>}, {pipeline_mode = #tpu.pipeline_mode<synchronous>, transform_indices = @transform_4, window_bounds = array<i64: 1, 128>}, {pipeline_mode = #tpu.pipeline_mode<synchronous>, transform_indices = @transform_5, window_bounds = array<i64: 1, 128>}, {pipeline_mode = #tpu.pipeline_mode<synchronous>, transform_indices = @transform_6, window_bounds = array<i64: 1, 128>}, {pipeline_mode = #tpu.pipeline_mode<synchronous>, transform_indices = @transform_7, window_bounds = array<i64: 1152, 128>}, {pipeline_mode = #tpu.pipeline_mode<synchronous>, transform_indices = @transform_8, window_bounds = array<i64: 1, 128>}, {pipeline_mode = #tpu.pipeline_mode<synchronous>, transform_indices = @transform_9, window_bounds = array<i64: 1, 128>}, {pipeline_mode = #tpu.pipeline_mode<synchronous>, transform_indices = @transform_10, window_bounds = array<i64: 1, 128>}, {pipeline_mode = #tpu.pipeline_mode<synchronous>, transform_indices = @transform_11, window_bounds = array<i64: 1152, 128>}, {pipeline_mode = #tpu.pipeline_mode<synchronous>, transform_indices = @transform_12, window_bounds = array<i64: 1, 128>}, {pipeline_mode = #tpu.pipeline_mode<synchronous>, transform_indices = @transform_13, window_bounds = array<i64: 512, 128>}]} {
    %cst = arith.constant 0.001953125 : f32
    %0 = vector.broadcast %cst : f32 to vector<8x512xf32>
    %cst_0 = arith.constant 0.000000e+00 : bf16
    %1 = vector.broadcast %cst_0 : bf16 to vector<2x16x16x1152xbf16>
    %c0 = arith.constant 0 : index
    %c0_1 = arith.constant 0 : index
    %c0_2 = arith.constant 0 : index
    %c0_3 = arith.constant 0 : index
    %2 = vector.load %arg15[%c0, %c0_1, %c0_2, %c0_3] : memref<2x16x16x1152xbf16, #tpu.memory_space<vmem>>, vector<2x16x16x1152xbf16>
    tpu.vector_store %arg15[%c0, %c0_1, %c0_2, %c0_3], %1 {strides = array<i32>} : memref<2x16x16x1152xbf16, #tpu.memory_space<vmem>>, vector<2x16x16x1152xbf16>,
    %c0_4 = arith.constant 0 : index
    %c0_5 = arith.constant 0 : index
    %3 = vector.load %arg1[%c0_4, %c0_5] : memref<512x128xbf16, #tpu.memory_space<vmem>>, vector<512x128xbf16>
    %c0_6 = arith.constant 0 : index
    %c0_7 = arith.constant 0 : index
    %4 = vector.load %arg2[%c0_6, %c0_7] : memref<128x128xbf16, #tpu.memory_space<vmem>>, vector<128x128xbf16>
    %cst_8 = arith.constant dense<0.000000e+00> : vector<512x128xf32>
    %5 = tpu.matmul %3, %4, %cst_8 {dimension_numbers = #tpu.dot_dimension_numbers<[1], [0], [0], [1], [0, 0, 1, 1], [], []>} : vector<512x128xbf16>, vector<128x128xbf16>, vector<512x128xf32> -> vector<512x128xf32>
    %c0_9 = arith.constant 0 : index
    %c0_10 = arith.constant 0 : index
    %6 = vector.load %arg3[%c0_9, %c0_10] : memref<1x128xf32, #tpu.memory_space<vmem>>, vector<1x128xf32>
    %7 = vector.broadcast %6 : vector<1x128xf32> to vector<512x128xf32>
    %8 = arith.addf %5, %7 : vector<512x128xf32>
    %9 = arith.truncf %8 : vector<512x128xf32> to vector<512x128xbf16>
    %10 = vector.shape_cast %9 : vector<512x128xbf16> to vector<2x16x16x128xbf16>
    %c0_11 = arith.constant 0 : index
    %c0_12 = arith.constant 0 : index
    %c0_13 = arith.constant 0 : index
    %c0_14 = arith.constant 0 : index
    %11 = vector.load %arg16[%c0_11, %c0_12, %c0_13, %c0_14] : memref<2x16x16x128xbf16, #tpu.memory_space<vmem>>, vector<2x16x16x128xbf16>
    tpu.vector_store %arg16[%c0_11, %c0_12, %c0_13, %c0_14], %10 {strides = array<i32>} : memref<2x16x16x128xbf16, #tpu.memory_space<vmem>>, vector<2x16x16x128xbf16>,
    %c0_15 = arith.constant 0 : index
    %c0_16 = arith.constant 0 : index
    %c0_17 = arith.constant 0 : index
    %c0_18 = arith.constant 0 : index
    %12 = vector.load %arg16[%c0_15, %c0_16, %c0_17, %c0_18] : memref<2x16x16x128xbf16, #tpu.memory_space<vmem>>, vector<2x15x15x128xbf16>
    %c0_19 = arith.constant 0 : index
    %c1 = arith.constant 1 : index
    %c1_20 = arith.constant 1 : index
    %c0_21 = arith.constant 0 : index
    %13 = vector.load %arg15[%c0_19, %c1, %c1_20, %c0_21] : memref<2x16x16x1152xbf16, #tpu.memory_space<vmem>>, vector<2x15x15x128xbf16>
    tpu.vector_store %arg15[%c0_19, %c1, %c1_20, %c0_21], %12 {strides = array<i32>} : memref<2x16x16x1152xbf16, #tpu.memory_space<vmem>>, vector<2x15x15x128xbf16>,
    %c0_22 = arith.constant 0 : index
    %c0_23 = arith.constant 0 : index
    %c0_24 = arith.constant 0 : index
    %c0_25 = arith.constant 0 : index
    %14 = vector.load %arg16[%c0_22, %c0_23, %c0_24, %c0_25] : memref<2x16x16x128xbf16, #tpu.memory_space<vmem>>, vector<2x15x16x128xbf16>
    %c0_26 = arith.constant 0 : index
    %c1_27 = arith.constant 1 : index
    %c0_28 = arith.constant 0 : index
    %c128 = arith.constant 128 : index
    %15 = vector.load %arg15[%c0_26, %c1_27, %c0_28, %c128] : memref<2x16x16x1152xbf16, #tpu.memory_space<vmem>>, vector<2x15x16x128xbf16>
    tpu.vector_store %arg15[%c0_26, %c1_27, %c0_28, %c128], %14 {strides = array<i32>} : memref<2x16x16x1152xbf16, #tpu.memory_space<vmem>>, vector<2x15x16x128xbf16>,
    %c0_29 = arith.constant 0 : index
    %c0_30 = arith.constant 0 : index
    %c1_31 = arith.constant 1 : index
    %c0_32 = arith.constant 0 : index
    %16 = vector.load %arg16[%c0_29, %c0_30, %c1_31, %c0_32] : memref<2x16x16x128xbf16, #tpu.memory_space<vmem>>, vector<2x15x15x128xbf16>
    %c0_33 = arith.constant 0 : index
    %c1_34 = arith.constant 1 : index
    %c0_35 = arith.constant 0 : index
    %c256 = arith.constant 256 : index
    %17 = vector.load %arg15[%c0_33, %c1_34, %c0_35, %c256] : memref<2x16x16x1152xbf16, #tpu.memory_space<vmem>>, vector<2x15x15x128xbf16>
    tpu.vector_store %arg15[%c0_33, %c1_34, %c0_35, %c256], %16 {strides = array<i32>} : memref<2x16x16x1152xbf16, #tpu.memory_space<vmem>>, vector<2x15x15x128xbf16>,
    %c0_36 = arith.constant 0 : index
    %c0_37 = arith.constant 0 : index
    %c0_38 = arith.constant 0 : index
    %c0_39 = arith.constant 0 : index
    %18 = vector.load %arg16[%c0_36, %c0_37, %c0_38, %c0_39] : memref<2x16x16x128xbf16, #tpu.memory_space<vmem>>, vector<2x16x15x128xbf16>
    %c0_40 = arith.constant 0 : index
    %c0_41 = arith.constant 0 : index
    %c1_42 = arith.constant 1 : index
    %c384 = arith.constant 384 : index
    %19 = vector.load %arg15[%c0_40, %c0_41, %c1_42, %c384] : memref<2x16x16x1152xbf16, #tpu.memory_space<vmem>>, vector<2x16x15x128xbf16>
    tpu.vector_store %arg15[%c0_40, %c0_41, %c1_42, %c384], %18 {strides = array<i32>} : memref<2x16x16x1152xbf16, #tpu.memory_space<vmem>>, vector<2x16x15x128xbf16>,
    %c0_43 = arith.constant 0 : index
    %c0_44 = arith.constant 0 : index
    %c0_45 = arith.constant 0 : index
    %c0_46 = arith.constant 0 : index
    %20 = vector.load %arg16[%c0_43, %c0_44, %c0_45, %c0_46] : memref<2x16x16x128xbf16, #tpu.memory_space<vmem>>, vector<2x16x16x128xbf16>
    %c0_47 = arith.constant 0 : index
    %c0_48 = arith.constant 0 : index
    %c0_49 = arith.constant 0 : index
    %c512 = arith.constant 512 : index
    %21 = vector.load %arg15[%c0_47, %c0_48, %c0_49, %c512] : memref<2x16x16x1152xbf16, #tpu.memory_space<vmem>>, vector<2x16x16x128xbf16>
    tpu.vector_store %arg15[%c0_47, %c0_48, %c0_49, %c512], %20 {strides = array<i32>} : memref<2x16x16x1152xbf16, #tpu.memory_space<vmem>>, vector<2x16x16x128xbf16>,
    %c0_50 = arith.constant 0 : index
    %c0_51 = arith.constant 0 : index
    %c1_52 = arith.constant 1 : index
    %c0_53 = arith.constant 0 : index
    %22 = vector.load %arg16[%c0_50, %c0_51, %c1_52, %c0_53] : memref<2x16x16x128xbf16, #tpu.memory_space<vmem>>, vector<2x16x15x128xbf16>
    %c0_54 = arith.constant 0 : index
    %c0_55 = arith.constant 0 : index
    %c0_56 = arith.constant 0 : index
    %c640 = arith.constant 640 : index
    %23 = vector.load %arg15[%c0_54, %c0_55, %c0_56, %c640] : memref<2x16x16x1152xbf16, #tpu.memory_space<vmem>>, vector<2x16x15x128xbf16>
    tpu.vector_store %arg15[%c0_54, %c0_55, %c0_56, %c640], %22 {strides = array<i32>} : memref<2x16x16x1152xbf16, #tpu.memory_space<vmem>>, vector<2x16x15x128xbf16>,
    %c0_57 = arith.constant 0 : index
    %c1_58 = arith.constant 1 : index
    %c0_59 = arith.constant 0 : index
    %c0_60 = arith.constant 0 : index
    %24 = vector.load %arg16[%c0_57, %c1_58, %c0_59, %c0_60] : memref<2x16x16x128xbf16, #tpu.memory_space<vmem>>, vector<2x15x15x128xbf16>
    %c0_61 = arith.constant 0 : index
    %c0_62 = arith.constant 0 : index
    %c1_63 = arith.constant 1 : index
    %c768 = arith.constant 768 : index
    %25 = vector.load %arg15[%c0_61, %c0_62, %c1_63, %c768] : memref<2x16x16x1152xbf16, #tpu.memory_space<vmem>>, vector<2x15x15x128xbf16>
    tpu.vector_store %arg15[%c0_61, %c0_62, %c1_63, %c768], %24 {strides = array<i32>} : memref<2x16x16x1152xbf16, #tpu.memory_space<vmem>>, vector<2x15x15x128xbf16>,
    %c0_64 = arith.constant 0 : index
    %c1_65 = arith.constant 1 : index
    %c0_66 = arith.constant 0 : index
    %c0_67 = arith.constant 0 : index
    %26 = vector.load %arg16[%c0_64, %c1_65, %c0_66, %c0_67] : memref<2x16x16x128xbf16, #tpu.memory_space<vmem>>, vector<2x15x16x128xbf16>
    %c0_68 = arith.constant 0 : index
    %c0_69 = arith.constant 0 : index
    %c0_70 = arith.constant 0 : index
    %c896 = arith.constant 896 : index
    %27 = vector.load %arg15[%c0_68, %c0_69, %c0_70, %c896] : memref<2x16x16x1152xbf16, #tpu.memory_space<vmem>>, vector<2x15x16x128xbf16>
    tpu.vector_store %arg15[%c0_68, %c0_69, %c0_70, %c896], %26 {strides = array<i32>} : memref<2x16x16x1152xbf16, #tpu.memory_space<vmem>>, vector<2x15x16x128xbf16>,
    %c0_71 = arith.constant 0 : index
    %c1_72 = arith.constant 1 : index
    %c1_73 = arith.constant 1 : index
    %c0_74 = arith.constant 0 : index
    %28 = vector.load %arg16[%c0_71, %c1_72, %c1_73, %c0_74] : memref<2x16x16x128xbf16, #tpu.memory_space<vmem>>, vector<2x15x15x128xbf16>
    %c0_75 = arith.constant 0 : index
    %c0_76 = arith.constant 0 : index
    %c0_77 = arith.constant 0 : index
    %c1024 = arith.constant 1024 : index
    %29 = vector.load %arg15[%c0_75, %c0_76, %c0_77, %c1024] : memref<2x16x16x1152xbf16, #tpu.memory_space<vmem>>, vector<2x15x15x128xbf16>
    tpu.vector_store %arg15[%c0_75, %c0_76, %c0_77, %c1024], %28 {strides = array<i32>} : memref<2x16x16x1152xbf16, #tpu.memory_space<vmem>>, vector<2x15x15x128xbf16>,
    %c0_78 = arith.constant 0 : index
    %c0_79 = arith.constant 0 : index
    %c0_80 = arith.constant 0 : index
    %c0_81 = arith.constant 0 : index
    %30 = vector.load %arg15[%c0_78, %c0_79, %c0_80, %c0_81] : memref<2x16x16x1152xbf16, #tpu.memory_space<vmem>>, vector<2x16x16x1152xbf16>
    %31 = vector.shape_cast %30 : vector<2x16x16x1152xbf16> to vector<512x1152xbf16>
    %c0_82 = arith.constant 0 : index
    %c0_83 = arith.constant 0 : index
    %32 = vector.load %arg4[%c0_82, %c0_83] : memref<1152x128xbf16, #tpu.memory_space<vmem>>, vector<1152x128xbf16>
    %cst_84 = arith.constant dense<0.000000e+00> : vector<512x128xf32>
    %33 = tpu.matmul %31, %32, %cst_84 {dimension_numbers = #tpu.dot_dimension_numbers<[1], [0], [0], [1], [0, 0, 1, 1], [], []>} : vector<512x1152xbf16>, vector<1152x128xbf16>, vector<512x128xf32> -> vector<512x128xf32>
    %c0_85 = arith.constant 0 : index
    %c0_86 = arith.constant 0 : index
    %34 = vector.load %arg5[%c0_85, %c0_86] : memref<1x128xf32, #tpu.memory_space<vmem>>, vector<1x128xf32>
    %35 = vector.broadcast %34 : vector<1x128xf32> to vector<512x128xf32>
    %36 = arith.addf %33, %35 : vector<512x128xf32>
    %cst_87 = arith.constant dense<0.000000e+00> : vector<8x128xf32>
    %37 = tpu.matmul %0, %36, %cst_87 {dimension_numbers = #tpu.dot_dimension_numbers<[1], [0], [0], [1], [0, 0, 1, 1], [], []>} : vector<8x512xf32>, vector<512x128xf32>, vector<8x128xf32> -> vector<8x128xf32>
    %38 = vector.extract_strided_slice %37 {offsets = [0, 0], sizes = [1, 128], strides = [1, 1]} : vector<8x128xf32> to vector<1x128xf32>
    %39 = arith.mulf %36, %36 : vector<512x128xf32>
    %cst_88 = arith.constant dense<0.000000e+00> : vector<8x128xf32>
    %40 = tpu.matmul %0, %39, %cst_88 {dimension_numbers = #tpu.dot_dimension_numbers<[1], [0], [0], [1], [0, 0, 1, 1], [], []>} : vector<8x512xf32>, vector<512x128xf32>, vector<8x128xf32> -> vector<8x128xf32>
    %41 = vector.extract_strided_slice %40 {offsets = [0, 0], sizes = [1, 128], strides = [1, 1]} : vector<8x128xf32> to vector<1x128xf32>
    %42 = arith.mulf %38, %38 : vector<1x128xf32>
    %43 = arith.subf %41, %42 : vector<1x128xf32>
    %cst_89 = arith.constant 9.99999974E-6 : f32
    %44 = vector.broadcast %cst_89 : f32 to vector<1x128xf32>
    %45 = arith.addf %43, %44 : vector<1x128xf32>
    %46 = math.rsqrt %45 : vector<1x128xf32>
    %47 = vector.broadcast %38 : vector<1x128xf32> to vector<512x128xf32>
    %48 = arith.subf %36, %47 : vector<512x128xf32>
    %c0_90 = arith.constant 0 : index
    %c0_91 = arith.constant 0 : index
    %49 = vector.load %arg6[%c0_90, %c0_91] : memref<1x128xf32, #tpu.memory_space<vmem>>, vector<1x128xf32>
    %50 = arith.mulf %46, %49 : vector<1x128xf32>
    %51 = vector.broadcast %50 : vector<1x128xf32> to vector<512x128xf32>
    %52 = arith.mulf %48, %51 : vector<512x128xf32>
    %c0_92 = arith.constant 0 : index
    %c0_93 = arith.constant 0 : index
    %53 = vector.load %arg7[%c0_92, %c0_93] : memref<1x128xf32, #tpu.memory_space<vmem>>, vector<1x128xf32>
    %54 = vector.broadcast %53 : vector<1x128xf32> to vector<512x128xf32>
    %55 = arith.addf %52, %54 : vector<512x128xf32>
    %cst_94 = arith.constant 0.000000e+00 : f32
    %56 = vector.broadcast %cst_94 : f32 to vector<512x128xf32>
    %57 = arith.maximumf %55, %56 : vector<512x128xf32>
    %58 = arith.truncf %57 : vector<512x128xf32> to vector<512x128xbf16>
    %59 = vector.shape_cast %58 : vector<512x128xbf16> to vector<2x16x16x128xbf16>
    %c0_95 = arith.constant 0 : index
    %c0_96 = arith.constant 0 : index
    %c0_97 = arith.constant 0 : index
    %c0_98 = arith.constant 0 : index
    %60 = vector.load %arg16[%c0_95, %c0_96, %c0_97, %c0_98] : memref<2x16x16x128xbf16, #tpu.memory_space<vmem>>, vector<2x16x16x128xbf16>
    tpu.vector_store %arg16[%c0_95, %c0_96, %c0_97, %c0_98], %59 {strides = array<i32>} : memref<2x16x16x128xbf16, #tpu.memory_space<vmem>>, vector<2x16x16x128xbf16>,
    %c0_99 = arith.constant 0 : index
    %c0_100 = arith.constant 0 : index
    %c0_101 = arith.constant 0 : index
    %c0_102 = arith.constant 0 : index
    %61 = vector.load %arg16[%c0_99, %c0_100, %c0_101, %c0_102] : memref<2x16x16x128xbf16, #tpu.memory_space<vmem>>, vector<2x15x15x128xbf16>
    %c0_103 = arith.constant 0 : index
    %c1_104 = arith.constant 1 : index
    %c1_105 = arith.constant 1 : index
    %c0_106 = arith.constant 0 : index
    %62 = vector.load %arg15[%c0_103, %c1_104, %c1_105, %c0_106] : memref<2x16x16x1152xbf16, #tpu.memory_space<vmem>>, vector<2x15x15x128xbf16>
    tpu.vector_store %arg15[%c0_103, %c1_104, %c1_105, %c0_106], %61 {strides = array<i32>} : memref<2x16x16x1152xbf16, #tpu.memory_space<vmem>>, vector<2x15x15x128xbf16>,
    %c0_107 = arith.constant 0 : index
    %c0_108 = arith.constant 0 : index
    %c0_109 = arith.constant 0 : index
    %c0_110 = arith.constant 0 : index
    %63 = vector.load %arg16[%c0_107, %c0_108, %c0_109, %c0_110] : memref<2x16x16x128xbf16, #tpu.memory_space<vmem>>, vector<2x15x16x128xbf16>
    %c0_111 = arith.constant 0 : index
    %c1_112 = arith.constant 1 : index
    %c0_113 = arith.constant 0 : index
    %c128_114 = arith.constant 128 : index
    %64 = vector.load %arg15[%c0_111, %c1_112, %c0_113, %c128_114] : memref<2x16x16x1152xbf16, #tpu.memory_space<vmem>>, vector<2x15x16x128xbf16>
    tpu.vector_store %arg15[%c0_111, %c1_112, %c0_113, %c128_114], %63 {strides = array<i32>} : memref<2x16x16x1152xbf16, #tpu.memory_space<vmem>>, vector<2x15x16x128xbf16>,
    %c0_115 = arith.constant 0 : index
    %c0_116 = arith.constant 0 : index
    %c1_117 = arith.constant 1 : index
    %c0_118 = arith.constant 0 : index
    %65 = vector.load %arg16[%c0_115, %c0_116, %c1_117, %c0_118] : memref<2x16x16x128xbf16, #tpu.memory_space<vmem>>, vector<2x15x15x128xbf16>
    %c0_119 = arith.constant 0 : index
    %c1_120 = arith.constant 1 : index
    %c0_121 = arith.constant 0 : index
    %c256_122 = arith.constant 256 : index
    %66 = vector.load %arg15[%c0_119, %c1_120, %c0_121, %c256_122] : memref<2x16x16x1152xbf16, #tpu.memory_space<vmem>>, vector<2x15x15x128xbf16>
    tpu.vector_store %arg15[%c0_119, %c1_120, %c0_121, %c256_122], %65 {strides = array<i32>} : memref<2x16x16x1152xbf16, #tpu.memory_space<vmem>>, vector<2x15x15x128xbf16>,
    %c0_123 = arith.constant 0 : index
    %c0_124 = arith.constant 0 : index
    %c0_125 = arith.constant 0 : index
    %c0_126 = arith.constant 0 : index
    %67 = vector.load %arg16[%c0_123, %c0_124, %c0_125, %c0_126] : memref<2x16x16x128xbf16, #tpu.memory_space<vmem>>, vector<2x16x15x128xbf16>
    %c0_127 = arith.constant 0 : index
    %c0_128 = arith.constant 0 : index
    %c1_129 = arith.constant 1 : index
    %c384_130 = arith.constant 384 : index
    %68 = vector.load %arg15[%c0_127, %c0_128, %c1_129, %c384_130] : memref<2x16x16x1152xbf16, #tpu.memory_space<vmem>>, vector<2x16x15x128xbf16>
    tpu.vector_store %arg15[%c0_127, %c0_128, %c1_129, %c384_130], %67 {strides = array<i32>} : memref<2x16x16x1152xbf16, #tpu.memory_space<vmem>>, vector<2x16x15x128xbf16>,
    %c0_131 = arith.constant 0 : index
    %c0_132 = arith.constant 0 : index
    %c0_133 = arith.constant 0 : index
    %c0_134 = arith.constant 0 : index
    %69 = vector.load %arg16[%c0_131, %c0_132, %c0_133, %c0_134] : memref<2x16x16x128xbf16, #tpu.memory_space<vmem>>, vector<2x16x16x128xbf16>
    %c0_135 = arith.constant 0 : index
    %c0_136 = arith.constant 0 : index
    %c0_137 = arith.constant 0 : index
    %c512_138 = arith.constant 512 : index
    %70 = vector.load %arg15[%c0_135, %c0_136, %c0_137, %c512_138] : memref<2x16x16x1152xbf16, #tpu.memory_space<vmem>>, vector<2x16x16x128xbf16>
    tpu.vector_store %arg15[%c0_135, %c0_136, %c0_137, %c512_138], %69 {strides = array<i32>} : memref<2x16x16x1152xbf16, #tpu.memory_space<vmem>>, vector<2x16x16x128xbf16>,
    %c0_139 = arith.constant 0 : index
    %c0_140 = arith.constant 0 : index
    %c1_141 = arith.constant 1 : index
    %c0_142 = arith.constant 0 : index
    %71 = vector.load %arg16[%c0_139, %c0_140, %c1_141, %c0_142] : memref<2x16x16x128xbf16, #tpu.memory_space<vmem>>, vector<2x16x15x128xbf16>
    %c0_143 = arith.constant 0 : index
    %c0_144 = arith.constant 0 : index
    %c0_145 = arith.constant 0 : index
    %c640_146 = arith.constant 640 : index
    %72 = vector.load %arg15[%c0_143, %c0_144, %c0_145, %c640_146] : memref<2x16x16x1152xbf16, #tpu.memory_space<vmem>>, vector<2x16x15x128xbf16>
    tpu.vector_store %arg15[%c0_143, %c0_144, %c0_145, %c640_146], %71 {strides = array<i32>} : memref<2x16x16x1152xbf16, #tpu.memory_space<vmem>>, vector<2x16x15x128xbf16>,
    %c0_147 = arith.constant 0 : index
    %c1_148 = arith.constant 1 : index
    %c0_149 = arith.constant 0 : index
    %c0_150 = arith.constant 0 : index
    %73 = vector.load %arg16[%c0_147, %c1_148, %c0_149, %c0_150] : memref<2x16x16x128xbf16, #tpu.memory_space<vmem>>, vector<2x15x15x128xbf16>
    %c0_151 = arith.constant 0 : index
    %c0_152 = arith.constant 0 : index
    %c1_153 = arith.constant 1 : index
    %c768_154 = arith.constant 768 : index
    %74 = vector.load %arg15[%c0_151, %c0_152, %c1_153, %c768_154] : memref<2x16x16x1152xbf16, #tpu.memory_space<vmem>>, vector<2x15x15x128xbf16>
    tpu.vector_store %arg15[%c0_151, %c0_152, %c1_153, %c768_154], %73 {strides = array<i32>} : memref<2x16x16x1152xbf16, #tpu.memory_space<vmem>>, vector<2x15x15x128xbf16>,
    %c0_155 = arith.constant 0 : index
    %c1_156 = arith.constant 1 : index
    %c0_157 = arith.constant 0 : index
    %c0_158 = arith.constant 0 : index
    %75 = vector.load %arg16[%c0_155, %c1_156, %c0_157, %c0_158] : memref<2x16x16x128xbf16, #tpu.memory_space<vmem>>, vector<2x15x16x128xbf16>
    %c0_159 = arith.constant 0 : index
    %c0_160 = arith.constant 0 : index
    %c0_161 = arith.constant 0 : index
    %c896_162 = arith.constant 896 : index
    %76 = vector.load %arg15[%c0_159, %c0_160, %c0_161, %c896_162] : memref<2x16x16x1152xbf16, #tpu.memory_space<vmem>>, vector<2x15x16x128xbf16>
    tpu.vector_store %arg15[%c0_159, %c0_160, %c0_161, %c896_162], %75 {strides = array<i32>} : memref<2x16x16x1152xbf16, #tpu.memory_space<vmem>>, vector<2x15x16x128xbf16>,
    %c0_163 = arith.constant 0 : index
    %c1_164 = arith.constant 1 : index
    %c1_165 = arith.constant 1 : index
    %c0_166 = arith.constant 0 : index
    %77 = vector.load %arg16[%c0_163, %c1_164, %c1_165, %c0_166] : memref<2x16x16x128xbf16, #tpu.memory_space<vmem>>, vector<2x15x15x128xbf16>
    %c0_167 = arith.constant 0 : index
    %c0_168 = arith.constant 0 : index
    %c0_169 = arith.constant 0 : index
    %c1024_170 = arith.constant 1024 : index
    %78 = vector.load %arg15[%c0_167, %c0_168, %c0_169, %c1024_170] : memref<2x16x16x1152xbf16, #tpu.memory_space<vmem>>, vector<2x15x15x128xbf16>
    tpu.vector_store %arg15[%c0_167, %c0_168, %c0_169, %c1024_170], %77 {strides = array<i32>} : memref<2x16x16x1152xbf16, #tpu.memory_space<vmem>>, vector<2x15x15x128xbf16>,
    %c0_171 = arith.constant 0 : index
    %c0_172 = arith.constant 0 : index
    %c0_173 = arith.constant 0 : index
    %c0_174 = arith.constant 0 : index
    %79 = vector.load %arg15[%c0_171, %c0_172, %c0_173, %c0_174] : memref<2x16x16x1152xbf16, #tpu.memory_space<vmem>>, vector<2x16x16x1152xbf16>
    %80 = vector.shape_cast %79 : vector<2x16x16x1152xbf16> to vector<512x1152xbf16>
    %c0_175 = arith.constant 0 : index
    %c0_176 = arith.constant 0 : index
    %81 = vector.load %arg8[%c0_175, %c0_176] : memref<1152x128xbf16, #tpu.memory_space<vmem>>, vector<1152x128xbf16>
    %cst_177 = arith.constant dense<0.000000e+00> : vector<512x128xf32>
    %82 = tpu.matmul %80, %81, %cst_177 {dimension_numbers = #tpu.dot_dimension_numbers<[1], [0], [0], [1], [0, 0, 1, 1], [], []>} : vector<512x1152xbf16>, vector<1152x128xbf16>, vector<512x128xf32> -> vector<512x128xf32>
    %c0_178 = arith.constant 0 : index
    %c0_179 = arith.constant 0 : index
    %83 = vector.load %arg9[%c0_178, %c0_179] : memref<1x128xf32, #tpu.memory_space<vmem>>, vector<1x128xf32>
    %84 = vector.broadcast %83 : vector<1x128xf32> to vector<512x128xf32>
    %85 = arith.addf %82, %84 : vector<512x128xf32>
    %cst_180 = arith.constant dense<0.000000e+00> : vector<8x128xf32>
    %86 = tpu.matmul %0, %85, %cst_180 {dimension_numbers = #tpu.dot_dimension_numbers<[1], [0], [0], [1], [0, 0, 1, 1], [], []>} : vector<8x512xf32>, vector<512x128xf32>, vector<8x128xf32> -> vector<8x128xf32>
    %87 = vector.extract_strided_slice %86 {offsets = [0, 0], sizes = [1, 128], strides = [1, 1]} : vector<8x128xf32> to vector<1x128xf32>
    %88 = arith.mulf %85, %85 : vector<512x128xf32>
    %cst_181 = arith.constant dense<0.000000e+00> : vector<8x128xf32>
    %89 = tpu.matmul %0, %88, %cst_181 {dimension_numbers = #tpu.dot_dimension_numbers<[1], [0], [0], [1], [0, 0, 1, 1], [], []>} : vector<8x512xf32>, vector<512x128xf32>, vector<8x128xf32> -> vector<8x128xf32>
    %90 = vector.extract_strided_slice %89 {offsets = [0, 0], sizes = [1, 128], strides = [1, 1]} : vector<8x128xf32> to vector<1x128xf32>
    %91 = arith.mulf %87, %87 : vector<1x128xf32>
    %92 = arith.subf %90, %91 : vector<1x128xf32>
    %cst_182 = arith.constant 9.99999974E-6 : f32
    %93 = vector.broadcast %cst_182 : f32 to vector<1x128xf32>
    %94 = arith.addf %92, %93 : vector<1x128xf32>
    %95 = math.rsqrt %94 : vector<1x128xf32>
    %96 = vector.broadcast %87 : vector<1x128xf32> to vector<512x128xf32>
    %97 = arith.subf %85, %96 : vector<512x128xf32>
    %c0_183 = arith.constant 0 : index
    %c0_184 = arith.constant 0 : index
    %98 = vector.load %arg10[%c0_183, %c0_184] : memref<1x128xf32, #tpu.memory_space<vmem>>, vector<1x128xf32>
    %99 = arith.mulf %95, %98 : vector<1x128xf32>
    %100 = vector.broadcast %99 : vector<1x128xf32> to vector<512x128xf32>
    %101 = arith.mulf %97, %100 : vector<512x128xf32>
    %c0_185 = arith.constant 0 : index
    %c0_186 = arith.constant 0 : index
    %102 = vector.load %arg11[%c0_185, %c0_186] : memref<1x128xf32, #tpu.memory_space<vmem>>, vector<1x128xf32>
    %103 = vector.broadcast %102 : vector<1x128xf32> to vector<512x128xf32>
    %104 = arith.addf %101, %103 : vector<512x128xf32>
    %cst_187 = arith.constant 0.000000e+00 : f32
    %105 = vector.broadcast %cst_187 : f32 to vector<512x128xf32>
    %106 = arith.maximumf %104, %105 : vector<512x128xf32>
    %107 = arith.truncf %106 : vector<512x128xf32> to vector<512x128xbf16>
    %108 = vector.shape_cast %107 : vector<512x128xbf16> to vector<2x16x16x128xbf16>
    %c0_188 = arith.constant 0 : index
    %c0_189 = arith.constant 0 : index
    %c0_190 = arith.constant 0 : index
    %c0_191 = arith.constant 0 : index
    %109 = vector.load %arg16[%c0_188, %c0_189, %c0_190, %c0_191] : memref<2x16x16x128xbf16, #tpu.memory_space<vmem>>, vector<2x16x16x128xbf16>
    tpu.vector_store %arg16[%c0_188, %c0_189, %c0_190, %c0_191], %108 {strides = array<i32>} : memref<2x16x16x128xbf16, #tpu.memory_space<vmem>>, vector<2x16x16x128xbf16>,
    %c0_192 = arith.constant 0 : index
    %c0_193 = arith.constant 0 : index
    %c0_194 = arith.constant 0 : index
    %c0_195 = arith.constant 0 : index
    %110 = vector.load %arg16[%c0_192, %c0_193, %c0_194, %c0_195] : memref<2x16x16x128xbf16, #tpu.memory_space<vmem>>, vector<2x15x15x128xbf16>
    %c0_196 = arith.constant 0 : index
    %c1_197 = arith.constant 1 : index
    %c1_198 = arith.constant 1 : index
    %c0_199 = arith.constant 0 : index
    %111 = vector.load %arg15[%c0_196, %c1_197, %c1_198, %c0_199] : memref<2x16x16x1152xbf16, #tpu.memory_space<vmem>>, vector<2x15x15x128xbf16>
    tpu.vector_store %arg15[%c0_196, %c1_197, %c1_198, %c0_199], %110 {strides = array<i32>} : memref<2x16x16x1152xbf16, #tpu.memory_space<vmem>>, vector<2x15x15x128xbf16>,
    %c0_200 = arith.constant 0 : index
    %c0_201 = arith.constant 0 : index
    %c0_202 = arith.constant 0 : index
    %c0_203 = arith.constant 0 : index
    %112 = vector.load %arg16[%c0_200, %c0_201, %c0_202, %c0_203] : memref<2x16x16x128xbf16, #tpu.memory_space<vmem>>, vector<2x15x16x128xbf16>
    %c0_204 = arith.constant 0 : index
    %c1_205 = arith.constant 1 : index
    %c0_206 = arith.constant 0 : index
    %c128_207 = arith.constant 128 : index
    %113 = vector.load %arg15[%c0_204, %c1_205, %c0_206, %c128_207] : memref<2x16x16x1152xbf16, #tpu.memory_space<vmem>>, vector<2x15x16x128xbf16>
    tpu.vector_store %arg15[%c0_204, %c1_205, %c0_206, %c128_207], %112 {strides = array<i32>} : memref<2x16x16x1152xbf16, #tpu.memory_space<vmem>>, vector<2x15x16x128xbf16>,
    %c0_208 = arith.constant 0 : index
    %c0_209 = arith.constant 0 : index
    %c1_210 = arith.constant 1 : index
    %c0_211 = arith.constant 0 : index
    %114 = vector.load %arg16[%c0_208, %c0_209, %c1_210, %c0_211] : memref<2x16x16x128xbf16, #tpu.memory_space<vmem>>, vector<2x15x15x128xbf16>
    %c0_212 = arith.constant 0 : index
    %c1_213 = arith.constant 1 : index
    %c0_214 = arith.constant 0 : index
    %c256_215 = arith.constant 256 : index
    %115 = vector.load %arg15[%c0_212, %c1_213, %c0_214, %c256_215] : memref<2x16x16x1152xbf16, #tpu.memory_space<vmem>>, vector<2x15x15x128xbf16>
    tpu.vector_store %arg15[%c0_212, %c1_213, %c0_214, %c256_215], %114 {strides = array<i32>} : memref<2x16x16x1152xbf16, #tpu.memory_space<vmem>>, vector<2x15x15x128xbf16>,
    %c0_216 = arith.constant 0 : index
    %c0_217 = arith.constant 0 : index
    %c0_218 = arith.constant 0 : index
    %c0_219 = arith.constant 0 : index
    %116 = vector.load %arg16[%c0_216, %c0_217, %c0_218, %c0_219] : memref<2x16x16x128xbf16, #tpu.memory_space<vmem>>, vector<2x16x15x128xbf16>
    %c0_220 = arith.constant 0 : index
    %c0_221 = arith.constant 0 : index
    %c1_222 = arith.constant 1 : index
    %c384_223 = arith.constant 384 : index
    %117 = vector.load %arg15[%c0_220, %c0_221, %c1_222, %c384_223] : memref<2x16x16x1152xbf16, #tpu.memory_space<vmem>>, vector<2x16x15x128xbf16>
    tpu.vector_store %arg15[%c0_220, %c0_221, %c1_222, %c384_223], %116 {strides = array<i32>} : memref<2x16x16x1152xbf16, #tpu.memory_space<vmem>>, vector<2x16x15x128xbf16>,
    %c0_224 = arith.constant 0 : index
    %c0_225 = arith.constant 0 : index
    %c0_226 = arith.constant 0 : index
    %c0_227 = arith.constant 0 : index
    %118 = vector.load %arg16[%c0_224, %c0_225, %c0_226, %c0_227] : memref<2x16x16x128xbf16, #tpu.memory_space<vmem>>, vector<2x16x16x128xbf16>
    %c0_228 = arith.constant 0 : index
    %c0_229 = arith.constant 0 : index
    %c0_230 = arith.constant 0 : index
    %c512_231 = arith.constant 512 : index
    %119 = vector.load %arg15[%c0_228, %c0_229, %c0_230, %c512_231] : memref<2x16x16x1152xbf16, #tpu.memory_space<vmem>>, vector<2x16x16x128xbf16>
    tpu.vector_store %arg15[%c0_228, %c0_229, %c0_230, %c512_231], %118 {strides = array<i32>} : memref<2x16x16x1152xbf16, #tpu.memory_space<vmem>>, vector<2x16x16x128xbf16>,
    %c0_232 = arith.constant 0 : index
    %c0_233 = arith.constant 0 : index
    %c1_234 = arith.constant 1 : index
    %c0_235 = arith.constant 0 : index
    %120 = vector.load %arg16[%c0_232, %c0_233, %c1_234, %c0_235] : memref<2x16x16x128xbf16, #tpu.memory_space<vmem>>, vector<2x16x15x128xbf16>
    %c0_236 = arith.constant 0 : index
    %c0_237 = arith.constant 0 : index
    %c0_238 = arith.constant 0 : index
    %c640_239 = arith.constant 640 : index
    %121 = vector.load %arg15[%c0_236, %c0_237, %c0_238, %c640_239] : memref<2x16x16x1152xbf16, #tpu.memory_space<vmem>>, vector<2x16x15x128xbf16>
    tpu.vector_store %arg15[%c0_236, %c0_237, %c0_238, %c640_239], %120 {strides = array<i32>} : memref<2x16x16x1152xbf16, #tpu.memory_space<vmem>>, vector<2x16x15x128xbf16>,
    %c0_240 = arith.constant 0 : index
    %c1_241 = arith.constant 1 : index
    %c0_242 = arith.constant 0 : index
    %c0_243 = arith.constant 0 : index
    %122 = vector.load %arg16[%c0_240, %c1_241, %c0_242, %c0_243] : memref<2x16x16x128xbf16, #tpu.memory_space<vmem>>, vector<2x15x15x128xbf16>
    %c0_244 = arith.constant 0 : index
    %c0_245 = arith.constant 0 : index
    %c1_246 = arith.constant 1 : index
    %c768_247 = arith.constant 768 : index
    %123 = vector.load %arg15[%c0_244, %c0_245, %c1_246, %c768_247] : memref<2x16x16x1152xbf16, #tpu.memory_space<vmem>>, vector<2x15x15x128xbf16>
    tpu.vector_store %arg15[%c0_244, %c0_245, %c1_246, %c768_247], %122 {strides = array<i32>} : memref<2x16x16x1152xbf16, #tpu.memory_space<vmem>>, vector<2x15x15x128xbf16>,
    %c0_248 = arith.constant 0 : index
    %c1_249 = arith.constant 1 : index
    %c0_250 = arith.constant 0 : index
    %c0_251 = arith.constant 0 : index
    %124 = vector.load %arg16[%c0_248, %c1_249, %c0_250, %c0_251] : memref<2x16x16x128xbf16, #tpu.memory_space<vmem>>, vector<2x15x16x128xbf16>
    %c0_252 = arith.constant 0 : index
    %c0_253 = arith.constant 0 : index
    %c0_254 = arith.constant 0 : index
    %c896_255 = arith.constant 896 : index
    %125 = vector.load %arg15[%c0_252, %c0_253, %c0_254, %c896_255] : memref<2x16x16x1152xbf16, #tpu.memory_space<vmem>>, vector<2x15x16x128xbf16>
    tpu.vector_store %arg15[%c0_252, %c0_253, %c0_254, %c896_255], %124 {strides = array<i32>} : memref<2x16x16x1152xbf16, #tpu.memory_space<vmem>>, vector<2x15x16x128xbf16>,
    %c0_256 = arith.constant 0 : index
    %c1_257 = arith.constant 1 : index
    %c1_258 = arith.constant 1 : index
    %c0_259 = arith.constant 0 : index
    %126 = vector.load %arg16[%c0_256, %c1_257, %c1_258, %c0_259] : memref<2x16x16x128xbf16, #tpu.memory_space<vmem>>, vector<2x15x15x128xbf16>
    %c0_260 = arith.constant 0 : index
    %c0_261 = arith.constant 0 : index
    %c0_262 = arith.constant 0 : index
    %c1024_263 = arith.constant 1024 : index
    %127 = vector.load %arg15[%c0_260, %c0_261, %c0_262, %c1024_263] : memref<2x16x16x1152xbf16, #tpu.memory_space<vmem>>, vector<2x15x15x128xbf16>
    tpu.vector_store %arg15[%c0_260, %c0_261, %c0_262, %c1024_263], %126 {strides = array<i32>} : memref<2x16x16x1152xbf16, #tpu.memory_space<vmem>>, vector<2x15x15x128xbf16>,
    %c0_264 = arith.constant 0 : index
    %c0_265 = arith.constant 0 : index
    %c0_266 = arith.constant 0 : index
    %c0_267 = arith.constant 0 : index
    %128 = vector.load %arg15[%c0_264, %c0_265, %c0_266, %c0_267] : memref<2x16x16x1152xbf16, #tpu.memory_space<vmem>>, vector<2x16x16x1152xbf16>
    %129 = vector.shape_cast %128 : vector<2x16x16x1152xbf16> to vector<512x1152xbf16>
    %c0_268 = arith.constant 0 : index
    %c0_269 = arith.constant 0 : index
    %130 = vector.load %arg12[%c0_268, %c0_269] : memref<1152x128xbf16, #tpu.memory_space<vmem>>, vector<1152x128xbf16>
    %cst_270 = arith.constant dense<0.000000e+00> : vector<512x128xf32>
    %131 = tpu.matmul %129, %130, %cst_270 {dimension_numbers = #tpu.dot_dimension_numbers<[1], [0], [0], [1], [0, 0, 1, 1], [], []>} : vector<512x1152xbf16>, vector<1152x128xbf16>, vector<512x128xf32> -> vector<512x128xf32>
    %c0_271 = arith.constant 0 : index
    %c0_272 = arith.constant 0 : index
    %132 = vector.load %arg13[%c0_271, %c0_272] : memref<1x128xf32, #tpu.memory_space<vmem>>, vector<1x128xf32>
    %133 = vector.broadcast %132 : vector<1x128xf32> to vector<512x128xf32>
    %134 = arith.addf %131, %133 : vector<512x128xf32>
    %135 = math.tanh %134 : vector<512x128xf32>
    %c0_273 = arith.constant 0 : index
    %c0_274 = arith.constant 0 : index
    %136 = vector.load %arg14[%c0_273, %c0_274] : memref<512x128xf32, #tpu.memory_space<vmem>>, vector<512x128xf32>
    tpu.vector_store %arg14[%c0_273, %c0_274], %135 {strides = array<i32>} : memref<512x128xf32, #tpu.memory_space<vmem>>, vector<512x128xf32>,
    return
  }
  func.func @transform_0(%arg0: i32) -> (i32, i32) {
    %c0_i32 = arith.constant 0 : i32
    %c0_i32_0 = arith.constant 0 : i32
    %c0_i32_1 = arith.constant 0 : i32
    return %c0_i32, %c0_i32_0 : i32, i32
  }
  func.func @transform_1(%arg0: i32) -> (i32, i32) {
    %c0_i32 = arith.constant 0 : i32
    %c0_i32_0 = arith.constant 0 : i32
    %c0_i32_1 = arith.constant 0 : i32
    return %c0_i32, %c0_i32_0 : i32, i32
  }
  func.func @transform_2(%arg0: i32) -> (i32, i32) {
    %c0_i32 = arith.constant 0 : i32
    %c0_i32_0 = arith.constant 0 : i32
    %c0_i32_1 = arith.constant 0 : i32
    return %c0_i32, %c0_i32_0 : i32, i32
  }
  func.func @transform_3(%arg0: i32) -> (i32, i32) {
    %c0_i32 = arith.constant 0 : i32
    %c0_i32_0 = arith.constant 0 : i32
    %c0_i32_1 = arith.constant 0 : i32
    return %c0_i32, %c0_i32_0 : i32, i32
  }
  func.func @transform_4(%arg0: i32) -> (i32, i32) {
    %c0_i32 = arith.constant 0 : i32
    %c0_i32_0 = arith.constant 0 : i32
    %c0_i32_1 = arith.constant 0 : i32
    return %c0_i32, %c0_i32_0 : i32, i32
  }
  func.func @transform_5(%arg0: i32) -> (i32, i32) {
    %c0_i32 = arith.constant 0 : i32
    %c0_i32_0 = arith.constant 0 : i32
    %c0_i32_1 = arith.constant 0 : i32
    return %c0_i32, %c0_i32_0 : i32, i32
  }
  func.func @transform_6(%arg0: i32) -> (i32, i32) {
    %c0_i32 = arith.constant 0 : i32
    %c0_i32_0 = arith.constant 0 : i32
    %c0_i32_1 = arith.constant 0 : i32
    return %c0_i32, %c0_i32_0 : i32, i32
  }
  func.func @transform_7(%arg0: i32) -> (i32, i32) {
    %c0_i32 = arith.constant 0 : i32
    %c0_i32_0 = arith.constant 0 : i32
    %c0_i32_1 = arith.constant 0 : i32
    return %c0_i32, %c0_i32_0 : i32, i32
  }
  func.func @transform_8(%arg0: i32) -> (i32, i32) {
    %c0_i32 = arith.constant 0 : i32
    %c0_i32_0 = arith.constant 0 : i32
    %c0_i32_1 = arith.constant 0 : i32
    return %c0_i32, %c0_i32_0 : i32, i32
  }
  func.func @transform_9(%arg0: i32) -> (i32, i32) {
    %c0_i32 = arith.constant 0 : i32
    %c0_i32_0 = arith.constant 0 : i32
    %c0_i32_1 = arith.constant 0 : i32
    return %c0_i32, %c0_i32_0 : i32, i32
  }
  func.func @transform_10(%arg0: i32) -> (i32, i32) {
    %c0_i32 = arith.constant 0 : i32
    %c0_i32_0 = arith.constant 0 : i32
    %c0_i32_1 = arith.constant 0 : i32
    return %c0_i32, %c0_i32_0 : i32, i32
  }
  func.func @transform_11(%arg0: i32) -> (i32, i32) {
    %c0_i32 = arith.constant 0 : i32
    %c0_i32_0 = arith.constant 0 : i32
    %c0_i32_1 = arith.constant 0 : i32
    return %c0_i32, %c0_i32_0 : i32, i32
  }
  func.func @transform_12(%arg0: i32) -> (i32, i32) {
    %c0_i32 = arith.constant 0 : i32
    %c0_i32_0 = arith.constant 0 : i32
    %c0_i32_1 = arith.constant 0 : i32
    return %c0_i32, %c0_i32_0 : i32, i32
  }
  func.func @transform_13(%arg0: i32) -> (i32, i32) {
    %c0_i32 = arith.constant 0 : i32
    %c0_i32_0 = arith.constant 0 : i32
    %c0_i32_1 = arith.constant 0 : i32
    return %c0_i32, %c0_i32_0 : i32, i32
  }
}

</mosaic_0001>

<bundles_post_ra>
// kernel: estimate_forward.1
= control target key start
LH: loop header
LB: loop body
LE: loop exit
PB: predicated region body
PF: predicated region fallthrough
CT: control target
= control target key end

     0   :  { %v27215_v7 = vmov 0   ;;  %vm1284_vm0 = vcmask 1047552   ;;  %vm1285_vm1 = vsmask.f32 7938  ;;  %vm1707_vm3 = vsmask.f32 7424  ;;  %s27189_s1 = inlined_call_operand.vmem [shape: bf16[128,128], index: 1, kind: input, shape index: {}]   ;;  %s27190_s0 = inlined_call_operand.vmem [shape: bf16[512,128], index: 0, kind: input, shape index: {}]   ;;  %s27191_s3 = inlined_call_operand.vmem [shape: bf16[1152,128], index: 3, kind: input, shape index: {}]   ;;  %s27192_s2 = inlined_call_operand.vmem [shape: f32[1,128], index: 2, kind: input, shape index: {}]   ;;  %s27193_s4 = inlined_call_operand.vmem [shape: f32[1,128], index: 4, kind: input, shape index: {}]   ;;  %s27194_s7 = inlined_call_operand.vmem [shape: bf16[1152,128], index: 7, kind: input, shape index: {}]   ;;  %s27195_s5 = inlined_call_operand.vmem [shape: f32[1,128], index: 5, kind: input, shape index: {}]   ;;  %s27196_s6 = inlined_call_operand.vmem [shape: f32[1,128], index: 6, kind: input, shape index: {}]   ;;  %s27197_s8 = inlined_call_operand.vmem [shape: f32[1,128], index: 8, kind: input, shape index: {}]   ;;  %s27198_s11 = inlined_call_operand.vmem [shape: bf16[1152,128], index: 11, kind: input, shape index: {}]   ;;  %s27199_s9 = inlined_call_operand.vmem [shape: f32[1,128], index: 9, kind: input, shape index: {}]   ;;  %s27200_s10 = inlined_call_operand.vmem [shape: f32[1,128], index: 10, kind: input, shape index: {}]   ;;  %s27201_s12 = inlined_call_operand.vmem [shape: f32[1,128], index: 12, kind: input, shape index: {}]   ;;  %s27202_s13 = inlined_call_operand.vmem [shape: f32[512,128], index: 13, kind: output, shape index: {}]  }
   0x1   :  { %v19238_v0 = vld [vmem:[%s27189_s1] sm:$0xff]   ;;  %v19239_v1 = vld [vmem:[%s27189_s1 + $0x8] sm:$0xff]   ;;  %v19240_v2 = vld [vmem:[%s27189_s1 + $0x10] sm:$0xff]   ;;  %17924 = vmatprep.subr.bf16.mxu1 %v27215_v7 }
   0x2   :  { %17348 = vmatprep.subr.bf16.mxu0 %v19238_v0  ;;  %v19241_v3 = vld [vmem:[%s27189_s1 + $0x18] sm:$0xff]   ;;  %v19246_v4 = vld [vmem:[%s27190_s0] sm:$0xff]   ;;  %v19243_v6 = vld [vmem:[%s27189_s1 + $0x28] sm:$0xff]  }
   0x3   :  { %17349 = vmatpush3.bf16.msra.mxu0 %v19238_v0  ;;  %17364 = vmatprep.mubr.bf16.mxu0 %v19246_v4  ;;  %v19242_v5 = vld [vmem:[%s27189_s1 + $0x20] sm:$0xff]   ;;  %v19244_v8 = vld [vmem:[%s27189_s1 + $0x30] sm:$0xff]   ;;  %v19245_v9 = vld [vmem:[%s27189_s1 + $0x38] sm:$0xff]  }
   0x4   :  { %17350 = vmatprep.subr.bf16.mxu0 %v19239_v1  ;;  %v19247_v10 = vld [vmem:[%s27190_s0 + $0x8] sm:$0xff]   ;;  %v19248_v11 = vld [vmem:[%s27190_s0 + $0x10] sm:$0xff]   ;;  %v19249_v12 = vld [vmem:[%s27190_s0 + $0x18] sm:$0xff]  }
   0x5   :  { %v19276_v13 = vld [vmem:[%s27191_s3] sm:$0xff]   ;;  %v19277_v15 = vld [vmem:[%s27191_s3 + $0x8] sm:$0xff]   ;;  %v19280_v16 = vld [vmem:[%s27191_s3 + $0x10] sm:$0xff]  }
   0x6   :  { %v19250_v14 = vld [vmem:[%s27190_s0 + $0x20] sm:$0xff]   ;;  %v19251_v17 = vld [vmem:[%s27190_s0 + $0x28] sm:$0xff]   ;;  %v19252_v18 = vld [vmem:[%s27190_s0 + $0x30] sm:$0xff]  }
   0x7   :  { %17351 = vmatpush3.bf16.msra.mxu0 %v19239_v1  ;;  %v19281_v19 = vld [vmem:[%s27191_s3 + $0x18] sm:$0xff]   ;;  %v19282_v21 = vld [vmem:[%s27191_s3 + $0x20] sm:$0xff]   ;;  %v19283_v23 = vld [vmem:[%s27191_s3 + $0x28] sm:$0xff]  }
   0x8   :  { %17352 = vmatprep.subr.bf16.mxu0 %v19240_v2  ;;  %v19253_v20 = vld [vmem:[%s27190_s0 + $0x38] sm:$0xff]   ;;  %v19254_v22 = vld [vmem:[%s27190_s0 + $0x40] sm:$0xff]   ;;  %v19284_v24 = vld [vmem:[%s27191_s3 + $0x30] sm:$0xff]  }
   0x9   :  { %v19255_v25 = vld [vmem:[%s27190_s0 + $0x48] sm:$0xff]   ;;  %v19256_v26 = vld [vmem:[%s27190_s0 + $0x50] sm:$0xff]   ;;  %v19285_v27 = vld [vmem:[%s27191_s3 + $0x38] sm:$0xff]  }
   0xa   :  { %v19286_v28 = vld [vmem:[%s27191_s3 + $0x40] sm:$0xff]   ;;  %v19257_v29 = vld [vmem:[%s27190_s0 + $0x58] sm:$0xff]   ;;  %v19287_v31 = vld [vmem:[%s27191_s3 + $0x48] sm:$0xff]  }
   0xb   :  { %17353 = vmatpush3.bf16.msra.mxu0 %v19240_v2  ;;  %v19258_v30 = vld [vmem:[%s27190_s0 + $0x60] sm:$0xff]   ;;  %v19288_v32 = vld [vmem:[%s27191_s3 + $0x50] sm:$0xff]   ;;  %v19259_v33 = vld [vmem:[%s27190_s0 + $0x68] sm:$0xff]  }
   0xc   :  { %17354 = vmatprep.subr.bf16.mxu0 %v19241_v3  ;;  %v19260_v34 = vld [vmem:[%s27190_s0 + $0x70] sm:$0xff]   ;;  %v19289_v35 = vld [vmem:[%s27191_s3 + $0x58] sm:$0xff]   ;;  %v19290_v36 = vld [vmem:[%s27191_s3 + $0x60] sm:$0xff]  }
   0xd   :  { %v19261_v37 = vld [vmem:[%s27190_s0 + $0x78] sm:$0xff]   ;;  %v19262_v38 = vld [vmem:[%s27190_s0 + $0x80] sm:$0xff]   ;;  %v19291_v39 = vld [vmem:[%s27191_s3 + $0x68] sm:$0xff]  }
   0xe   :  { %v19263_v40 = vld [vmem:[%s27190_s0 + $0x88] sm:$0xff]   ;;  %v19264_v41 = vld [vmem:[%s27190_s0 + $0x90] sm:$0xff]   ;;  %v19265_v42 = vld [vmem:[%s27190_s0 + $0x98] sm:$0xff]  }
   0xf   :  { %17355 = vmatpush3.bf16.msra.mxu0 %v19241_v3  ;;  %v19266_v43 = vld [vmem:[%s27190_s0 + $0xa0] sm:$0xff]   ;;  %v19267_v44 = vld [vmem:[%s27190_s0 + $0xa8] sm:$0xff]   ;;  %v19268_v45 = vld [vmem:[%s27190_s0 + $0xb0] sm:$0xff]  }
  0x10   :  { %17356 = vmatprep.subr.bf16.mxu0 %v19242_v5  ;;  %v19292_v46 = vld [vmem:[%s27191_s3 + $0x70] sm:$0xff]   ;;  %v19269_v47 = vld [vmem:[%s27190_s0 + $0xb8] sm:$0xff]   ;;  %v19270_v48 = vld [vmem:[%s27190_s0 + $0xc0] sm:$0xff]  }
  0x11   :  { %v19293_v49 = vld [vmem:[%s27191_s3 + $0x78] sm:$0xff]   ;;  %v19271_v50 = vld [vmem:[%s27190_s0 + $0xc8] sm:$0xff]   ;;  %v19272_v51 = vld [vmem:[%s27190_s0 + $0xd0] sm:$0xff]  }
  0x12   :  { %v19273_v52 = vld [vmem:[%s27190_s0 + $0xd8] sm:$0xff]   ;;  %v19274_v53 = vld [vmem:[%s27190_s0 + $0xe0] sm:$0xff]   ;;  %v19275_v55 = vld [vmem:[%s27190_s0 + $0xe8] sm:$0xff]  }
  0x13   :  { %17357 = vmatpush3.bf16.msra.mxu0 %v19242_v5  ;;  %v19294_v54 = vld [vmem:[%s27191_s3 + $0x80] sm:$0xff]   ;;  %v19278_v56 = vld [vmem:[%s27190_s0 + $0xf0] sm:$0xff]   ;;  %v19295_v57 = vld [vmem:[%s27191_s3 + $0x88] sm:$0xff]  }
  0x14   :  { %17358 = vmatprep.subr.bf16.mxu0 %v19243_v6  ;;  %17940 = vmatpush1.bf16.msra.mxu1 %v19294_v54  ;;  %v19296_v58 = vld [vmem:[%s27191_s3 + $0x90] sm:$0xff]   ;;  %v19279_v59 = vld [vmem:[%s27190_s0 + $0xf8] sm:$0xff]   ;;  %v19298_v61 = vld [vmem:[%s27191_s3 + $0xa0] sm:$0xff]  }
  0x15   :  { %17925 = vmatprep.subr.bf16.mxu1 %v27215_v7  ;;  %v19297_v60 = vld [vmem:[%s27191_s3 + $0x98] sm:$0xff]   ;;  %v19299_v62 = vld [vmem:[%s27191_s3 + $0xa8] sm:$0xff]   ;;  %v19300_v63 = vld [vmem:[%s27191_s3 + $0xb0] sm:$0xff]  }
  0x16   :  { %v19301_v0 = vld [vmem:[%s27191_s3 + $0xb8] sm:$0xff]   ;;  %v19302_v1 = vld [vmem:[%s27191_s3 + $0xc0] sm:$0xff]   ;;  %v19303_v2 = vld [vmem:[%s27191_s3 + $0xc8] sm:$0xff]  }
  0x17   :  { %17359 = vmatpush3.bf16.msra.mxu0 %v19243_v6  ;;  %v19304_v3 = vld [vmem:[%s27191_s3 + $0xd0] sm:$0xff]   ;;  %v19305_v4 = vld [vmem:[%s27191_s3 + $0xd8] sm:$0xff]   ;;  %v19306_v5 = vld [vmem:[%s27191_s3 + $0xe0] sm:$0xff]  }
  0x18   :  { %17360 = vmatprep.subr.bf16.mxu0 %v19244_v8  ;;  %17941 = vmatpush1.bf16.msra.mxu1 %v19295_v57  ;;  %v19307_v6 = vld [vmem:[%s27191_s3 + $0xe8] sm:$0xff]   ;;  %vm19986_vm2 = vmand %vm1284_vm0, %vm1285_vm1 }
  0x19   :  { %17926 = vmatprep.subr.bf16.mxu1 %v27215_v7  ;;  %vm20262_vm4 = vmand %vm1284_vm0, %vm1707_vm3 }
  0x1b   :  { %17361 = vmatpush3.bf16.msra.mxu0 %v19244_v8  ;;  %v19308_v8 = vld [vmem:[%s27191_s3 + $0xf0] sm:$0xff]  }
  0x1c   :  { %17362 = vmatprep.subr.bf16.mxu0 %v19245_v9  ;;  %17942 = vmatpush1.bf16.msra.mxu1 %v19296_v58 }
  0x1d   :  { %17927 = vmatprep.subr.bf16.mxu1 %v27215_v7 }
  0x1f   :  { %17363 = vmatpush3.bf16.msra.mxu0 %v19245_v9  ;;  %v19309_v9 = vld [vmem:[%s27191_s3 + $0xf8] sm:$0xff]  }
  0x20   :  { %4283 = vmatprep.subr.bf16.mxu0 %v27215_v7  ;;  %17943 = vmatpush1.bf16.msra.mxu1 %v19297_v60 }
  0x21   :  { %17928 = vmatprep.subr.bf16.mxu1 %v27215_v7 }
  0x22   :  { %17365 = vmatmul.mubr.bf16.vlgmr.msra.gmra.mrb[0].mxu0 %v19247_v10 }
  0x23   :  { %17368 = vmatprep.mubr.bf16.mxu0 %v19248_v11  ;;  %4284 = vmatpush1.bf16.msra.mxu0 %v19276_v13  ;;  %v19968_v11 = vld [vmem:[%s27192_s2] ss:$0 sm:$0xff] }
  0x24   :  { %4285 = vmatprep.subr.bf16.mxu0 %v27215_v7  ;;  %17944 = vmatpush1.bf16.msra.mxu1 %v19298_v61 }
  0x25   :  { %17929 = vmatprep.subr.bf16.mxu1 %v27215_v7 }
  0x27   :  { %4286 = vmatpush1.bf16.msra.mxu0 %v19277_v15 }
  0x28   :  { %4287 = vmatprep.subr.bf16.mxu0 %v27215_v7  ;;  %17945 = vmatpush1.bf16.msra.mxu1 %v19299_v62 }
  0x29   :  { %17930 = vmatprep.subr.bf16.mxu1 %v27215_v7 }
  0x2a   :  { %17369 = vmatmul.mubr.bf16.gmra.mrb[4].mxu0 %v19249_v12 }
  0x2b   :  { %17372 = vmatprep.mubr.bf16.mxu0 %v19250_v14  ;;  %4288 = vmatpush1.bf16.msra.mxu0 %v19280_v16 }
  0x2c   :  { %4289 = vmatprep.subr.bf16.mxu0 %v27215_v7  ;;  %17946 = vmatpush1.bf16.msra.mxu1 %v19300_v63 }
  0x2d   :  { %17931 = vmatprep.subr.bf16.mxu1 %v27215_v7 }
  0x2f   :  { %4290 = vmatpush1.bf16.msra.mxu0 %v19281_v19 }
  0x30   :  { %4291 = vmatprep.subr.bf16.mxu0 %v27215_v7  ;;  %17947 = vmatpush1.bf16.msra.mxu1 %v19301_v0 }
  0x31   :  { %17932 = vmatprep.subr.bf16.mxu1 %v27215_v7 }
  0x32   :  { %17373 = vmatmul.mubr.bf16.gmra.mrb[8].mxu0 %v19251_v17 }
  0x33   :  { %17376 = vmatprep.mubr.bf16.mxu0 %v19252_v18  ;;  %4292 = vmatpush1.bf16.msra.mxu0 %v19282_v21 }
  0x34   :  { %4293 = vmatprep.subr.bf16.mxu0 %v27215_v7  ;;  %17948 = vmatpush1.bf16.msra.mxu1 %v19302_v1 }
  0x35   :  { %17933 = vmatprep.subr.bf16.mxu1 %v27215_v7 }
  0x37   :  { %4294 = vmatpush1.bf16.msra.mxu0 %v19283_v23 }
  0x38   :  { %4295 = vmatprep.subr.bf16.mxu0 %v27215_v7  ;;  %17949 = vmatpush1.bf16.msra.mxu1 %v19303_v2 }
  0x39   :  { %17934 = vmatprep.subr.bf16.mxu1 %v27215_v7 }
  0x3a   :  { %17377 = vmatmul.mubr.bf16.gmra.mrb[12].mxu0 %v19253_v20 }
  0x3b   :  { %17380 = vmatprep.mubr.bf16.mxu0 %v19254_v22  ;;  %4296 = vmatpush1.bf16.msra.mxu0 %v19284_v24 }
  0x3c   :  { %4297 = vmatprep.subr.bf16.mxu0 %v27215_v7  ;;  %17950 = vmatpush1.bf16.msra.mxu1 %v19304_v3 }
  0x3d   :  { %17935 = vmatprep.subr.bf16.mxu1 %v27215_v7 }
  0x3f   :  { %4298 = vmatpush1.bf16.msra.mxu0 %v19285_v27 }
  0x40   :  { %4299 = vmatprep.subr.bf16.mxu0 %v27215_v7  ;;  %17951 = vmatpush1.bf16.msra.mxu1 %v19305_v4 }
  0x41   :  { %17936 = vmatprep.subr.bf16.mxu1 %v27215_v7 }
  0x42   :  { %17381 = vmatmul.mubr.bf16.gmra.mrb[16].mxu0 %v19255_v25 }
  0x43   :  { %17384 = vmatprep.mubr.bf16.mxu0 %v19256_v26  ;;  %4300 = vmatpush1.bf16.msra.mxu0 %v19286_v28 }
  0x44   :  { %4301 = vmatprep.subr.bf16.mxu0 %v27215_v7  ;;  %17952 = vmatpush1.bf16.msra.mxu1 %v19306_v5 }
  0x45   :  { %17937 = vmatprep.subr.bf16.mxu1 %v27215_v7 }
  0x47   :  { %4302 = vmatpush1.bf16.msra.mxu0 %v19287_v31 }
  0x48   :  { %4303 = vmatprep.subr.bf16.mxu0 %v27215_v7  ;;  %17953 = vmatpush1.bf16.msra.mxu1 %v19307_v6 }
  0x49   :  { %17938 = vmatprep.subr.bf16.mxu1 %v27215_v7 }
  0x4a   :  { %17385 = vmatmul.mubr.bf16.gmra.mrb[20].mxu0 %v19257_v29 }
  0x4b   :  { %17388 = vmatprep.mubr.bf16.mxu0 %v19258_v30  ;;  %4304 = vmatpush1.bf16.msra.mxu0 %v19288_v32 }
  0x4c   :  { %4305 = vmatprep.subr.bf16.mxu0 %v27215_v7  ;;  %17954 = vmatpush1.bf16.msra.mxu1 %v19308_v8 }
  0x4d   :  { %17939 = vmatprep.subr.bf16.mxu1 %v27215_v7 }
  0x4f   :  { %4306 = vmatpush1.bf16.msra.mxu0 %v19289_v35 }
  0x50   :  { %4307 = vmatprep.subr.bf16.mxu0 %v27215_v7  ;;  %17955 = vmatpush1.bf16.msra.mxu1 %v19309_v9 }
  0x51   :  { %4861 = vmatprep.subr.bf16.mxu1 %v27215_v7 }
  0x52   :  { %17389 = vmatmul.mubr.bf16.gmra.mrb[24].mxu0 %v19259_v33 }
  0x53   :  { %17392 = vmatprep.mubr.bf16.mxu0 %v19260_v34  ;;  %4308 = vmatpush1.bf16.msra.mxu0 %v19290_v36  ;;  %v27853_v34 = vmov 0 }
  0x54   :  { %4309 = vmatprep.subr.bf16.mxu0 %v27215_v7  ;;  %v27854_v34 = vsel %vm19986_vm2, 4294967295, %v27853_v34 }
  0x55   :  { %27855 = vst [vmem:[#allocation4_spill] sm:$0xff] %v27854_v34 }
  0x57   :  { %4310 = vmatpush1.bf16.msra.mxu0 %v19291_v39 }
  0x58   :  { %4311 = vmatprep.subr.bf16.mxu0 %v27215_v7 }
  0x5a   :  { %17393 = vmatmul.mubr.bf16.gmra.mrb[28].mxu0 %v19261_v37 }
  0x5b   :  { %17396 = vmatprep.mubr.bf16.mxu0 %v19262_v38  ;;  %4312 = vmatpush1.bf16.msra.mxu0 %v19292_v46 }
  0x5c   :  { %4313 = vmatprep.subr.bf16.mxu0 %v27215_v7 }
  0x5f   :  { %4314 = vmatpush1.bf16.msra.mxu0 %v19293_v49 }
  0x60   :  { %4572 = vmatprep.subr.bf16.mxu0 %v27215_v7 }
  0x62   :  { %17397 = vmatmul.mubr.bf16.gmra.mrb[32].mxu0 %v19263_v40 }
  0x63   :  { %17400 = vmatprep.mubr.bf16.mxu0 %v19264_v41 }
  0x6a   :  { %17401 = vmatmul.mubr.bf16.gmra.mrb[36].mxu0 %v19265_v42 }
  0x6b   :  { %17404 = vmatprep.mubr.bf16.mxu0 %v19266_v43 }
  0x72   :  { %17405 = vmatmul.mubr.bf16.gmra.mrb[40].mxu0 %v19267_v44 }
  0x73   :  { %17408 = vmatprep.mubr.bf16.mxu0 %v19268_v45 }
  0x7a   :  { %17409 = vmatmul.mubr.bf16.gmra.mrb[44].mxu0 %v19269_v47 }
  0x7b   :  { %17412 = vmatprep.mubr.bf16.mxu0 %v19270_v48 }
  0x82   :  { %17413 = vmatmul.mubr.bf16.gmra.mrb[48].mxu0 %v19271_v50 }
  0x83   :  { %17416 = vmatprep.mubr.bf16.mxu0 %v19272_v51 }
  0x8a   :  { %17417 = vmatmul.mubr.bf16.gmra.mrb[52].mxu0 %v19273_v52 }
  0x8b   :  { %17420 = vmatprep.mubr.bf16.mxu0 %v19274_v53 }
  0x92   :  { %17421 = vmatmul.mubr.bf16.gmra.mrb[56].mxu0 %v19275_v55 }
  0x93   :  { %17424 = vmatprep.mubr.bf16.mxu0 %v19278_v56 }
  0x9a   :  { %17425 = vmatmul.mubr.bf16.gmra.mrb[60].mxu0 %v19279_v59 }
  0x9b   :  { %4315 = vmatprep.mubr.bf16.mxu0 %v27215_v7 }
  0xa2   :  { %4316 = vmatmul.mubr.bf16.vlgmr.msra.gmra.mrb[64].mxu0 %v27215_v7 }
  0xa3   :  { %4573 = vmatpush1.bf16.msra.mxu0 %v19294_v54 }
  0xa4   :  { %4574 = vmatprep.subr.bf16.mxu0 %v27215_v7 }
  0xa7   :  { %4575 = vmatpush1.bf16.msra.mxu0 %v19295_v57 }
  0xa8   :  { %4576 = vmatprep.subr.bf16.mxu0 %v27215_v7 }
  0xab   :  { %4577 = vmatpush1.bf16.msra.mxu0 %v19296_v58 }
  0xac   :  { %4578 = vmatprep.subr.bf16.mxu0 %v27215_v7 }
  0xaf   :  { %4579 = vmatpush1.bf16.msra.mxu0 %v19297_v60 }
  0xb0   :  { %4580 = vmatprep.subr.bf16.mxu0 %v27215_v7 }
  0xb3   :  { %4581 = vmatpush1.bf16.msra.mxu0 %v19298_v61 }
  0xb4   :  { %4582 = vmatprep.subr.bf16.mxu0 %v27215_v7 }
  0xb7   :  { %4583 = vmatpush1.bf16.msra.mxu0 %v19299_v62 }
  0xb8   :  { %4584 = vmatprep.subr.bf16.mxu0 %v27215_v7 }
  0xbb   :  { %4585 = vmatpush1.bf16.msra.mxu0 %v19300_v63 }
  0xbc   :  { %4586 = vmatprep.subr.bf16.mxu0 %v27215_v7 }
  0xbf   :  { %4587 = vmatpush1.bf16.msra.mxu0 %v19301_v0 }
  0xc0   :  { %4588 = vmatprep.subr.bf16.mxu0 %v27215_v7 }
  0xc3   :  { %4589 = vmatpush1.bf16.msra.mxu0 %v19302_v1 }
  0xc4   :  { %4590 = vmatprep.subr.bf16.mxu0 %v27215_v7 }
  0xc7   :  { %4591 = vmatpush1.bf16.msra.mxu0 %v19303_v2 }
  0xc8   :  { %4592 = vmatprep.subr.bf16.mxu0 %v27215_v7 }
  0xcb   :  { %4593 = vmatpush1.bf16.msra.mxu0 %v19304_v3 }
  0xcc   :  { %4594 = vmatprep.subr.bf16.mxu0 %v27215_v7 }
  0xcf   :  { %4595 = vmatpush1.bf16.msra.mxu0 %v19305_v4 }
  0xd0   :  { %4596 = vmatprep.subr.bf16.mxu0 %v27215_v7 }
  0xd3   :  { %4597 = vmatpush1.bf16.msra.mxu0 %v19306_v5 }
  0xd4   :  { %4598 = vmatprep.subr.bf16.mxu0 %v27215_v7 }
  0xd7   :  { %4599 = vmatpush1.bf16.msra.mxu0 %v19307_v6 }
  0xd8   :  { %4600 = vmatprep.subr.bf16.mxu0 %v27215_v7 }
  0xdb   :  { %4601 = vmatpush1.bf16.msra.mxu0 %v19308_v8 }
  0xdc   :  { %4602 = vmatprep.subr.bf16.mxu0 %v27215_v7 }
  0xdf   :  { %4603 = vmatpush1.bf16.msra.mxu0 %v19309_v9 }
  0xf5   :  { %v17366_v10 = vpop.f32.mrb[0].mxu0 }
  0xf6   :  { %v694_v12 = vpop.f32.mrb[1].mxu0  ;;  %v703_v14 = vadd.f32 %v17366_v10, %v19968_v11 }
  0xf7   :  { %v17367_v13 = vpop.f32.mrb[2].mxu0  ;;  %v695_v17 = vadd.f32 %v19968_v11, %v694_v12 }
  0xf8   :  { %v706_v15 = vadd.f32 %v17367_v13, %v19968_v11  ;;  %v697_v16 = vpop.f32.mrb[3].mxu0 }
  0xf9   :  { %v698_v18 = vadd.f32 %v19968_v11, %v697_v16 }
  0xfa   :  { %v19974_v19 = vpack.c.bf16 %v706_v15, %v703_v14 }
  0xfb   :  { %v19976_v20 = vpack.c.bf16 %v698_v18, %v695_v17 }
  0xfc   :  { %v1054_v21 = vshll.u32 %v19974_v19, 16  ;;  %v1051_v26 = vshrl.u32 %v19974_v19, 16 }
  0xfd   :  { %v17370_v22 = vpop.f32.mrb[4].mxu0  ;;  %4323 = vmatprep.mubr.bf16.mxu0 %v19976_v20  ;;  %v1044_v23 = vshrl.u32 %v19976_v20, 16  ;;  %v1047_v24 = vshll.u32 %v19976_v20, 16 }
  0xfe   :  { %v710_v25 = vpop.f32.mrb[5].mxu0  ;;  %v1479_v27 = vrot.slane %v1054_v21, 1  ;;  %v719_v31 = vadd.f32 %v17370_v22, %v19968_v11  ;;  %v1053_v43 = vrot.slane %v1051_v26, 7 }
  0xff   :  { %v17371_v28 = vpop.f32.mrb[6].mxu0  ;;  %v1046_v29 = vrot.slane %v1044_v23, 7  ;;  %v1472_v30 = vrot.slane %v1047_v24, 1  ;;  %v711_v36 = vadd.f32 %v19968_v11, %v710_v25 }
 0x100   :  { %v722_v32 = vadd.f32 %v17371_v28, %v19968_v11  ;;  %v713_v33 = vpop.f32.mrb[7].mxu0  ;;  %v19990_v35 = vor.u32 %v1479_v27, %v1051_v26  ;;  %v1056_v51 = vor.u32 %v1054_v21, %v1053_v43 }
 0x101   :  { %v714_v37 = vadd.f32 %v19968_v11, %v713_v33  ;;  %v1049_v38 = vor.u32 %v1047_v24, %v1046_v29  ;;  %v19994_v39 = vor.u32 %v1472_v30, %v1044_v23 }
 0x102   :  { %v19996_v40 = vpack.c.bf16 %v722_v32, %v719_v31  ;;  %v20022_v62 = vsel %vm19986_vm2, %v1056_v51, 0 }
 0x103   :  { %v19998_v41 = vpack.c.bf16 %v714_v37, %v711_v36  ;;  %v20002_v42 = vsel %vm19986_vm2, %v1049_v38, 0  ;;  %27857 = vst [vmem:[#allocation6_spill] sm:$0xff] %v20022_v62 }
 0x104   :  { %27856 = vst [vmem:[#allocation5_spill] sm:$0xff] %v20002_v42  ;;  %4324 = vmatmul.mubr.bf16.gmra.mrb[68].mxu0 %v20002_v42  ;;  %v1068_v44 = vshll.u32 %v19996_v40, 16  ;;  %v1065_v48 = vshrl.u32 %v19996_v40, 16 }
 0x105   :  { %v17374_v45 = vpop.f32.mrb[8].mxu0  ;;  %4331 = vmatprep.mubr.bf16.mxu0 %v19974_v19  ;;  %v1061_v46 = vshll.u32 %v19998_v41, 16  ;;  %v1058_v52 = vshrl.u32 %v19998_v41, 16 }
 0x106   :  { %v726_v47 = vpop.f32.mrb[9].mxu0  ;;  %v1493_v49 = vrot.slane %v1068_v44, 1  ;;  %v735_v54 = vadd.f32 %v17374_v45, %v19968_v11  ;;  %v1067_v24 = vrot.slane %v1065_v48, 7 }
 0x107   :  { %v17375_v50 = vpop.f32.mrb[10].mxu0  ;;  %v1486_v53 = vrot.slane %v1061_v46, 1  ;;  %v727_v58 = vadd.f32 %v19968_v11, %v726_v47  ;;  %v1060_v63 = vrot.slane %v1058_v52, 7 }
 0x108   :  { %v738_v55 = vadd.f32 %v17375_v50, %v19968_v11  ;;  %v729_v56 = vpop.f32.mrb[11].mxu0  ;;  %v20012_v57 = vor.u32 %v1493_v49, %v1065_v48  ;;  %v1070_v33 = vor.u32 %v1068_v44, %v1067_v24 }
 0x109   :  { %v730_v59 = vadd.f32 %v19968_v11, %v729_v56  ;;  %v20016_v60 = vor.u32 %v1486_v53, %v1058_v52  ;;  %v1063_v9 = vor.u32 %v1061_v46, %v1060_v63 }
 0x10a   :  { %v20018_v61 = vpack.c.bf16 %v738_v55, %v735_v54  ;;  %v20074_v50 = vsel %vm19986_vm2, %v1070_v33, 0 }
 0x10b   :  { %v20024_v0 = vpack.c.bf16 %v730_v59, %v727_v58  ;;  %v20046_v23 = vsel %vm19986_vm2, %v1063_v9, 0  ;;  %27861 = vst [vmem:[#allocation10_spill] sm:$0xff] %v20074_v50 }
 0x10c   :  { %4332 = vmatmul.mubr.bf16.gmra.mrb[72].mxu0 %v20022_v62  ;;  %v1082_v1 = vshll.u32 %v20018_v61, 16  ;;  %v1079_v5 = vshrl.u32 %v20018_v61, 16  ;;  %27859 = vst [vmem:[#allocation8_spill] sm:$0xff] %v20046_v23 }
 0x10d   :  { %v17378_v2 = vpop.f32.mrb[12].mxu0  ;;  %4339 = vmatprep.mubr.bf16.mxu0 %v19998_v41  ;;  %v1075_v3 = vshll.u32 %v20024_v0, 16  ;;  %v1072_v10 = vshrl.u32 %v20024_v0, 16 }
 0x10e   :  { %v742_v4 = vpop.f32.mrb[13].mxu0  ;;  %v1507_v6 = vrot.slane %v1082_v1, 1  ;;  %v751_v13 = vadd.f32 %v17378_v2, %v19968_v11 }
 0x10f   :  { %v17379_v8 = vpop.f32.mrb[14].mxu0  ;;  %v1500_v12 = vrot.slane %v1075_v3, 1  ;;  %v743_v17 = vadd.f32 %v19968_v11, %v742_v4  ;;  %v1074_v51 = vrot.slane %v1072_v10, 7 }
 0x110   :  { %v754_v14 = vadd.f32 %v17379_v8, %v19968_v11  ;;  %v745_v15 = vpop.f32.mrb[15].mxu0  ;;  %v20036_v16 = vor.u32 %v1507_v6, %v1079_v5 }
 0x111   :  { %v746_v18 = vadd.f32 %v19968_v11, %v745_v15  ;;  %v20040_v21 = vor.u32 %v1500_v12, %v1072_v10  ;;  %v1077_v2 = vor.u32 %v1075_v3, %v1074_v51 }
 0x112   :  { %v20042_v22 = vpack.c.bf16 %v754_v14, %v751_v13 }
 0x113   :  { %v20048_v25 = vpack.c.bf16 %v746_v18, %v743_v17  ;;  %v20104_v17 = vsel %vm19986_vm2, %v1077_v2, 0  ;;  %v1081_v18 = vrot.slane %v1079_v5, 7 }
 0x114   :  { %27858 = vst [vmem:[#allocation7_spill] sm:$0xff] %v20042_v22  ;;  %4340 = vmatmul.mubr.bf16.gmra.mrb[76].mxu0 %v20046_v23  ;;  %v1096_v26 = vshll.u32 %v20042_v22, 16  ;;  %v1093_v30 = vshrl.u32 %v20042_v22, 16  ;;  %27865 = vst [vmem:[#allocation14_spill] sm:$0xff] %v20104_v17 }
 0x115   :  { %v17382_v27 = vpop.f32.mrb[16].mxu0  ;;  %4347 = vmatprep.mubr.bf16.mxu0 %v19996_v40  ;;  %v1089_v28 = vshll.u32 %v20048_v25, 16  ;;  %v1086_v36 = vshrl.u32 %v20048_v25, 16  ;;  %v1084_v5 = vor.u32 %v1082_v1, %v1081_v18 }
 0x116   :  { %v758_v29 = vpop.f32.mrb[17].mxu0  ;;  %v1521_v31 = vrot.slane %v1096_v26, 1  ;;  %v767_v38 = vadd.f32 %v17382_v27, %v19968_v11 }
 0x117   :  { %v17383_v32 = vpop.f32.mrb[18].mxu0  ;;  %v1514_v37 = vrot.slane %v1089_v28, 1  ;;  %v759_v47 = vadd.f32 %v19968_v11, %v758_v29  ;;  %v20136_v2 = vsel %vm19986_vm2, %v1084_v5, 0 }
 0x118   :  { %v770_v43 = vadd.f32 %v17383_v32, %v19968_v11  ;;  %v761_v45 = vpop.f32.mrb[19].mxu0  ;;  %v20064_v46 = vor.u32 %v1521_v31, %v1093_v30  ;;  %27870 = vst [vmem:[#allocation19_spill] sm:$0xff] %v20136_v2 }
 0x119   :  { %v762_v48 = vadd.f32 %v19968_v11, %v761_v45  ;;  %v20068_v49 = vor.u32 %v1514_v37, %v1086_v36 }
 0x11a   :  { %v20070_v44 = vpack.c.bf16 %v770_v43, %v767_v38 }
 0x11b   :  { %v20076_v52 = vpack.c.bf16 %v762_v48, %v759_v47 }
 0x11c   :  { %27860 = vst [vmem:[#allocation9_spill] sm:$0xff] %v20070_v44  ;;  %4348 = vmatmul.mubr.bf16.gmra.mrb[80].mxu0 %v20074_v50  ;;  %v1110_v53 = vshll.u32 %v20070_v44, 16  ;;  %v1107_v58 = vshrl.u32 %v20070_v44, 16 }
 0x11d   :  { %27862 = vst [vmem:[#allocation11_spill] sm:$0xff] %v20076_v52  ;;  %v17386_v54 = vpop.f32.mrb[20].mxu0  ;;  %4355 = vmatprep.mubr.bf16.mxu0 %v20024_v0  ;;  %v1103_v55 = vshll.u32 %v20076_v52, 16  ;;  %v1100_v4 = vshrl.u32 %v20076_v52, 16 }
 0x11e   :  { %v774_v56 = vpop.f32.mrb[21].mxu0  ;;  %v1535_v59 = vrot.slane %v1110_v53, 1  ;;  %v783_v8 = vadd.f32 %v17386_v54, %v19968_v11 }
 0x11f   :  { %v17387_v63 = vpop.f32.mrb[22].mxu0  ;;  %v1528_v6 = vrot.slane %v1103_v55, 1  ;;  %v775_v13 = vadd.f32 %v19968_v11, %v774_v56 }
 0x120   :  { %v786_v9 = vadd.f32 %v17387_v63, %v19968_v11  ;;  %v777_v10 = vpop.f32.mrb[23].mxu0  ;;  %v20092_v12 = vor.u32 %v1535_v59, %v1107_v58 }
 0x121   :  { %v778_v14 = vadd.f32 %v19968_v11, %v777_v10  ;;  %v20098_v3 = vor.u32 %v1528_v6, %v1100_v4  ;;  %v1088_v6 = vrot.slane %v1086_v36, 7 }
 0x122   :  { %27863 = vst [vmem:[#allocation12_spill] sm:$0xff] %v20092_v12  ;;  %v20100_v15 = vpack.c.bf16 %v786_v9, %v783_v8 }
 0x123   :  { %v20106_v24 = vpack.c.bf16 %v778_v14, %v775_v13  ;;  %v1091_v36 = vor.u32 %v1089_v28, %v1088_v6 }
 0x124   :  { %27864 = vst [vmem:[#allocation13_spill] sm:$0xff] %v20100_v15  ;;  %4356 = vmatmul.mubr.bf16.gmra.mrb[84].mxu0 %v20104_v17  ;;  %v27209_v27 = vshll.u32 %v20100_v15, 16  ;;  %v27210_v33 = vshrl.u32 %v20100_v15, 16 }
 0x125   :  { %27866 = vst [vmem:[#allocation15_spill] sm:$0xff] %v20106_v24  ;;  %v17390_v29 = vpop.f32.mrb[24].mxu0  ;;  %4363 = vmatprep.mubr.bf16.mxu0 %v20018_v61  ;;  %v27214_v31 = vshll.u32 %v20106_v24, 16  ;;  %v27217_v43 = vshrl.u32 %v20106_v24, 16  ;;  %v20168_v6 = vsel %vm19986_vm2, %v1091_v36, 0 }
 0x126   :  { %v790_v32 = vpop.f32.mrb[25].mxu0  ;;  %v1549_v37 = vrot.slane %v27209_v27, 1  ;;  %v799_v47 = vadd.f32 %v17390_v29, %v19968_v11  ;;  %27875 = vst [vmem:[#allocation24_spill] sm:$0xff] %v20168_v6 }
 0x127   :  { %v17391_v38 = vpop.f32.mrb[26].mxu0  ;;  %v1542_v45 = vrot.slane %v27214_v31, 1  ;;  %v791_v56 = vadd.f32 %v19968_v11, %v790_v32 }
 0x128   :  { %v802_v48 = vadd.f32 %v17391_v38, %v19968_v11  ;;  %v793_v51 = vpop.f32.mrb[27].mxu0  ;;  %v20124_v54 = vor.u32 %v1549_v37, %v27210_v33 }
 0x129   :  { %v794_v59 = vadd.f32 %v19968_v11, %v793_v51  ;;  %v20130_v1 = vor.u32 %v1542_v45, %v27217_v43 }
 0x12a   :  { %27867 = vst [vmem:[#allocation16_spill] sm:$0xff] %v20124_v54  ;;  %v20132_v63 = vpack.c.bf16 %v802_v48, %v799_v47 }
 0x12b   :  { %27868 = vst [vmem:[#allocation17_spill] sm:$0xff] %v20130_v1  ;;  %v20138_v8 = vpack.c.bf16 %v794_v59, %v791_v56 }
 0x12c   :  { %27869 = vst [vmem:[#allocation18_spill] sm:$0xff] %v20132_v63  ;;  %4364 = vmatmul.mubr.bf16.gmra.mrb[88].mxu0 %v20136_v2  ;;  %v27203_v9 = vshll.u32 %v20132_v63, 16  ;;  %v27204_v18 = vshrl.u32 %v20132_v63, 16 }
 0x12d   :  { %27871 = vst [vmem:[#allocation20_spill] sm:$0xff] %v20138_v8  ;;  %v17394_v10 = vpop.f32.mrb[28].mxu0  ;;  %4371 = vmatprep.mubr.bf16.mxu0 %v20048_v25  ;;  %v27205_v13 = vshll.u32 %v20138_v8, 16  ;;  %v27206_v37 = vshrl.u32 %v20138_v8, 16 }
 0x12e   :  { %v806_v14 = vpop.f32.mrb[29].mxu0  ;;  %v1563_v29 = vrot.slane %v27203_v9, 1  ;;  %v815_v5 = vadd.f32 %v17394_v10, %v19968_v11  ;;  %v1095_v10 = vrot.slane %v1093_v30, 7 }
 0x12f   :  { %v17395_v32 = vpop.f32.mrb[30].mxu0  ;;  %v1556_v38 = vrot.slane %v27205_v13, 1  ;;  %v807_v51 = vadd.f32 %v19968_v11, %v806_v14 }
 0x130   :  { %v818_v45 = vadd.f32 %v17395_v32, %v19968_v11  ;;  %v809_v47 = vpop.f32.mrb[31].mxu0  ;;  %v20156_v48 = vor.u32 %v1563_v29, %v27204_v18 }
 0x131   :  { %v810_v56 = vadd.f32 %v19968_v11, %v809_v47  ;;  %v20162_v28 = vor.u32 %v1556_v38, %v27206_v37 }
 0x132   :  { %27872 = vst [vmem:[#allocation21_spill] sm:$0xff] %v20156_v48  ;;  %v20164_v59 = vpack.c.bf16 %v818_v45, %v815_v5  ;;  %v1098_v5 = vor.u32 %v1096_v26, %v1095_v10  ;;  %v1102_v10 = vrot.slane %v1100_v4, 7 }
 0x133   :  { %27873 = vst [vmem:[#allocation22_spill] sm:$0xff] %v20162_v28  ;;  %v20172_v32 = vpack.c.bf16 %v810_v56, %v807_v51 }
 0x134   :  { %27874 = vst [vmem:[#allocation23_spill] sm:$0xff] %v20164_v59  ;;  %4372 = vmatmul.mubr.bf16.gmra.mrb[92].mxu0 %v20168_v6  ;;  %v20194_v26 = vsel %vm19986_vm2, %v1098_v5, 0 }
 0x135   :  { %27876 = vst [vmem:[#allocation25_spill] sm:$0xff] %v20172_v32  ;;  %v17398_v14 = vpop.f32.mrb[32].mxu0  ;;  %4379 = vmatprep.mubr.bf16.mxu0 %v20042_v22  ;;  %v27207_v29 = vshll.u32 %v20172_v32, 16  ;;  %v27208_v36 = vshrl.u32 %v20172_v32, 16  ;;  %27879 = vst [vmem:[#allocation28_spill] sm:$0xff] %v20194_v26 }
 0x136   :  { %v822_v38 = vpop.f32.mrb[33].mxu0  ;;  %v831_v30 = vadd.f32 %v17398_v14, %v19968_v11 }
 0x137   :  { %v17399_v47 = vpop.f32.mrb[34].mxu0  ;;  %v1570_v45 = vrot.slane %v27207_v29, 1  ;;  %v823_v9 = vadd.f32 %v19968_v11, %v822_v38 }
 0x138   :  { %v834_v51 = vadd.f32 %v17399_v47, %v19968_v11  ;;  %v825_v56 = vpop.f32.mrb[35].mxu0 }
 0x139   :  { %v826_v18 = vadd.f32 %v19968_v11, %v825_v56  ;;  %v20188_v13 = vor.u32 %v1570_v45, %v27208_v36 }
 0x13a   :  { %v20190_v37 = vpack.c.bf16 %v834_v51, %v831_v30  ;;  %v1105_v30 = vor.u32 %v1103_v55, %v1102_v10  ;;  %v1109_v10 = vrot.slane %v1107_v58, 7 }
 0x13b   :  { %27877 = vst [vmem:[#allocation26_spill] sm:$0xff] %v20188_v13  ;;  %v20198_v14 = vpack.c.bf16 %v826_v18, %v823_v9 }
 0x13c   :  { %27878 = vst [vmem:[#allocation27_spill] sm:$0xff] %v20190_v37  ;;  %4380 = vmatmul.mubr.bf16.gmra.mrb[96].mxu0 %v20194_v26  ;;  %v27212_v29 = vshll.u32 %v20190_v37, 16 }
 0x13d   :  { %27880 = vst [vmem:[#allocation29_spill] sm:$0xff] %v20198_v14  ;;  %v17402_v38 = vpop.f32.mrb[36].mxu0  ;;  %4387 = vmatprep.mubr.bf16.mxu0 %v20076_v52  ;;  %v27211_v47 = vshll.u32 %v20198_v14, 16  ;;  %v27213_v5 = vshrl.u32 %v20198_v14, 16 }
 0x13e   :  { %v838_v45 = vpop.f32.mrb[37].mxu0  ;;  %v847_v4 = vadd.f32 %v17402_v38, %v19968_v11  ;;  %v20225_v38 = vsel %vm19986_vm2, %v1105_v30, 0  ;;  %v27223_v30 = vshrl.u32 %v20190_v37, 16 }
 0x13f   :  { %v17403_v56 = vpop.f32.mrb[38].mxu0  ;;  %v1577_v51 = vrot.slane %v27211_v47, 1  ;;  %v839_v36 = vadd.f32 %v19968_v11, %v838_v45  ;;  %27884 = vst [vmem:[#allocation33_spill] sm:$0xff] %v20225_v38  ;;  %v1584_v45 = vrot.slane %v27212_v29, 1 }
 0x140   :  { %v850_v9 = vadd.f32 %v17403_v56, %v19968_v11  ;;  %v841_v18 = vpop.f32.mrb[39].mxu0 }
 0x141   :  { %v842_v27 = vadd.f32 %v19968_v11, %v841_v18  ;;  %v20215_v33 = vor.u32 %v1577_v51, %v27213_v5 }
 0x142   :  { %v20217_v55 = vpack.c.bf16 %v850_v9, %v847_v4 }
 0x143   :  { %27881 = vst [vmem:[#allocation30_spill] sm:$0xff] %v20215_v33  ;;  %v20221_v47 = vpack.c.bf16 %v842_v27, %v839_v36  ;;  %v1112_v36 = vor.u32 %v1110_v53, %v1109_v10  ;;  %v1585_v33 = vor.u32 %v1584_v45, %v27223_v30  ;;  %v27895_v30 = vshll.u32 %v20106_v24, 16 }
 0x144   :  { %27882 = vst [vmem:[#allocation31_spill] sm:$0xff] %v20217_v55  ;;  %4388 = vmatmul.mubr.bf16.gmra.mrb[100].mxu0 %v20225_v38  ;;  %v27220_v56 = vshrl.u32 %v20217_v55, 16  ;;  %v1173_v7 = vshll.u32 %v20217_v55, 16 }
 0x145   :  { %27883 = vst [vmem:[#allocation32_spill] sm:$0xff] %v20221_v47  ;;  %4395 = vmatprep.mubr.bf16.mxu0 %v20070_v44  ;;  %v17406_v51 = vpop.f32.mrb[40].mxu0  ;;  %v1163_v4 = vshrl.u32 %v20221_v47, 16  ;;  %v1166_v31 = vshll.u32 %v20221_v47, 16 }
 0x146   :  { %v863_v58 = vadd.f32 %v17406_v51, %v19968_v11  ;;  %v854_v27 = vpop.f32.mrb[41].mxu0  ;;  %v1172_v9 = vrot.slane %v27220_v56, 7 }
 0x147   :  { %v855_v18 = vadd.f32 %v19968_v11, %v854_v27  ;;  %v17407_v29 = vpop.f32.mrb[42].mxu0  ;;  %v1165_v5 = vrot.slane %v1163_v4, 7  ;;  %v19310_v27 = vld [vmem:[%s27191_s3 + $0x100] sm:$0xff]  }
 0x148   :  { %v866_v43 = vadd.f32 %v17407_v29, %v19968_v11  ;;  %v857_v51 = vpop.f32.mrb[43].mxu0  ;;  %v1175_v38 = vor.u32 %v1173_v7, %v1172_v9  ;;  %v20255_v29 = vsel %vm19986_vm2, %v1112_v36, 0  ;;  %v20272_v36 = vsel %vm20262_vm4, %v1585_v33, 0  ;;  %v19311_v33 = vld [vmem:[%s27191_s3 + $0x108] sm:$0xff]  }
 0x149   :  { %v858_v53 = vadd.f32 %v19968_v11, %v857_v51  ;;  %v1168_v10 = vor.u32 %v1166_v31, %v1165_v5  ;;  %27886 = vst [vmem:[#allocation35_spill] sm:$0xff] %v20255_v29  ;;  %v27888_v5 = vmov 0  ;;  %27892 = vst [vmem:[#allocation38_spill] sm:$0xff] %v20272_v36  ;;  %v1591_v9 = vrot.slane %v1166_v31, 1 }
 0x14a   :  { %v20246_v56 = vpack.c.bf16 %v866_v43, %v863_v58  ;;  %v27889_v5 = vsel %vm20262_vm4, 4294967295, %v27888_v5  ;;  %v27891_v43 = vshrl.u32 %v20106_v24, 16 }
 0x14b   :  { %v20251_v26 = vpack.c.bf16 %v858_v53, %v855_v18  ;;  %v20259_v45 = vsel %vm19986_vm2, %v1168_v10, 0  ;;  %27890 = vst [vmem:[#allocation37_spill] sm:$0xff] %v27889_v5  ;;  %v20278_v18 = vsel %vm19986_vm2, %v1175_v38, 0  ;;  %v1592_v6 = vor.u32 %v1591_v9, %v1163_v4 }
 0x14c   :  { %27887 = vst [vmem:[#allocation36_spill] sm:$0xff] %v20259_v45  ;;  %v1116_v58 = vrot.slane %v27891_v43, 7  ;;  %4396 = vmatmul.mubr.bf16.gmra.mrb[104].mxu0 %v20255_v29  ;;  %4748 = vmatprep.mubr.bf16.mxu1 %v20259_v45  ;;  %27893 = vst [vmem:[#allocation39_spill] sm:$0xff] %v20278_v18  ;;  %v27894_v43 = vmov 0   ;;  %v27235_v28 = vshrl.u32 %v20246_v56, 16  ;;  %v27899_v4 = vshrl.u32 %v20100_v15, 16 }
 0x14d   :  { %27885 = vst [vmem:[#allocation34_spill] sm:$0xff] %v20251_v26  ;;  %4403 = vmatprep.mubr.bf16.mxu0 %v20106_v24  ;;  %4749 = vmatmul.mubr.bf16.vlgmr.msra.gmra.mrb[0].mxu1 %v20272_v36  ;;  %v27236_v51 = vshrl.u32 %v20251_v26, 16  ;;  %v17410_v53 = vpop.f32.mrb[44].mxu0  ;;  %v1180_v29 = vshll.u32 %v20251_v26, 16  ;;  %v20317_v9 = vsel %vm20262_vm4, %v1592_v6, 0 }
 0x14e   :  { %4862 = vmatpush1.bf16.msra.mxu1 %v19310_v27  ;;  %4756 = vmatprep.mubr.bf16.mxu1 %v20278_v18  ;;  %v879_v31 = vadd.f32 %v17410_v53, %v19968_v11  ;;  %v870_v10 = vpop.f32.mrb[45].mxu0  ;;  %v1119_v36 = vor.u32 %v27895_v30, %v1116_v58  ;;  %v19312_v30 = vld [vmem:[%s27191_s3 + $0x110] sm:$0xff]   ;;  %27900 = vst [vmem:[#allocation43_spill] sm:$0xff] %v20317_v9 }
 0x14f   :  { %4863 = vmatprep.subr.bf16.mxu1 %v27894_v43  ;;  %v1179_v38 = vrot.slane %v27236_v51, 7  ;;  %v871_v27 = vadd.f32 %v19968_v11, %v870_v10  ;;  %v17411_v13 = vpop.f32.mrb[46].mxu0 }
 0x150   :  { %v882_v59 = vadd.f32 %v17411_v13, %v19968_v11  ;;  %v873_v48 = vpop.f32.mrb[47].mxu0  ;;  %v20303_v58 = vsel %vm19986_vm2, %v1119_v36, 0 }
 0x151   :  { %v1182_v2 = vor.u32 %v1180_v29, %v1179_v38  ;;  %v874_v53 = vadd.f32 %v19968_v11, %v873_v48  ;;  %27897 = vst [vmem:[#allocation41_spill] sm:$0xff] %v20303_v58 }
 0x152   :  { %4864 = vmatpush1.bf16.msra.mxu1 %v19311_v33  ;;  %v20296_v17 = vpack.c.bf16 %v882_v59, %v879_v31  ;;  %v1123_v59 = vrot.slane %v27899_v4, 7  ;;  %v1598_v33 = vrot.slane %v1173_v7, 1  ;;  %v19313_v31 = vld [vmem:[%s27191_s3 + $0x118] sm:$0xff]   ;;  %v27901_v7 = vshll.u32 %v20100_v15, 16 }
 0x153   :  { %v20307_v13 = vsel %vm19986_vm2, %v1182_v2, 0  ;;  %4865 = vmatprep.subr.bf16.mxu1 %v27894_v43  ;;  %v20310_v48 = vpack.c.bf16 %v874_v53, %v871_v27  ;;  %v1186_v2 = vrot.slane %v27235_v28, 7  ;;  %v1187_v27 = vshll.u32 %v20246_v56, 16 }
 0x154   :  { %27896 = vst [vmem:[#allocation40_spill] sm:$0xff] %v20296_v17  ;;  %27898 = vst [vmem:[#allocation42_spill] sm:$0xff] %v20307_v13  ;;  %4404 = vmatmul.mubr.bf16.gmra.mrb[108].mxu0 %v20303_v58  ;;  %v1126_v38 = vor.u32 %v27901_v7, %v1123_v59  ;;  %v19314_v59 = vld [vmem:[%s27191_s3 + $0x120] sm:$0xff]   ;;  %v27904_v53 = vshrl.u32 %v20138_v8, 16  ;;  %v27251_v50 = vshrl.u32 %v20296_v17, 16 }
 0x155   :  { %4411 = vmatprep.mubr.bf16.mxu0 %v20100_v15  ;;  %4757 = vmatmul.mubr.bf16.gmra.mrb[4].mxu1 %v20317_v9  ;;  %v17414_v36 = vpop.f32.mrb[48].mxu0 }
 0x156   :  { %4764 = vmatprep.mubr.bf16.mxu1 %v20307_v13  ;;  %4866 = vmatpush1.bf16.msra.mxu1 %v19312_v30  ;;  %v895_v10 = vadd.f32 %v17414_v36, %v19968_v11  ;;  %v886_v6 = vpop.f32.mrb[49].mxu0  ;;  %v27902_v30 = vshrl.u32 %v20217_v55, 16  ;;  %v1189_v36 = vor.u32 %v1187_v27, %v1186_v2  ;;  %v1605_v2 = vrot.slane %v1180_v29, 1 }
 0x157   :  { %4867 = vmatprep.subr.bf16.mxu1 %v27894_v43  ;;  %v887_v4 = vadd.f32 %v19968_v11, %v886_v6  ;;  %v17415_v28 = vpop.f32.mrb[50].mxu0  ;;  %v20345_v6 = vsel %vm19986_vm2, %v1126_v38, 0 }
 0x158   :  { %v1599_v51 = vor.u32 %v1598_v33, %v27902_v30  ;;  %v898_v9 = vadd.f32 %v17415_v28, %v19968_v11  ;;  %v889_v58 = vpop.f32.mrb[51].mxu0  ;;  %27903 = vst [vmem:[#allocation44_spill] sm:$0xff] %v20345_v6  ;;  %v1130_v33 = vrot.slane %v27904_v53, 7  ;;  %v27905_v28 = vshrl.u32 %v20310_v48, 16 }
 0x159   :  { %v890_v54 = vadd.f32 %v19968_v11, %v889_v58  ;;  %v27909_v53 = vshll.u32 %v20138_v8, 16 }
 0x15a   :  { %4868 = vmatpush1.bf16.msra.mxu1 %v19313_v31  ;;  %v20341_v7 = vpack.c.bf16 %v898_v9, %v895_v10  ;;  %v1193_v30 = vrot.slane %v27905_v28, 7  ;;  %v20357_v9 = vsel %vm20262_vm4, %v1599_v51, 0  ;;  %v20363_v31 = vsel %vm19986_vm2, %v1189_v36, 0 }
 0x15b   :  { %4869 = vmatprep.subr.bf16.mxu1 %v27894_v43  ;;  %v20352_v58 = vpack.c.bf16 %v890_v54, %v887_v4  ;;  %27907 = vst [vmem:[#allocation46_spill] sm:$0xff] %v20357_v9  ;;  %27908 = vst [vmem:[#allocation47_spill] sm:$0xff] %v20363_v31  ;;  %v1194_v10 = vshll.u32 %v20310_v48, 16  ;;  %v19315_v54 = vld [vmem:[%s27191_s3 + $0x128] sm:$0xff]   ;;  %v1133_v4 = vor.u32 %v27909_v53, %v1130_v33  ;;  %v19316_v33 = vld [vmem:[%s27191_s3 + $0x130] sm:$0xff]   ;;  %v1200_v53 = vrot.slane %v27251_v50, 7 }
 0x15c   :  { %4412 = vmatmul.mubr.bf16.gmra.mrb[112].mxu0 %v20345_v6  ;;  %v27910_v6 = vshrl.u32 %v20251_v26, 16  ;;  %v27269_v12 = vshrl.u32 %v20341_v7, 16 }
 0x15d   :  { %27906 = vst [vmem:[#allocation45_spill] sm:$0xff] %v20352_v58  ;;  %4419 = vmatprep.mubr.bf16.mxu0 %v20138_v8  ;;  %4765 = vmatmul.mubr.bf16.gmra.mrb[8].mxu1 %v20357_v9  ;;  %v17418_v38 = vpop.f32.mrb[52].mxu0  ;;  %v1196_v28 = vor.u32 %v1194_v10, %v1193_v30 }
 0x15e   :  { %4772 = vmatprep.mubr.bf16.mxu1 %v20363_v31  ;;  %4870 = vmatpush1.bf16.msra.mxu1 %v19314_v59  ;;  %v911_v29 = vadd.f32 %v17418_v38, %v19968_v11  ;;  %v902_v51 = vpop.f32.mrb[53].mxu0  ;;  %v1606_v15 = vor.u32 %v1605_v2, %v27910_v6 }
 0x15f   :  { %4871 = vmatprep.subr.bf16.mxu1 %v27894_v43  ;;  %v903_v36 = vadd.f32 %v19968_v11, %v902_v51  ;;  %v17419_v9 = vpop.f32.mrb[54].mxu0  ;;  %v20387_v51 = vsel %vm19986_vm2, %v1133_v4, 0  ;;  %v20391_v6 = vsel %vm19986_vm2, %v1196_v28, 0  ;;  %v19317_v28 = vld [vmem:[%s27191_s3 + $0x138] sm:$0xff]  }
 0x160   :  { %v914_v59 = vadd.f32 %v17419_v9, %v19968_v11  ;;  %v905_v24 = vpop.f32.mrb[55].mxu0  ;;  %27911 = vst [vmem:[#allocation48_spill] sm:$0xff] %v20387_v51  ;;  %27912 = vst [vmem:[#allocation49_spill] sm:$0xff] %v20391_v6  ;;  %v27913_v9 = vshrl.u32 %v20132_v63, 16 }
 0x161   :  { %v906_v38 = vadd.f32 %v19968_v11, %v905_v24 }
 0x162   :  { %4872 = vmatpush1.bf16.msra.mxu1 %v19315_v54  ;;  %v20383_v30 = vpack.c.bf16 %v914_v59, %v911_v29  ;;  %v1137_v2 = vrot.slane %v27913_v9, 7  ;;  %v20401_v54 = vsel %vm20262_vm4, %v1606_v15, 0  ;;  %v1612_v29 = vrot.slane %v1187_v27, 1 }
 0x163   :  { %4873 = vmatprep.subr.bf16.mxu1 %v27894_v43  ;;  %v20396_v24 = vpack.c.bf16 %v906_v38, %v903_v36  ;;  %27914 = vst [vmem:[#allocation50_spill] sm:$0xff] %v20401_v54  ;;  %v27915_v27 = vshll.u32 %v20132_v63, 16  ;;  %v1201_v38 = vshll.u32 %v20296_v17, 16  ;;  %v27918_v9 = vshrl.u32 %v20172_v32, 16 }
 0x164   :  { %4420 = vmatmul.mubr.bf16.gmra.mrb[116].mxu0 %v20387_v51 }
 0x165   :  { %4427 = vmatprep.mubr.bf16.mxu0 %v20132_v63  ;;  %4773 = vmatmul.mubr.bf16.gmra.mrb[12].mxu1 %v20401_v54  ;;  %v17422_v4 = vpop.f32.mrb[56].mxu0  ;;  %v1140_v59 = vor.u32 %v27915_v27, %v1137_v2  ;;  %v19318_v2 = vld [vmem:[%s27191_s3 + $0x140] sm:$0xff]  }
 0x166   :  { %4780 = vmatprep.mubr.bf16.mxu1 %v20391_v6  ;;  %4874 = vmatpush1.bf16.msra.mxu1 %v19316_v33  ;;  %v927_v36 = vadd.f32 %v17422_v4, %v19968_v11  ;;  %v918_v15 = vpop.f32.mrb[57].mxu0  ;;  %v27916_v33 = vshrl.u32 %v20246_v56, 16  ;;  %v1203_v4 = vor.u32 %v1201_v38, %v1200_v53  ;;  %v1619_v53 = vrot.slane %v1194_v10, 1 }
 0x167   :  { %4875 = vmatprep.subr.bf16.mxu1 %v27894_v43  ;;  %v919_v50 = vadd.f32 %v19968_v11, %v918_v15  ;;  %v17423_v54 = vpop.f32.mrb[58].mxu0  ;;  %v20429_v15 = vsel %vm19986_vm2, %v1140_v59, 0 }
 0x168   :  { %v1613_v51 = vor.u32 %v1612_v29, %v27916_v33  ;;  %v930_v8 = vadd.f32 %v17423_v54, %v19968_v11  ;;  %v921_v1 = vpop.f32.mrb[59].mxu0  ;;  %27917 = vst [vmem:[#allocation51_spill] sm:$0xff] %v20429_v15  ;;  %v1144_v29 = vrot.slane %v27918_v9, 7  ;;  %v27919_v54 = vshrl.u32 %v20352_v58, 16 }
 0x169   :  { %v922_v44 = vadd.f32 %v19968_v11, %v921_v1 }
 0x16a   :  { %4876 = vmatpush1.bf16.msra.mxu1 %v19317_v28  ;;  %v20425_v27 = vpack.c.bf16 %v930_v8, %v927_v36  ;;  %v1207_v33 = vrot.slane %v27919_v54, 7  ;;  %v20441_v8 = vsel %vm20262_vm4, %v1613_v51, 0  ;;  %v20447_v28 = vsel %vm19986_vm2, %v1203_v4, 0 }
 0x16b   :  { %4877 = vmatprep.subr.bf16.mxu1 %v27894_v43  ;;  %v20436_v1 = vpack.c.bf16 %v922_v44, %v919_v50  ;;  %27920 = vst [vmem:[#allocation52_spill] sm:$0xff] %v20441_v8  ;;  %27921 = vst [vmem:[#allocation53_spill] sm:$0xff] %v20447_v28  ;;  %v1208_v36 = vshll.u32 %v20352_v58, 16  ;;  %v19319_v44 = vld [vmem:[%s27191_s3 + $0x148] sm:$0xff]   ;;  %v27922_v51 = vshll.u32 %v20172_v32, 16 }
 0x16c   :  { %4428 = vmatmul.mubr.bf16.gmra.mrb[120].mxu0 %v20429_v15  ;;  %v27923_v15 = vshrl.u32 %v20310_v48, 16 }
 0x16d   :  { %4435 = vmatprep.mubr.bf16.mxu0 %v20172_v32  ;;  %4781 = vmatmul.mubr.bf16.gmra.mrb[16].mxu1 %v20441_v8  ;;  %v17426_v59 = vpop.f32.mrb[60].mxu0  ;;  %v1147_v9 = vor.u32 %v27922_v51, %v1144_v29  ;;  %v1210_v54 = vor.u32 %v1208_v36, %v1207_v33  ;;  %v19320_v29 = vld [vmem:[%s27191_s3 + $0x150] sm:$0xff]   ;;  %v1215_v51 = vshll.u32 %v20341_v7, 16 }
 0x16e   :  { %4788 = vmatprep.mubr.bf16.mxu1 %v20447_v28  ;;  %4878 = vmatpush1.bf16.msra.mxu1 %v19318_v2  ;;  %v943_v50 = vadd.f32 %v17426_v59, %v19968_v11  ;;  %v934_v10 = vpop.f32.mrb[61].mxu0  ;;  %v1620_v63 = vor.u32 %v1619_v53, %v27923_v15 }
 0x16f   :  { %4879 = vmatprep.subr.bf16.mxu1 %v27894_v43  ;;  %v935_v4 = vadd.f32 %v19968_v11, %v934_v10  ;;  %v17427_v8 = vpop.f32.mrb[62].mxu0  ;;  %v20471_v10 = vsel %vm19986_vm2, %v1147_v9, 0  ;;  %v20475_v15 = vsel %vm19986_vm2, %v1210_v54, 0  ;;  %v1219_v9 = vshrl.u32 %v20396_v24, 16 }
 0x170   :  { %v946_v2 = vadd.f32 %v17427_v8, %v19968_v11  ;;  %v937_v23 = vpop.f32.mrb[63].mxu0  ;;  %27924 = vst [vmem:[#allocation54_spill] sm:$0xff] %v20471_v10  ;;  %27925 = vst [vmem:[#allocation55_spill] sm:$0xff] %v20475_v15  ;;  %v27927_v54 = vshrl.u32 %v20296_v17, 16 }
 0x171   :  { %v938_v59 = vadd.f32 %v19968_v11, %v937_v23  ;;  %v20483_v11 = vsel %vm20262_vm4, %v1620_v63, 0  ;;  %v1626_v23 = vrot.slane %v1201_v38, 1 }
 0x172   :  { %4880 = vmatpush1.bf16.msra.mxu1 %v19319_v44  ;;  %v20467_v33 = vpack.c.bf16 %v946_v2, %v943_v50  ;;  %27926 = vst [vmem:[#allocation56_spill] sm:$0xff] %v20483_v11  ;;  %v1214_v44 = vrot.slane %v27269_v12, 7  ;;  %v19321_v50 = vld [vmem:[%s27191_s3 + $0x158] sm:$0xff]  }
 0x173   :  { %4881 = vmatprep.subr.bf16.mxu1 %v27894_v43  ;;  %v20478_v8 = vpack.c.bf16 %v938_v59, %v935_v4  ;;  %v1627_v4 = vor.u32 %v1626_v23, %v27927_v54  ;;  %v27932_v54 = vshll.u32 %v20198_v14, 16 }
 0x174   :  { %4436 = vmatmul.mubr.bf16.gmra.mrb[124].mxu0 %v20471_v10  ;;  %v27268_v53 = vshll.u32 %v20467_v33, 16  ;;  %v27272_v63 = vshrl.u32 %v20467_v33, 16  ;;  %v1217_v59 = vor.u32 %v1215_v51, %v1214_v44 }
 0x175   :  { %4789 = vmatmul.mubr.bf16.gmra.mrb[20].mxu1 %v20483_v11  ;;  %4443 = vmatprep.mubr.bf16.mxu0 %v27894_v43  ;;  %v1221_v11 = vrot.slane %v1219_v9, 7  ;;  %v20515_v23 = vsel %vm20262_vm4, %v1627_v4, 0 }
 0x176   :  { %4796 = vmatprep.mubr.bf16.mxu1 %v20475_v15  ;;  %4882 = vmatpush1.bf16.msra.mxu1 %v19320_v29  ;;  %v2501_v38 = vrot.slane %v27268_v53, 1  ;;  %v19322_v29 = vld [vmem:[%s27191_s3 + $0x160] sm:$0xff]   ;;  %v27929_v53 = vshrl.u32 %v20198_v14, 16  ;;  %27930 = vst [vmem:[#allocation58_spill] sm:$0xff] %v20515_v23  ;;  %v20521_v44 = vsel %vm19986_vm2, %v1217_v59, 0  ;;  %v1226_v59 = vshrl.u32 %v20383_v30, 16 }
 0x177   :  { %4883 = vmatprep.subr.bf16.mxu1 %v27894_v43  ;;  %27931 = vst [vmem:[#allocation59_spill] sm:$0xff] %v20521_v44 }
 0x178   :  { %v20504_v2 = vor.u32 %v2501_v38, %v27272_v63  ;;  %v1151_v12 = vrot.slane %v27929_v53, 7  ;;  %v1633_v38 = vrot.slane %v1208_v36, 1  ;;  %v1222_v53 = vshll.u32 %v20396_v24, 16 }
 0x179   :  { %v27933_v63 = vshrl.u32 %v20352_v58, 16 }
 0x17a   :  { %27928 = vst [vmem:[#allocation57_spill] sm:$0xff] %v20504_v2  ;;  %4884 = vmatpush1.bf16.msra.mxu1 %v19321_v50  ;;  %v19323_v50 = vld [vmem:[%s27191_s3 + $0x168] sm:$0xff]   ;;  %v1154_v36 = vor.u32 %v27932_v54, %v1151_v12  ;;  %v1224_v4 = vor.u32 %v1222_v53, %v1221_v11  ;;  %v27936_v11 = vshrl.u32 %v20190_v37, 16 }
 0x17b   :  { %4885 = vmatprep.subr.bf16.mxu1 %v27894_v43  ;;  %v1634_v2 = vor.u32 %v1633_v38, %v27933_v63  ;;  %v1640_v38 = vrot.slane %v1215_v51, 1  ;;  %v27939_v51 = vshrl.u32 %v20341_v7, 16 }
 0x17c   :  { %4444 = vmatmul.mubr.bf16.gmra.mrb[128].mxu0 %v27894_v43  ;;  %v20543_v12 = vsel %vm19986_vm2, %v1224_v4, 0  ;;  %v1158_v54 = vrot.slane %v27936_v11, 7  ;;  %v27938_v4 = vshll.u32 %v20190_v37, 16 }
 0x17d   :  { %4451 = vmatprep.mubr.bf16.mxu0 %v20198_v14  ;;  %4797 = vmatmul.mubr.bf16.gmra.mrb[24].mxu1 %v20515_v23  ;;  %v20539_v23 = vsel %vm19986_vm2, %v1154_v36, 0  ;;  %27935 = vst [vmem:[#allocation61_spill] sm:$0xff] %v20543_v12  ;;  %v20551_v63 = vsel %vm20262_vm4, %v1634_v2, 0  ;;  %v19325_v36 = vld [vmem:[%s27191_s3 + $0x178] sm:$0xff]   ;;  %v1233_v2 = vshrl.u32 %v20436_v1, 16 }
 0x17e   :  { %4804 = vmatprep.mubr.bf16.mxu1 %v20521_v44  ;;  %4886 = vmatpush1.bf16.msra.mxu1 %v19322_v29  ;;  %v19324_v29 = vld [vmem:[%s27191_s3 + $0x170] sm:$0xff]   ;;  %27934 = vst [vmem:[#allocation60_spill] sm:$0xff] %v20539_v23  ;;  %27937 = vst [vmem:[#allocation62_spill] sm:$0xff] %v20551_v63  ;;  %v1161_v11 = vor.u32 %v27938_v4, %v1158_v54  ;;  %v1647_v4 = vrot.slane %v1222_v53, 1 }
 0x17f   :  { %4887 = vmatprep.subr.bf16.mxu1 %v27894_v43  ;;  %v1235_v14 = vrot.slane %v1233_v2, 7 }
 0x182   :  { %4888 = vmatpush1.bf16.msra.mxu1 %v19323_v50  ;;  %v1228_v50 = vrot.slane %v1226_v59, 7 }
 0x183   :  { %4889 = vmatprep.subr.bf16.mxu1 %v27894_v43 }
 0x184   :  { %4452 = vmatmul.mubr.bf16.gmra.mrb[132].mxu0 %v20539_v23  ;;  %v1229_v23 = vshll.u32 %v20383_v30, 16 }
 0x185   :  { %4459 = vmatprep.mubr.bf16.mxu0 %v20190_v37  ;;  %4805 = vmatmul.mubr.bf16.gmra.mrb[28].mxu1 %v20551_v63  ;;  %v1641_v63 = vor.u32 %v1640_v38, %v27939_v51  ;;  %v1240_v51 = vshrl.u32 %v20425_v27, 16 }
 0x186   :  { %4812 = vmatprep.mubr.bf16.mxu1 %v20543_v12  ;;  %4890 = vmatpush1.bf16.msra.mxu1 %v19324_v29  ;;  %v1231_v10 = vor.u32 %v1229_v23, %v1228_v50  ;;  %v20568_v29 = vsel %vm19986_vm2, %v1161_v11, 0  ;;  %v1236_v50 = vshll.u32 %v20436_v1, 16  ;;  %v1648_v11 = vor.u32 %v1647_v4, %v1219_v9 }
 0x187   :  { %4891 = vmatprep.subr.bf16.mxu1 %v27894_v43  ;;  %27940 = vst [vmem:[#allocation63_spill] sm:$0xff] %v20568_v29  ;;  %v20574_v54 = vsel %vm20262_vm4, %v1641_v63, 0  ;;  %v1247_v9 = vshrl.u32 %v20478_v8, 16 }
 0x188   :  { %27941 = vst [vmem:[#allocation64_spill] sm:$0xff] %v20574_v54  ;;  %v20580_v38 = vsel %vm19986_vm2, %v1231_v10, 0  ;;  %v20592_v53 = vsel %vm20262_vm4, %v1648_v11, 0  ;;  %v1654_v10 = vrot.slane %v1229_v23, 1  ;;  %v1661_v23 = vrot.slane %v1236_v50, 1 }
 0x189   :  { %27942 = vst [vmem:[#allocation65_spill] sm:$0xff] %v20580_v38  ;;  %27944 = vst [vmem:[#allocation67_spill] sm:$0xff] %v20592_v53 }
 0x18a   :  { %4892 = vmatpush1.bf16.msra.mxu1 %v19325_v36  ;;  %v1238_v36 = vor.u32 %v1236_v50, %v1235_v14  ;;  %v1243_v14 = vshll.u32 %v20425_v27, 16  ;;  %v1655_v4 = vor.u32 %v1654_v10, %v1226_v59 }
 0x18b   :  { %5150 = vmatprep.subr.bf16.mxu1 %v27894_v43 }
 0x18c   :  { %4460 = vmatmul.mubr.bf16.gmra.mrb[136].mxu0 %v20568_v29  ;;  %v20587_v63 = vsel %vm19986_vm2, %v1238_v36, 0  ;;  %v1249_v29 = vrot.slane %v1247_v9, 7  ;;  %v20602_v11 = vsel %vm20262_vm4, %v1655_v4, 0  ;;  %v1668_v4 = vrot.slane %v1243_v14, 1 }
 0x18d   :  { %4467 = vmatprep.mubr.bf16.mxu0 %v20221_v47  ;;  %4813 = vmatmul.mubr.bf16.gmra.mrb[32].mxu1 %v20574_v54  ;;  %27943 = vst [vmem:[#allocation66_spill] sm:$0xff] %v20587_v63  ;;  %v1242_v54 = vrot.slane %v1240_v51, 7  ;;  %27945 = vst [vmem:[#allocation68_spill] sm:$0xff] %v20602_v11 }
 0x18e   :  { %4820 = vmatprep.mubr.bf16.mxu1 %v20580_v38 }
 0x18f   :  { %v1245_v36 = vor.u32 %v1243_v14, %v1242_v54  ;;  %v1662_v54 = vor.u32 %v1661_v23, %v1233_v2  ;;  %v1669_v2 = vor.u32 %v1668_v4, %v1240_v51  ;;  %v20662_v4 = vsel %vm20262_vm4, %v19990_v35, 0  ;;  %v19329_v35 = vld [vmem:[%s27191_s3 + $0x198] sm:$0xff]  }
 0x190   :  { %27955 = vst [vmem:[#allocation76_spill] sm:$0xff] %v20662_v4 }
 0x191   :  { %v20619_v50 = vsel %vm20262_vm4, %v1662_v54, 0 }
 0x192   :  { %27948 = vst [vmem:[#allocation71_spill] sm:$0xff] %v20619_v50 }
 0x194   :  { %4468 = vmatmul.mubr.bf16.gmra.mrb[140].mxu0 %v20259_v45  ;;  %v20608_v45 = vsel %vm19986_vm2, %v1245_v36, 0  ;;  %v27949_v36 = vshrl.u32 %v20467_v33, 16 }
 0x195   :  { %4475 = vmatprep.mubr.bf16.mxu0 %v20217_v55  ;;  %4821 = vmatmul.mubr.bf16.gmra.mrb[36].mxu1 %v20592_v53  ;;  %27946 = vst [vmem:[#allocation69_spill] sm:$0xff] %v20608_v45  ;;  %v1250_v53 = vshll.u32 %v20478_v8, 16 }
 0x196   :  { %4828 = vmatprep.mubr.bf16.mxu1 %v20587_v63 }
 0x197   :  { %v1252_v59 = vor.u32 %v1250_v53, %v1249_v29  ;;  %v27950_v29 = vshll.u32 %v20467_v33, 16  ;;  %v1675_v14 = vrot.slane %v1250_v53, 1  ;;  %v20650_v53 = vsel %vm20262_vm4, %v19994_v39, 0  ;;  %v19327_v39 = vld [vmem:[%s27191_s3 + $0x188] sm:$0xff]  }
 0x198   :  { %27954 = vst [vmem:[#allocation75_spill] sm:$0xff] %v20650_v53 }
 0x199   :  { %v20614_v10 = vsel %vm19986_vm2, %v1252_v59, 0  ;;  %v20631_v59 = vsel %vm20262_vm4, %v1669_v2, 0  ;;  %v1676_v51 = vor.u32 %v1675_v14, %v1247_v9  ;;  %v19326_v9 = vld [vmem:[%s27191_s3 + $0x180] sm:$0xff]   ;;  %v19333_v14 = vld [vmem:[%s27191_s3 + $0x1b8] sm:$0xff]  }
 0x19a   :  { %27947 = vst [vmem:[#allocation70_spill] sm:$0xff] %v20614_v10  ;;  %27951 = vst [vmem:[#allocation72_spill] sm:$0xff] %v20631_v59  ;;  %v19330_v2 = vld [vmem:[%s27191_s3 + $0x1a0] sm:$0xff]  }
 0x19c   :  { %4476 = vmatmul.mubr.bf16.gmra.mrb[144].mxu0 %v20278_v18  ;;  %v2051_v18 = vrot.slane %v27949_v36, 7  ;;  %v19328_v36 = vld [vmem:[%s27191_s3 + $0x190] sm:$0xff]  }
 0x19d   :  { %4483 = vmatprep.mubr.bf16.mxu0 %v20251_v26  ;;  %4829 = vmatmul.mubr.bf16.gmra.mrb[40].mxu1 %v20602_v11 }
 0x19e   :  { %4836 = vmatprep.mubr.bf16.mxu1 %v20608_v45  ;;  %v2054_v23 = vor.u32 %v27950_v29, %v2051_v18  ;;  %v20643_v18 = vsel %vm20262_vm4, %v1676_v51, 0  ;;  %v19331_v29 = vld [vmem:[%s27191_s3 + $0x1a8] sm:$0xff]   ;;  %v19334_v51 = vld [vmem:[%s27191_s3 + $0x1c0] sm:$0xff]  }
 0x19f   :  { %27953 = vst [vmem:[#allocation74_spill] sm:$0xff] %v20643_v18 }
 0x1a0   :  { %v20637_v54 = vsel %vm19986_vm2, %v2054_v23, 0  ;;  %v19332_v23 = vld [vmem:[%s27191_s3 + $0x1b0] sm:$0xff]  }
 0x1a1   :  { %27952 = vst [vmem:[#allocation73_spill] sm:$0xff] %v20637_v54 }
 0x1a4   :  { %4484 = vmatmul.mubr.bf16.gmra.mrb[148].mxu0 %v20307_v13 }
 0x1a5   :  { %4491 = vmatprep.mubr.bf16.mxu0 %v20246_v56  ;;  %4837 = vmatmul.mubr.bf16.gmra.mrb[44].mxu1 %v20619_v50 }
 0x1a6   :  { %4844 = vmatprep.mubr.bf16.mxu1 %v20614_v10 }
 0x1ac   :  { %4492 = vmatmul.mubr.bf16.gmra.mrb[152].mxu0 %v20363_v31  ;;  %v27986_v31 = vld [vmem:[#allocation28_spill] sm:$0xff] }
 0x1ad   :  { %4499 = vmatprep.mubr.bf16.mxu0 %v20310_v48  ;;  %4845 = vmatmul.mubr.bf16.gmra.mrb[48].mxu1 %v20631_v59 }
 0x1ae   :  { %4852 = vmatprep.mubr.bf16.mxu1 %v20637_v54  ;;  %v27973_v54 = vld [vmem:[#allocation14_spill] sm:$0xff] }
 0x1b4   :  { %4500 = vmatmul.mubr.bf16.gmra.mrb[156].mxu0 %v20391_v6 }
 0x1b5   :  { %4507 = vmatprep.mubr.bf16.mxu0 %v20296_v17  ;;  %4853 = vmatmul.mubr.bf16.gmra.mrb[52].mxu1 %v20643_v18 }
 0x1b6   :  { %4893 = vmatprep.mubr.bf16.mxu1 %v20650_v53 }
 0x1bc   :  { %4508 = vmatmul.mubr.bf16.gmra.mrb[160].mxu0 %v20447_v28 }
 0x1bd   :  { %4515 = vmatprep.mubr.bf16.mxu0 %v20352_v58  ;;  %4894 = vmatmul.mubr.bf16.vlgmr.msra.gmra.mrb[56].mxu1 %v19976_v20  ;;  %v20679_v20 = vsel %vm20262_vm4, %v20016_v60, 0  ;;  %v20696_v60 = vsel %vm20262_vm4, %v20012_v57, 0  ;;  %v20713_v57 = vsel %vm20262_vm4, %v20040_v21, 0  ;;  %v20730_v21 = vsel %vm20262_vm4, %v20036_v16, 0 }
 0x1be   :  { %5151 = vmatpush1.bf16.msra.mxu1 %v19326_v9  ;;  %4901 = vmatprep.mubr.bf16.mxu1 %v20662_v4  ;;  %27956 = vst [vmem:[#allocation77_spill] sm:$0xff] %v20679_v20  ;;  %27957 = vst [vmem:[#allocation78_spill] sm:$0xff] %v20696_v60  ;;  %v19335_v9 = vld [vmem:[%s27191_s3 + $0x1c8] sm:$0xff]   ;;  %v20747_v16 = vsel %vm20262_vm4, %v20068_v49, 0  ;;  %v20760_v49 = vsel %vm20262_vm4, %v20064_v46, 0  ;;  %v20773_v46 = vsel %vm20262_vm4, %v20098_v3, 0 }
 0x1bf   :  { %5152 = vmatprep.subr.bf16.mxu1 %v27894_v43  ;;  %27958 = vst [vmem:[#allocation79_spill] sm:$0xff] %v20713_v57  ;;  %27959 = vst [vmem:[#allocation80_spill] sm:$0xff] %v20730_v21  ;;  %v19343_v3 = vld [vmem:[%s27191_s3 + $0x1e0] sm:$0xff]  }
 0x1c0   :  { %27960 = vst [vmem:[#allocation81_spill] sm:$0xff] %v20747_v16  ;;  %27961 = vst [vmem:[#allocation82_spill] sm:$0xff] %v20760_v49 }
 0x1c1   :  { %27962 = vst [vmem:[#allocation83_spill] sm:$0xff] %v20773_v46 }
 0x1c2   :  { %5153 = vmatpush1.bf16.msra.mxu1 %v19327_v39  ;;  %v19336_v39 = vld [vmem:[%s27191_s3 + $0x1d0] sm:$0xff]  }
 0x1c3   :  { %5154 = vmatprep.subr.bf16.mxu1 %v27894_v43 }
 0x1c4   :  { %4516 = vmatmul.mubr.bf16.gmra.mrb[164].mxu0 %v20475_v15  ;;  %v27984_v15 = vld [vmem:[#allocation26_spill] sm:$0xff] }
 0x1c5   :  { %4523 = vmatprep.mubr.bf16.mxu0 %v20341_v7  ;;  %4902 = vmatmul.mubr.bf16.gmra.mrb[60].mxu1 %v19974_v19 }
 0x1c6   :  { %4909 = vmatprep.mubr.bf16.mxu1 %v20679_v20  ;;  %5155 = vmatpush1.bf16.msra.mxu1 %v19328_v36  ;;  %v19337_v36 = vld [vmem:[%s27191_s3 + $0x200] sm:$0xff]  }
 0x1c7   :  { %5156 = vmatprep.subr.bf16.mxu1 %v27894_v43  ;;  %17428 = vmatprep.subr.bf16.mxu0 %v19337_v36 }
 0x1ca   :  { %5157 = vmatpush1.bf16.msra.mxu1 %v19329_v35  ;;  %v19338_v35 = vld [vmem:[%s27191_s3 + $0x1d8] sm:$0xff]  }
 0x1cb   :  { %5158 = vmatprep.subr.bf16.mxu1 %v27894_v43 }
 0x1cc   :  { %4524 = vmatmul.mubr.bf16.gmra.mrb[168].mxu0 %v20521_v44  ;;  %v27983_v44 = vld [vmem:[#allocation18_spill] sm:$0xff] }
 0x1cd   :  { %4531 = vmatprep.mubr.bf16.mxu0 %v20396_v24  ;;  %4910 = vmatmul.mubr.bf16.gmra.mrb[64].mxu1 %v19998_v41 }
 0x1ce   :  { %4917 = vmatprep.mubr.bf16.mxu1 %v20696_v60  ;;  %5159 = vmatpush1.bf16.msra.mxu1 %v19330_v2  ;;  %v19339_v2 = vld [vmem:[%s27191_s3 + $0x208] sm:$0xff]  }
 0x1cf   :  { %5160 = vmatprep.subr.bf16.mxu1 %v27894_v43 }
 0x1d2   :  { %5161 = vmatpush1.bf16.msra.mxu1 %v19331_v29  ;;  %v27963_v29 = vld [vmem:[#allocation12_spill] sm:$0xff] }
 0x1d3   :  { %5162 = vmatprep.subr.bf16.mxu1 %v27894_v43 }
 0x1d4   :  { %4532 = vmatmul.mubr.bf16.gmra.mrb[172].mxu0 %v20543_v12  ;;  %v27982_v12 = vld [vmem:[#allocation24_spill] sm:$0xff] }
 0x1d5   :  { %4539 = vmatprep.mubr.bf16.mxu0 %v20383_v30  ;;  %4918 = vmatmul.mubr.bf16.gmra.mrb[68].mxu1 %v19996_v40 }
 0x1d6   :  { %4925 = vmatprep.mubr.bf16.mxu1 %v20713_v57  ;;  %5163 = vmatpush1.bf16.msra.mxu1 %v19332_v23  ;;  %v20785_v23 = vsel %vm20262_vm4, %v27963_v29, 0  ;;  %v19344_v29 = vld [vmem:[%s27191_s3 + $0x228] sm:$0xff]  }
 0x1d7   :  { %5164 = vmatprep.subr.bf16.mxu1 %v27894_v43  ;;  %27964 = vst [vmem:[#allocation12_spill] sm:$0xff] %v20785_v23 }
 0x1da   :  { %5165 = vmatpush1.bf16.msra.mxu1 %v19333_v14  ;;  %v19340_v14 = vld [vmem:[%s27191_s3 + $0x210] sm:$0xff]  }
 0x1db   :  { %5166 = vmatprep.subr.bf16.mxu1 %v27894_v43 }
 0x1dc   :  { %4540 = vmatmul.mubr.bf16.gmra.mrb[176].mxu0 %v20580_v38 }
 0x1dd   :  { %4547 = vmatprep.mubr.bf16.mxu0 %v20436_v1  ;;  %4926 = vmatmul.mubr.bf16.gmra.mrb[72].mxu1 %v20024_v0 }
 0x1de   :  { %4933 = vmatprep.mubr.bf16.mxu1 %v20730_v21  ;;  %5167 = vmatpush1.bf16.msra.mxu1 %v19334_v51  ;;  %v19341_v51 = vld [vmem:[%s27191_s3 + $0x218] sm:$0xff]  }
 0x1df   :  { %5168 = vmatprep.subr.bf16.mxu1 %v27894_v43 }
 0x1e2   :  { %5169 = vmatpush1.bf16.msra.mxu1 %v19335_v9  ;;  %v27965_v9 = vld [vmem:[#allocation8_spill] sm:$0xff] }
 0x1e3   :  { %5170 = vmatprep.subr.bf16.mxu1 %v27894_v43 }
 0x1e4   :  { %4548 = vmatmul.mubr.bf16.gmra.mrb[180].mxu0 %v20587_v63  ;;  %v27979_v63 = vld [vmem:[#allocation21_spill] sm:$0xff] }
 0x1e5   :  { %4555 = vmatprep.mubr.bf16.mxu0 %v20425_v27  ;;  %4934 = vmatmul.mubr.bf16.gmra.mrb[76].mxu1 %v20018_v61  ;;  %v20847_v38 = vsel %vm20262_vm4, %v27979_v63, 0  ;;  %v20861_v63 = vsel %vm20262_vm4, %v27984_v15, 0  ;;  %v19349_v15 = vld [vmem:[%s27191_s3 + $0x1f8] sm:$0xff]  }
 0x1e6   :  { %4941 = vmatprep.mubr.bf16.mxu1 %v20747_v16  ;;  %5171 = vmatpush1.bf16.msra.mxu1 %v19336_v39  ;;  %v27966_v39 = vld [vmem:[#allocation9_spill] sm:$0xff]  ;;  %27980 = vst [vmem:[#allocation21_spill] sm:$0xff] %v20847_v38  ;;  %27985 = vst [vmem:[#allocation26_spill] sm:$0xff] %v20861_v63 }
 0x1e7   :  { %5172 = vmatprep.subr.bf16.mxu1 %v27894_v43 }
 0x1ea   :  { %5173 = vmatpush1.bf16.msra.mxu1 %v19338_v35 }
 0x1eb   :  { %5174 = vmatprep.subr.bf16.mxu1 %v27894_v43 }
 0x1ec   :  { %4556 = vmatmul.mubr.bf16.gmra.mrb[184].mxu0 %v20608_v45 }
 0x1ed   :  { %4563 = vmatprep.mubr.bf16.mxu0 %v20478_v8  ;;  %4942 = vmatmul.mubr.bf16.gmra.mrb[80].mxu1 %v20048_v25 }
 0x1ee   :  { %4949 = vmatprep.mubr.bf16.mxu1 %v20760_v49  ;;  %5175 = vmatpush1.bf16.msra.mxu1 %v19343_v3  ;;  %v27969_v3 = vld [vmem:[#allocation10_spill] sm:$0xff] }
 0x1ef   :  { %5176 = vmatprep.subr.bf16.mxu1 %v27894_v43 }
 0x1f4   :  { %4564 = vmatmul.mubr.bf16.gmra.mrb[188].mxu0 %v20614_v10  ;;  %v27974_v10 = vld [vmem:[#allocation13_spill] sm:$0xff] }
 0x1f5   :  { %4604 = vmatprep.mubr.bf16.mxu0 %v20002_v42  ;;  %4950 = vmatmul.mubr.bf16.gmra.mrb[84].mxu1 %v20042_v22  ;;  %v19345_v42 = vld [vmem:[%s27191_s3 + $0x230] sm:$0xff]  }
 0x1f6   :  { %4957 = vmatprep.mubr.bf16.mxu1 %v20773_v46 }
 0x1fc   :  { %4605 = vmatmul.mubr.bf16.vlgmr.msra.gmra.mrb[64].mxu0 %v27894_v43 }
 0x1fd   :  { %4612 = vmatprep.mubr.bf16.mxu0 %v20022_v62  ;;  %4958 = vmatmul.mubr.bf16.gmra.mrb[88].mxu1 %v20076_v52  ;;  %v28005_v52 = vld [vmem:[#allocation56_spill] sm:$0xff] }
 0x1fe   :  { %4965 = vmatprep.mubr.bf16.mxu1 %v20785_v23  ;;  %17429 = vmatpush3.bf16.msra.mxu0 %v19337_v36  ;;  %v27967_v36 = vld [vmem:[#allocation17_spill] sm:$0xff] }
 0x1ff   :  { %17430 = vmatprep.subr.bf16.mxu0 %v19339_v2  ;;  %v20804_v35 = vsel %vm20262_vm4, %v27967_v36, 0  ;;  %v27970_v36 = vld [vmem:[#allocation15_spill] sm:$0xff] }
 0x200   :  { %27968 = vst [vmem:[#allocation17_spill] sm:$0xff] %v20804_v35 }
 0x202   :  { %17431 = vmatpush3.bf16.msra.mxu0 %v19339_v2  ;;  %v19342_v2 = vld [vmem:[%s27191_s3 + $0x220] sm:$0xff]  }
 0x203   :  { %17432 = vmatprep.subr.bf16.mxu0 %v19340_v14 }
 0x204   :  { %4613 = vmatmul.mubr.bf16.gmra.mrb[68].mxu0 %v20650_v53  ;;  %v27971_v53 = vld [vmem:[#allocation16_spill] sm:$0xff] }
 0x205   :  { %4620 = vmatprep.mubr.bf16.mxu0 %v27965_v9  ;;  %4966 = vmatmul.mubr.bf16.gmra.mrb[92].mxu1 %v27966_v39 }
 0x206   :  { %4973 = vmatprep.mubr.bf16.mxu1 %v20804_v35  ;;  %17433 = vmatpush3.bf16.msra.mxu0 %v19340_v14  ;;  %v20819_v14 = vsel %vm20262_vm4, %v27971_v53, 0  ;;  %v19346_v53 = vld [vmem:[%s27191_s3 + $0x238] sm:$0xff]  }
 0x207   :  { %17434 = vmatprep.subr.bf16.mxu0 %v19341_v51  ;;  %27972 = vst [vmem:[#allocation16_spill] sm:$0xff] %v20819_v14 }
 0x20a   :  { %17435 = vmatpush3.bf16.msra.mxu0 %v19341_v51  ;;  %v19347_v51 = vld [vmem:[%s27191_s3 + $0x1e8] sm:$0xff]  }
 0x20b   :  { %17436 = vmatprep.subr.bf16.mxu0 %v19342_v2  ;;  %5177 = vmatpush1.bf16.msra.mxu1 %v19347_v51  ;;  %v27978_v51 = vld [vmem:[#allocation20_spill] sm:$0xff] }
 0x20c   :  { %4621 = vmatmul.mubr.bf16.gmra.mrb[72].mxu0 %v20662_v4  ;;  %5178 = vmatprep.subr.bf16.mxu1 %v27894_v43 }
 0x20d   :  { %4628 = vmatprep.mubr.bf16.mxu0 %v27969_v3  ;;  %4974 = vmatmul.mubr.bf16.gmra.mrb[96].mxu1 %v27970_v36  ;;  %v27997_v36 = vld [vmem:[#allocation46_spill] sm:$0xff] }
 0x20e   :  { %4981 = vmatprep.mubr.bf16.mxu1 %v20819_v14  ;;  %17437 = vmatpush3.bf16.msra.mxu0 %v19342_v2  ;;  %v27975_v2 = vld [vmem:[#allocation22_spill] sm:$0xff] }
 0x20f   :  { %17438 = vmatprep.subr.bf16.mxu0 %v19344_v29  ;;  %v20838_v45 = vsel %vm20262_vm4, %v27975_v2, 0  ;;  %v19348_v2 = vld [vmem:[%s27191_s3 + $0x1f0] sm:$0xff]  }
 0x210   :  { %27976 = vst [vmem:[#allocation22_spill] sm:$0xff] %v20838_v45  ;;  %5179 = vmatpush1.bf16.msra.mxu1 %v19348_v2 }
 0x211   :  { %5180 = vmatprep.subr.bf16.mxu1 %v27894_v43 }
 0x212   :  { %17439 = vmatpush3.bf16.msra.mxu0 %v19344_v29  ;;  %v27977_v29 = vld [vmem:[#allocation19_spill] sm:$0xff] }
 0x213   :  { %17440 = vmatprep.subr.bf16.mxu0 %v19345_v42 }
 0x214   :  { %4629 = vmatmul.mubr.bf16.gmra.mrb[76].mxu0 %v20679_v20  ;;  %5181 = vmatpush1.bf16.msra.mxu1 %v19349_v15  ;;  %v27993_v15 = vld [vmem:[#allocation38_spill] sm:$0xff] }
 0x215   :  { %4636 = vmatprep.mubr.bf16.mxu0 %v27973_v54  ;;  %4982 = vmatmul.mubr.bf16.gmra.mrb[100].mxu1 %v27974_v10  ;;  %v27994_v10 = vld [vmem:[#allocation41_spill] sm:$0xff] }
 0x216   :  { %4989 = vmatprep.mubr.bf16.mxu1 %v20838_v45  ;;  %17441 = vmatpush3.bf16.msra.mxu0 %v19345_v42  ;;  %v27981_v42 = vld [vmem:[#allocation23_spill] sm:$0xff] }
 0x217   :  { %17442 = vmatprep.subr.bf16.mxu0 %v19346_v53  ;;  %v1937_v2 = vshrl.u32 %v27981_v42, 16 }
 0x21a   :  { %17443 = vmatpush3.bf16.msra.mxu0 %v19346_v53  ;;  %v1940_v53 = vshll.u32 %v27981_v42, 16 }
 0x21c   :  { %4637 = vmatmul.mubr.bf16.gmra.mrb[80].mxu0 %v20696_v60  ;;  %v2389_v28 = vrot.slane %v1940_v53, 1 }
 0x21d   :  { %4644 = vmatprep.mubr.bf16.mxu0 %v27977_v29  ;;  %4990 = vmatmul.mubr.bf16.gmra.mrb[104].mxu1 %v27978_v51  ;;  %v27992_v51 = vld [vmem:[#allocation29_spill] sm:$0xff] }
 0x21e   :  { %4997 = vmatprep.mubr.bf16.mxu1 %v20847_v38  ;;  %v2390_v6 = vor.u32 %v2389_v28, %v1937_v2  ;;  %v27988_v28 = vld [vmem:[#allocation33_spill] sm:$0xff] }
 0x220   :  { %v20870_v13 = vsel %vm20262_vm4, %v2390_v6, 0  ;;  %v27991_v6 = vld [vmem:[#allocation35_spill] sm:$0xff] }
 0x221   :  { %27987 = vst [vmem:[#allocation84_spill] sm:$0xff] %v20870_v13 }
 0x224   :  { %4645 = vmatmul.mubr.bf16.gmra.mrb[84].mxu0 %v20713_v57 }
 0x225   :  { %4652 = vmatprep.mubr.bf16.mxu0 %v27982_v12  ;;  %4998 = vmatmul.mubr.bf16.gmra.mrb[108].mxu1 %v27983_v44  ;;  %v27989_v44 = vld [vmem:[#allocation30_spill] sm:$0xff] }
 0x226   :  { %5005 = vmatprep.mubr.bf16.mxu1 %v20861_v63 }
 0x22c   :  { %4653 = vmatmul.mubr.bf16.gmra.mrb[88].mxu0 %v20730_v21 }
 0x22d   :  { %4660 = vmatprep.mubr.bf16.mxu0 %v27986_v31  ;;  %5006 = vmatmul.mubr.bf16.gmra.mrb[112].mxu1 %v20172_v32  ;;  %v20882_v32 = vsel %vm20262_vm4, %v27989_v44, 0  ;;  %v27996_v44 = vld [vmem:[#allocation44_spill] sm:$0xff] }
 0x22e   :  { %5013 = vmatprep.mubr.bf16.mxu1 %v20870_v13  ;;  %27990 = vst [vmem:[#allocation30_spill] sm:$0xff] %v20882_v32 }
 0x234   :  { %4661 = vmatmul.mubr.bf16.gmra.mrb[92].mxu0 %v20747_v16 }
 0x235   :  { %4668 = vmatprep.mubr.bf16.mxu0 %v27988_v28  ;;  %5014 = vmatmul.mubr.bf16.gmra.mrb[116].mxu1 %v27981_v42  ;;  %v27995_v42 = vld [vmem:[#allocation43_spill] sm:$0xff] }
 0x236   :  { %5021 = vmatprep.mubr.bf16.mxu1 %v20882_v32 }
 0x23c   :  { %4669 = vmatmul.mubr.bf16.gmra.mrb[96].mxu0 %v20760_v49 }
 0x23d   :  { %4676 = vmatprep.mubr.bf16.mxu0 %v27991_v6  ;;  %5022 = vmatmul.mubr.bf16.gmra.mrb[120].mxu1 %v27992_v51  ;;  %v27998_v51 = vld [vmem:[#allocation48_spill] sm:$0xff]  ;;  %v27999_v6 = vld [vmem:[#allocation50_spill] sm:$0xff] }
 0x23e   :  { %5029 = vmatprep.mubr.bf16.mxu1 %v27993_v15 }
 0x244   :  { %4677 = vmatmul.mubr.bf16.gmra.mrb[100].mxu0 %v20773_v46 }
 0x245   :  { %4684 = vmatprep.mubr.bf16.mxu0 %v27994_v10  ;;  %5030 = vmatmul.mubr.bf16.gmra.mrb[124].mxu1 %v20190_v37  ;;  %v28000_v37 = vld [vmem:[#allocation51_spill] sm:$0xff]  ;;  %v28001_v10 = vld [vmem:[#allocation52_spill] sm:$0xff] }
 0x246   :  { %5037 = vmatprep.mubr.bf16.mxu1 %v27995_v42 }
 0x24c   :  { %4685 = vmatmul.mubr.bf16.gmra.mrb[104].mxu0 %v20785_v23 }
 0x24d   :  { %4692 = vmatprep.mubr.bf16.mxu0 %v27996_v44  ;;  %5038 = vmatmul.mubr.bf16.gmra.mrb[0].mxu1 %v20221_v47 }
 0x24e   :  { %5045 = vmatprep.mubr.bf16.mxu1 %v27997_v36 }
 0x254   :  { %4693 = vmatmul.mubr.bf16.gmra.mrb[108].mxu0 %v20804_v35 }
 0x255   :  { %4700 = vmatprep.mubr.bf16.mxu0 %v27998_v51  ;;  %5046 = vmatmul.mubr.bf16.gmra.mrb[4].mxu1 %v20217_v55  ;;  %v1939_v51 = vrot.slane %v1937_v2, 7  ;;  %v28004_v55 = vld [vmem:[#allocation54_spill] sm:$0xff] }
 0x256   :  { %5053 = vmatprep.mubr.bf16.mxu1 %v27999_v6  ;;  %v28009_v2 = vld [vmem:[#allocation58_spill] sm:$0xff] }
 0x257   :  { %v1942_v31 = vor.u32 %v1940_v53, %v1939_v51 }
 0x25c   :  { %4701 = vmatmul.mubr.bf16.gmra.mrb[112].mxu0 %v20819_v14 }
 0x25d   :  { %4708 = vmatprep.mubr.bf16.mxu0 %v28000_v37  ;;  %5054 = vmatmul.mubr.bf16.gmra.mrb[8].mxu1 %v20251_v26 }
 0x25e   :  { %5061 = vmatprep.mubr.bf16.mxu1 %v28001_v10 }
 0x25f   :  { %v20905_v44 = vpop.f32.mrb[136].mxu0 }
 0x260   :  { %28002 = vst [vmem:[#allocation29_spill] sm:$0xff] %v20905_v44  ;;  %v4463_v47 = vpop.f32.mrb[137].mxu0 }
 0x261   :  { %v20907_v39 = vpop.f32.mrb[138].mxu0  ;;  %v20920_v47 = vsel %vm19986_vm2, %v1942_v31, 0  ;;  %v28013_v31 = vld [vmem:[#allocation62_spill] sm:$0xff] }
 0x262   :  { %28003 = vst [vmem:[#allocation85_spill] sm:$0xff] %v20907_v39  ;;  %v4466_v28 = vpop.f32.mrb[139].mxu0  ;;  %28008 = vst [vmem:[#allocation88_spill] sm:$0xff] %v20920_v47 }
 0x264   :  { %4709 = vmatmul.mubr.bf16.gmra.mrb[116].mxu0 %v20838_v45 }
 0x265   :  { %4716 = vmatprep.mubr.bf16.mxu0 %v28004_v55  ;;  %5062 = vmatmul.mubr.bf16.gmra.mrb[12].mxu1 %v20246_v56 }
 0x266   :  { %5069 = vmatprep.mubr.bf16.mxu1 %v28005_v52 }
 0x267   :  { %v20913_v37 = vpop.f32.mrb[140].mxu0 }
 0x268   :  { %28006 = vst [vmem:[#allocation86_spill] sm:$0xff] %v20913_v37  ;;  %v4471_v26 = vpop.f32.mrb[141].mxu0 }
 0x269   :  { %v20915_v22 = vpop.f32.mrb[142].mxu0 }
 0x26a   :  { %28007 = vst [vmem:[#allocation87_spill] sm:$0xff] %v20915_v22  ;;  %v4474_v44 = vpop.f32.mrb[143].mxu0 }
 0x26b   :  { %v28012_v44 = vld [vmem:[#allocation60_spill] sm:$0xff] }
 0x26c   :  { %4717 = vmatmul.mubr.bf16.gmra.mrb[120].mxu0 %v20847_v38 }
 0x26d   :  { %4724 = vmatprep.mubr.bf16.mxu0 %v20920_v47  ;;  %5070 = vmatmul.mubr.bf16.gmra.mrb[16].mxu1 %v20310_v48 }
 0x26e   :  { %5077 = vmatprep.mubr.bf16.mxu1 %v28009_v2 }
 0x26f   :  { %v20925_v28 = vpop.f32.mrb[144].mxu0 }
 0x270   :  { %28010 = vst [vmem:[#allocation89_spill] sm:$0xff] %v20925_v28  ;;  %v4479_v37 = vpop.f32.mrb[145].mxu0 }
 0x271   :  { %v20927_v26 = vpop.f32.mrb[146].mxu0  ;;  %v28016_v37 = vld [vmem:[#allocation63_spill] sm:$0xff] }
 0x272   :  { %28011 = vst [vmem:[#allocation90_spill] sm:$0xff] %v20927_v26  ;;  %v4482_v53 = vpop.f32.mrb[147].mxu0 }
 0x273   :  { %v28017_v53 = vld [vmem:[#allocation64_spill] sm:$0xff] }
 0x274   :  { %4725 = vmatmul.mubr.bf16.gmra.mrb[124].mxu0 %v20861_v63 }
 0x275   :  { %4732 = vmatprep.mubr.bf16.mxu0 %v28012_v44  ;;  %5078 = vmatmul.mubr.bf16.gmra.mrb[20].mxu1 %v20296_v17 }
 0x276   :  { %5085 = vmatprep.mubr.bf16.mxu1 %v28013_v31 }
 0x277   :  { %v20933_v51 = vpop.f32.mrb[148].mxu0 }
 0x278   :  { %28014 = vst [vmem:[#allocation91_spill] sm:$0xff] %v20933_v51  ;;  %v4487_v34 = vpop.f32.mrb[149].mxu0 }
 0x279   :  { %v20935_v22 = vpop.f32.mrb[150].mxu0  ;;  %v28020_v34 = vld [vmem:[#allocation67_spill] sm:$0xff] }
 0x27a   :  { %28015 = vst [vmem:[#allocation92_spill] sm:$0xff] %v20935_v22  ;;  %v4490_v39 = vpop.f32.mrb[151].mxu0 }
 0x27c   :  { %4733 = vmatmul.mubr.bf16.gmra.mrb[128].mxu0 %v27894_v43 }
 0x27d   :  { %4740 = vmatprep.mubr.bf16.mxu0 %v28016_v37  ;;  %5086 = vmatmul.mubr.bf16.gmra.mrb[24].mxu1 %v20352_v58 }
 0x27e   :  { %5093 = vmatprep.mubr.bf16.mxu1 %v28017_v53 }
 0x27f   :  { %v20941_v26 = vpop.f32.mrb[152].mxu0 }
 0x280   :  { %28018 = vst [vmem:[#allocation93_spill] sm:$0xff] %v20941_v26  ;;  %v4495_v44 = vpop.f32.mrb[153].mxu0 }
 0x281   :  { %v20943_v28 = vpop.f32.mrb[154].mxu0 }
 0x282   :  { %28019 = vst [vmem:[#allocation94_spill] sm:$0xff] %v20943_v28  ;;  %v4498_v17 = vpop.f32.mrb[155].mxu0 }
 0x284   :  { %4741 = vmatmul.mubr.bf16.gmra.mrb[132].mxu0 %v20882_v32 }
 0x285   :  { %5094 = vmatmul.mubr.bf16.gmra.mrb[28].mxu1 %v20341_v7  ;;  %17444 = vmatprep.mubr.bf16.mxu0 %v20662_v4 }
 0x286   :  { %5101 = vmatprep.mubr.bf16.mxu1 %v28020_v34 }
 0x287   :  { %v20949_v39 = vpop.f32.mrb[156].mxu0 }
 0x288   :  { %28021 = vst [vmem:[#allocation95_spill] sm:$0xff] %v20949_v39  ;;  %v4503_v22 = vpop.f32.mrb[157].mxu0 }
 0x289   :  { %v20951_v51 = vpop.f32.mrb[158].mxu0 }
 0x28a   :  { %28022 = vst [vmem:[#allocation96_spill] sm:$0xff] %v20951_v51  ;;  %v4506_v58 = vpop.f32.mrb[159].mxu0 }
 0x28c   :  { %17445 = vmatmul.mubr.bf16.vlgmr.msra.gmra.mrb[192].mxu0 %v20679_v20 }
 0x28d   :  { %5102 = vmatmul.mubr.bf16.gmra.mrb[32].mxu1 %v20396_v24  ;;  %17448 = vmatprep.mubr.bf16.mxu0 %v20696_v60 }
 0x28e   :  { %5109 = vmatprep.mubr.bf16.mxu1 %v20602_v11 }
 0x28f   :  { %v20957_v17 = vpop.f32.mrb[160].mxu0 }
 0x290   :  { %28023 = vst [vmem:[#allocation97_spill] sm:$0xff] %v20957_v17  ;;  %v4511_v44 = vpop.f32.mrb[161].mxu0 }
 0x291   :  { %v20959_v32 = vpop.f32.mrb[162].mxu0 }
 0x292   :  { %28024 = vst [vmem:[#allocation98_spill] sm:$0xff] %v20959_v32  ;;  %v4514_v4 = vpop.f32.mrb[163].mxu0 }
 0x294   :  { %17449 = vmatmul.mubr.bf16.gmra.mrb[196].mxu0 %v20713_v57 }
 0x295   :  { %5110 = vmatmul.mubr.bf16.gmra.mrb[36].mxu1 %v20383_v30  ;;  %17452 = vmatprep.mubr.bf16.mxu0 %v20730_v21 }
 0x296   :  { %5117 = vmatprep.mubr.bf16.mxu1 %v20619_v50 }
 0x297   :  { %v20965_v22 = vpop.f32.mrb[164].mxu0 }
 0x298   :  { %28025 = vst [vmem:[#allocation99_spill] sm:$0xff] %v20965_v22  ;;  %v4519_v58 = vpop.f32.mrb[165].mxu0 }
 0x299   :  { %v20967_v60 = vpop.f32.mrb[166].mxu0 }
 0x29a   :  { %28026 = vst [vmem:[#allocation100_spill] sm:$0xff] %v20967_v60  ;;  %v4522_v20 = vpop.f32.mrb[167].mxu0 }
 0x29c   :  { %17453 = vmatmul.mubr.bf16.gmra.mrb[200].mxu0 %v20747_v16 }
 0x29d   :  { %5118 = vmatmul.mubr.bf16.gmra.mrb[40].mxu1 %v20436_v1  ;;  %17456 = vmatprep.mubr.bf16.mxu0 %v20760_v49 }
 0x29e   :  { %5125 = vmatprep.mubr.bf16.mxu1 %v20631_v59 }
 0x29f   :  { %v20973_v4 = vpop.f32.mrb[168].mxu0 }
 0x2a0   :  { %28027 = vst [vmem:[#allocation101_spill] sm:$0xff] %v20973_v4  ;;  %v4527_v44 = vpop.f32.mrb[169].mxu0 }
 0x2a1   :  { %v20975_v21 = vpop.f32.mrb[170].mxu0 }
 0x2a2   :  { %28028 = vst [vmem:[#allocation102_spill] sm:$0xff] %v20975_v21  ;;  %v4530_v57 = vpop.f32.mrb[171].mxu0  ;;  %v28077_v21 = vld [vmem:[#allocation49_spill] sm:$0xff] }
 0x2a3   :  { %v28031_v57 = vld [vmem:[#allocation57_spill] sm:$0xff] }
 0x2a4   :  { %17457 = vmatmul.mubr.bf16.gmra.mrb[204].mxu0 %v20773_v46  ;;  %v20991_v44 = vsel %vm20262_vm4, %v28031_v57, 0 }
 0x2a5   :  { %5126 = vmatmul.mubr.bf16.gmra.mrb[44].mxu1 %v20425_v27  ;;  %17460 = vmatprep.mubr.bf16.mxu0 %v20785_v23  ;;  %28032 = vst [vmem:[#allocation57_spill] sm:$0xff] %v20991_v44 }
 0x2a6   :  { %5133 = vmatprep.mubr.bf16.mxu1 %v20643_v18 }
 0x2a7   :  { %v20981_v20 = vpop.f32.mrb[172].mxu0 }
 0x2a8   :  { %28029 = vst [vmem:[#allocation103_spill] sm:$0xff] %v20981_v20  ;;  %v4535_v58 = vpop.f32.mrb[173].mxu0  ;;  %v28076_v20 = vld [vmem:[#allocation47_spill] sm:$0xff] }
 0x2a9   :  { %v20983_v49 = vpop.f32.mrb[174].mxu0 }
 0x2aa   :  { %28030 = vst [vmem:[#allocation104_spill] sm:$0xff] %v20983_v49  ;;  %v4538_v16 = vpop.f32.mrb[175].mxu0 }
 0x2ac   :  { %17461 = vmatmul.mubr.bf16.gmra.mrb[208].mxu0 %v20804_v35 }
 0x2ad   :  { %5134 = vmatmul.mubr.bf16.gmra.mrb[48].mxu1 %v20478_v8  ;;  %17464 = vmatprep.mubr.bf16.mxu0 %v20819_v14 }
 0x2ae   :  { %5141 = vmatprep.mubr.bf16.mxu1 %v20991_v44 }
 0x2af   :  { %v20994_v23 = vpop.f32.mrb[176].mxu0 }
 0x2b0   :  { %28033 = vst [vmem:[#allocation105_spill] sm:$0xff] %v20994_v23  ;;  %v4543_v46 = vpop.f32.mrb[177].mxu0  ;;  %v28073_v23 = vld [vmem:[#allocation42_spill] sm:$0xff] }
 0x2b1   :  { %v20996_v58 = vpop.f32.mrb[178].mxu0 }
 0x2b2   :  { %28034 = vst [vmem:[#allocation106_spill] sm:$0xff] %v20996_v58  ;;  %v4546_v49 = vpop.f32.mrb[179].mxu0 }
 0x2b4   :  { %17465 = vmatmul.mubr.bf16.gmra.mrb[212].mxu0 %v20838_v45  ;;  %v28052_v45 = vld [vmem:[#allocation48_spill] sm:$0xff] }
 0x2b5   :  { %5142 = vmatmul.mubr.bf16.gmra.mrb[52].mxu1 %v20467_v33  ;;  %17468 = vmatprep.mubr.bf16.mxu0 %v20847_v38 }
 0x2b6   :  { %5182 = vmatprep.mubr.bf16.mxu1 %v19974_v19 }
 0x2b7   :  { %v21002_v16 = vpop.f32.mrb[180].mxu0 }
 0x2b8   :  { %28035 = vst [vmem:[#allocation107_spill] sm:$0xff] %v21002_v16  ;;  %v4551_v57 = vpop.f32.mrb[181].mxu0  ;;  %v28069_v16 = vld [vmem:[#allocation39_spill] sm:$0xff] }
 0x2b9   :  { %v21004_v14 = vpop.f32.mrb[182].mxu0 }
 0x2ba   :  { %28036 = vst [vmem:[#allocation108_spill] sm:$0xff] %v21004_v14  ;;  %v4554_v35 = vpop.f32.mrb[183].mxu0 }
 0x2bc   :  { %17469 = vmatmul.mubr.bf16.gmra.mrb[216].mxu0 %v20861_v63 }
 0x2bd   :  { %5183 = vmatmul.mubr.bf16.vlgmr.msra.gmra.mrb[56].mxu1 %v20022_v62  ;;  %17472 = vmatprep.mubr.bf16.mxu0 %v20870_v13 }
 0x2be   :  { %5190 = vmatprep.mubr.bf16.mxu1 %v19998_v41 }
 0x2bf   :  { %v21010_v49 = vpop.f32.mrb[184].mxu0 }
 0x2c0   :  { %28037 = vst [vmem:[#allocation109_spill] sm:$0xff] %v21010_v49  ;;  %v4559_v46 = vpop.f32.mrb[185].mxu0  ;;  %v28066_v49 = vld [vmem:[#allocation31_spill] sm:$0xff] }
 0x2c1   :  { %v21012_v38 = vpop.f32.mrb[186].mxu0 }
 0x2c2   :  { %28038 = vst [vmem:[#allocation110_spill] sm:$0xff] %v21012_v38  ;;  %v4562_v19 = vpop.f32.mrb[187].mxu0  ;;  %v28065_v38 = vld [vmem:[#allocation36_spill] sm:$0xff] }
 0x2c4   :  { %17473 = vmatmul.mubr.bf16.gmra.mrb[220].mxu0 %v27894_v43 }
 0x2c5   :  { %5191 = vmatmul.mubr.bf16.gmra.mrb[60].mxu1 %v27965_v9  ;;  %17476 = vmatprep.mubr.bf16.mxu0 %v27993_v15 }
 0x2c6   :  { %5198 = vmatprep.mubr.bf16.mxu1 %v19996_v40 }
 0x2c7   :  { %v21018_v35 = vpop.f32.mrb[188].mxu0 }
 0x2c8   :  { %28039 = vst [vmem:[#allocation111_spill] sm:$0xff] %v21018_v35  ;;  %v4567_v57 = vpop.f32.mrb[189].mxu0 }
 0x2c9   :  { %v21020_v13 = vpop.f32.mrb[190].mxu0 }
 0x2ca   :  { %28040 = vst [vmem:[#allocation112_spill] sm:$0xff] %v21020_v13  ;;  %v4570_v41 = vpop.f32.mrb[191].mxu0 }
 0x2cc   :  { %17477 = vmatmul.mubr.bf16.gmra.mrb[224].mxu0 %v27995_v42 }
 0x2cd   :  { %5199 = vmatmul.mubr.bf16.gmra.mrb[64].mxu1 %v27969_v3  ;;  %17480 = vmatprep.mubr.bf16.mxu0 %v27997_v36  ;;  %v28054_v3 = vld [vmem:[#allocation51_spill] sm:$0xff] }
 0x2ce   :  { %5206 = vmatprep.mubr.bf16.mxu1 %v20024_v0 }
 0x2cf   :  { %v21026_v46 = vpop.f32.mrb[64].mxu0 }
 0x2d0   :  { %v4608_v19 = vpop.f32.mrb[65].mxu0 }
 0x2d1   :  { %v21028_v15 = vpop.f32.mrb[66].mxu0 }
 0x2d2   :  { %v4611_v40 = vpop.f32.mrb[67].mxu0 }
 0x2d4   :  { %17481 = vmatmul.mubr.bf16.gmra.mrb[228].mxu0 %v27999_v6 }
 0x2d5   :  { %5207 = vmatmul.mubr.bf16.gmra.mrb[68].mxu1 %v27973_v54  ;;  %17484 = vmatprep.mubr.bf16.mxu0 %v28001_v10 }
 0x2d6   :  { %5214 = vmatprep.mubr.bf16.mxu1 %v20018_v61 }
 0x2d7   :  { %v21034_v57 = vpop.f32.mrb[68].mxu0 }
 0x2d8   :  { %v4616_v41 = vpop.f32.mrb[69].mxu0 }
 0x2d9   :  { %v21036_v36 = vpop.f32.mrb[70].mxu0  ;;  %v28041_v41 = vld [vmem:[#allocation7_spill] sm:$0xff] }
 0x2da   :  { %v4619_v0 = vpop.f32.mrb[71].mxu0 }
 0x2dc   :  { %17485 = vmatmul.mubr.bf16.gmra.mrb[232].mxu0 %v28005_v52 }
 0x2dd   :  { %5215 = vmatmul.mubr.bf16.gmra.mrb[72].mxu1 %v27977_v29  ;;  %17488 = vmatprep.mubr.bf16.mxu0 %v28009_v2 }
 0x2de   :  { %5222 = vmatprep.mubr.bf16.mxu1 %v20048_v25 }
 0x2df   :  { %v21042_v19 = vpop.f32.mrb[72].mxu0 }
 0x2e0   :  { %v4624_v40 = vpop.f32.mrb[73].mxu0 }
 0x2e1   :  { %v21044_v10 = vpop.f32.mrb[74].mxu0  ;;  %v28042_v40 = vld [vmem:[#allocation28_spill] sm:$0xff] }
 0x2e2   :  { %v4627_v61 = vpop.f32.mrb[75].mxu0 }
 0x2e3   :  { %v28043_v61 = vld [vmem:[#allocation11_spill] sm:$0xff] }
 0x2e4   :  { %17489 = vmatmul.mubr.bf16.gmra.mrb[236].mxu0 %v28013_v31 }
 0x2e5   :  { %5223 = vmatmul.mubr.bf16.gmra.mrb[76].mxu1 %v27982_v12  ;;  %17492 = vmatprep.mubr.bf16.mxu0 %v28017_v53  ;;  %v28050_v12 = vld [vmem:[#allocation44_spill] sm:$0xff] }
 0x2e6   :  { %5230 = vmatprep.mubr.bf16.mxu1 %v28041_v41 }
 0x2e7   :  { %v21050_v0 = vpop.f32.mrb[76].mxu0 }
 0x2e8   :  { %v4632_v52 = vpop.f32.mrb[77].mxu0 }
 0x2e9   :  { %v21052_v2 = vpop.f32.mrb[78].mxu0  ;;  %v28044_v52 = vld [vmem:[#allocation33_spill] sm:$0xff] }
 0x2ea   :  { %v4635_v25 = vpop.f32.mrb[79].mxu0 }
 0x2eb   :  { %v28045_v25 = vld [vmem:[#allocation9_spill] sm:$0xff] }
 0x2ec   :  { %17493 = vmatmul.mubr.bf16.gmra.mrb[240].mxu0 %v28020_v34 }
 0x2ed   :  { %5231 = vmatmul.mubr.bf16.gmra.mrb[80].mxu1 %v28042_v40  ;;  %17496 = vmatprep.mubr.bf16.mxu0 %v20602_v11  ;;  %v28049_v40 = vld [vmem:[#allocation13_spill] sm:$0xff] }
 0x2ee   :  { %5238 = vmatprep.mubr.bf16.mxu1 %v28043_v61 }
 0x2ef   :  { %v21058_v31 = vpop.f32.mrb[80].mxu0 }
 0x2f0   :  { %v4640_v6 = vpop.f32.mrb[81].mxu0 }
 0x2f1   :  { %v21060_v53 = vpop.f32.mrb[82].mxu0  ;;  %v28046_v6 = vld [vmem:[#allocation35_spill] sm:$0xff] }
 0x2f2   :  { %v4643_v41 = vpop.f32.mrb[83].mxu0 }
 0x2f3   :  { %v28047_v41 = vld [vmem:[#allocation15_spill] sm:$0xff] }
 0x2f4   :  { %17497 = vmatmul.mubr.bf16.gmra.mrb[244].mxu0 %v20619_v50 }
 0x2f5   :  { %5239 = vmatmul.mubr.bf16.gmra.mrb[84].mxu1 %v28044_v52  ;;  %17500 = vmatprep.mubr.bf16.mxu0 %v20631_v59 }
 0x2f6   :  { %5246 = vmatprep.mubr.bf16.mxu1 %v28045_v25 }
 0x2f7   :  { %v21066_v34 = vpop.f32.mrb[84].mxu0 }
 0x2f8   :  { %v4648_v42 = vpop.f32.mrb[85].mxu0 }
 0x2f9   :  { %v21068_v11 = vpop.f32.mrb[86].mxu0  ;;  %v28048_v42 = vld [vmem:[#allocation41_spill] sm:$0xff] }
 0x2fa   :  { %v4651_v61 = vpop.f32.mrb[87].mxu0 }
 0x2fc   :  { %17501 = vmatmul.mubr.bf16.gmra.mrb[248].mxu0 %v20643_v18 }
 0x2fd   :  { %5247 = vmatmul.mubr.bf16.gmra.mrb[88].mxu1 %v28046_v6  ;;  %17504 = vmatprep.mubr.bf16.mxu0 %v20991_v44 }
 0x2fe   :  { %5254 = vmatprep.mubr.bf16.mxu1 %v28047_v41  ;;  %v28051_v41 = vld [vmem:[#allocation20_spill] sm:$0xff] }
 0x2ff   :  { %v21074_v50 = vpop.f32.mrb[88].mxu0 }
 0x300   :  { %v4656_v52 = vpop.f32.mrb[89].mxu0 }
 0x301   :  { %v21076_v59 = vpop.f32.mrb[90].mxu0 }
 0x302   :  { %v4659_v25 = vpop.f32.mrb[91].mxu0 }
 0x304   :  { %17505 = vmatmul.mubr.bf16.gmra.mrb[252].mxu0 %v27894_v43 }
 0x305   :  { %5255 = vmatmul.mubr.bf16.gmra.mrb[92].mxu1 %v28048_v42  ;;  %v28053_v42 = vld [vmem:[#allocation18_spill] sm:$0xff] }
 0x306   :  { %5262 = vmatprep.mubr.bf16.mxu1 %v28049_v40 }
 0x307   :  { %v21081_v61 = vpop.f32.mrb[92].mxu0 }
 0x308   :  { %v4664_v18 = vpop.f32.mrb[93].mxu0 }
 0x309   :  { %v21083_v6 = vpop.f32.mrb[94].mxu0 }
 0x30a   :  { %v4667_v44 = vpop.f32.mrb[95].mxu0 }
 0x30d   :  { %5263 = vmatmul.mubr.bf16.gmra.mrb[96].mxu1 %v28050_v12  ;;  %v28055_v12 = vld [vmem:[#allocation25_spill] sm:$0xff] }
 0x30e   :  { %5270 = vmatprep.mubr.bf16.mxu1 %v28051_v41 }
 0x30f   :  { %v21087_v52 = vpop.f32.mrb[96].mxu0 }
 0x310   :  { %v4672_v63 = vpop.f32.mrb[97].mxu0 }
 0x311   :  { %v21089_v25 = vpop.f32.mrb[98].mxu0 }
 0x312   :  { %v4675_v29 = vpop.f32.mrb[99].mxu0 }
 0x315   :  { %5271 = vmatmul.mubr.bf16.gmra.mrb[100].mxu1 %v28052_v45  ;;  %v28056_v45 = vld [vmem:[#allocation23_spill] sm:$0xff] }
 0x316   :  { %5278 = vmatprep.mubr.bf16.mxu1 %v28053_v42 }
 0x317   :  { %v21093_v40 = vpop.f32.mrb[100].mxu0 }
 0x318   :  { %v4680_v18 = vpop.f32.mrb[101].mxu0 }
 0x319   :  { %v21095_v54 = vpop.f32.mrb[102].mxu0 }
 0x31a   :  { %v4683_v44 = vpop.f32.mrb[103].mxu0 }
 0x31d   :  { %5279 = vmatmul.mubr.bf16.gmra.mrb[104].mxu1 %v28054_v3 }
 0x31e   :  { %5286 = vmatprep.mubr.bf16.mxu1 %v28055_v12 }
 0x31f   :  { %v21099_v41 = vpop.f32.mrb[104].mxu0 }
 0x320   :  { %v4688_v63 = vpop.f32.mrb[105].mxu0 }
 0x321   :  { %v21101_v9 = vpop.f32.mrb[106].mxu0 }
 0x322   :  { %v4691_v29 = vpop.f32.mrb[107].mxu0 }
 0x325   :  { %5287 = vmatmul.mubr.bf16.gmra.mrb[108].mxu1 %v28004_v55  ;;  %v28059_v55 = vld [vmem:[#allocation27_spill] sm:$0xff] }
 0x326   :  { %5294 = vmatprep.mubr.bf16.mxu1 %v28056_v45 }
 0x327   :  { %v21105_v42 = vpop.f32.mrb[108].mxu0 }
 0x328   :  { %v4696_v18 = vpop.f32.mrb[109].mxu0 }
 0x329   :  { %v21107_v62 = vpop.f32.mrb[110].mxu0 }
 0x32a   :  { %v4699_v44 = vpop.f32.mrb[111].mxu0 }
 0x32d   :  { %5295 = vmatmul.mubr.bf16.gmra.mrb[112].mxu1 %v20920_v47  ;;  %v28062_v47 = vld [vmem:[#allocation32_spill] sm:$0xff] }
 0x32e   :  { %5302 = vmatprep.mubr.bf16.mxu1 %v27894_v43 }
 0x32f   :  { %v21111_v12 = vpop.f32.mrb[112].mxu0 }
 0x330   :  { %28057 = vst [vmem:[#allocation7_spill] sm:$0xff] %v21111_v12  ;;  %v4704_v63 = vpop.f32.mrb[113].mxu0 }
 0x331   :  { %v21113_v3 = vpop.f32.mrb[114].mxu0 }
 0x332   :  { %28058 = vst [vmem:[#allocation11_spill] sm:$0xff] %v21113_v3  ;;  %v4707_v29 = vpop.f32.mrb[115].mxu0 }
 0x335   :  { %5303 = vmatmul.mubr.bf16.gmra.mrb[116].mxu1 %v27894_v43 }
 0x336   :  { %5310 = vmatprep.mubr.bf16.mxu1 %v28059_v55 }
 0x337   :  { %v21117_v45 = vpop.f32.mrb[116].mxu0 }
 0x338   :  { %28060 = vst [vmem:[#allocation9_spill] sm:$0xff] %v21117_v45  ;;  %v4712_v18 = vpop.f32.mrb[117].mxu0 }
 0x339   :  { %v21119_v5 = vpop.f32.mrb[118].mxu0 }
 0x33a   :  { %28061 = vst [vmem:[#allocation15_spill] sm:$0xff] %v21119_v5  ;;  %v4715_v44 = vpop.f32.mrb[119].mxu0 }
 0x33d   :  { %5311 = vmatmul.mubr.bf16.gmra.mrb[120].mxu1 %v28016_v37  ;;  %v28070_v37 = vld [vmem:[#allocation34_spill] sm:$0xff] }
 0x33e   :  { %5318 = vmatprep.mubr.bf16.mxu1 %v28062_v47 }
 0x33f   :  { %v21123_v13 = vpop.f32.mrb[120].mxu0 }
 0x340   :  { %28063 = vst [vmem:[#allocation13_spill] sm:$0xff] %v21123_v13  ;;  %v4720_v63 = vpop.f32.mrb[121].mxu0 }
 0x341   :  { %v21125_v35 = vpop.f32.mrb[122].mxu0 }
 0x342   :  { %28064 = vst [vmem:[#allocation20_spill] sm:$0xff] %v21125_v35  ;;  %v4723_v29 = vpop.f32.mrb[123].mxu0 }
 0x345   :  { %5319 = vmatmul.mubr.bf16.gmra.mrb[124].mxu1 %v28065_v38 }
 0x346   :  { %5326 = vmatprep.mubr.bf16.mxu1 %v28066_v49 }
 0x347   :  { %v21129_v55 = vpop.f32.mrb[124].mxu0 }
 0x348   :  { %28067 = vst [vmem:[#allocation18_spill] sm:$0xff] %v21129_v55  ;;  %v4728_v18 = vpop.f32.mrb[125].mxu0 }
 0x349   :  { %v21131_v14 = vpop.f32.mrb[126].mxu0 }
 0x34a   :  { %28068 = vst [vmem:[#allocation25_spill] sm:$0xff] %v21131_v14  ;;  %v4731_v44 = vpop.f32.mrb[127].mxu0  ;;  %v21205_v14 = vld [vmem:[%s27193_s4] ss:$0 sm:$0xff] }
 0x34b   :  { %v17958_v13 = vadd.f32 %v21205_v14, %v21028_v15  ;;  %v17960_v15 = vadd.f32 %v21205_v14, %v21034_v57  ;;  %v28092_v57 = vld [vmem:[#allocation69_spill] sm:$0xff] }
 0x34d   :  { %5327 = vmatmul.mubr.bf16.gmra.mrb[0].mxu1 %v28069_v16 }
 0x34e   :  { %5334 = vmatprep.mubr.bf16.mxu1 %v28070_v37 }
 0x34f   :  { %v21135_v47 = vpop.f32.mrb[128].mxu0 }
 0x350   :  { %28071 = vst [vmem:[#allocation23_spill] sm:$0xff] %v21135_v47  ;;  %v4736_v63 = vpop.f32.mrb[129].mxu0 }
 0x351   :  { %v21137_v58 = vpop.f32.mrb[130].mxu0 }
 0x352   :  { %28072 = vst [vmem:[#allocation27_spill] sm:$0xff] %v21137_v58  ;;  %v4739_v29 = vpop.f32.mrb[131].mxu0 }
 0x355   :  { %5335 = vmatmul.mubr.bf16.gmra.mrb[4].mxu1 %v28073_v23  ;;  %v28078_v23 = vld [vmem:[#allocation40_spill] sm:$0xff] }
 0x356   :  { %5342 = vmatprep.mubr.bf16.mxu1 %v20246_v56 }
 0x357   :  { %v21141_v49 = vpop.f32.mrb[132].mxu0 }
 0x358   :  { %28074 = vst [vmem:[#allocation32_spill] sm:$0xff] %v21141_v49  ;;  %v4744_v18 = vpop.f32.mrb[133].mxu0 }
 0x359   :  { %v21143_v38 = vpop.f32.mrb[134].mxu0 }
 0x35a   :  { %28075 = vst [vmem:[#allocation31_spill] sm:$0xff] %v21143_v38  ;;  %v4747_v44 = vpop.f32.mrb[135].mxu0 }
 0x35d   :  { %5343 = vmatmul.mubr.bf16.gmra.mrb[8].mxu1 %v28076_v20  ;;  %v28079_v20 = vld [vmem:[#allocation53_spill] sm:$0xff] }
 0x35e   :  { %5350 = vmatprep.mubr.bf16.mxu1 %v20310_v48  ;;  %v28080_v48 = vld [vmem:[#allocation45_spill] sm:$0xff] }
 0x35f   :  { %v21147_v37 = vpop.f32.mrb[192].mxu0 }
 0x360   :  { %v5473_v63 = vpop.f32.mrb[193].mxu0 }
 0x361   :  { %v21149_v16 = vpop.f32.mrb[194].mxu0 }
 0x362   :  { %v5476_v29 = vpop.f32.mrb[195].mxu0 }
 0x365   :  { %5351 = vmatmul.mubr.bf16.gmra.mrb[12].mxu1 %v28077_v21 }
 0x366   :  { %5358 = vmatprep.mubr.bf16.mxu1 %v28078_v23  ;;  %v28081_v23 = vld [vmem:[#allocation55_spill] sm:$0xff] }
 0x367   :  { %v21153_v56 = vpop.f32.mrb[196].mxu0 }
 0x368   :  { %v21155_v18 = vpop.f32.mrb[197].mxu0 }
 0x369   :  { %v21157_v4 = vpop.f32.mrb[198].mxu0 }
 0x36a   :  { %v21159_v44 = vpop.f32.mrb[199].mxu0 }
 0x36d   :  { %5359 = vmatmul.mubr.bf16.gmra.mrb[16].mxu1 %v28079_v20 }
 0x36e   :  { %5366 = vmatprep.mubr.bf16.mxu1 %v28080_v48  ;;  %v28082_v48 = vld [vmem:[#allocation59_spill] sm:$0xff] }
 0x36f   :  { %v21163_v60 = vpop.f32.mrb[200].mxu0 }
 0x370   :  { %v21165_v22 = vpop.f32.mrb[201].mxu0 }
 0x371   :  { %v21167_v32 = vpop.f32.mrb[202].mxu0 }
 0x372   :  { %v21169_v21 = vpop.f32.mrb[203].mxu0 }
 0x375   :  { %5367 = vmatmul.mubr.bf16.gmra.mrb[20].mxu1 %v28081_v23 }
 0x376   :  { %5374 = vmatprep.mubr.bf16.mxu1 %v20341_v7  ;;  %v28083_v7 = vld [vmem:[#allocation61_spill] sm:$0xff] }
 0x377   :  { %v21173_v17 = vpop.f32.mrb[204].mxu0 }
 0x378   :  { %v21175_v51 = vpop.f32.mrb[205].mxu0 }
 0x379   :  { %v21177_v39 = vpop.f32.mrb[206].mxu0 }
 0x37a   :  { %v21179_v20 = vpop.f32.mrb[207].mxu0 }
 0x37d   :  { %5375 = vmatmul.mubr.bf16.gmra.mrb[24].mxu1 %v28082_v48 }
 0x37e   :  { %5382 = vmatprep.mubr.bf16.mxu1 %v20396_v24  ;;  %v28086_v24 = vld [vmem:[#allocation65_spill] sm:$0xff] }
 0x37f   :  { %v21183_v28 = vpop.f32.mrb[208].mxu0 }
 0x380   :  { %v21185_v26 = vpop.f32.mrb[209].mxu0 }
 0x381   :  { %v21187_v38 = vpop.f32.mrb[210].mxu0 }
 0x382   :  { %v21189_v23 = vpop.f32.mrb[211].mxu0 }
 0x385   :  { %5383 = vmatmul.mubr.bf16.gmra.mrb[28].mxu1 %v28083_v7 }
 0x386   :  { %5390 = vmatprep.mubr.bf16.mxu1 %v20383_v30  ;;  %v17956_v30 = vadd.f32 %v21205_v14, %v21026_v46  ;;  %v28089_v46 = vld [vmem:[#allocation66_spill] sm:$0xff] }
 0x387   :  { %v21193_v49 = vpop.f32.mrb[212].mxu0 }
 0x388   :  { %28084 = vst [vmem:[#allocation34_spill] sm:$0xff] %v21193_v49  ;;  %v21195_v58 = vpop.f32.mrb[213].mxu0 }
 0x389   :  { %v21197_v47 = vpop.f32.mrb[214].mxu0 }
 0x38a   :  { %28085 = vst [vmem:[#allocation40_spill] sm:$0xff] %v21197_v47  ;;  %v21199_v48 = vpop.f32.mrb[215].mxu0 }
 0x38d   :  { %5391 = vmatmul.mubr.bf16.gmra.mrb[32].mxu1 %v28086_v24 }
 0x38e   :  { %5398 = vmatprep.mubr.bf16.mxu1 %v20436_v1 }
 0x38f   :  { %v21210_v7 = vpop.f32.mrb[216].mxu0 }
 0x390   :  { %28087 = vst [vmem:[#allocation45_spill] sm:$0xff] %v21210_v7  ;;  %v5184_v55 = vpop.f32.mrb[56].mxu1  ;;  %v21212_v35 = vpop.f32.mrb[217].mxu0 }
 0x391   :  { %v17957_v5 = vadd.f32 %v17956_v30, %v5184_v55  ;;  %v5186_v24 = vpop.f32.mrb[57].mxu1  ;;  %v21216_v45 = vpop.f32.mrb[218].mxu0 }
 0x392   :  { %v5187_v3 = vpop.f32.mrb[58].mxu1  ;;  %v21218_v12 = vpop.f32.mrb[219].mxu0 }
 0x393   :  { %v17959_v47 = vadd.f32 %v17958_v13, %v5187_v3  ;;  %v5189_v1 = vpop.f32.mrb[59].mxu1  ;;  %v21220_v49 = vadd.f32 %v17957_v5, %v5473_v63  ;;  %v17962_v13 = vadd.f32 %v21205_v14, %v21036_v36  ;;  %v17964_v36 = vadd.f32 %v21205_v14, %v21042_v19  ;;  %v28094_v19 = vld [vmem:[#allocation70_spill] sm:$0xff] }
 0x395   :  { %28088 = vst [vmem:[#allocation113_spill] sm:$0xff] %v21220_v49  ;;  %5399 = vmatmul.mubr.bf16.gmra.mrb[36].mxu1 %v28089_v46  ;;  %v21223_v7 = vadd.f32 %v17959_v47, %v5476_v29 }
 0x396   :  { %5406 = vmatprep.mubr.bf16.mxu1 %v20425_v27 }
 0x397   :  { %28090 = vst [vmem:[#allocation114_spill] sm:$0xff] %v21223_v7  ;;  %v21228_v55 = vpop.f32.mrb[220].mxu0 }
 0x398   :  { %28091 = vst [vmem:[#allocation115_spill] sm:$0xff] %v21228_v55  ;;  %v5192_v24 = vpop.f32.mrb[60].mxu1  ;;  %v21230_v30 = vpop.f32.mrb[221].mxu0 }
 0x399   :  { %v17961_v3 = vadd.f32 %v17960_v15, %v5192_v24  ;;  %v5194_v5 = vpop.f32.mrb[61].mxu1  ;;  %v21234_v63 = vpop.f32.mrb[222].mxu0 }
 0x39a   :  { %v5195_v1 = vpop.f32.mrb[62].mxu1  ;;  %v21236_v47 = vpop.f32.mrb[223].mxu0 }
 0x39b   :  { %v17963_v29 = vadd.f32 %v17962_v13, %v5195_v1  ;;  %v5197_v27 = vpop.f32.mrb[63].mxu1  ;;  %v21239_v46 = vadd.f32 %v17961_v3, %v21147_v37  ;;  %v17966_v13 = vadd.f32 %v21205_v14, %v21044_v10  ;;  %v17968_v10 = vadd.f32 %v21205_v14, %v21050_v0  ;;  %v28097_v0 = vld [vmem:[#allocation73_spill] sm:$0xff] }
 0x39d   :  { %5407 = vmatmul.mubr.bf16.gmra.mrb[40].mxu1 %v28092_v57  ;;  %v21243_v55 = vadd.f32 %v17963_v29, %v21149_v16 }
 0x39e   :  { %5414 = vmatprep.mubr.bf16.mxu1 %v20478_v8 }
 0x39f   :  { %v21248_v15 = vpop.f32.mrb[224].mxu0 }
 0x3a0   :  { %28093 = vst [vmem:[#allocation116_spill] sm:$0xff] %v21248_v15  ;;  %v5200_v24 = vpop.f32.mrb[64].mxu1  ;;  %v21250_v5 = vpop.f32.mrb[225].mxu0 }
 0x3a1   :  { %v17965_v37 = vadd.f32 %v17964_v36, %v5200_v24  ;;  %v5202_v3 = vpop.f32.mrb[65].mxu1  ;;  %v21254_v1 = vpop.f32.mrb[226].mxu0 }
 0x3a2   :  { %v5203_v27 = vpop.f32.mrb[66].mxu1  ;;  %v21256_v16 = vpop.f32.mrb[227].mxu0 }
 0x3a3   :  { %v17967_v29 = vadd.f32 %v17966_v13, %v5203_v27  ;;  %v5205_v8 = vpop.f32.mrb[67].mxu1  ;;  %v21259_v57 = vadd.f32 %v17965_v37, %v21155_v18  ;;  %v17970_v13 = vadd.f32 %v21205_v14, %v21052_v2  ;;  %v17972_v2 = vadd.f32 %v21205_v14, %v21058_v31 }
 0x3a5   :  { %5415 = vmatmul.mubr.bf16.gmra.mrb[44].mxu1 %v28094_v19  ;;  %v21263_v15 = vadd.f32 %v17967_v29, %v21159_v44 }
 0x3a6   :  { %5422 = vmatprep.mubr.bf16.mxu1 %v20467_v33 }
 0x3a7   :  { %v21268_v36 = vpop.f32.mrb[228].mxu0 }
 0x3a8   :  { %28095 = vst [vmem:[#allocation117_spill] sm:$0xff] %v21268_v36  ;;  %v5208_v24 = vpop.f32.mrb[68].mxu1  ;;  %v21270_v3 = vpop.f32.mrb[229].mxu0 }
 0x3a9   :  { %v17969_v18 = vadd.f32 %v17968_v10, %v5208_v24  ;;  %v5210_v37 = vpop.f32.mrb[69].mxu1  ;;  %v21274_v27 = vpop.f32.mrb[230].mxu0 }
 0x3aa   :  { %28096 = vst [vmem:[#allocation118_spill] sm:$0xff] %v21274_v27  ;;  %v5211_v8 = vpop.f32.mrb[70].mxu1  ;;  %v21276_v44 = vpop.f32.mrb[231].mxu0 }
 0x3ab   :  { %v17971_v29 = vadd.f32 %v17970_v13, %v5211_v8  ;;  %v5213_v33 = vpop.f32.mrb[71].mxu1  ;;  %v21279_v19 = vadd.f32 %v17969_v18, %v21153_v56  ;;  %v17974_v13 = vadd.f32 %v21205_v14, %v21060_v53  ;;  %v17976_v53 = vadd.f32 %v21205_v14, %v21066_v34 }
 0x3ad   :  { %5423 = vmatmul.mubr.bf16.gmra.mrb[48].mxu1 %v28097_v0  ;;  %v21283_v36 = vadd.f32 %v17971_v29, %v21157_v4 }
 0x3ae   :  { %5430 = vmatprep.mubr.bf16.mxu1 %v27894_v43 }
 0x3af   :  { %v21288_v10 = vpop.f32.mrb[232].mxu0 }
 0x3b0   :  { %v5216_v24 = vpop.f32.mrb[72].mxu1  ;;  %v21290_v37 = vpop.f32.mrb[233].mxu0 }
 0x3b1   :  { %v17973_v56 = vadd.f32 %v17972_v2, %v5216_v24  ;;  %v5218_v18 = vpop.f32.mrb[73].mxu1  ;;  %v21294_v8 = vpop.f32.mrb[234].mxu0 }
 0x3b2   :  { %28098 = vst [vmem:[#allocation119_spill] sm:$0xff] %v21294_v8  ;;  %v5219_v33 = vpop.f32.mrb[74].mxu1  ;;  %v21296_v4 = vpop.f32.mrb[235].mxu0 }
 0x3b3   :  { %v17975_v29 = vadd.f32 %v17974_v13, %v5219_v33  ;;  %v5221_v0 = vpop.f32.mrb[75].mxu1  ;;  %v21299_v27 = vadd.f32 %v17973_v56, %v21165_v22  ;;  %v17978_v13 = vadd.f32 %v21205_v14, %v21068_v11 }
 0x3b5   :  { %28099 = vst [vmem:[#allocation120_spill] sm:$0xff] %v21299_v27  ;;  %5431 = vmatmul.mubr.bf16.gmra.mrb[52].mxu1 %v27894_v43  ;;  %v21303_v31 = vadd.f32 %v17975_v29, %v21169_v21 }
 0x3b7   :  { %v21307_v2 = vpop.f32.mrb[236].mxu0 }
 0x3b8   :  { %28100 = vst [vmem:[#allocation121_spill] sm:$0xff] %v21307_v2  ;;  %v5224_v24 = vpop.f32.mrb[76].mxu1  ;;  %v21309_v18 = vpop.f32.mrb[237].mxu0  ;;  %v17980_v2 = vadd.f32 %v21205_v14, %v21074_v50 }
 0x3b9   :  { %28101 = vst [vmem:[#allocation122_spill] sm:$0xff] %v21309_v18  ;;  %v17977_v0 = vadd.f32 %v17976_v53, %v5224_v24  ;;  %v5226_v33 = vpop.f32.mrb[77].mxu1  ;;  %v21313_v22 = vpop.f32.mrb[238].mxu0  ;;  %v17982_v24 = vadd.f32 %v21205_v14, %v21076_v59 }
 0x3ba   :  { %v5227_v56 = vpop.f32.mrb[78].mxu1  ;;  %v21315_v43 = vpop.f32.mrb[239].mxu0 }
 0x3bb   :  { %v17979_v21 = vadd.f32 %v17978_v13, %v5227_v56  ;;  %v5229_v29 = vpop.f32.mrb[79].mxu1  ;;  %v21318_v8 = vadd.f32 %v17977_v0, %v21163_v60 }
 0x3bd   :  { %28102 = vst [vmem:[#allocation123_spill] sm:$0xff] %v21318_v8  ;;  %v21321_v34 = vadd.f32 %v17979_v21, %v21167_v32 }
 0x3bf   :  { %28103 = vst [vmem:[#allocation124_spill] sm:$0xff] %v21321_v34  ;;  %v21325_v18 = vpop.f32.mrb[240].mxu0 }
 0x3c0   :  { %28104 = vst [vmem:[#allocation125_spill] sm:$0xff] %v21325_v18  ;;  %v5232_v11 = vpop.f32.mrb[80].mxu1  ;;  %v21327_v53 = vpop.f32.mrb[241].mxu0  ;;  %v17984_v18 = vadd.f32 %v21205_v14, %v21081_v61 }
 0x3c1   :  { %28105 = vst [vmem:[#allocation126_spill] sm:$0xff] %v21327_v53  ;;  %v17981_v33 = vadd.f32 %v17980_v2, %v5232_v11  ;;  %v5234_v13 = vpop.f32.mrb[81].mxu1  ;;  %v21331_v56 = vpop.f32.mrb[242].mxu0  ;;  %v17986_v11 = vadd.f32 %v21205_v14, %v21083_v6 }
 0x3c2   :  { %v5235_v60 = vpop.f32.mrb[82].mxu1  ;;  %v21333_v0 = vpop.f32.mrb[243].mxu0 }
 0x3c3   :  { %v17983_v32 = vadd.f32 %v17982_v24, %v5235_v60  ;;  %v5237_v21 = vpop.f32.mrb[83].mxu1  ;;  %v21336_v29 = vadd.f32 %v17981_v33, %v21175_v51 }
 0x3c5   :  { %28106 = vst [vmem:[#allocation127_spill] sm:$0xff] %v21336_v29  ;;  %v21339_v50 = vadd.f32 %v17983_v32, %v21179_v20 }
 0x3c7   :  { %28107 = vst [vmem:[#allocation128_spill] sm:$0xff] %v21339_v50  ;;  %v21343_v53 = vpop.f32.mrb[244].mxu0 }
 0x3c8   :  { %28108 = vst [vmem:[#allocation129_spill] sm:$0xff] %v21343_v53  ;;  %v5240_v59 = vpop.f32.mrb[84].mxu1  ;;  %v21345_v2 = vpop.f32.mrb[245].mxu0  ;;  %v17988_v53 = vadd.f32 %v21205_v14, %v21087_v52 }
 0x3c9   :  { %28109 = vst [vmem:[#allocation130_spill] sm:$0xff] %v21345_v2  ;;  %v17985_v13 = vadd.f32 %v17984_v18, %v5240_v59  ;;  %v5242_v24 = vpop.f32.mrb[85].mxu1  ;;  %v21349_v60 = vpop.f32.mrb[246].mxu0  ;;  %v17990_v59 = vadd.f32 %v21205_v14, %v21089_v25 }
 0x3ca   :  { %v5243_v51 = vpop.f32.mrb[86].mxu1  ;;  %v21351_v33 = vpop.f32.mrb[247].mxu0 }
 0x3cb   :  { %v17987_v20 = vadd.f32 %v17986_v11, %v5243_v51  ;;  %v5245_v32 = vpop.f32.mrb[87].mxu1  ;;  %v21354_v21 = vadd.f32 %v17985_v13, %v21173_v17 }
 0x3cd   :  { %28110 = vst [vmem:[#allocation131_spill] sm:$0xff] %v21354_v21  ;;  %v21357_v61 = vadd.f32 %v17987_v20, %v21177_v39 }
 0x3cf   :  { %28111 = vst [vmem:[#allocation132_spill] sm:$0xff] %v21357_v61  ;;  %v21361_v2 = vpop.f32.mrb[248].mxu0 }
 0x3d0   :  { %28112 = vst [vmem:[#allocation133_spill] sm:$0xff] %v21361_v2  ;;  %v5248_v6 = vpop.f32.mrb[88].mxu1  ;;  %v21363_v18 = vpop.f32.mrb[249].mxu0  ;;  %v17992_v2 = vadd.f32 %v21205_v14, %v21093_v40 }
 0x3d1   :  { %v5250_v24 = vpop.f32.mrb[89].mxu1  ;;  %v21367_v11 = vpop.f32.mrb[250].mxu0  ;;  %v17989_v51 = vadd.f32 %v17988_v53, %v5248_v6  ;;  %v17670_v53 = vpack.c.bf16 %v21223_v7, %v21220_v49  ;;  %v17994_v6 = vadd.f32 %v21205_v14, %v21095_v54  ;;  %v17996_v49 = vadd.f32 %v21205_v14, %v21099_v41 }
 0x3d2   :  { %v5251_v17 = vpop.f32.mrb[90].mxu1  ;;  %v21369_v13 = vpop.f32.mrb[251].mxu0 }
 0x3d3   :  { %v5253_v39 = vpop.f32.mrb[91].mxu1  ;;  %v17991_v20 = vadd.f32 %v17990_v59, %v5251_v17  ;;  %v21372_v32 = vadd.f32 %v17989_v51, %v21185_v26  ;;  %v27375_v51 = vmov 0.001953125  }
 0x3d4   :  { %5792 = vmatprep.mubr.f32.mxu0 %v27375_v51 }
 0x3d5   :  { %v21375_v52 = vadd.f32 %v17991_v20, %v21189_v23 }
 0x3d7   :  { %v17668_v25 = vpack.c.bf16 %v21375_v52, %v21372_v32 }
 0x3d8   :  { %v5256_v24 = vpop.f32.mrb[92].mxu1 }
 0x3d9   :  { %v5258_v59 = vpop.f32.mrb[93].mxu1  ;;  %17669 = vmatprep.subr.bf16.mxu0 %v17668_v25  ;;  %v17993_v26 = vadd.f32 %v17992_v2, %v5256_v24  ;;  %v17674_v25 = vpack.c.bf16 %v21243_v55, %v21239_v46  ;;  %v17998_v24 = vadd.f32 %v21205_v14, %v21101_v9 }
 0x3da   :  { %v5259_v23 = vpop.f32.mrb[94].mxu1  ;;  %17671 = vmatpush3.bf16.msra.mxu0 %v17670_v53 }
 0x3db   :  { %v5261_v17 = vpop.f32.mrb[95].mxu1  ;;  %v17995_v40 = vadd.f32 %v17994_v6, %v5259_v23  ;;  %v21387_v39 = vadd.f32 %v17993_v26, %v21183_v28  ;;  %v18000_v23 = vadd.f32 %v21205_v14, %v21105_v42  ;;  %v28117_v42 = vld [vmem:[#allocation40_spill] sm:$0xff] }
 0x3dd   :  { %v21390_v20 = vadd.f32 %v17995_v40, %v21187_v38  ;;  %v18002_v40 = vadd.f32 %v21205_v14, %v21107_v62 }
 0x3df   :  { %v17672_v54 = vpack.c.bf16 %v21390_v20, %v21387_v39 }
 0x3e0   :  { %v5264_v2 = vpop.f32.mrb[96].mxu1 }
 0x3e1   :  { %v5266_v53 = vpop.f32.mrb[97].mxu1  ;;  %17673 = vmatprep.subr.bf16.mxu0 %v17672_v54  ;;  %v17997_v28 = vadd.f32 %v17996_v49, %v5264_v2  ;;  %v17678_v49 = vpack.c.bf16 %v21263_v15, %v21259_v57 }
 0x3e2   :  { %v5267_v6 = vpop.f32.mrb[98].mxu1  ;;  %17675 = vmatpush3.bf16.msra.mxu0 %v17674_v25 }
 0x3e3   :  { %v5269_v38 = vpop.f32.mrb[99].mxu1  ;;  %v17999_v59 = vadd.f32 %v17998_v24, %v5267_v6  ;;  %v21401_v26 = vadd.f32 %v17997_v28, %v21195_v58  ;;  %v28115_v24 = vld [vmem:[#allocation34_spill] sm:$0xff]  ;;  %v28119_v6 = vld [vmem:[#allocation7_spill] sm:$0xff] }
 0x3e4   :  { %v18004_v38 = vadd.f32 %v21205_v14, %v28119_v6 }
 0x3e5   :  { %28113 = vst [vmem:[#allocation134_spill] sm:$0xff] %v21401_v26  ;;  %v21404_v41 = vadd.f32 %v17999_v59, %v21199_v48 }
 0x3e7   :  { %28114 = vst [vmem:[#allocation135_spill] sm:$0xff] %v21404_v41  ;;  %v17676_v17 = vpack.c.bf16 %v21404_v41, %v21401_v26 }
 0x3e8   :  { %v5272_v9 = vpop.f32.mrb[100].mxu1 }
 0x3e9   :  { %v5274_v54 = vpop.f32.mrb[101].mxu1  ;;  %17677 = vmatprep.subr.bf16.mxu0 %v17676_v17  ;;  %v18001_v58 = vadd.f32 %v18000_v23, %v5272_v9  ;;  %v17682_v23 = vpack.c.bf16 %v21283_v36, %v21279_v19  ;;  %v28120_v17 = vld [vmem:[#allocation11_spill] sm:$0xff] }
 0x3ea   :  { %v5275_v2 = vpop.f32.mrb[102].mxu1  ;;  %17679 = vmatpush3.bf16.msra.mxu0 %v17678_v49  ;;  %v18006_v9 = vadd.f32 %v21205_v14, %v28120_v17 }
 0x3eb   :  { %v5277_v48 = vpop.f32.mrb[103].mxu1  ;;  %v18003_v25 = vadd.f32 %v18002_v40, %v5275_v2  ;;  %v21415_v53 = vadd.f32 %v18001_v58, %v28115_v24  ;;  %v28123_v24 = vld [vmem:[#allocation9_spill] sm:$0xff] }
 0x3ed   :  { %28116 = vst [vmem:[#allocation34_spill] sm:$0xff] %v21415_v53  ;;  %v21418_v28 = vadd.f32 %v18003_v25, %v28117_v42  ;;  %v18008_v42 = vadd.f32 %v21205_v14, %v28123_v24 }
 0x3ef   :  { %28118 = vst [vmem:[#allocation40_spill] sm:$0xff] %v21418_v28  ;;  %v17680_v59 = vpack.c.bf16 %v21418_v28, %v21415_v53 }
 0x3f0   :  { %v5280_v62 = vpop.f32.mrb[104].mxu1 }
 0x3f1   :  { %v5282_v49 = vpop.f32.mrb[105].mxu1  ;;  %17681 = vmatprep.subr.bf16.mxu0 %v17680_v59  ;;  %v18005_v40 = vadd.f32 %v18004_v38, %v5280_v62  ;;  %v17686_v38 = vpack.c.bf16 %v21303_v31, %v21299_v27  ;;  %v28124_v59 = vld [vmem:[#allocation15_spill] sm:$0xff] }
 0x3f2   :  { %v5283_v54 = vpop.f32.mrb[106].mxu1  ;;  %17683 = vmatpush3.bf16.msra.mxu0 %v17682_v23  ;;  %v18010_v62 = vadd.f32 %v21205_v14, %v28124_v59 }
 0x3f3   :  { %v5285_v58 = vpop.f32.mrb[107].mxu1  ;;  %v18007_v2 = vadd.f32 %v18006_v9, %v5283_v54  ;;  %v21429_v48 = vadd.f32 %v18005_v40, %v21212_v35  ;;  %v28125_v40 = vld [vmem:[#allocation45_spill] sm:$0xff] }
 0x3f5   :  { %28121 = vst [vmem:[#allocation7_spill] sm:$0xff] %v21429_v48  ;;  %v21432_v25 = vadd.f32 %v18007_v2, %v21218_v12  ;;  %v28128_v2 = vld [vmem:[#allocation13_spill] sm:$0xff] }
 0x3f6   :  { %v18012_v24 = vadd.f32 %v21205_v14, %v28128_v2 }
 0x3f7   :  { %28122 = vst [vmem:[#allocation11_spill] sm:$0xff] %v21432_v25  ;;  %v17684_v6 = vpack.c.bf16 %v21432_v25, %v21429_v48 }
 0x3f8   :  { %v5288_v17 = vpop.f32.mrb[108].mxu1 }
 0x3f9   :  { %v5290_v23 = vpop.f32.mrb[109].mxu1  ;;  %17685 = vmatprep.subr.bf16.mxu0 %v17684_v6  ;;  %v18009_v35 = vadd.f32 %v18008_v42, %v5288_v17  ;;  %v17690_v42 = vpack.c.bf16 %v21321_v34, %v21318_v8  ;;  %v28129_v6 = vld [vmem:[#allocation20_spill] sm:$0xff]  ;;  %v28134_v8 = vld [vmem:[#allocation115_spill] sm:$0xff] }
 0x3fa   :  { %v5291_v9 = vpop.f32.mrb[110].mxu1  ;;  %17687 = vmatpush3.bf16.msra.mxu0 %v17686_v38  ;;  %v18014_v17 = vadd.f32 %v21205_v14, %v28129_v6  ;;  %v21456_v23 = vpop.f32.mrb[252].mxu0 }
 0x3fb   :  { %v5293_v12 = vpop.f32.mrb[111].mxu1  ;;  %v18011_v49 = vadd.f32 %v18010_v62, %v5291_v9  ;;  %v21443_v54 = vadd.f32 %v18009_v35, %v28125_v40  ;;  %v21458_v35 = vpop.f32.mrb[253].mxu0 }
 0x3fc   :  { %v21463_v40 = vpop.f32.mrb[254].mxu0 }
 0x3fd   :  { %28126 = vst [vmem:[#allocation9_spill] sm:$0xff] %v21443_v54  ;;  %v21446_v58 = vadd.f32 %v18011_v49, %v21216_v45  ;;  %v21465_v2 = vpop.f32.mrb[255].mxu0 }
 0x3ff   :  { %28127 = vst [vmem:[#allocation15_spill] sm:$0xff] %v21446_v58  ;;  %v17688_v51 = vpack.c.bf16 %v21446_v58, %v21443_v54 }
 0x400   :  { %v5296_v59 = vpop.f32.mrb[112].mxu1 }
 0x401   :  { %v5298_v38 = vpop.f32.mrb[113].mxu1  ;;  %17689 = vmatprep.subr.bf16.mxu0 %v17688_v51  ;;  %v18013_v62 = vadd.f32 %v18012_v24, %v5296_v59  ;;  %v28132_v51 = vld [vmem:[#allocation18_spill] sm:$0xff] }
 0x402   :  { %v5299_v45 = vpop.f32.mrb[114].mxu1  ;;  %17691 = vmatpush3.bf16.msra.mxu0 %v17690_v42  ;;  %v18016_v24 = vadd.f32 %v21205_v14, %v28132_v51  ;;  %v28133_v38 = vld [vmem:[#allocation25_spill] sm:$0xff] }
 0x403   :  { %v5301_v9 = vpop.f32.mrb[115].mxu1  ;;  %v18015_v12 = vadd.f32 %v18014_v17, %v5299_v45  ;;  %v21461_v49 = vadd.f32 %v18013_v62, %v21230_v30  ;;  %v17694_v17 = vpack.c.bf16 %v21339_v50, %v21336_v29  ;;  %v18018_v30 = vadd.f32 %v21205_v14, %v28133_v38 }
 0x405   :  { %28130 = vst [vmem:[#allocation45_spill] sm:$0xff] %v21461_v49  ;;  %v21468_v6 = vadd.f32 %v18015_v12, %v21236_v47 }
 0x407   :  { %28131 = vst [vmem:[#allocation13_spill] sm:$0xff] %v21468_v6  ;;  %v17692_v59 = vpack.c.bf16 %v21468_v6, %v21461_v49  ;;  %v28137_v49 = vld [vmem:[#allocation23_spill] sm:$0xff] }
 0x408   :  { %v5304_v42 = vpop.f32.mrb[116].mxu1  ;;  %v18020_v6 = vadd.f32 %v21205_v14, %v28137_v49  ;;  %v28140_v49 = vmov 0.001953125  }
 0x409   :  { %v5306_v62 = vpop.f32.mrb[117].mxu1  ;;  %17693 = vmatprep.subr.bf16.mxu0 %v17692_v59  ;;  %v18017_v45 = vadd.f32 %v18016_v24, %v5304_v42  ;;  %v17698_v24 = vpack.c.bf16 %v21357_v61, %v21354_v21  ;;  %v28138_v59 = vld [vmem:[#allocation27_spill] sm:$0xff] }
 0x40a   :  { %v5307_v9 = vpop.f32.mrb[118].mxu1  ;;  %17695 = vmatpush3.bf16.msra.mxu0 %v17694_v17  ;;  %v18022_v42 = vadd.f32 %v21205_v14, %v28138_v59 }
 0x40b   :  { %v5309_v47 = vpop.f32.mrb[119].mxu1  ;;  %v18019_v12 = vadd.f32 %v18018_v30, %v5307_v9  ;;  %v21479_v34 = vadd.f32 %v18017_v45, %v28134_v8 }
 0x40c   :  { %v28142_v47 = vld [vmem:[#allocation32_spill] sm:$0xff] }
 0x40d   :  { %28135 = vst [vmem:[#allocation20_spill] sm:$0xff] %v21479_v34  ;;  %v21482_v51 = vadd.f32 %v18019_v12, %v21234_v63  ;;  %v18024_v12 = vadd.f32 %v21205_v14, %v28142_v47 }
 0x40f   :  { %28136 = vst [vmem:[#allocation18_spill] sm:$0xff] %v21482_v51  ;;  %v17696_v29 = vpack.c.bf16 %v21482_v51, %v21479_v34  ;;  %v28146_v34 = vld [vmem:[#allocation85_spill] sm:$0xff] }
 0x410   :  { %v5312_v38 = vpop.f32.mrb[120].mxu1 }
 0x411   :  { %v18021_v17 = vadd.f32 %v18020_v6, %v5312_v38  ;;  %v5314_v30 = vpop.f32.mrb[121].mxu1  ;;  %17697 = vmatprep.subr.bf16.mxu0 %v17696_v29  ;;  %v28143_v38 = vld [vmem:[#allocation31_spill] sm:$0xff] }
 0x412   :  { %v5315_v8 = vpop.f32.mrb[122].mxu1  ;;  %17699 = vmatpush3.bf16.msra.mxu0 %v17698_v24  ;;  %v18026_v29 = vadd.f32 %v21205_v14, %v28143_v38  ;;  %v4465_v38 = vadd.f32 %v21205_v14, %v28146_v34  ;;  %v28150_v34 = vld [vmem:[#allocation117_spill] sm:$0xff] }
 0x413   :  { %v18023_v63 = vadd.f32 %v18022_v42, %v5315_v8  ;;  %v5317_v62 = vpop.f32.mrb[123].mxu1  ;;  %v21493_v45 = vadd.f32 %v18021_v17, %v21250_v5  ;;  %v28144_v17 = vld [vmem:[#allocation116_spill] sm:$0xff] }
 0x415   :  { %28139 = vst [vmem:[#allocation25_spill] sm:$0xff] %v21493_v45  ;;  %5793 = vmatmul.mubr.f32.vlgmr.msra.gmra.mrb[0].mxu0 %v28140_v49  ;;  %v21497_v9 = vadd.f32 %v18023_v63, %v21256_v16  ;;  %v28145_v63 = vld [vmem:[#allocation29_spill] sm:$0xff] }
 0x416   :  { %5862 = vmatprep.mubr.f32.mxu0 %v28140_v49  ;;  %v4462_v62 = vadd.f32 %v21205_v14, %v28145_v63 }
 0x417   :  { %28141 = vst [vmem:[#allocation115_spill] sm:$0xff] %v21497_v9 }
 0x418   :  { %v5320_v6 = vpop.f32.mrb[124].mxu1 }
 0x419   :  { %v18025_v24 = vadd.f32 %v18024_v12, %v5320_v6  ;;  %v5322_v59 = vpop.f32.mrb[125].mxu1 }
 0x41a   :  { %v5323_v42 = vpop.f32.mrb[126].mxu1 }
 0x41b   :  { %v18027_v30 = vadd.f32 %v18026_v29, %v5323_v42  ;;  %v5325_v5 = vpop.f32.mrb[127].mxu1  ;;  %v21505_v8 = vadd.f32 %v18025_v24, %v28144_v17 }
 0x41d   :  { %v21508_v16 = vadd.f32 %v18027_v30, %v21254_v1  ;;  %v28148_v1 = vld [vmem:[#allocation86_spill] sm:$0xff] }
 0x41e   :  { %v4470_v42 = vadd.f32 %v21205_v14, %v28148_v1 }
 0x420   :  { %v5328_v21 = vpop.f32.mrb[0].mxu1 }
 0x421   :  { %v18029_v47 = vadd.f32 %v5328_v21, %v4462_v62  ;;  %v5330_v61 = vpop.f32.mrb[1].mxu1  ;;  %v28149_v21 = vld [vmem:[#allocation87_spill] sm:$0xff] }
 0x422   :  { %v5331_v12 = vpop.f32.mrb[2].mxu1  ;;  %v4473_v61 = vadd.f32 %v21205_v14, %v28149_v21 }
 0x423   :  { %v21515_v6 = vadd.f32 %v18029_v47, %v21270_v3  ;;  %v18031_v29 = vadd.f32 %v5331_v12, %v4465_v38  ;;  %v5333_v59 = vpop.f32.mrb[3].mxu1  ;;  %v28151_v38 = vld [vmem:[#allocation118_spill] sm:$0xff] }
 0x425   :  { %28147 = vst [vmem:[#allocation23_spill] sm:$0xff] %v21515_v6  ;;  %v21518_v24 = vadd.f32 %v18031_v29, %v21276_v44  ;;  %v28152_v44 = vld [vmem:[#allocation89_spill] sm:$0xff] }
 0x426   :  { %v4478_v29 = vadd.f32 %v21205_v14, %v28152_v44 }
 0x428   :  { %v5336_v30 = vpop.f32.mrb[4].mxu1 }
 0x429   :  { %v18033_v5 = vadd.f32 %v5336_v30, %v4470_v42  ;;  %v5338_v17 = vpop.f32.mrb[5].mxu1  ;;  %v28153_v42 = vld [vmem:[#allocation90_spill] sm:$0xff] }
 0x42a   :  { %v5339_v63 = vpop.f32.mrb[6].mxu1  ;;  %v4481_v30 = vadd.f32 %v21205_v14, %v28153_v42 }
 0x42b   :  { %v21525_v62 = vadd.f32 %v18033_v5, %v28150_v34  ;;  %v18035_v3 = vadd.f32 %v5339_v63, %v4473_v61  ;;  %v5341_v47 = vpop.f32.mrb[7].mxu1  ;;  %v28155_v63 = vld [vmem:[#allocation91_spill] sm:$0xff] }
 0x42d   :  { %v21528_v12 = vadd.f32 %v18035_v3, %v28151_v38  ;;  %v4486_v3 = vadd.f32 %v21205_v14, %v28155_v63 }
 0x430   :  { %v5344_v59 = vpop.f32.mrb[8].mxu1 }
 0x431   :  { %v18037_v1 = vadd.f32 %v5344_v59, %v4478_v29  ;;  %v5346_v51 = vpop.f32.mrb[9].mxu1  ;;  %v28156_v29 = vld [vmem:[#allocation92_spill] sm:$0xff] }
 0x432   :  { %v5347_v17 = vpop.f32.mrb[10].mxu1  ;;  %v4489_v51 = vadd.f32 %v21205_v14, %v28156_v29  ;;  %v28160_v29 = vld [vmem:[#allocation122_spill] sm:$0xff] }
 0x433   :  { %v21535_v21 = vadd.f32 %v18037_v1, %v21290_v37  ;;  %v18039_v5 = vadd.f32 %v5347_v17, %v4481_v30  ;;  %v5349_v34 = vpop.f32.mrb[11].mxu1  ;;  %v28157_v30 = vld [vmem:[#allocation119_spill] sm:$0xff] }
 0x435   :  { %28154 = vst [vmem:[#allocation27_spill] sm:$0xff] %v21535_v21  ;;  %v21538_v61 = vadd.f32 %v18039_v5, %v21296_v4  ;;  %v28158_v4 = vld [vmem:[#allocation93_spill] sm:$0xff] }
 0x436   :  { %v4494_v5 = vadd.f32 %v21205_v14, %v28158_v4 }
 0x438   :  { %v5352_v47 = vpop.f32.mrb[12].mxu1 }
 0x439   :  { %v18041_v38 = vadd.f32 %v5352_v47, %v4486_v3  ;;  %v5354_v44 = vpop.f32.mrb[13].mxu1  ;;  %v28159_v3 = vld [vmem:[#allocation94_spill] sm:$0xff] }
 0x43a   :  { %v5355_v59 = vpop.f32.mrb[14].mxu1  ;;  %v4497_v47 = vadd.f32 %v21205_v14, %v28159_v3  ;;  %v28163_v3 = vld [vmem:[#allocation121_spill] sm:$0xff] }
 0x43b   :  { %v21545_v42 = vadd.f32 %v18041_v38, %v21288_v10  ;;  %v18043_v37 = vadd.f32 %v5355_v59, %v4489_v51  ;;  %v5357_v1 = vpop.f32.mrb[15].mxu1  ;;  %v28161_v59 = vld [vmem:[#allocation95_spill] sm:$0xff] }
 0x43d   :  { %v21548_v17 = vadd.f32 %v18043_v37, %v28157_v30  ;;  %v4502_v37 = vadd.f32 %v21205_v14, %v28161_v59 }
 0x440   :  { %v5360_v34 = vpop.f32.mrb[16].mxu1 }
 0x441   :  { %v18045_v63 = vadd.f32 %v5360_v34, %v4494_v5  ;;  %v5362_v50 = vpop.f32.mrb[17].mxu1  ;;  %v28162_v5 = vld [vmem:[#allocation96_spill] sm:$0xff] }
 0x442   :  { %v5363_v44 = vpop.f32.mrb[18].mxu1  ;;  %v4505_v50 = vadd.f32 %v21205_v14, %v28162_v5  ;;  %v28166_v5 = vld [vmem:[#allocation126_spill] sm:$0xff] }
 0x443   :  { %v21555_v54 = vadd.f32 %v18045_v63, %v28160_v29  ;;  %v18047_v10 = vadd.f32 %v5363_v44, %v4497_v47  ;;  %v5365_v38 = vpop.f32.mrb[19].mxu1 }
 0x445   :  { %v21558_v51 = vadd.f32 %v18047_v10, %v21315_v43  ;;  %v28164_v43 = vld [vmem:[#allocation97_spill] sm:$0xff] }
 0x446   :  { %v4510_v44 = vadd.f32 %v21205_v14, %v28164_v43  ;;  %v17702_v43 = vpack.c.bf16 %v21497_v9, %v21493_v45 }
 0x448   :  { %v5368_v1 = vpop.f32.mrb[20].mxu1 }
 0x449   :  { %v18049_v30 = vadd.f32 %v5368_v1, %v4502_v37  ;;  %v5370_v4 = vpop.f32.mrb[21].mxu1  ;;  %v28165_v37 = vld [vmem:[#allocation98_spill] sm:$0xff] }
 0x44a   :  { %v5371_v34 = vpop.f32.mrb[22].mxu1  ;;  %v4513_v1 = vadd.f32 %v21205_v14, %v28165_v37 }
 0x44b   :  { %v21565_v27 = vadd.f32 %v18049_v30, %v28163_v3  ;;  %v18051_v63 = vadd.f32 %v5371_v34, %v4505_v50  ;;  %v5373_v29 = vpop.f32.mrb[23].mxu1 }
 0x44d   :  { %v21568_v47 = vadd.f32 %v18051_v63, %v21313_v22  ;;  %v28168_v22 = vld [vmem:[#allocation99_spill] sm:$0xff] }
 0x44e   :  { %v4518_v34 = vadd.f32 %v21205_v14, %v28168_v22 }
 0x450   :  { %v5376_v10 = vpop.f32.mrb[24].mxu1 }
 0x451   :  { %v18053_v38 = vadd.f32 %v5376_v10, %v4510_v44  ;;  %v5378_v59 = vpop.f32.mrb[25].mxu1 }
 0x452   :  { %v5379_v4 = vpop.f32.mrb[26].mxu1 }
 0x453   :  { %v21575_v58 = vadd.f32 %v18053_v38, %v28166_v5  ;;  %v18055_v30 = vadd.f32 %v5379_v4, %v4513_v1  ;;  %v5381_v3 = vpop.f32.mrb[27].mxu1  ;;  %v28169_v38 = vld [vmem:[#allocation100_spill] sm:$0xff] }
 0x454   :  { %v4521_v59 = vadd.f32 %v21205_v14, %v28169_v38  ;;  %v28172_v3 = vld [vmem:[#allocation101_spill] sm:$0xff] }
 0x455   :  { %v21578_v50 = vadd.f32 %v18055_v30, %v21333_v0  ;;  %v28170_v0 = vld [vmem:[#allocation125_spill] sm:$0xff]  ;;  %v4526_v22 = vadd.f32 %v21205_v14, %v28172_v3  ;;  %v28175_v3 = vld [vmem:[#allocation103_spill] sm:$0xff] }
 0x457   :  { %28167 = vst [vmem:[#allocation32_spill] sm:$0xff] %v21578_v50  ;;  %v17700_v63 = vpack.c.bf16 %v21578_v50, %v21575_v58 }
 0x458   :  { %v5384_v29 = vpop.f32.mrb[28].mxu1 }
 0x459   :  { %v18057_v44 = vadd.f32 %v5384_v29, %v4518_v34  ;;  %v5386_v10 = vpop.f32.mrb[29].mxu1  ;;  %17701 = vmatprep.subr.bf16.mxu0 %v17700_v63  ;;  %v17706_v29 = vpack.c.bf16 %v21508_v16, %v21505_v8 }
 0x45a   :  { %v5387_v37 = vpop.f32.mrb[30].mxu1  ;;  %17703 = vmatpush3.bf16.msra.mxu0 %v17702_v43 }
 0x45b   :  { %v21589_v1 = vadd.f32 %v18057_v44, %v28170_v0  ;;  %v18059_v4 = vadd.f32 %v5387_v37, %v4521_v59  ;;  %v5389_v5 = vpop.f32.mrb[31].mxu1  ;;  %v28173_v44 = vld [vmem:[#allocation102_spill] sm:$0xff] }
 0x45c   :  { %v4529_v38 = vadd.f32 %v21205_v14, %v28173_v44 }
 0x45d   :  { %28171 = vst [vmem:[#allocation31_spill] sm:$0xff] %v21589_v1  ;;  %v21592_v30 = vadd.f32 %v18059_v4, %v21331_v56  ;;  %v28174_v56 = vld [vmem:[#allocation130_spill] sm:$0xff] }
 0x45f   :  { %v17704_v34 = vpack.c.bf16 %v21592_v30, %v21589_v1  ;;  %v4534_v1 = vadd.f32 %v21205_v14, %v28175_v3  ;;  %v28178_v3 = vld [vmem:[#allocation105_spill] sm:$0xff] }
 0x460   :  { %v5392_v63 = vpop.f32.mrb[32].mxu1 }
 0x461   :  { %v18061_v10 = vadd.f32 %v5392_v63, %v4526_v22  ;;  %v5394_v43 = vpop.f32.mrb[33].mxu1  ;;  %17705 = vmatprep.subr.bf16.mxu0 %v17704_v34  ;;  %v17710_v34 = vpack.c.bf16 %v21518_v24, %v21515_v6  ;;  %v4542_v6 = vadd.f32 %v21205_v14, %v28178_v3 }
 0x462   :  { %v5395_v59 = vpop.f32.mrb[34].mxu1  ;;  %17707 = vmatpush3.bf16.msra.mxu0 %v17706_v29 }
 0x463   :  { %v21603_v37 = vadd.f32 %v18061_v10, %v28174_v56  ;;  %v18063_v0 = vadd.f32 %v5395_v59, %v4529_v38  ;;  %v5397_v4 = vpop.f32.mrb[35].mxu1  ;;  %v28176_v10 = vld [vmem:[#allocation104_spill] sm:$0xff] }
 0x464   :  { %v4537_v44 = vadd.f32 %v21205_v14, %v28176_v10 }
 0x465   :  { %v21606_v5 = vadd.f32 %v18063_v0, %v21351_v33  ;;  %v28177_v33 = vld [vmem:[#allocation129_spill] sm:$0xff] }
 0x467   :  { %v17708_v22 = vpack.c.bf16 %v21606_v5, %v21603_v37 }
 0x468   :  { %v5400_v63 = vpop.f32.mrb[36].mxu1 }
 0x469   :  { %v18065_v43 = vadd.f32 %v5400_v63, %v4534_v1  ;;  %v5402_v29 = vpop.f32.mrb[37].mxu1  ;;  %17709 = vmatprep.subr.bf16.mxu0 %v17708_v22  ;;  %v17714_v22 = vpack.c.bf16 %v21528_v12, %v21525_v62 }
 0x46a   :  { %v5403_v38 = vpop.f32.mrb[38].mxu1  ;;  %17711 = vmatpush3.bf16.msra.mxu0 %v17710_v34 }
 0x46b   :  { %v21617_v59 = vadd.f32 %v18065_v43, %v28177_v33  ;;  %v18067_v56 = vadd.f32 %v5403_v38, %v4537_v44  ;;  %v5405_v0 = vpop.f32.mrb[39].mxu1  ;;  %v28179_v43 = vld [vmem:[#allocation106_spill] sm:$0xff] }
 0x46c   :  { %v4545_v10 = vadd.f32 %v21205_v14, %v28179_v43  ;;  %v28181_v0 = vld [vmem:[#allocation107_spill] sm:$0xff] }
 0x46d   :  { %v21620_v4 = vadd.f32 %v18067_v56, %v21349_v60  ;;  %v4550_v3 = vadd.f32 %v21205_v14, %v28181_v0  ;;  %v28184_v0 = vld [vmem:[#allocation109_spill] sm:$0xff] }
 0x46f   :  { %v17712_v1 = vpack.c.bf16 %v21620_v4, %v21617_v59 }
 0x470   :  { %v5408_v63 = vpop.f32.mrb[40].mxu1 }
 0x471   :  { %v18069_v29 = vadd.f32 %v5408_v63, %v4542_v6  ;;  %v5410_v34 = vpop.f32.mrb[41].mxu1  ;;  %17713 = vmatprep.subr.bf16.mxu0 %v17712_v1  ;;  %v17718_v1 = vpack.c.bf16 %v21538_v61, %v21535_v21  ;;  %v4558_v21 = vadd.f32 %v21205_v14, %v28184_v0 }
 0x472   :  { %v5411_v44 = vpop.f32.mrb[42].mxu1  ;;  %17715 = vmatpush3.bf16.msra.mxu0 %v17714_v22 }
 0x473   :  { %v21631_v60 = vadd.f32 %v18069_v29, %v21363_v18  ;;  %v18071_v38 = vadd.f32 %v5411_v44, %v4545_v10  ;;  %v5413_v33 = vpop.f32.mrb[43].mxu1  ;;  %v28182_v18 = vld [vmem:[#allocation108_spill] sm:$0xff] }
 0x474   :  { %v4553_v29 = vadd.f32 %v21205_v14, %v28182_v18 }
 0x475   :  { %v21634_v56 = vadd.f32 %v18071_v38, %v21369_v13  ;;  %v28183_v13 = vld [vmem:[#allocation133_spill] sm:$0xff] }
 0x477   :  { %28180 = vst [vmem:[#allocation116_spill] sm:$0xff] %v21634_v56  ;;  %v17716_v6 = vpack.c.bf16 %v21634_v56, %v21631_v60 }
 0x478   :  { %v5416_v63 = vpop.f32.mrb[44].mxu1 }
 0x479   :  { %v18073_v34 = vadd.f32 %v5416_v63, %v4550_v3  ;;  %v5418_v22 = vpop.f32.mrb[45].mxu1  ;;  %17717 = vmatprep.subr.bf16.mxu0 %v17716_v6  ;;  %v17722_v6 = vpack.c.bf16 %v21548_v17, %v21545_v42 }
 0x47a   :  { %v5419_v43 = vpop.f32.mrb[46].mxu1  ;;  %17719 = vmatpush3.bf16.msra.mxu0 %v17718_v1 }
 0x47b   :  { %v21645_v10 = vadd.f32 %v18073_v34, %v28183_v13  ;;  %v18075_v44 = vadd.f32 %v5419_v43, %v4553_v29  ;;  %v5421_v38 = vpop.f32.mrb[47].mxu1  ;;  %v28185_v34 = vld [vmem:[#allocation110_spill] sm:$0xff] }
 0x47c   :  { %v4561_v18 = vadd.f32 %v21205_v14, %v28185_v34  ;;  %v28186_v38 = vld [vmem:[#allocation111_spill] sm:$0xff]  ;;  %v28187_v34 = vld [vmem:[#allocation112_spill] sm:$0xff] }
 0x47d   :  { %v21648_v33 = vadd.f32 %v18075_v44, %v21367_v11  ;;  %v4566_v0 = vadd.f32 %v21205_v14, %v28186_v38 }
 0x47f   :  { %v17720_v3 = vpack.c.bf16 %v21648_v33, %v21645_v10 }
 0x480   :  { %v5424_v63 = vpop.f32.mrb[48].mxu1 }
 0x481   :  { %v18077_v22 = vadd.f32 %v5424_v63, %v4558_v21  ;;  %v5426_v1 = vpop.f32.mrb[49].mxu1  ;;  %17721 = vmatprep.subr.bf16.mxu0 %v17720_v3  ;;  %v17726_v3 = vpack.c.bf16 %v21558_v51, %v21555_v54 }
 0x482   :  { %v5427_v29 = vpop.f32.mrb[50].mxu1  ;;  %17723 = vmatpush3.bf16.msra.mxu0 %v17722_v6 }
 0x483   :  { %v18079_v11 = vadd.f32 %v5427_v29, %v4561_v18  ;;  %v21659_v43 = vadd.f32 %v18077_v22, %v21458_v35  ;;  %v5429_v13 = vpop.f32.mrb[51].mxu1  ;;  %v4569_v35 = vadd.f32 %v21205_v14, %v28187_v34  ;;  %v17730_v14 = vpack.c.bf16 %v21568_v47, %v21565_v27 }
 0x484   :  { %v5885_v13 = vmul.f32 %v21375_v52, %v21375_v52  ;;  %v5871_v34 = vmul.f32 %v21243_v55, %v21243_v55 }
 0x485   :  { %v21662_v44 = vadd.f32 %v18079_v11, %v21465_v2 }
 0x487   :  { %v17724_v21 = vpack.c.bf16 %v21662_v44, %v21659_v43 }
 0x488   :  { %v5432_v63 = vpop.f32.mrb[52].mxu1 }
 0x489   :  { %v18081_v1 = vadd.f32 %v5432_v63, %v4566_v0  ;;  %v5434_v6 = vpop.f32.mrb[53].mxu1  ;;  %17725 = vmatprep.subr.bf16.mxu0 %v17724_v21  ;;  %v5884_v0 = vmul.f32 %v21372_v32, %v21372_v32 }
 0x48a   :  { %v5435_v22 = vpop.f32.mrb[54].mxu1  ;;  %17727 = vmatpush3.bf16.msra.mxu0 %v17726_v3  ;;  %v28190_v3 = vld [vmem:[#allocation113_spill] sm:$0xff] }
 0x48b   :  { %v21673_v2 = vadd.f32 %v18081_v1, %v21456_v23  ;;  %v18083_v18 = vadd.f32 %v5435_v22, %v4569_v35  ;;  %v5437_v29 = vpop.f32.mrb[55].mxu1  ;;  %v5869_v23 = vmul.f32 %v21223_v7, %v21223_v7  ;;  %v17732_v21 = vpack.c.bf16 %v5885_v13, %v5884_v0 }
 0x48c   :  { %v5868_v63 = vmul.f32 %v28190_v3, %v28190_v3  ;;  %v5886_v1 = vmul.f32 %v21387_v39, %v21387_v39  ;;  %v5889_v22 = vmul.f32 %v21404_v41, %v21404_v41  ;;  %v5888_v29 = vmul.f32 %v21401_v26, %v21401_v26 }
 0x48d   :  { %28188 = vst [vmem:[#allocation29_spill] sm:$0xff] %v21673_v2  ;;  %v21676_v11 = vadd.f32 %v18083_v18, %v21463_v40  ;;  %v5887_v40 = vmul.f32 %v21390_v20, %v21390_v20  ;;  %v5870_v18 = vmul.f32 %v21239_v46, %v21239_v46 }
 0x48e   :  { %v17734_v6 = vpack.c.bf16 %v5869_v23, %v5868_v63  ;;  %v17740_v0 = vpack.c.bf16 %v5889_v22, %v5888_v29  ;;  %v5872_v23 = vmul.f32 %v21259_v57, %v21259_v57  ;;  %v5875_v63 = vmul.f32 %v21283_v36, %v21283_v36 }
 0x48f   :  { %28189 = vst [vmem:[#allocation85_spill] sm:$0xff] %v21676_v11  ;;  %v17728_v38 = vpack.c.bf16 %v21676_v11, %v21673_v2  ;;  %v17736_v35 = vpack.c.bf16 %v5887_v40, %v5886_v1  ;;  %v17738_v13 = vpack.c.bf16 %v5871_v34, %v5870_v18  ;;  %v5874_v34 = vmul.f32 %v21279_v19, %v21279_v19 }
 0x490   :  { %v5877_v18 = vmul.f32 %v21303_v31, %v21303_v31 }
 0x491   :  { %17729 = vmatprep.subr.bf16.mxu0 %v17728_v38  ;;  %v5873_v38 = vmul.f32 %v21263_v15, %v21263_v15  ;;  %v17746_v22 = vpack.c.bf16 %v5875_v63, %v5874_v34  ;;  %v28195_v34 = vld [vmem:[#allocation13_spill] sm:$0xff] }
 0x492   :  { %17731 = vmatpush3.bf16.msra.mxu0 %v17730_v14  ;;  %v5891_v14 = vmul.f32 %v21418_v28, %v21418_v28  ;;  %v5897_v3 = vmul.f32 %v28195_v34, %v28195_v34  ;;  %v28202_v28 = vld [vmem:[#allocation132_spill] sm:$0xff] }
 0x493   :  { %17733 = vmatprep.subr.bf16.mxu0 %v17732_v21  ;;  %v5890_v21 = vmul.f32 %v21415_v53, %v21415_v53  ;;  %v17742_v40 = vpack.c.bf16 %v5873_v38, %v5872_v23  ;;  %v28193_v23 = vld [vmem:[#allocation9_spill] sm:$0xff] }
 0x495   :  { %5863 = vmatmul.mubr.f32.vlgmr.msra.gmra.mrb[2].mxu0 %v28140_v49  ;;  %v17744_v1 = vpack.c.bf16 %v5891_v14, %v5890_v21  ;;  %v5894_v21 = vmul.f32 %v28193_v23, %v28193_v23 }
 0x496   :  { %17735 = vmatpush3.bf16.msra.mxu0 %v17734_v6  ;;  %5996 = vmatprep.mubr.f32.mxu0 %v28140_v49  ;;  %v5893_v6 = vmul.f32 %v21432_v25, %v21432_v25  ;;  %v28198_v25 = vld [vmem:[#allocation128_spill] sm:$0xff]  ;;  %v28221_v53 = vld [vmem:[#allocation85_spill] sm:$0xff] }
 0x497   :  { %17737 = vmatprep.subr.bf16.mxu0 %v17736_v35  ;;  %v5892_v35 = vmul.f32 %v21429_v48, %v21429_v48  ;;  %v5881_v23 = vmul.f32 %v28198_v25, %v28198_v25 }
 0x499   :  { %v17748_v29 = vpack.c.bf16 %v5893_v6, %v5892_v35  ;;  %v28196_v6 = vld [vmem:[#allocation123_spill] sm:$0xff] }
 0x49a   :  { %17739 = vmatpush3.bf16.msra.mxu0 %v17738_v13  ;;  %v28191_v13 = vld [vmem:[#allocation15_spill] sm:$0xff]  ;;  %v5878_v35 = vmul.f32 %v28196_v6, %v28196_v6 }
 0x49b   :  { %17741 = vmatprep.subr.bf16.mxu0 %v17740_v0  ;;  %v5895_v38 = vmul.f32 %v28191_v13, %v28191_v13  ;;  %v28192_v0 = vld [vmem:[#allocation120_spill] sm:$0xff] }
 0x49c   :  { %v5876_v14 = vmul.f32 %v28192_v0, %v28192_v0 }
 0x49d   :  { %v17752_v63 = vpack.c.bf16 %v5895_v38, %v5894_v21  ;;  %v28200_v38 = vld [vmem:[#allocation127_spill] sm:$0xff] }
 0x49e   :  { %17743 = vmatpush3.bf16.msra.mxu0 %v17742_v40  ;;  %v17750_v40 = vpack.c.bf16 %v5877_v18, %v5876_v14  ;;  %v28199_v14 = vld [vmem:[#allocation18_spill] sm:$0xff]  ;;  %v5880_v21 = vmul.f32 %v28200_v38, %v28200_v38 }
 0x49f   :  { %17745 = vmatprep.subr.bf16.mxu0 %v17744_v1  ;;  %v28194_v1 = vld [vmem:[#allocation124_spill] sm:$0xff]  ;;  %v5899_v48 = vmul.f32 %v28199_v14, %v28199_v14  ;;  %v5901_v14 = vmul.f32 %v21497_v9, %v21497_v9 }
 0x4a0   :  { %v5879_v7 = vmul.f32 %v28194_v1, %v28194_v1 }
 0x4a2   :  { %17747 = vmatpush3.bf16.msra.mxu0 %v17746_v22  ;;  %v28197_v22 = vld [vmem:[#allocation45_spill] sm:$0xff] }
 0x4a3   :  { %17749 = vmatprep.subr.bf16.mxu0 %v17748_v29  ;;  %v5896_v13 = vmul.f32 %v28197_v22, %v28197_v22  ;;  %v17754_v29 = vpack.c.bf16 %v5879_v7, %v5878_v35  ;;  %v5883_v22 = vmul.f32 %v28202_v28, %v28202_v28  ;;  %v5917_v35 = vmul.f32 %v21578_v50, %v21578_v50 }
 0x4a4   :  { %v5903_v50 = vmul.f32 %v21508_v16, %v21508_v16 }
 0x4a5   :  { %v17756_v18 = vpack.c.bf16 %v5897_v3, %v5896_v13  ;;  %v28203_v3 = vld [vmem:[#allocation131_spill] sm:$0xff] }
 0x4a6   :  { %17751 = vmatpush3.bf16.msra.mxu0 %v17750_v40  ;;  %v28201_v40 = vld [vmem:[#allocation20_spill] sm:$0xff]  ;;  %v5882_v13 = vmul.f32 %v28203_v3, %v28203_v3 }
 0x4a7   :  { %17753 = vmatprep.subr.bf16.mxu0 %v17752_v63  ;;  %v5898_v34 = vmul.f32 %v28201_v40, %v28201_v40  ;;  %v17758_v63 = vpack.c.bf16 %v5881_v23, %v5880_v21  ;;  %v5919_v21 = vmul.f32 %v21592_v30, %v21592_v30 }
 0x4a9   :  { %v17760_v7 = vpack.c.bf16 %v5899_v48, %v5898_v34  ;;  %v5900_v48 = vmul.f32 %v21493_v45, %v21493_v45  ;;  %v28204_v34 = vld [vmem:[#allocation31_spill] sm:$0xff] }
 0x4aa   :  { %17755 = vmatpush3.bf16.msra.mxu0 %v17754_v29  ;;  %v5916_v29 = vmul.f32 %v21575_v58, %v21575_v58 }
 0x4ab   :  { %17757 = vmatprep.subr.bf16.mxu0 %v17756_v18  ;;  %v17762_v18 = vpack.c.bf16 %v5883_v22, %v5882_v13  ;;  %v5902_v13 = vmul.f32 %v21505_v8, %v21505_v8 }
 0x4ac   :  { %v17764_v23 = vpack.c.bf16 %v5917_v35, %v5916_v29  ;;  %v5921_v35 = vmul.f32 %v21606_v5, %v21606_v5  ;;  %v5920_v29 = vmul.f32 %v21603_v37, %v21603_v37 }
 0x4ae   :  { %17759 = vmatpush3.bf16.msra.mxu0 %v17758_v63  ;;  %v5918_v63 = vmul.f32 %v28204_v34, %v28204_v34 }
 0x4af   :  { %17761 = vmatprep.subr.bf16.mxu0 %v17760_v7  ;;  %v17766_v7 = vpack.c.bf16 %v5901_v14, %v5900_v48  ;;  %v5905_v14 = vmul.f32 %v21518_v24, %v21518_v24  ;;  %v28205_v48 = vld [vmem:[#allocation23_spill] sm:$0xff] }
 0x4b0   :  { %v17768_v22 = vpack.c.bf16 %v5919_v21, %v5918_v63  ;;  %v5923_v21 = vmul.f32 %v21620_v4, %v21620_v4  ;;  %v5904_v63 = vmul.f32 %v28205_v48, %v28205_v48 }
 0x4b2   :  { %17763 = vmatpush3.bf16.msra.mxu0 %v17762_v18  ;;  %v17770_v18 = vpack.c.bf16 %v5903_v50, %v5902_v13  ;;  %v17774_v9 = vpack.c.bf16 %v5905_v14, %v5904_v63  ;;  %v5925_v50 = vmul.f32 %v21634_v56, %v21634_v56  ;;  %v5924_v13 = vmul.f32 %v21631_v60, %v21631_v60 }
 0x4b3   :  { %17765 = vmatprep.subr.bf16.mxu0 %v17764_v23  ;;  %v17772_v23 = vpack.c.bf16 %v5921_v35, %v5920_v29  ;;  %v5906_v35 = vmul.f32 %v21525_v62, %v21525_v62  ;;  %v5909_v29 = vmul.f32 %v21538_v61, %v21538_v61  ;;  %v5927_v14 = vmul.f32 %v21648_v33, %v21648_v33 }
 0x4b4   :  { %v5929_v56 = vmul.f32 %v21662_v44, %v21662_v44 }
 0x4b5   :  { %5997 = vmatmul.mubr.f32.vlgmr.msra.gmra.mrb[4].mxu0 %v28140_v49 }
 0x4b6   :  { %17767 = vmatpush3.bf16.msra.mxu0 %v17766_v7  ;;  %6066 = vmatprep.mubr.f32.mxu0 %v28140_v49  ;;  %v5922_v7 = vmul.f32 %v21617_v59, %v21617_v59 }
 0x4b7   :  { %17769 = vmatprep.subr.bf16.mxu0 %v17768_v22  ;;  %v5907_v22 = vmul.f32 %v21528_v12, %v21528_v12 }
 0x4b8   :  { %v17776_v45 = vpack.c.bf16 %v5923_v21, %v5922_v7  ;;  %v28206_v21 = vld [vmem:[#allocation27_spill] sm:$0xff] }
 0x4b9   :  { %v5908_v63 = vmul.f32 %v28206_v21, %v28206_v21 }
 0x4ba   :  { %17771 = vmatpush3.bf16.msra.mxu0 %v17770_v18  ;;  %v17778_v18 = vpack.c.bf16 %v5907_v22, %v5906_v35  ;;  %v5928_v35 = vmul.f32 %v21659_v43, %v21659_v43 }
 0x4bb   :  { %17773 = vmatprep.subr.bf16.mxu0 %v17772_v23  ;;  %v17780_v23 = vpack.c.bf16 %v5925_v50, %v5924_v13  ;;  %v17782_v7 = vpack.c.bf16 %v5909_v29, %v5908_v63  ;;  %v5910_v50 = vmul.f32 %v21545_v42, %v21545_v42  ;;  %v5913_v13 = vmul.f32 %v21558_v51, %v21558_v51 }
 0x4bc   :  { %v5931_v29 = vmul.f32 %v21676_v11, %v21676_v11  ;;  %v5912_v63 = vmul.f32 %v21555_v54, %v21555_v54 }
 0x4be   :  { %17775 = vmatpush3.bf16.msra.mxu0 %v17774_v9  ;;  %v5926_v9 = vmul.f32 %v21645_v10, %v21645_v10 }
 0x4bf   :  { %17777 = vmatprep.subr.bf16.mxu0 %v17776_v45  ;;  %v5911_v45 = vmul.f32 %v21548_v17, %v21548_v17 }
 0x4c0   :  { %v17784_v22 = vpack.c.bf16 %v5927_v14, %v5926_v9  ;;  %v5930_v14 = vmul.f32 %v21673_v2, %v21673_v2  ;;  %v5915_v9 = vmul.f32 %v21568_v47, %v21568_v47 }
 0x4c2   :  { %17779 = vmatpush3.bf16.msra.mxu0 %v17778_v18  ;;  %v17786_v18 = vpack.c.bf16 %v5911_v45, %v5910_v50  ;;  %v5914_v45 = vmul.f32 %v21565_v27, %v21565_v27  ;;  %v28207_v50 = vmov 0  }
 0x4c3   :  { %17781 = vmatprep.subr.bf16.mxu0 %v17780_v23  ;;  %v17788_v23 = vpack.c.bf16 %v5929_v56, %v5928_v35 }
 0x4c4   :  { %v17794_v56 = vpack.c.bf16 %v5915_v9, %v5914_v45  ;;  %v19354_v9 = vld [vmem:[%s27194_s7 + $0x20] sm:$0xff]   ;;  %v19357_v45 = vld [vmem:[%s27194_s7 + $0x38] sm:$0xff]  }
 0x4c6   :  { %17783 = vmatpush3.bf16.msra.mxu0 %v17782_v7  ;;  %v17790_v7 = vpack.c.bf16 %v5913_v13, %v5912_v63  ;;  %v19350_v13 = vld [vmem:[%s27194_s7] sm:$0xff]   ;;  %v19352_v63 = vld [vmem:[%s27194_s7 + $0x10] sm:$0xff]  }
 0x4c7   :  { %17785 = vmatprep.subr.bf16.mxu0 %v17784_v22  ;;  %v17792_v22 = vpack.c.bf16 %v5931_v29, %v5930_v14  ;;  %v19351_v29 = vld [vmem:[%s27194_s7 + $0x8] sm:$0xff]   ;;  %v19353_v14 = vld [vmem:[%s27194_s7 + $0x18] sm:$0xff]  }
 0x4ca   :  { %17787 = vmatpush3.bf16.msra.mxu0 %v17786_v18 }
 0x4cb   :  { %17789 = vmatprep.subr.bf16.mxu0 %v17788_v23 }
 0x4ce   :  { %17791 = vmatpush3.bf16.msra.mxu0 %v17790_v7  ;;  %v19355_v7 = vld [vmem:[%s27194_s7 + $0x28] sm:$0xff]  }
 0x4cf   :  { %17793 = vmatprep.subr.bf16.mxu0 %v17792_v22  ;;  %v19356_v22 = vld [vmem:[%s27194_s7 + $0x30] sm:$0xff]  }
 0x4d2   :  { %17795 = vmatpush3.bf16.msra.mxu0 %v17794_v56  ;;  %v19358_v56 = vld [vmem:[%s27194_s7 + $0x40] sm:$0xff]  }
 0x4d3   :  { %9676 = vmatprep.subr.bf16.mxu0 %v28207_v50 }
 0x4d5   :  { %6067 = vmatmul.mubr.f32.vlgmr.msra.gmra.mrb[6].mxu0 %v28140_v49 }
 0x4d6   :  { %9708 = vmatprep.mubr.bf16.mxu0 %v28207_v50  ;;  %9677 = vmatpush1.bf16.msra.mxu0 %v19350_v13  ;;  %v19361_v13 = vld [vmem:[%s27194_s7 + $0x200] sm:$0xff]  }
 0x4d7   :  { %9678 = vmatprep.subr.bf16.mxu0 %v28207_v50  ;;  %17508 = vmatprep.subr.bf16.mxu1 %v19361_v13 }
 0x4d8   :  { %17509 = vmatpush3.bf16.msra.mxu1 %v19361_v13  ;;  %v19369_v13 = vld [vmem:[%s27194_s7 + $0x220] sm:$0xff]  }
 0x4da   :  { %9679 = vmatpush1.bf16.msra.mxu0 %v19351_v29  ;;  %v19362_v29 = vld [vmem:[%s27194_s7 + $0x58] sm:$0xff]  }
 0x4db   :  { %9680 = vmatprep.subr.bf16.mxu0 %v28207_v50 }
 0x4de   :  { %9681 = vmatpush1.bf16.msra.mxu0 %v19352_v63  ;;  %v19363_v63 = vld [vmem:[%s27194_s7 + $0x208] sm:$0xff]  }
 0x4df   :  { %9682 = vmatprep.subr.bf16.mxu0 %v28207_v50  ;;  %17510 = vmatprep.subr.bf16.mxu1 %v19363_v63 }
 0x4e0   :  { %17511 = vmatpush3.bf16.msra.mxu1 %v19363_v63  ;;  %v19370_v63 = vld [vmem:[%s27194_s7 + $0x78] sm:$0xff]  }
 0x4e2   :  { %9683 = vmatpush1.bf16.msra.mxu0 %v19353_v14  ;;  %v19364_v14 = vld [vmem:[%s27194_s7 + $0x60] sm:$0xff]  }
 0x4e3   :  { %9684 = vmatprep.subr.bf16.mxu0 %v28207_v50 }
 0x4e6   :  { %9685 = vmatpush1.bf16.msra.mxu0 %v19354_v9  ;;  %v19365_v9 = vld [vmem:[%s27194_s7 + $0x210] sm:$0xff]  }
 0x4e7   :  { %9686 = vmatprep.subr.bf16.mxu0 %v28207_v50  ;;  %17512 = vmatprep.subr.bf16.mxu1 %v19365_v9 }
 0x4e8   :  { %v17020_v35 = vpop.f32.mrb[0].mxu0  ;;  %17513 = vmatpush3.bf16.msra.mxu1 %v19365_v9  ;;  %v19373_v9 = vld [vmem:[%s27194_s7 + $0x230] sm:$0xff]  }
 0x4e9   :  { %v17021_v18 = vpop.f32.mrb[1].mxu0 }
 0x4ea   :  { %v17022_v23 = vadd.f32 %v17021_v18, %v17020_v35  ;;  %9687 = vmatpush1.bf16.msra.mxu0 %v19355_v7  ;;  %v19359_v35 = vld [vmem:[%s27194_s7 + $0x48] sm:$0xff]   ;;  %v19360_v18 = vld [vmem:[%s27194_s7 + $0x50] sm:$0xff]  }
 0x4eb   :  { %9688 = vmatprep.subr.bf16.mxu0 %v28207_v50  ;;  %v19366_v7 = vld [vmem:[%s27194_s7 + $0x68] sm:$0xff]  }
 0x4ee   :  { %9689 = vmatpush1.bf16.msra.mxu0 %v19356_v22  ;;  %v19367_v22 = vld [vmem:[%s27194_s7 + $0x218] sm:$0xff]  }
 0x4ef   :  { %9690 = vmatprep.subr.bf16.mxu0 %v28207_v50  ;;  %17514 = vmatprep.subr.bf16.mxu1 %v19367_v22 }
 0x4f0   :  { %17515 = vmatpush3.bf16.msra.mxu1 %v19367_v22 }
 0x4f1   :  { %17516 = vmatprep.subr.bf16.mxu1 %v19369_v13 }
 0x4f2   :  { %9691 = vmatpush1.bf16.msra.mxu0 %v19357_v45 }
 0x4f3   :  { %9692 = vmatprep.subr.bf16.mxu0 %v28207_v50 }
 0x4f4   :  { %17517 = vmatpush3.bf16.msra.mxu1 %v19369_v13 }
 0x4f6   :  { %9693 = vmatpush1.bf16.msra.mxu0 %v19358_v56 }
 0x4f7   :  { %9694 = vmatprep.subr.bf16.mxu0 %v28207_v50 }
 0x4fa   :  { %9695 = vmatpush1.bf16.msra.mxu0 %v19359_v35 }
 0x4fb   :  { %9696 = vmatprep.subr.bf16.mxu0 %v28207_v50 }
 0x4fe   :  { %9697 = vmatpush1.bf16.msra.mxu0 %v19360_v18  ;;  %v19368_v18 = vld [vmem:[%s27194_s7 + $0x70] sm:$0xff]  }
 0x4ff   :  { %9698 = vmatprep.subr.bf16.mxu0 %v28207_v50 }
 0x502   :  { %9699 = vmatpush1.bf16.msra.mxu0 %v19362_v29 }
 0x503   :  { %9700 = vmatprep.subr.bf16.mxu0 %v28207_v50 }
 0x506   :  { %9701 = vmatpush1.bf16.msra.mxu0 %v19364_v14  ;;  %v19371_v14 = vld [vmem:[%s27194_s7 + $0x228] sm:$0xff]  }
 0x507   :  { %9702 = vmatprep.subr.bf16.mxu0 %v28207_v50  ;;  %17518 = vmatprep.subr.bf16.mxu1 %v19371_v14 }
 0x508   :  { %17519 = vmatpush3.bf16.msra.mxu1 %v19371_v14 }
 0x509   :  { %17520 = vmatprep.subr.bf16.mxu1 %v19373_v9 }
 0x50a   :  { %9703 = vmatpush1.bf16.msra.mxu0 %v19366_v7  ;;  %v19374_v7 = vld [vmem:[%s27194_s7 + $0x238] sm:$0xff]  }
 0x50b   :  { %9704 = vmatprep.subr.bf16.mxu0 %v28207_v50 }
 0x50c   :  { %17521 = vmatpush3.bf16.msra.mxu1 %v19373_v9 }
 0x50d   :  { %17522 = vmatprep.subr.bf16.mxu1 %v19374_v7 }
 0x50e   :  { %9705 = vmatpush1.bf16.msra.mxu0 %v19368_v18  ;;  %v19376_v18 = vld [vmem:[%s27194_s7 + $0x90] sm:$0xff]  }
 0x50f   :  { %9706 = vmatprep.subr.bf16.mxu0 %v28207_v50 }
 0x510   :  { %17523 = vmatpush3.bf16.msra.mxu1 %v19374_v7 }
 0x512   :  { %9707 = vmatpush1.bf16.msra.mxu0 %v19370_v63 }
 0x513   :  { %9965 = vmatprep.subr.bf16.mxu0 %v28207_v50 }
 0x515   :  { %9709 = vmatmul.mubr.bf16.vlgmr.msra.gmra.mrb[8].mxu0 %v28207_v50 }
 0x568   :  { %v17055_v45 = vpop.f32.mrb[2].mxu0 }
 0x569   :  { %v17056_v56 = vpop.f32.mrb[3].mxu0 }
 0x56a   :  { %v17057_v35 = vadd.f32 %v17056_v56, %v17055_v45 }
 0x56c   :  { %v5865_v29 = vadd.f32 %v17057_v35, %v17022_v23  ;;  %v19372_v23 = vld [vmem:[%s27194_s7 + $0x80] sm:$0xff]   ;;  %v19375_v35 = vld [vmem:[%s27194_s7 + $0x88] sm:$0xff]  }
 0x56d   :  { %9966 = vmatpush1.bf16.msra.mxu0 %v19372_v23  ;;  %v19377_v23 = vld [vmem:[%s27194_s7 + $0x98] sm:$0xff]  }
 0x56e   :  { %9967 = vmatprep.subr.bf16.mxu0 %v28207_v50  ;;  %v6072_v9 = vmul.f32 %v5865_v29, %v5865_v29 }
 0x571   :  { %9968 = vmatpush1.bf16.msra.mxu0 %v19375_v35 }
 0x572   :  { %9969 = vmatprep.subr.bf16.mxu0 %v28207_v50 }
 0x575   :  { %9970 = vmatpush1.bf16.msra.mxu0 %v19376_v18  ;;  %v19378_v18 = vld [vmem:[%s27194_s7 + $0xa0] sm:$0xff]  }
 0x576   :  { %9971 = vmatprep.subr.bf16.mxu0 %v28207_v50 }
 0x579   :  { %9972 = vmatpush1.bf16.msra.mxu0 %v19377_v23 }
 0x57a   :  { %9973 = vmatprep.subr.bf16.mxu0 %v28207_v50 }
 0x57d   :  { %9974 = vmatpush1.bf16.msra.mxu0 %v19378_v18  ;;  %v28213_v18 = vld [vmem:[#allocation9_spill] sm:$0xff] }
 0x57e   :  { %9975 = vmatprep.subr.bf16.mxu0 %v28207_v50 }
 0x588   :  { %v17090_v22 = vpop.f32.mrb[4].mxu0 }
 0x589   :  { %v17091_v45 = vpop.f32.mrb[5].mxu0 }
 0x58a   :  { %v17092_v56 = vadd.f32 %v17091_v45, %v17090_v22  ;;  %v6076_v45 = vlaneseq }
 0x58c   :  { %v6077_v35 = vshrl.u32 %v6076_v45, 7  ;;  %v6144_v45 = vld [vmem:[%s27195_s5] sm:$0x1] }
 0x58e   :  { %v21922_v11 = vsub.s32 0, %v6077_v35  ;;  %v28217_v35 = vld [vmem:[#allocation18_spill] sm:$0xff] }
 0x590   :  { %28208 = vst [vmem:[#allocation86_spill] sm:$0xff] %v21922_v11 }
 0x5a8   :  { %v17125_v13 = vpop.f32.mrb[6].mxu0 }
 0x5a9   :  { %v17126_v63 = vpop.f32.mrb[7].mxu0 }
 0x5aa   :  { %v17127_v14 = vadd.f32 %v17126_v63, %v17125_v13  ;;  %v21928_v13 = vrot.slane %v5865_v29, %v21922_v11 }
 0x5ac   :  { %v6069_v7 = vadd.f32 %v17127_v14, %v17092_v56  ;;  %28209 = vst [vmem:[#allocation87_spill] sm:$0xff] %v21928_v13  ;;  %v28212_v14 = vld [vmem:[#allocation11_spill] sm:$0xff]  ;;  %v19379_v56 = vld [vmem:[%s27194_s7 + $0xa8] sm:$0xff]   ;;  %v28229_v2 = vsub.f32 %v21283_v36, %v21928_v13 }
 0x5ad   :  { %9976 = vmatpush1.bf16.msra.mxu0 %v19379_v56 }
 0x5ae   :  { %v6073_v22 = vsub.f32 %v6069_v7, %v6072_v9  ;;  %v28215_v9 = vld [vmem:[#allocation45_spill] sm:$0xff]  ;;  %v28220_v7 = vld [vmem:[#allocation116_spill] sm:$0xff]  ;;  %9977 = vmatprep.subr.bf16.mxu0 %v28207_v50 }
 0x5b0   :  { %v6074_v49 = vadd.f32 1e-05, %v6073_v22  ;;  %v28223_v22 = vsub.f32 %v21243_v55, %v21928_v13 }
 0x5b2   :  { %19494 = vrsqrt.f32 %v6074_v49  ;;  %v28216_v49 = vld [vmem:[#allocation13_spill] sm:$0xff] }
 0x5bc   :  { %v19495_v23 = vpop.eup %19494 }
 0x5bd   :  { %v6145_v29 = vmul.f32 %v19495_v23, %v6144_v45  ;;  %v28218_v23 = vld [vmem:[#allocation32_spill] sm:$0xff] }
 0x5bf   :  { %v22034_v26 = vrot.slane %v6145_v29, %v21922_v11  ;;  %v28222_v11 = vsub.f32 %v21239_v46, %v21928_v13  ;;  %v28226_v29 = vsub.f32 %v21259_v57, %v21928_v13 }
 0x5c1   :  { %28219 = vst [vmem:[#allocation117_spill] sm:$0xff] %v22034_v26  ;;  %v22065_v63 = vmul.f32 %v22034_v26, %v28222_v11  ;;  %v22071_v41 = vmul.f32 %v22034_v26, %v28223_v22  ;;  %v22081_v46 = vmul.f32 %v22034_v26, %v28226_v29  ;;  %v28227_v11 = vsub.f32 %v21263_v15, %v21928_v13 }
 0x5c2   :  { %v28228_v22 = vsub.f32 %v21279_v19, %v21928_v13  ;;  %v22099_v57 = vmul.f32 %v22034_v26, %v28229_v2  ;;  %v28230_v29 = vsub.f32 %v28192_v0, %v21928_v13  ;;  %v28233_v2 = vsub.f32 %v28194_v1, %v21928_v13 }
 0x5c3   :  { %v22087_v55 = vmul.f32 %v22034_v26, %v28227_v11  ;;  %v28231_v11 = vsub.f32 %v21303_v31, %v21928_v13 }
 0x5c4   :  { %v22093_v50 = vmul.f32 %v22034_v26, %v28228_v22  ;;  %v22105_v15 = vmul.f32 %v22034_v26, %v28230_v29  ;;  %v28232_v22 = vsub.f32 %v28196_v6, %v21928_v13  ;;  %v22123_v0 = vmul.f32 %v22034_v26, %v28233_v2 }
 0x5c5   :  { %v22111_v19 = vmul.f32 %v22034_v26, %v28231_v11  ;;  %v28234_v29 = vsub.f32 %v28200_v38, %v21928_v13  ;;  %v28235_v11 = vsub.f32 %v28198_v25, %v21928_v13  ;;  %v28237_v2 = vsub.f32 %v28202_v28, %v21928_v13 }
 0x5c6   :  { %v22117_v36 = vmul.f32 %v22034_v26, %v28232_v22  ;;  %v28236_v22 = vsub.f32 %v28203_v3, %v21928_v13 }
 0x5c7   :  { %v22129_v31 = vmul.f32 %v22034_v26, %v28234_v29  ;;  %v22135_v6 = vmul.f32 %v22034_v26, %v28235_v11  ;;  %v22147_v38 = vmul.f32 %v22034_v26, %v28237_v2  ;;  %v28238_v29 = vsub.f32 %v21372_v32, %v21928_v13 }
 0x5c8   :  { %v22141_v1 = vmul.f32 %v22034_v26, %v28236_v22  ;;  %v28239_v11 = vsub.f32 %v21375_v52, %v21928_v13  ;;  %v28240_v22 = vsub.f32 %v21387_v39, %v21928_v13  ;;  %v28242_v2 = vsub.f32 %v21390_v20, %v21928_v13 }
 0x5c9   :  { %v22153_v25 = vmul.f32 %v22034_v26, %v28238_v29  ;;  %v28244_v29 = vld [vmem:[#allocation134_spill] sm:$0xff] }
 0x5ca   :  { %v22159_v3 = vmul.f32 %v22034_v26, %v28239_v11  ;;  %v22165_v28 = vmul.f32 %v22034_v26, %v28240_v22  ;;  %v22171_v32 = vmul.f32 %v22034_v26, %v28242_v2  ;;  %v28245_v45 = vsub.f32 %v28244_v29, %v21928_v13  ;;  %v28247_v11 = vld [vmem:[#allocation135_spill] sm:$0xff]  ;;  %v28249_v22 = vld [vmem:[#allocation34_spill] sm:$0xff]  ;;  %v28251_v2 = vld [vmem:[#allocation40_spill] sm:$0xff] }
 0x5cb   :  { %v28248_v56 = vsub.f32 %v28247_v11, %v21928_v13 }
 0x5cc   :  { %28241 = vst [vmem:[#allocation118_spill] sm:$0xff] %v22165_v28  ;;  %28243 = vst [vmem:[#allocation89_spill] sm:$0xff] %v22171_v32  ;;  %v22177_v52 = vmul.f32 %v22034_v26, %v28245_v45  ;;  %v28250_v28 = vsub.f32 %v28249_v22, %v21928_v13  ;;  %v28252_v32 = vsub.f32 %v28251_v2, %v21928_v13  ;;  %v28254_v45 = vld [vmem:[#allocation7_spill] sm:$0xff] }
 0x5cd   :  { %v22183_v39 = vmul.f32 %v22034_v26, %v28248_v56  ;;  %v28256_v56 = vsub.f32 %v28212_v14, %v21928_v13 }
 0x5ce   :  { %28246 = vst [vmem:[#allocation90_spill] sm:$0xff] %v22177_v52  ;;  %v22189_v20 = vmul.f32 %v22034_v26, %v28250_v28  ;;  %v22195_v29 = vmul.f32 %v22034_v26, %v28252_v32  ;;  %v28255_v52 = vsub.f32 %v28254_v45, %v21928_v13  ;;  %v28257_v28 = vsub.f32 %v28213_v18, %v21928_v13  ;;  %v28258_v32 = vld [vmem:[#allocation15_spill] sm:$0xff] }
 0x5cf   :  { %v22207_v22 = vmul.f32 %v22034_v26, %v28256_v56  ;;  %v28261_v56 = vsub.f32 %v28216_v49, %v21928_v13 }
 0x5d0   :  { %28253 = vst [vmem:[#allocation91_spill] sm:$0xff] %v22195_v29  ;;  %v22201_v11 = vmul.f32 %v22034_v26, %v28255_v52  ;;  %v22213_v2 = vmul.f32 %v22034_v26, %v28257_v28  ;;  %v28259_v29 = vsub.f32 %v28258_v32, %v21928_v13  ;;  %v28260_v52 = vsub.f32 %v28215_v9, %v21928_v13 }
 0x5d1   :  { %v22231_v18 = vmul.f32 %v22034_v26, %v28261_v56  ;;  %v28262_v28 = vsub.f32 %v28201_v40, %v21928_v13  ;;  %v28265_v56 = vsub.f32 %v21508_v16, %v21928_v13 }
 0x5d2   :  { %v22219_v45 = vmul.f32 %v22034_v26, %v28259_v29  ;;  %v22225_v14 = vmul.f32 %v22034_v26, %v28260_v52  ;;  %v28263_v29 = vsub.f32 %v28217_v35, %v21928_v13  ;;  %v28264_v52 = vsub.f32 %v21505_v8, %v21928_v13 }
 0x5d3   :  { %v22237_v32 = vmul.f32 %v22034_v26, %v28262_v28  ;;  %v22255_v40 = vmul.f32 %v22034_v26, %v28265_v56  ;;  %v28266_v28 = vsub.f32 %v28205_v48, %v21928_v13  ;;  %v28269_v56 = vsub.f32 %v21528_v12, %v21928_v13 }
 0x5d4   :  { %v22243_v9 = vmul.f32 %v22034_v26, %v28263_v29  ;;  %v22249_v49 = vmul.f32 %v22034_v26, %v28264_v52  ;;  %v28267_v29 = vsub.f32 %v21518_v24, %v21928_v13  ;;  %v28268_v52 = vsub.f32 %v21525_v62, %v21928_v13 }
 0x5d5   :  { %v22261_v35 = vmul.f32 %v22034_v26, %v28266_v28  ;;  %v22279_v48 = vmul.f32 %v22034_v26, %v28269_v56  ;;  %v28270_v28 = vsub.f32 %v28206_v21, %v21928_v13  ;;  %v28273_v56 = vsub.f32 %v21548_v17, %v21928_v13 }
 0x5d6   :  { %v22267_v8 = vmul.f32 %v22034_v26, %v28267_v29  ;;  %v22273_v16 = vmul.f32 %v22034_v26, %v28268_v52  ;;  %v28271_v29 = vsub.f32 %v21538_v61, %v21928_v13  ;;  %v28272_v52 = vsub.f32 %v21545_v42, %v21928_v13 }
 0x5d7   :  { %v22285_v24 = vmul.f32 %v22034_v26, %v28270_v28  ;;  %v22303_v21 = vmul.f32 %v22034_v26, %v28273_v56  ;;  %v28274_v28 = vsub.f32 %v21555_v54, %v21928_v13  ;;  %v28277_v56 = vsub.f32 %v21568_v47, %v21928_v13  ;;  %v22347_v47 = vld [vmem:[%s27196_s6] ss:$0 sm:$0xff] }
 0x5d8   :  { %v22291_v62 = vmul.f32 %v22034_v26, %v28271_v29  ;;  %v22297_v12 = vmul.f32 %v22034_v26, %v28272_v52  ;;  %v28275_v29 = vsub.f32 %v21558_v51, %v21928_v13  ;;  %v28276_v52 = vsub.f32 %v21565_v27, %v21928_v13  ;;  %28283 = vst [vmem:[#allocation94_spill] sm:$0xff] %v22347_v47 }
 0x5d9   :  { %v22309_v61 = vmul.f32 %v22034_v26, %v28274_v28  ;;  %v22327_v54 = vmul.f32 %v22034_v26, %v28277_v56  ;;  %v28279_v28 = vsub.f32 %v21575_v58, %v21928_v13  ;;  %v28284_v58 = vsub.f32 %v28204_v34, %v21928_v13 }
 0x5da   :  { %v22315_v42 = vmul.f32 %v22034_v26, %v28275_v29  ;;  %v22321_v17 = vmul.f32 %v22034_v26, %v28276_v52  ;;  %v28281_v29 = vsub.f32 %v28218_v23, %v21928_v13  ;;  %v19380_v52 = vld [vmem:[%s27194_s7 + $0xb0] sm:$0xff]   ;;  %v28285_v23 = vsub.f32 %v21592_v30, %v21928_v13 }
 0x5db   :  { %28278 = vst [vmem:[#allocation92_spill] sm:$0xff] %v22327_v54  ;;  %v22333_v51 = vmul.f32 %v22034_v26, %v28279_v28  ;;  %v6200_v56 = vmul.f32 %v22034_v26, %v28284_v58  ;;  %v28288_v34 = vsub.f32 %v21617_v59, %v21928_v13  ;;  %v28289_v30 = vsub.f32 %v21620_v4, %v21928_v13 }
 0x5dc   :  { %v22339_v27 = vmul.f32 %v22034_v26, %v28281_v29  ;;  %v6201_v28 = vmul.f32 %v22034_v26, %v28285_v23  ;;  %v28286_v29 = vsub.f32 %v21603_v37, %v21928_v13  ;;  %v28290_v37 = vsub.f32 %v21631_v60, %v21928_v13  ;;  %9978 = vmatpush1.bf16.msra.mxu0 %v19380_v52 }
 0x5dd   :  { %28280 = vst [vmem:[#allocation119_spill] sm:$0xff] %v22333_v51  ;;  %v28287_v51 = vsub.f32 %v21606_v5, %v21928_v13  ;;  %v22369_v58 = vmul.f32 %v22034_v26, %v28288_v34  ;;  %v22375_v23 = vmul.f32 %v22034_v26, %v28289_v30  ;;  %v28291_v5 = vsub.f32 %v28220_v7, %v21928_v13 }
 0x5de   :  { %28282 = vst [vmem:[#allocation93_spill] sm:$0xff] %v22339_v27  ;;  %v6202_v27 = vmul.f32 %v22034_v26, %v28286_v29  ;;  %v22381_v29 = vmul.f32 %v22034_v26, %v28290_v37  ;;  %v28293_v34 = vsub.f32 %v21648_v33, %v21928_v13  ;;  %v28294_v30 = vsub.f32 %v21659_v43, %v21928_v13 }
 0x5df   :  { %v6203_v54 = vmul.f32 %v22034_v26, %v28287_v51  ;;  %v22387_v59 = vmul.f32 %v22034_v26, %v28291_v5  ;;  %v28292_v51 = vsub.f32 %v21645_v10, %v21928_v13  ;;  %v28295_v7 = vsub.f32 %v21662_v44, %v21928_v13  ;;  %v28297_v5 = vld [vmem:[#allocation29_spill] sm:$0xff] }
 0x5e0   :  { %v6209_v60 = vmul.f32 %v22034_v26, %v28293_v34  ;;  %v22401_v37 = vmul.f32 %v22034_v26, %v28294_v30  ;;  %v28296_v10 = vmov 0   ;;  %v28299_v43 = vsub.f32 %v28221_v53, %v21928_v13 }
 0x5e1   :  { %v6208_v4 = vmul.f32 %v22034_v26, %v28292_v51  ;;  %v22407_v52 = vmul.f32 %v22034_v26, %v28295_v7  ;;  %9979 = vmatprep.subr.bf16.mxu0 %v28296_v10  ;;  %v28298_v51 = vsub.f32 %v28297_v5, %v21928_v13  ;;  %v22424_v44 = vadd.f32 %v22347_v47, %v22065_v63  ;;  %v28303_v13 = vld [vmem:[#allocation91_spill] sm:$0xff] }
 0x5e2   :  { %v22420_v34 = vmul.f32 %v22034_v26, %v28299_v43  ;;  %v22428_v30 = vadd.f32 %v22347_v47, %v22071_v41  ;;  %v22432_v7 = vadd.f32 %v22347_v47, %v22081_v46  ;;  %v22436_v5 = vadd.f32 %v22347_v47, %v22087_v55  ;;  %v28301_v43 = vld [vmem:[#allocation89_spill] sm:$0xff] }
 0x5e3   :  { %v22414_v33 = vmul.f32 %v22034_v26, %v28298_v51  ;;  %v22440_v53 = vadd.f32 %v22347_v47, %v22093_v50  ;;  %v22444_v63 = vadd.f32 %v22347_v47, %v22099_v57  ;;  %v22448_v41 = vadd.f32 %v22347_v47, %v22105_v15  ;;  %v28300_v51 = vld [vmem:[#allocation118_spill] sm:$0xff] }
 0x5e4   :  { %v22452_v46 = vadd.f32 %v22347_v47, %v22111_v19  ;;  %v22456_v55 = vadd.f32 %v22347_v47, %v22117_v36  ;;  %v22460_v50 = vadd.f32 %v22347_v47, %v22123_v0  ;;  %v22464_v57 = vadd.f32 %v22347_v47, %v22129_v31  ;;  %v28302_v26 = vld [vmem:[#allocation90_spill] sm:$0xff] }
 0x5e5   :  { %v22468_v15 = vadd.f32 %v22347_v47, %v22135_v6  ;;  %v22472_v19 = vadd.f32 %v22347_v47, %v22141_v1  ;;  %v22476_v36 = vadd.f32 %v22347_v47, %v22147_v38  ;;  %v22480_v0 = vadd.f32 %v22347_v47, %v22153_v25 }
 0x5e6   :  { %v22484_v31 = vadd.f32 %v22347_v47, %v22159_v3  ;;  %v22488_v6 = vadd.f32 %v22347_v47, %v28300_v51  ;;  %v22492_v1 = vadd.f32 %v22347_v47, %v28301_v43  ;;  %v22496_v38 = vadd.f32 %v22347_v47, %v28302_v26 }
 0x5e7   :  { %v22500_v25 = vadd.f32 %v22347_v47, %v22183_v39  ;;  %v22504_v3 = vadd.f32 %v22347_v47, %v22189_v20  ;;  %v22508_v51 = vadd.f32 %v22347_v47, %v28303_v13  ;;  %v22512_v43 = vadd.f32 %v22347_v47, %v22201_v11 }
 0x5e8   :  { %v22516_v26 = vadd.f32 %v22347_v47, %v22207_v22  ;;  %v22520_v39 = vadd.f32 %v22347_v47, %v22213_v2  ;;  %v22524_v20 = vadd.f32 %v22347_v47, %v22219_v45  ;;  %v22528_v13 = vadd.f32 %v22347_v47, %v22225_v14 }
 0x5e9   :  { %v22532_v11 = vadd.f32 %v22347_v47, %v22231_v18  ;;  %v22536_v22 = vadd.f32 %v22347_v47, %v22237_v32  ;;  %v22540_v2 = vadd.f32 %v22347_v47, %v22243_v9  ;;  %v22544_v45 = vadd.f32 %v22347_v47, %v22249_v49 }
 0x5ea   :  { %v22548_v14 = vadd.f32 %v22347_v47, %v22255_v40  ;;  %v22552_v18 = vadd.f32 %v22347_v47, %v22261_v35  ;;  %v22556_v32 = vadd.f32 %v22347_v47, %v22267_v8  ;;  %v22560_v9 = vadd.f32 %v22347_v47, %v22273_v16 }
 0x5eb   :  { %v22564_v49 = vadd.f32 %v22347_v47, %v22279_v48  ;;  %v22568_v40 = vadd.f32 %v22347_v47, %v22285_v24  ;;  %v22572_v35 = vadd.f32 %v22347_v47, %v22291_v62  ;;  %v22576_v8 = vadd.f32 %v22347_v47, %v22297_v12 }
 0x5ec   :  { %v22580_v16 = vadd.f32 %v22347_v47, %v22303_v21  ;;  %v22584_v48 = vadd.f32 %v22347_v47, %v22309_v61  ;;  %v22588_v24 = vadd.f32 %v22347_v47, %v22315_v42  ;;  %v22592_v62 = vadd.f32 %v22347_v47, %v22321_v17 }
 0x5ed   :  { %28304 = vst [vmem:[#allocation122_spill] sm:$0xff] %v22572_v35  ;;  %28305 = vst [vmem:[#allocation95_spill] sm:$0xff] %v22576_v8  ;;  %v28308_v35 = vld [vmem:[#allocation92_spill] sm:$0xff]  ;;  %v28309_v8 = vld [vmem:[#allocation119_spill] sm:$0xff]  ;;  %v22610_v42 = vadd.f32 %v22347_v47, %v6201_v28  ;;  %v22613_v17 = vadd.f32 %v22347_v47, %v6202_v27  ;;  %v22631_v28 = vadd.f32 %v22347_v47, %v22381_v29 }
 0x5ee   :  { %28306 = vst [vmem:[#allocation96_spill] sm:$0xff] %v22580_v16  ;;  %28307 = vst [vmem:[#allocation121_spill] sm:$0xff] %v22584_v48  ;;  %v22596_v12 = vadd.f32 %v22347_v47, %v28308_v35  ;;  %v22600_v21 = vadd.f32 %v22347_v47, %v28309_v8  ;;  %v28310_v16 = vld [vmem:[#allocation93_spill] sm:$0xff]  ;;  %v22607_v48 = vadd.f32 %v22347_v47, %v6200_v56  ;;  %v19381_v8 = vld [vmem:[%s27194_s7 + $0xb8] sm:$0xff]  }
 0x5ef   :  { %v22604_v61 = vadd.f32 %v22347_v47, %v28310_v16  ;;  %v22616_v35 = vadd.f32 %v22347_v47, %v6203_v54  ;;  %v22623_v16 = vadd.f32 %v22347_v47, %v22369_v58  ;;  %v22627_v56 = vadd.f32 %v22347_v47, %v22375_v23  ;;  %9980 = vmatpush1.bf16.msra.mxu0 %v19381_v8 }
 0x5f0   :  { %v22635_v54 = vadd.f32 %v22347_v47, %v22387_v59  ;;  %v22638_v27 = vadd.f32 %v22347_v47, %v6208_v4  ;;  %v6289_v58 = vmax.f32 %v22432_v7, 0.0  ;;  %v22647_v23 = vadd.f32 %v22347_v47, %v22401_v37  ;;  %9981 = vmatprep.subr.bf16.mxu0 %v28296_v10 }
 0x5f1   :  { %28311 = vst [vmem:[#allocation97_spill] sm:$0xff] %v22616_v35  ;;  %28312 = vst [vmem:[#allocation98_spill] sm:$0xff] %v22623_v16  ;;  %v22641_v35 = vadd.f32 %v22347_v47, %v6209_v60  ;;  %v6290_v16 = vmax.f32 %v22436_v5, 0.0  ;;  %v22651_v29 = vadd.f32 %v22347_v47, %v22407_v52  ;;  %v22655_v59 = vadd.f32 %v22347_v47, %v22414_v33 }
 0x5f2   :  { %28314 = vst [vmem:[#allocation99_spill] sm:$0xff] %v22647_v23  ;;  %v22659_v4 = vadd.f32 %v22347_v47, %v22420_v34  ;;  %v6287_v60 = vmax.f32 %v22424_v44, 0.0  ;;  %v6288_v7 = vmax.f32 %v22428_v30, 0.0  ;;  %v6291_v37 = vmax.f32 %v22440_v53, 0.0  ;;  %v28320_v30 = vld [vmem:[#allocation87_spill] sm:$0xff]  ;;  %v28322_v53 = vld [vmem:[#allocation117_spill] sm:$0xff] }
 0x5f3   :  { %28313 = vst [vmem:[#allocation126_spill] sm:$0xff] %v22641_v35  ;;  %28315 = vst [vmem:[#allocation100_spill] sm:$0xff] %v22651_v29  ;;  %v6292_v5 = vmax.f32 %v22444_v63, 0.0  ;;  %v6293_v52 = vmax.f32 %v22448_v41, 0.0  ;;  %v6294_v8 = vmax.f32 %v22452_v46, 0.0  ;;  %v6295_v33 = vmax.f32 %v22456_v55, 0.0 }
 0x5f4   :  { %28316 = vst [vmem:[#allocation125_spill] sm:$0xff] %v22655_v59  ;;  %28317 = vst [vmem:[#allocation101_spill] sm:$0xff] %v22659_v4  ;;  %v6296_v59 = vmax.f32 %v22460_v50, 0.0  ;;  %v22673_v29 = vpack.c.bf16 %v6290_v16, %v6289_v58  ;;  %v28319_v58 = vld [vmem:[#allocation113_spill] sm:$0xff]  ;;  %v28323_v63 = vld [vmem:[#allocation114_spill] sm:$0xff]  ;;  %v22694_v35 = vpack.c.bf16 %v6288_v7, %v6287_v60 }
 0x5f5   :  { %v28321_v34 = vsub.f32 %v28319_v58, %v28320_v30  ;;  %v28324_v41 = vsub.f32 %v28323_v63, %v28320_v30  ;;  %v22697_v50 = vpack.c.bf16 %v6292_v5, %v6291_v37  ;;  %v28333_v7 = vld [vmem:[#allocation76_spill] sm:$0xff] }
 0x5f6   :  { %28318 = vst [vmem:[#allocation102_spill] sm:$0xff] %v22673_v29  ;;  %28325 = vst [vmem:[#allocation130_spill] sm:$0xff] %v22694_v35  ;;  %v27445_v4 = vshll.u32 %v22673_v29, 16  ;;  %v27450_v55 = vshrl.u32 %v22673_v29, 16 }
 0x5f7   :  { %v6150_v23 = vmul.f32 %v28322_v53, %v28321_v34  ;;  %v6151_v46 = vmul.f32 %v28322_v53, %v28324_v41  ;;  %28326 = vst [vmem:[#allocation103_spill] sm:$0xff] %v22697_v50  ;;  %v22702_v34 = vpack.c.bf16 %v6294_v8, %v6293_v52  ;;  %v27451_v41 = vshll.u32 %v22694_v35, 16 }
 0x5f8   :  { %v6882_v60 = vrot.slane %v27445_v4, 1  ;;  %v27449_v16 = vshll.u32 %v22697_v50, 16  ;;  %v6451_v52 = vshrl.u32 %v22694_v35, 16  ;;  %v27452_v4 = vshrl.u32 %v22697_v50, 16 }
 0x5f9   :  { %v6221_v44 = vadd.f32 %v22347_v47, %v6150_v23  ;;  %v6222_v58 = vadd.f32 %v22347_v47, %v6151_v46  ;;  %28327 = vst [vmem:[#allocation104_spill] sm:$0xff] %v22702_v34  ;;  %v6875_v8 = vrot.slane %v27451_v41, 1  ;;  %v22725_v53 = vpack.c.bf16 %v6296_v59, %v6295_v33 }
 0x5fa   :  { %v6883_v46 = vor.u32 %v6882_v60, %v27450_v55  ;;  %v19382_v60 = vld [vmem:[%s27194_s7 + $0xc0] sm:$0xff]   ;;  %v6453_v33 = vrot.slane %v6451_v52, 7 }
 0x5fb   :  { %v6285_v37 = vmax.f32 %v6221_v44, 0.0  ;;  %v6286_v5 = vmax.f32 %v6222_v58, 0.0  ;;  %v6889_v44 = vrot.slane %v27449_v16, 1  ;;  %v6876_v47 = vor.u32 %v6875_v8, %v6451_v52  ;;  %28329 = vst [vmem:[#allocation105_spill] sm:$0xff] %v22725_v53  ;;  %v28330_v16 = vld [vmem:[#allocation77_spill] sm:$0xff]  ;;  %9982 = vmatpush1.bf16.msra.mxu0 %v19382_v60 }
 0x5fc   :  { %v22736_v41 = vsel %vm20262_vm4, %v6883_v46, %v28330_v16  ;;  %9983 = vmatprep.subr.bf16.mxu0 %v28296_v10  ;;  %v28339_v58 = vmax.f32 %v22468_v15, 0.0  ;;  %v28345_v15 = vld [vmem:[#allocation95_spill] sm:$0xff]  ;;  %v28356_v52 = vmax.f32 %v22488_v6, 0.0  ;;  %v28363_v6 = vld [vmem:[#allocation80_spill] sm:$0xff] }
 0x5fd   :  { %v22717_v63 = vpack.c.bf16 %v6286_v5, %v6285_v37  ;;  %28332 = vst [vmem:[#allocation106_spill] sm:$0xff] %v22736_v41  ;;  %v6890_v8 = vor.u32 %v6889_v44, %v27452_v4  ;;  %v22746_v37 = vsel %vm20262_vm4, %v6876_v47, %v28333_v7  ;;  %v28335_v44 = vshll.u32 %v22702_v34, 16  ;;  %v28336_v47 = vld [vmem:[#allocation78_spill] sm:$0xff] }
 0x5fe   :  { %28334 = vst [vmem:[#allocation107_spill] sm:$0xff] %v22746_v37  ;;  %17524 = vmatprep.mubr.bf16.mxu1 %v22746_v37 }
 0x5ff   :  { %28328 = vst [vmem:[#allocation129_spill] sm:$0xff] %v22717_v63  ;;  %v27453_v5 = vshrl.u32 %v22717_v63, 16  ;;  %9716 = vmatprep.mubr.bf16.mxu0 %v22717_v63  ;;  %v27458_v46 = vshll.u32 %v22717_v63, 16  ;;  %v6896_v59 = vrot.slane %v28335_v44, 1  ;;  %17525 = vmatmul.mubr.bf16.vlgmr.msra.gmra.mrb[128].mxu1 %v22736_v41  ;;  %v22761_v7 = vsel %vm20262_vm4, %v6890_v8, %v28336_v47  ;;  %v28352_v63 = vld [vmem:[#allocation121_spill] sm:$0xff] }
 0x600   :  { %28337 = vst [vmem:[#allocation108_spill] sm:$0xff] %v22761_v7  ;;  %17528 = vmatprep.mubr.bf16.mxu1 %v22761_v7  ;;  %v28341_v8 = vmax.f32 %v22472_v19, 0.0  ;;  %v28342_v47 = vmax.f32 %v22476_v36, 0.0  ;;  %v28346_v44 = vshll.u32 %v22725_v53, 16  ;;  %v28350_v19 = vshrl.u32 %v22702_v34, 16 }
 0x601   :  { %v6446_v16 = vrot.slane %v27453_v5, 7  ;;  %v28338_v5 = vmax.f32 %v22464_v57, 0.0  ;;  %v28344_v57 = vld [vmem:[#allocation122_spill] sm:$0xff] }
 0x602   :  { %v22779_v60 = vpack.c.bf16 %v28342_v47, %v28341_v8  ;;  %v6903_v37 = vrot.slane %v28346_v44, 1  ;;  %v6897_v36 = vor.u32 %v6896_v59, %v28350_v19  ;;  %v28351_v47 = vld [vmem:[#allocation96_spill] sm:$0xff]  ;;  %v28353_v59 = vmax.f32 %v22480_v0, 0.0 }
 0x603   :  { %v22768_v23 = vpack.c.bf16 %v28339_v58, %v28338_v5  ;;  %v6449_v4 = vor.u32 %v27458_v46, %v6446_v16  ;;  %v27464_v5 = vshrl.u32 %v22725_v53, 16  ;;  %v28347_v16 = vld [vmem:[#allocation5_spill] sm:$0xff]  ;;  %v28354_v19 = vmax.f32 %v22484_v31, 0.0  ;;  %v28708_v46 = vld [vmem:[#allocation103_spill] sm:$0xff] }
 0x604   :  { %28343 = vst [vmem:[#allocation109_spill] sm:$0xff] %v22779_v60  ;;  %v28359_v0 = vshll.u32 %v22694_v35, 16 }
 0x605   :  { %28340 = vst [vmem:[#allocation133_spill] sm:$0xff] %v22768_v23  ;;  %v22789_v7 = vsel %vm19986_vm2, %v6449_v4, %v28347_v16  ;;  %v27465_v8 = vshll.u32 %v22768_v23, 16  ;;  %v6904_v44 = vor.u32 %v6903_v37, %v27464_v5  ;;  %v22807_v41 = vpack.c.bf16 %v28354_v19, %v28353_v59  ;;  %v28360_v59 = vld [vmem:[#allocation79_spill] sm:$0xff]  ;;  %v28362_v4 = vld [vmem:[#allocation97_spill] sm:$0xff] }
 0x606   :  { %28349 = vst [vmem:[#allocation110_spill] sm:$0xff] %v22789_v7  ;;  %9717 = vmatmul.mubr.bf16.gmra.mrb[12].mxu0 %v22789_v7  ;;  %v28357_v16 = vmax.f32 %v22492_v1, 0.0  ;;  %v6456_v31 = vor.u32 %v28359_v0, %v6453_v33  ;;  %v22825_v19 = vsel %vm20262_vm4, %v6897_v36, %v28360_v59  ;;  %v28365_v33 = vshll.u32 %v22779_v60, 16 }
 0x607   :  { %28355 = vst [vmem:[#allocation111_spill] sm:$0xff] %v22807_v41  ;;  %9724 = vmatprep.mubr.bf16.mxu0 %v22694_v35  ;;  %28361 = vst [vmem:[#allocation120_spill] sm:$0xff] %v22825_v19  ;;  %v6910_v37 = vrot.slane %v27465_v8, 1  ;;  %17529 = vmatmul.mubr.bf16.gmra.mrb[132].mxu1 %v22825_v19  ;;  %v22835_v1 = vsel %vm20262_vm4, %v6904_v44, %v28363_v6  ;;  %v28367_v5 = vmax.f32 %v22520_v39, 0.0  ;;  %v28368_v44 = vmax.f32 %v22524_v20, 0.0  ;;  %v28373_v8 = vld [vmem:[#allocation6_spill] sm:$0xff] }
 0x608   :  { %v22818_v30 = vpack.c.bf16 %v28357_v16, %v28356_v52  ;;  %28364 = vst [vmem:[#allocation124_spill] sm:$0xff] %v22835_v1  ;;  %v6917_v52 = vrot.slane %v28365_v33, 1  ;;  %v28366_v16 = vld [vmem:[#allocation98_spill] sm:$0xff]  ;;  %17532 = vmatprep.mubr.bf16.mxu1 %v22835_v1  ;;  %v28369_v33 = vshrl.u32 %v22673_v29, 16  ;;  %v27470_v36 = vshrl.u32 %v22779_v60, 16  ;;  %v28390_v19 = vld [vmem:[#allocation81_spill] sm:$0xff] }
 0x609   :  { %v22849_v6 = vpack.c.bf16 %v28368_v44, %v28367_v5  ;;  %v28370_v0 = vmax.f32 %v22496_v38, 0.0  ;;  %v28371_v1 = vmax.f32 %v22500_v25, 0.0  ;;  %v22863_v58 = vsel %vm19986_vm2, %v6456_v31, %v28373_v8  ;;  %v28378_v31 = vld [vmem:[#allocation126_spill] sm:$0xff] }
 0x60a   :  { %28358 = vst [vmem:[#allocation112_spill] sm:$0xff] %v22818_v30  ;;  %v6460_v35 = vrot.slane %v28369_v33, 7  ;;  %28374 = vst [vmem:[#allocation128_spill] sm:$0xff] %v22863_v58  ;;  %v28375_v39 = vshrl.u32 %v22768_v23, 16  ;;  %v28376_v38 = vmax.f32 %v22528_v13, 0.0  ;;  %v28377_v25 = vmax.f32 %v22532_v11, 0.0 }
 0x60b   :  { %v22858_v59 = vpack.c.bf16 %v28371_v1, %v28370_v0  ;;  %v6918_v8 = vor.u32 %v6917_v52, %v27470_v36  ;;  %v28380_v33 = vmax.f32 %v22504_v3, 0.0  ;;  %v28381_v13 = vmax.f32 %v22508_v51, 0.0 }
 0x60c   :  { %v6911_v20 = vor.u32 %v6910_v37, %v28375_v39  ;;  %v22874_v1 = vpack.c.bf16 %v28377_v25, %v28376_v38  ;;  %v19383_v37 = vld [vmem:[%s27194_s7 + $0xc8] sm:$0xff]   ;;  %v28379_v39 = vld [vmem:[#allocation99_spill] sm:$0xff]  ;;  %v28383_v38 = vshll.u32 %v22807_v41, 16  ;;  %v28384_v52 = vmax.f32 %v22512_v43, 0.0 }
 0x60d   :  { %28372 = vst [vmem:[#allocation123_spill] sm:$0xff] %v22858_v59  ;;  %v22888_v11 = vpack.c.bf16 %v28381_v13, %v28380_v33  ;;  %v28385_v36 = vmax.f32 %v22516_v26, 0.0  ;;  %v28387_v0 = vmax.f32 %v22552_v18, 0.0  ;;  %v28388_v44 = vmax.f32 %v22556_v32, 0.0  ;;  %9984 = vmatpush1.bf16.msra.mxu0 %v19383_v37 }
 0x60e   :  { %9725 = vmatmul.mubr.bf16.gmra.mrb[16].mxu0 %v22863_v58  ;;  %v6924_v25 = vrot.slane %v28383_v38, 1  ;;  %v28389_v51 = vshll.u32 %v22673_v29, 16  ;;  %v27473_v13 = vshrl.u32 %v22849_v6, 16  ;;  %v22911_v43 = vsel %vm20262_vm4, %v6911_v20, %v28390_v19  ;;  %9985 = vmatprep.subr.bf16.mxu0 %v28296_v10  ;;  %v28475_v58 = vld [vmem:[#allocation26_spill] sm:$0xff] }
 0x60f   :  { %28382 = vst [vmem:[#allocation127_spill] sm:$0xff] %v22888_v11  ;;  %9732 = vmatprep.mubr.bf16.mxu0 %v22673_v29  ;;  %v22897_v5 = vpack.c.bf16 %v28385_v36, %v28384_v52  ;;  %v22903_v3 = vpack.c.bf16 %v28388_v44, %v28387_v0  ;;  %28391 = vst [vmem:[#allocation132_spill] sm:$0xff] %v22911_v43  ;;  %v27474_v26 = vshrl.u32 %v22807_v41, 16  ;;  %v28392_v36 = vshll.u32 %v22818_v30, 16 }
 0x610   :  { %v6463_v33 = vor.u32 %v28389_v51, %v6460_v35  ;;  %17533 = vmatmul.mubr.bf16.gmra.mrb[136].mxu1 %v22911_v43  ;;  %v28393_v35 = vld [vmem:[#allocation82_spill] sm:$0xff]  ;;  %v6537_v19 = vrot.slane %v27473_v13, 7  ;;  %v27475_v20 = vshll.u32 %v22849_v6, 16  ;;  %v27476_v37 = vshrl.u32 %v22874_v1, 16 }
 0x611   :  { %28386 = vst [vmem:[#allocation20_spill] sm:$0xff] %v22897_v5  ;;  %v6931_v18 = vrot.slane %v28392_v36, 1  ;;  %v22922_v44 = vsel %vm20262_vm4, %v6918_v8, %v28393_v35  ;;  %v28395_v0 = vmax.f32 %v22560_v9, 0.0  ;;  %v28396_v38 = vmax.f32 %v22564_v49, 0.0 }
 0x612   :  { %28394 = vst [vmem:[#allocation131_spill] sm:$0xff] %v22922_v44  ;;  %v28397_v51 = vshrl.u32 %v22697_v50, 16  ;;  %17536 = vmatprep.mubr.bf16.mxu1 %v22922_v44  ;;  %v6925_v8 = vor.u32 %v6924_v25, %v27474_v26  ;;  %v27479_v35 = vshrl.u32 %v22818_v30, 16  ;;  %v22943_v32 = vor.u32 %v27475_v20, %v6537_v19 }
 0x613   :  { %v22932_v52 = vpack.c.bf16 %v28396_v38, %v28395_v0  ;;  %v6544_v9 = vrot.slane %v27476_v37, 7  ;;  %v28398_v0 = vld [vmem:[#allocation8_spill] sm:$0xff]  ;;  %v28401_v13 = vmax.f32 %v22544_v45, 0.0  ;;  %v28402_v19 = vmax.f32 %v22548_v14, 0.0 }
 0x614   :  { %v6467_v36 = vrot.slane %v28397_v51, 7  ;;  %v22951_v38 = vsel %vm19986_vm2, %v6463_v33, %v28398_v0  ;;  %v6932_v25 = vor.u32 %v6931_v18, %v27479_v35  ;;  %v28400_v51 = vshll.u32 %v22858_v59, 16 }
 0x615   :  { %28399 = vst [vmem:[#allocation31_spill] sm:$0xff] %v22951_v38  ;;  %v22961_v20 = vpack.c.bf16 %v28402_v19, %v28401_v13  ;;  %v28403_v37 = vmax.f32 %v22568_v40, 0.0  ;;  %v28404_v49 = vmax.f32 %v28344_v57, 0.0  ;;  %v28405_v33 = vmax.f32 %v28345_v15, 0.0 }
 0x616   :  { %v6938_v26 = vrot.slane %v28400_v51, 1  ;;  %v28406_v0 = vmax.f32 %v28351_v47, 0.0  ;;  %v28407_v51 = vshrl.u32 %v22702_v34, 16  ;;  %9733 = vmatmul.mubr.bf16.gmra.mrb[20].mxu0 %v22951_v38  ;;  %v28408_v45 = vshll.u32 %v22874_v1, 16 }
 0x617   :  { %v22967_v29 = vpack.c.bf16 %v28404_v49, %v28403_v37  ;;  %v28409_v40 = vshll.u32 %v22697_v50, 16  ;;  %9740 = vmatprep.mubr.bf16.mxu0 %v22697_v50  ;;  %v27482_v15 = vshrl.u32 %v22858_v59, 16  ;;  %v27483_v13 = vshrl.u32 %v22961_v20, 16  ;;  %v28410_v37 = vld [vmem:[#allocation83_spill] sm:$0xff] }
 0x618   :  { %v22973_v18 = vpack.c.bf16 %v28406_v0, %v28405_v33  ;;  %v6474_v35 = vrot.slane %v28407_v51, 7  ;;  %v22980_v14 = vor.u32 %v28408_v45, %v6544_v9  ;;  %v22991_v49 = vsel %vm20262_vm4, %v6925_v8, %v28410_v37  ;;  %v28413_v0 = vld [vmem:[#allocation12_spill] sm:$0xff] }
 0x619   :  { %v6470_v57 = vor.u32 %v28409_v40, %v6467_v36  ;;  %28411 = vst [vmem:[#allocation23_spill] sm:$0xff] %v22991_v49  ;;  %v28412_v19 = vshll.u32 %v22888_v11, 16  ;;  %v27484_v33 = vshrl.u32 %v22903_v3, 16  ;;  %v27485_v36 = vshrl.u32 %v22932_v52, 16  ;;  %17537 = vmatmul.mubr.bf16.gmra.mrb[140].mxu1 %v22991_v49 }
 0x61a   :  { %v23000_v51 = vsel %vm20262_vm4, %v6932_v25, %v28413_v0  ;;  %v6939_v45 = vor.u32 %v6938_v26, %v27482_v15  ;;  %v6558_v40 = vrot.slane %v27483_v13, 7  ;;  %v28415_v0 = vld [vmem:[#allocation100_spill] sm:$0xff]  ;;  %v28416_v26 = vmax.f32 %v28352_v63, 0.0 }
 0x61b   :  { %v6945_v9 = vrot.slane %v28412_v19, 1  ;;  %28414 = vst [vmem:[#allocation27_spill] sm:$0xff] %v23000_v51  ;;  %v6565_v37 = vrot.slane %v27484_v33, 7  ;;  %v6572_v47 = vrot.slane %v27485_v36, 7  ;;  %v6346_v50 = vmax.f32 %v28415_v0, 0.0  ;;  %17540 = vmatprep.mubr.bf16.mxu1 %v23000_v51 }
 0x61c   :  { %v28417_v15 = vmax.f32 %v22588_v24, 0.0  ;;  %v28418_v33 = vshll.u32 %v22961_v20, 16  ;;  %v28419_v36 = vmax.f32 %v22592_v62, 0.0  ;;  %v28420_v25 = vmax.f32 %v22596_v12, 0.0 }
 0x61d   :  { %v28421_v63 = vshrl.u32 %v22888_v11, 16  ;;  %v28422_v24 = vshll.u32 %v22903_v3, 16  ;;  %v28426_v12 = vmax.f32 %v22607_v48, 0.0 }
 0x61e   :  { %v23019_v13 = vpack.c.bf16 %v28417_v15, %v28416_v26  ;;  %v23025_v19 = vor.u32 %v28418_v33, %v6558_v40  ;;  %v23031_v49 = vpack.c.bf16 %v28420_v25, %v28419_v36  ;;  %v28423_v26 = vshll.u32 %v22932_v52, 16 }
 0x61f   :  { %v6946_v0 = vor.u32 %v6945_v9, %v28421_v63  ;;  %v23037_v15 = vor.u32 %v28422_v24, %v6565_v37  ;;  %v28424_v33 = vmax.f32 %v22600_v21, 0.0  ;;  %v28425_v40 = vmax.f32 %v22604_v61, 0.0  ;;  %v28428_v9 = vld [vmem:[#allocation10_spill] sm:$0xff] }
 0x620   :  { %v23041_v8 = vor.u32 %v28423_v26, %v6572_v47  ;;  %v28427_v36 = vmax.f32 %v22610_v42, 0.0  ;;  %v23058_v37 = vsel %vm19986_vm2, %v6470_v57, %v28428_v9  ;;  %v27488_v47 = vshrl.u32 %v22967_v29, 16  ;;  %v28433_v42 = vld [vmem:[#allocation17_spill] sm:$0xff] }
 0x621   :  { %v23047_v62 = vpack.c.bf16 %v28425_v40, %v28424_v33  ;;  %28429 = vst [vmem:[#allocation11_spill] sm:$0xff] %v23058_v37  ;;  %v28430_v63 = vmax.f32 %v22613_v17, 0.0  ;;  %v28431_v21 = vmax.f32 %v28362_v4, 0.0  ;;  %v28432_v24 = vshll.u32 %v22702_v34, 16  ;;  %9741 = vmatmul.mubr.bf16.gmra.mrb[24].mxu0 %v23058_v37  ;;  %v19384_v17 = vld [vmem:[%s27194_s7 + $0xd0] sm:$0xff]  }
 0x622   :  { %v23053_v25 = vpack.c.bf16 %v28427_v36, %v28426_v12  ;;  %v23073_v26 = vsel %vm20262_vm4, %v6939_v45, %v28433_v42  ;;  %v27489_v57 = vshrl.u32 %v22973_v18, 16  ;;  %9748 = vmatprep.mubr.bf16.mxu0 %v22702_v34  ;;  %v28435_v4 = vshll.u32 %v22897_v5, 16  ;;  %v28436_v45 = vld [vmem:[#allocation16_spill] sm:$0xff]  ;;  %9986 = vmatpush1.bf16.msra.mxu0 %v19384_v17 }
 0x623   :  { %v23065_v61 = vpack.c.bf16 %v28431_v21, %v28430_v63  ;;  %v6477_v48 = vor.u32 %v28432_v24, %v6474_v35  ;;  %28434 = vst [vmem:[#allocation9_spill] sm:$0xff] %v23073_v26  ;;  %v6579_v35 = vrot.slane %v27488_v47, 7  ;;  %v27491_v40 = vshll.u32 %v22967_v29, 16  ;;  %9987 = vmatprep.subr.bf16.mxu0 %v28296_v10  ;;  %17541 = vmatmul.mubr.bf16.gmra.mrb[144].mxu1 %v23073_v26 }
 0x624   :  { %v6952_v33 = vrot.slane %v28435_v4, 1  ;;  %v27490_v12 = vshrl.u32 %v23019_v13, 16  ;;  %v23089_v36 = vsel %vm20262_vm4, %v6946_v0, %v28436_v45  ;;  %v6586_v9 = vrot.slane %v27489_v57, 7 }
 0x625   :  { %28437 = vst [vmem:[#allocation45_spill] sm:$0xff] %v23089_v36  ;;  %v27495_v63 = vshll.u32 %v22973_v18, 16  ;;  %v27494_v21 = vshrl.u32 %v23031_v49, 16  ;;  %v28438_v24 = vshll.u32 %v22849_v6, 16  ;;  %v23099_v4 = vor.u32 %v27491_v40, %v6579_v35  ;;  %17544 = vmatprep.mubr.bf16.mxu1 %v23089_v36  ;;  %v28465_v36 = vld [vmem:[#allocation101_spill] sm:$0xff] }
 0x626   :  { %v6593_v47 = vrot.slane %v27490_v12, 7  ;;  %v28439_v45 = vmax.f32 %v22536_v22, 0.0  ;;  %v28440_v17 = vmax.f32 %v22540_v2, 0.0  ;;  %v27497_v12 = vshll.u32 %v23031_v49, 16 }
 0x627   :  { %v6959_v42 = vrot.slane %v28438_v24, 1  ;;  %v23114_v24 = vor.u32 %v27495_v63, %v6586_v9  ;;  %v6600_v35 = vrot.slane %v27494_v21, 7  ;;  %v28442_v40 = vmax.f32 %v28366_v16, 0.0 }
 0x628   :  { %v23110_v57 = vpack.c.bf16 %v28440_v17, %v28439_v45  ;;  %v28443_v0 = vmax.f32 %v22627_v56, 0.0  ;;  %v28444_v22 = vshrl.u32 %v22725_v53, 16  ;;  %v28445_v9 = vshll.u32 %v23019_v13, 16 }
 0x629   :  { %v28446_v21 = vmax.f32 %v22631_v28, 0.0  ;;  %v28447_v63 = vmax.f32 %v22635_v54, 0.0  ;;  %v28448_v56 = vmax.f32 %v22638_v27, 0.0  ;;  %v27496_v45 = vshrl.u32 %v23047_v62, 16 }
 0x62a   :  { %28441 = vst [vmem:[#allocation13_spill] sm:$0xff] %v23110_v57  ;;  %v23123_v34 = vpack.c.bf16 %v28443_v0, %v28442_v40  ;;  %v6481_v2 = vrot.slane %v28444_v22, 7  ;;  %v23131_v17 = vor.u32 %v28445_v9, %v6593_v47  ;;  %v28449_v40 = vmax.f32 %v28378_v31, 0.0  ;;  %v28451_v47 = vld [vmem:[#allocation14_spill] sm:$0xff] }
 0x62b   :  { %v23137_v16 = vpack.c.bf16 %v28447_v63, %v28446_v21  ;;  %v23147_v22 = vor.u32 %v27497_v12, %v6600_v35  ;;  %v23153_v28 = vsel %vm19986_vm2, %v6477_v48, %v28451_v47  ;;  %v28453_v54 = vshrl.u32 %v22897_v5, 16 }
 0x62c   :  { %v23143_v0 = vpack.c.bf16 %v28449_v40, %v28448_v56  ;;  %28452 = vst [vmem:[#allocation32_spill] sm:$0xff] %v23153_v28  ;;  %v28454_v27 = vshrl.u32 %v22849_v6, 16  ;;  %v27498_v31 = vshrl.u32 %v23053_v25, 16  ;;  %9749 = vmatmul.mubr.bf16.gmra.mrb[28].mxu0 %v23153_v28  ;;  %v27508_v35 = vshll.u32 %v23110_v57, 16  ;;  %v28472_v28 = vld [vmem:[#allocation115_spill] sm:$0xff] }
 0x62d   :  { %v6953_v63 = vor.u32 %v6952_v33, %v28453_v54  ;;  %v6607_v9 = vrot.slane %v27496_v45, 7  ;;  %v27499_v56 = vshll.u32 %v23047_v62, 16  ;;  %v27500_v48 = vshrl.u32 %v23065_v61, 16  ;;  %9756 = vmatprep.mubr.bf16.mxu0 %v22725_v53 }
 0x62e   :  { %28450 = vst [vmem:[#allocation18_spill] sm:$0xff] %v23143_v0  ;;  %v6960_v21 = vor.u32 %v6959_v42, %v28454_v27  ;;  %v28455_v40 = vmax.f32 %v28379_v39, 0.0  ;;  %v28457_v33 = vshll.u32 %v22725_v53, 16  ;;  %v6614_v54 = vrot.slane %v27498_v31, 7  ;;  %v28464_v53 = vld [vmem:[#allocation125_spill] sm:$0xff] }
 0x62f   :  { %v27507_v27 = vshll.u32 %v23053_v25, 16  ;;  %v23178_v45 = vor.u32 %v27499_v56, %v6607_v9  ;;  %v6621_v12 = vrot.slane %v27500_v48, 7  ;;  %v28462_v9 = vshll.u32 %v22874_v1, 16 }
 0x630   :  { %v23168_v47 = vpack.c.bf16 %v6346_v50, %v28455_v40  ;;  %v6484_v42 = vor.u32 %v28457_v33, %v6481_v2  ;;  %v27511_v50 = vshll.u32 %v23065_v61, 16  ;;  %v28458_v40 = vld [vmem:[#allocation22_spill] sm:$0xff]  ;;  %v28460_v33 = vld [vmem:[#allocation21_spill] sm:$0xff]  ;;  %v7783_v39 = vrot.slane %v27508_v35, 1 }
 0x631   :  { %v23187_v2 = vsel %vm20262_vm4, %v6953_v63, %v28458_v40  ;;  %v23192_v31 = vsel %vm20262_vm4, %v6960_v21, %v28460_v33  ;;  %v6966_v56 = vrot.slane %v28462_v9, 1  ;;  %v23198_v48 = vor.u32 %v27507_v27, %v6614_v54 }
 0x632   :  { %28456 = vst [vmem:[#allocation116_spill] sm:$0xff] %v23168_v47  ;;  %28459 = vst [vmem:[#allocation85_spill] sm:$0xff] %v23187_v2  ;;  %17545 = vmatmul.mubr.bf16.gmra.mrb[148].mxu1 %v23187_v2  ;;  %v23205_v63 = vor.u32 %v27511_v50, %v6621_v12  ;;  %v28463_v40 = vshrl.u32 %v23123_v34, 16  ;;  %v27518_v33 = vshll.u32 %v23123_v34, 16  ;;  %v6347_v9 = vmax.f32 %v28464_v53, 0.0  ;;  %v28467_v50 = vld [vmem:[#allocation19_spill] sm:$0xff] }
 0x633   :  { %28461 = vst [vmem:[#allocation134_spill] sm:$0xff] %v23192_v31  ;;  %v6348_v26 = vmax.f32 %v28465_v36, 0.0  ;;  %17548 = vmatprep.mubr.bf16.mxu1 %v23192_v31  ;;  %v27522_v54 = vshrl.u32 %v23137_v16, 16  ;;  %v28466_v27 = vshrl.u32 %v22768_v23, 16  ;;  %v7331_v2 = vshrl.u32 %v23110_v57, 16 }
 0x634   :  { %v6628_v21 = vrot.slane %v28463_v40, 7  ;;  %v27521_v40 = vshrl.u32 %v23143_v0, 16  ;;  %v23225_v53 = vsel %vm19986_vm2, %v6484_v42, %v28467_v50  ;;  %v28469_v36 = vshrl.u32 %v22874_v1, 16  ;;  %v19385_v42 = vld [vmem:[%s27194_s7 + $0xd8] sm:$0xff]  }
 0x635   :  { %v6488_v35 = vrot.slane %v28466_v27, 7  ;;  %28468 = vst [vmem:[#allocation135_spill] sm:$0xff] %v23225_v53  ;;  %v6635_v51 = vrot.slane %v27522_v54, 7  ;;  %v27531_v27 = vshll.u32 %v23137_v16, 16  ;;  %9757 = vmatmul.mubr.bf16.gmra.mrb[32].mxu0 %v23225_v53  ;;  %v7784_v44 = vor.u32 %v7783_v39, %v7331_v2  ;;  %v28470_v50 = vld [vmem:[#allocation87_spill] sm:$0xff] }
 0x636   :  { %v23219_v12 = vor.u32 %v27518_v33, %v6628_v21  ;;  %v6967_v31 = vor.u32 %v6966_v56, %v28469_v36  ;;  %v6642_v21 = vrot.slane %v27521_v40, 7  ;;  %v27534_v33 = vshll.u32 %v23143_v0, 16  ;;  %9764 = vmatprep.mubr.bf16.mxu0 %v22768_v23  ;;  %v28471_v36 = vld [vmem:[#allocation25_spill] sm:$0xff]  ;;  %9988 = vmatpush1.bf16.msra.mxu0 %v19385_v42 }
 0x637   :  { %v27535_v43 = vshrl.u32 %v23168_v47, 16  ;;  %v23243_v56 = vor.u32 %v27531_v27, %v6635_v51  ;;  %v6112_v39 = vsub.f32 %v28471_v36, %v28470_v50  ;;  %v27540_v53 = vshll.u32 %v23168_v47, 16  ;;  %9989 = vmatprep.subr.bf16.mxu0 %v28296_v10 }
 0x638   :  { %v23249_v40 = vor.u32 %v27534_v33, %v6642_v21  ;;  %v6113_v37 = vsub.f32 %v28472_v28, %v28470_v50  ;;  %v23256_v38 = vpack.c.bf16 %v6348_v26, %v6347_v9  ;;  %v28474_v51 = vshll.u32 %v22768_v23, 16  ;;  %v28477_v21 = vld [vmem:[#allocation117_spill] sm:$0xff] }
 0x639   :  { %v6649_v54 = vrot.slane %v27535_v43, 7  ;;  %v23263_v36 = vsel %vm20262_vm4, %v6967_v31, %v28475_v58  ;;  %v6182_v33 = vmul.f32 %v28477_v21, %v6112_v39  ;;  %v28478_v43 = vld [vmem:[#allocation84_spill] sm:$0xff]  ;;  %v28480_v26 = vshll.u32 %v22961_v20, 16  ;;  %v28481_v31 = vld [vmem:[#allocation94_spill] sm:$0xff] }
 0x63a   :  { %28473 = vst [vmem:[#allocation34_spill] sm:$0xff] %v23256_v38  ;;  %v6491_v27 = vor.u32 %v28474_v51, %v6488_v35  ;;  %28476 = vst [vmem:[#allocation40_spill] sm:$0xff] %v23263_v36  ;;  %17549 = vmatmul.mubr.bf16.gmra.mrb[152].mxu1 %v23263_v36  ;;  %v23271_v28 = vsel %vm20262_vm4, %v7784_v44, %v28478_v43  ;;  %v6183_v58 = vmul.f32 %v28477_v21, %v6113_v37  ;;  %v28483_v43 = vld [vmem:[#allocation129_spill] sm:$0xff]  ;;  %v28485_v36 = vld [vmem:[#allocation24_spill] sm:$0xff] }
 0x63b   :  { %28479 = vst [vmem:[#allocation7_spill] sm:$0xff] %v23271_v28  ;;  %v6980_v9 = vrot.slane %v28480_v26, 1  ;;  %v23277_v35 = vor.u32 %v27540_v53, %v6649_v54  ;;  %17552 = vmatprep.mubr.bf16.mxu1 %v23271_v28  ;;  %v6253_v42 = vadd.f32 %v28481_v31, %v6182_v33  ;;  %v28482_v50 = vshrl.u32 %v22779_v60, 16 }
 0x63c   :  { %v6254_v51 = vadd.f32 %v28481_v31, %v6183_v58  ;;  %v28484_v44 = vshll.u32 %v28483_v43, 16  ;;  %v23290_v26 = vsel %vm19986_vm2, %v6491_v27, %v28485_v36  ;;  %v28487_v33 = vshrl.u32 %v22961_v20, 16 }
 0x63d   :  { %v6495_v39 = vrot.slane %v28482_v50, 7  ;;  %28486 = vst [vmem:[#allocation15_spill] sm:$0xff] %v23290_v26  ;;  %v6317_v37 = vmax.f32 %v6253_v42, 0.0  ;;  %9765 = vmatmul.mubr.bf16.gmra.mrb[36].mxu0 %v23290_v26  ;;  %v28488_v58 = vshll.u32 %v22779_v60, 16  ;;  %v28489_v50 = vshll.u32 %v22903_v3, 16 }
 0x63e   :  { %v6868_v23 = vrot.slane %v28484_v44, 1  ;;  %v6981_v21 = vor.u32 %v6980_v9, %v28487_v33  ;;  %v6318_v53 = vmax.f32 %v6254_v51, 0.0  ;;  %9772 = vmatprep.mubr.bf16.mxu0 %v22779_v60  ;;  %v27545_v27 = vshll.u32 %v23256_v38, 16  ;;  %v28492_v33 = vld [vmem:[#allocation38_spill] sm:$0xff] }
 0x63f   :  { %v6498_v31 = vor.u32 %v28488_v58, %v6495_v39  ;;  %v6987_v44 = vrot.slane %v28489_v50, 1  ;;  %v28490_v36 = vshrl.u32 %v28483_v43, 16  ;;  %v7333_v54 = vrot.slane %v7331_v2, 7 }
 0x640   :  { %v23301_v28 = vpack.c.bf16 %v6318_v53, %v6317_v37  ;;  %v28491_v9 = vshrl.u32 %v23256_v38, 16  ;;  %v23314_v39 = vsel %vm20262_vm4, %v6981_v21, %v28492_v33  ;;  %v28494_v53 = vshll.u32 %v22932_v52, 16 }
 0x641   :  { %v23306_v42 = vor.u32 %v6868_v23, %v28490_v36  ;;  %28493 = vst [vmem:[#allocation29_spill] sm:$0xff] %v23314_v39  ;;  %v28495_v23 = vshll.u32 %v23110_v57, 16  ;;  %v28512_v57 = vshrl.u32 %v22967_v29, 16 }
 0x642   :  { %v7445_v51 = vrot.slane %v28491_v9, 7  ;;  %17553 = vmatmul.mubr.bf16.gmra.mrb[156].mxu1 %v28296_v10  ;;  %v6994_v37 = vrot.slane %v28494_v53, 1  ;;  %v27546_v58 = vshll.u32 %v23301_v28, 16  ;;  %v27547_v36 = vshrl.u32 %v23301_v28, 16  ;;  %v28498_v53 = vld [vmem:[#allocation28_spill] sm:$0xff] }
 0x643   :  { %17556 = vmatprep.mubr.bf16.mxu1 %v23314_v39  ;;  %v23322_v2 = vor.u32 %v28495_v23, %v7333_v54  ;;  %v28497_v9 = vshrl.u32 %v22807_v41, 16  ;;  %v23336_v60 = vsel %vm19986_vm2, %v6498_v31, %v28498_v53  ;;  %v28500_v54 = vshrl.u32 %v22903_v3, 16 }
 0x644   :  { %v23326_v50 = vor.u32 %v27545_v27, %v7445_v51  ;;  %v6973_v21 = vrot.slane %v27546_v58, 1  ;;  %28499 = vst [vmem:[#allocation89_spill] sm:$0xff] %v23336_v60  ;;  %v28501_v51 = vshrl.u32 %v22932_v52, 16  ;;  %v19386_v58 = vld [vmem:[%s27194_s7 + $0xe0] sm:$0xff]   ;;  %v28502_v31 = vshll.u32 %v22807_v41, 16 }
 0x645   :  { %v6502_v33 = vrot.slane %v28497_v9, 7  ;;  %v6988_v23 = vor.u32 %v6987_v44, %v28500_v54  ;;  %9773 = vmatmul.mubr.bf16.gmra.mrb[40].mxu0 %v23336_v60  ;;  %v28503_v44 = vld [vmem:[#allocation43_spill] sm:$0xff] }
 0x646   :  { %28496 = vst [vmem:[#allocation118_spill] sm:$0xff] %v23326_v50  ;;  %v6995_v27 = vor.u32 %v6994_v37, %v28501_v51  ;;  %v23348_v9 = vor.u32 %v6973_v21, %v27547_v36  ;;  %9780 = vmatprep.mubr.bf16.mxu0 %v22807_v41  ;;  %9990 = vmatpush1.bf16.msra.mxu0 %v19386_v58  ;;  %v28505_v37 = vshll.u32 %v22967_v29, 16  ;;  %v28506_v21 = vld [vmem:[#allocation46_spill] sm:$0xff]  ;;  %v28508_v58 = vshll.u32 %v22973_v18, 16 }
 0x647   :  { %v6505_v53 = vor.u32 %v28502_v31, %v6502_v33  ;;  %v23356_v54 = vsel %vm20262_vm4, %v6988_v23, %v28503_v44  ;;  %9991 = vmatprep.subr.bf16.mxu0 %v28296_v10  ;;  %v28509_v23 = vshrl.u32 %v22818_v30, 16  ;;  %v28510_v44 = vld [vmem:[#allocation33_spill] sm:$0xff]  ;;  %v28515_v50 = vld [vmem:[#allocation50_spill] sm:$0xff] }
 0x648   :  { %28504 = vst [vmem:[#allocation90_spill] sm:$0xff] %v23356_v54  ;;  %v7001_v51 = vrot.slane %v28505_v37, 1  ;;  %v23365_v36 = vsel %vm20262_vm4, %v6995_v27, %v28506_v21  ;;  %v7008_v33 = vrot.slane %v28508_v58, 1  ;;  %v28513_v27 = vshrl.u32 %v22973_v18, 16 }
 0x649   :  { %28507 = vst [vmem:[#allocation91_spill] sm:$0xff] %v23365_v36  ;;  %v6509_v31 = vrot.slane %v28509_v23, 7  ;;  %v23375_v37 = vsel %vm19986_vm2, %v6505_v53, %v28510_v44  ;;  %v28514_v58 = vshll.u32 %v22818_v30, 16  ;;  %v28517_v53 = vshll.u32 %v23019_v13, 16 }
 0x64a   :  { %17557 = vmatmul.mubr.bf16.gmra.mrb[160].mxu1 %v23356_v54  ;;  %28511 = vst [vmem:[#allocation92_spill] sm:$0xff] %v23375_v37  ;;  %v7002_v41 = vor.u32 %v7001_v51, %v28512_v57  ;;  %v7009_v21 = vor.u32 %v7008_v33, %v28513_v27  ;;  %v28518_v57 = vld [vmem:[#allocation52_spill] sm:$0xff]  ;;  %v28520_v33 = vshll.u32 %v23031_v49, 16 }
 0x64b   :  { %17560 = vmatprep.mubr.bf16.mxu1 %v23365_v36  ;;  %v6512_v43 = vor.u32 %v28514_v58, %v6509_v31  ;;  %v7015_v44 = vrot.slane %v28517_v53, 1  ;;  %v28521_v31 = vshrl.u32 %v22858_v59, 16  ;;  %v28524_v53 = vshrl.u32 %v23019_v13, 16 }
 0x64c   :  { %v23388_v23 = vsel %vm20262_vm4, %v7002_v41, %v28515_v50  ;;  %v23396_v51 = vsel %vm20262_vm4, %v7009_v21, %v28518_v57  ;;  %v7022_v27 = vrot.slane %v28520_v33, 1  ;;  %v28522_v41 = vld [vmem:[#allocation35_spill] sm:$0xff]  ;;  %v28525_v21 = vshrl.u32 %v23031_v49, 16  ;;  %v19387_v33 = vld [vmem:[%s27194_s7 + $0xe8] sm:$0xff]  }
 0x64d   :  { %9781 = vmatmul.mubr.bf16.gmra.mrb[44].mxu0 %v23375_v37  ;;  %28516 = vst [vmem:[#allocation119_spill] sm:$0xff] %v23388_v23  ;;  %28519 = vst [vmem:[#allocation93_spill] sm:$0xff] %v23396_v51  ;;  %v6516_v58 = vrot.slane %v28521_v31, 7  ;;  %v23406_v50 = vsel %vm19986_vm2, %v6512_v43, %v28522_v41  ;;  %v28526_v31 = vshll.u32 %v22858_v59, 16  ;;  %v28527_v43 = vld [vmem:[#allocation56_spill] sm:$0xff] }
 0x64e   :  { %9788 = vmatprep.mubr.bf16.mxu0 %v22818_v30  ;;  %28523 = vst [vmem:[#allocation113_spill] sm:$0xff] %v23406_v50  ;;  %v7016_v30 = vor.u32 %v7015_v44, %v28524_v53  ;;  %v7023_v57 = vor.u32 %v7022_v27, %v28525_v21  ;;  %9992 = vmatpush1.bf16.msra.mxu0 %v19387_v33  ;;  %v28529_v44 = vshll.u32 %v23047_v62, 16  ;;  %v28530_v27 = vld [vmem:[#allocation58_spill] sm:$0xff]  ;;  %v28532_v33 = vshll.u32 %v23053_v25, 16 }
 0x64f   :  { %9993 = vmatprep.subr.bf16.mxu0 %v28296_v10 }
 0x650   :  { %v23422_v41 = vsel %vm20262_vm4, %v7016_v30, %v28527_v43  ;;  %v7029_v53 = vrot.slane %v28529_v44, 1  ;;  %v23431_v21 = vsel %vm20262_vm4, %v7023_v57, %v28530_v27  ;;  %v28533_v30 = vshrl.u32 %v22888_v11, 16  ;;  %v28534_v43 = vld [vmem:[#allocation41_spill] sm:$0xff] }
 0x651   :  { %28528 = vst [vmem:[#allocation114_spill] sm:$0xff] %v23422_v41  ;;  %28531 = vst [vmem:[#allocation77_spill] sm:$0xff] %v23431_v21  ;;  %v28537_v57 = vshrl.u32 %v23053_v25, 16 }
 0x652   :  { %17561 = vmatmul.mubr.bf16.gmra.mrb[164].mxu1 %v23388_v23  ;;  %v28539_v23 = vld [vmem:[#allocation62_spill] sm:$0xff] }
 0x653   :  { %17564 = vmatprep.mubr.bf16.mxu1 %v23396_v51  ;;  %v6519_v51 = vor.u32 %v28526_v31, %v6516_v58  ;;  %v7036_v58 = vrot.slane %v28532_v33, 1  ;;  %v6523_v31 = vrot.slane %v28533_v30, 7  ;;  %v28538_v33 = vshll.u32 %v22888_v11, 16 }
 0x655   :  { %9789 = vmatmul.mubr.bf16.gmra.mrb[48].mxu0 %v23406_v50  ;;  %v23441_v44 = vsel %vm19986_vm2, %v6519_v51, %v28534_v43  ;;  %v7037_v27 = vor.u32 %v7036_v58, %v28537_v57  ;;  %v28541_v51 = vshll.u32 %v23065_v61, 16  ;;  %v28544_v58 = vshll.u32 %v23123_v34, 16 }
 0x656   :  { %9796 = vmatprep.mubr.bf16.mxu0 %v22858_v59  ;;  %28535 = vst [vmem:[#allocation76_spill] sm:$0xff] %v23441_v44  ;;  %v28536_v59 = vshrl.u32 %v23047_v62, 16 }
 0x657   :  { %v7043_v43 = vrot.slane %v28541_v51, 1  ;;  %v7050_v57 = vrot.slane %v28544_v58, 1  ;;  %v28548_v51 = vshrl.u32 %v23065_v61, 16  ;;  %v19388_v58 = vld [vmem:[%s27194_s7 + $0xf0] sm:$0xff]  }
 0x658   :  { %9994 = vmatpush1.bf16.msra.mxu0 %v19388_v58  ;;  %v28556_v58 = vshll.u32 %v23143_v0, 16 }
 0x659   :  { %9995 = vmatprep.subr.bf16.mxu0 %v28296_v10 }
 0x65a   :  { %17565 = vmatmul.mubr.bf16.gmra.mrb[168].mxu1 %v23422_v41  ;;  %v7030_v41 = vor.u32 %v7029_v53, %v28536_v59  ;;  %v28542_v59 = vld [vmem:[#allocation64_spill] sm:$0xff] }
 0x65b   :  { %17568 = vmatprep.mubr.bf16.mxu1 %v23431_v21  ;;  %v6526_v21 = vor.u32 %v28538_v33, %v6523_v31  ;;  %v23462_v53 = vsel %vm20262_vm4, %v7037_v27, %v28542_v59  ;;  %v28545_v31 = vshrl.u32 %v22897_v5, 16  ;;  %v28549_v27 = vshrl.u32 %v23123_v34, 16 }
 0x65c   :  { %v23454_v30 = vsel %vm20262_vm4, %v7030_v41, %v28539_v23  ;;  %28543 = vst [vmem:[#allocation122_spill] sm:$0xff] %v23462_v53  ;;  %v28546_v23 = vld [vmem:[#allocation44_spill] sm:$0xff] }
 0x65d   :  { %9797 = vmatmul.mubr.bf16.gmra.mrb[52].mxu0 %v23441_v44  ;;  %28540 = vst [vmem:[#allocation78_spill] sm:$0xff] %v23454_v30  ;;  %v6530_v33 = vrot.slane %v28545_v31, 7  ;;  %v23472_v41 = vsel %vm19986_vm2, %v6526_v21, %v28546_v23  ;;  %v7051_v59 = vor.u32 %v7050_v57, %v28549_v27  ;;  %v28550_v31 = vshll.u32 %v22897_v5, 16  ;;  %v28551_v21 = vld [vmem:[#allocation67_spill] sm:$0xff]  ;;  %v28554_v57 = vld [vmem:[#allocation68_spill] sm:$0xff] }
 0x65e   :  { %9804 = vmatprep.mubr.bf16.mxu0 %v22888_v11  ;;  %28547 = vst [vmem:[#allocation95_spill] sm:$0xff] %v23472_v41  ;;  %v7044_v11 = vor.u32 %v7043_v43, %v28548_v51  ;;  %v28553_v43 = vshll.u32 %v23137_v16, 16 }
 0x65f   :  { %v23497_v27 = vsel %vm20262_vm4, %v7051_v59, %v28554_v57  ;;  %v28561_v59 = vld [vmem:[#allocation71_spill] sm:$0xff] }
 0x660   :  { %v23488_v23 = vsel %vm20262_vm4, %v7044_v11, %v28551_v21  ;;  %v7057_v51 = vrot.slane %v28553_v43, 1  ;;  %28555 = vst [vmem:[#allocation96_spill] sm:$0xff] %v23497_v27  ;;  %v28559_v21 = vshrl.u32 %v23137_v16, 16 }
 0x661   :  { %28552 = vst [vmem:[#allocation5_spill] sm:$0xff] %v23488_v23 }
 0x662   :  { %17569 = vmatmul.mubr.bf16.gmra.mrb[172].mxu1 %v23454_v30  ;;  %v7058_v43 = vor.u32 %v7057_v51, %v28559_v21 }
 0x663   :  { %17572 = vmatprep.mubr.bf16.mxu1 %v23462_v53  ;;  %v6533_v53 = vor.u32 %v28550_v31, %v6530_v33  ;;  %v7064_v33 = vrot.slane %v28556_v58, 1  ;;  %v28557_v31 = vld [vmem:[#allocation48_spill] sm:$0xff]  ;;  %v28563_v58 = vshll.u32 %v23168_v47, 16 }
 0x664   :  { %v23516_v57 = vsel %vm20262_vm4, %v7058_v43, %v28561_v59  ;;  %v28569_v43 = vshrl.u32 %v23168_v47, 16 }
 0x665   :  { %9805 = vmatmul.mubr.bf16.gmra.mrb[56].mxu0 %v23472_v41  ;;  %v23505_v11 = vsel %vm19986_vm2, %v6533_v53, %v28557_v31  ;;  %28562 = vst [vmem:[#allocation79_spill] sm:$0xff] %v23516_v57  ;;  %v28564_v53 = vld [vmem:[#allocation72_spill] sm:$0xff]  ;;  %v28566_v31 = vshll.u32 %v23256_v38, 16 }
 0x666   :  { %9812 = vmatprep.mubr.bf16.mxu0 %v22897_v5  ;;  %28558 = vst [vmem:[#allocation121_spill] sm:$0xff] %v23505_v11  ;;  %v28560_v5 = vshrl.u32 %v23143_v0, 16 }
 0x668   :  { %v28700_v55 = vld [vmem:[#allocation5_spill] sm:$0xff] }
 0x66a   :  { %17573 = vmatmul.mubr.bf16.gmra.mrb[176].mxu1 %v23488_v23  ;;  %v7065_v23 = vor.u32 %v7064_v33, %v28560_v5  ;;  %v7895_v5 = vrot.slane %v28566_v31, 1  ;;  %v28567_v33 = vld [vmem:[#allocation51_spill] sm:$0xff]  ;;  %v28571_v31 = vld [vmem:[#allocation74_spill] sm:$0xff] }
 0x66b   :  { %17576 = vmatprep.mubr.bf16.mxu1 %v23497_v27  ;;  %v7071_v27 = vrot.slane %v28563_v58, 1  ;;  %v23533_v21 = vsel %vm19986_vm2, %v22943_v32, %v28567_v33  ;;  %v28570_v58 = vshrl.u32 %v23256_v38, 16  ;;  %v28575_v33 = vld [vmem:[#allocation54_spill] sm:$0xff] }
 0x66c   :  { %v23524_v51 = vsel %vm20262_vm4, %v7065_v23, %v28564_v53  ;;  %28568 = vst [vmem:[#allocation80_spill] sm:$0xff] %v23533_v21  ;;  %v19389_v53 = vld [vmem:[%s27194_s7 + $0xf8] sm:$0xff]  }
 0x66d   :  { %9813 = vmatmul.mubr.bf16.gmra.mrb[60].mxu0 %v23505_v11  ;;  %28565 = vst [vmem:[#allocation97_spill] sm:$0xff] %v23524_v51  ;;  %v7072_v59 = vor.u32 %v7071_v27, %v28569_v43  ;;  %v7896_v23 = vor.u32 %v7895_v5, %v28570_v58  ;;  %v28573_v27 = vld [vmem:[#allocation57_spill] sm:$0xff]  ;;  %v23561_v43 = vsel %vm19986_vm2, %v22980_v14, %v28575_v33  ;;  %v28578_v58 = vshrl.u32 %v23301_v28, 16  ;;  %v28580_v14 = vld [vmem:[#allocation60_spill] sm:$0xff]  ;;  %v28582_v33 = vld [vmem:[#allocation63_spill] sm:$0xff] }
 0x66e   :  { %9820 = vmatprep.mubr.bf16.mxu0 %v22849_v6  ;;  %9996 = vmatpush1.bf16.msra.mxu0 %v19389_v53  ;;  %28576 = vst [vmem:[#allocation126_spill] sm:$0xff] %v23561_v43  ;;  %v28579_v53 = vshll.u32 %v23301_v28, 16 }
 0x66f   :  { %v23547_v32 = vsel %vm20262_vm4, %v7072_v59, %v28571_v31  ;;  %10254 = vmatprep.subr.bf16.mxu0 %v28296_v10  ;;  %v23554_v5 = vsel %vm20262_vm4, %v7896_v23, %v28573_v27  ;;  %v28577_v59 = vmov 0.001953125   ;;  %v6551_v23 = vrot.slane %v28578_v58, 7 }
 0x670   :  { %28572 = vst [vmem:[#allocation98_spill] sm:$0xff] %v23547_v32  ;;  %28574 = vst [vmem:[#allocation6_spill] sm:$0xff] %v23554_v5  ;;  %v23584_v58 = vsel %vm19986_vm2, %v23025_v19, %v28582_v33  ;;  %v28590_v33 = vld [vmem:[#allocation47_spill] sm:$0xff] }
 0x671   :  { %v6554_v31 = vor.u32 %v28579_v53, %v6551_v23  ;;  %28583 = vst [vmem:[#allocation81_spill] sm:$0xff] %v23584_v58  ;;  %v28584_v23 = vld [vmem:[#allocation36_spill] sm:$0xff] }
 0x672   :  { %17577 = vmatmul.mubr.bf16.gmra.mrb[180].mxu1 %v23516_v57  ;;  %v23592_v53 = vsel %vm19986_vm2, %v23037_v15, %v28584_v23  ;;  %v28592_v23 = vld [vmem:[#allocation49_spill] sm:$0xff] }
 0x673   :  { %17580 = vmatprep.mubr.bf16.mxu1 %v23524_v51  ;;  %v23576_v27 = vsel %vm19986_vm2, %v6554_v31, %v28580_v14  ;;  %28585 = vst [vmem:[#allocation82_spill] sm:$0xff] %v23592_v53  ;;  %v28586_v31 = vld [vmem:[#allocation39_spill] sm:$0xff]  ;;  %v28588_v14 = vld [vmem:[#allocation42_spill] sm:$0xff] }
 0x674   :  { %28581 = vst [vmem:[#allocation99_spill] sm:$0xff] %v23576_v27  ;;  %v23600_v19 = vsel %vm19986_vm2, %v23041_v8, %v28586_v31  ;;  %v23608_v15 = vsel %vm19986_vm2, %v23099_v4, %v28588_v14  ;;  %v23616_v8 = vsel %vm19986_vm2, %v23114_v24, %v28590_v33  ;;  %v23624_v4 = vsel %vm19986_vm2, %v23131_v17, %v28592_v23  ;;  %v28594_v31 = vld [vmem:[#allocation53_spill] sm:$0xff]  ;;  %v28596_v14 = vld [vmem:[#allocation55_spill] sm:$0xff] }
 0x675   :  { %9821 = vmatmul.mubr.bf16.gmra.mrb[136].mxu0 %v23533_v21  ;;  %28587 = vst [vmem:[#allocation8_spill] sm:$0xff] %v23600_v19  ;;  %28589 = vst [vmem:[#allocation83_spill] sm:$0xff] %v23608_v15  ;;  %v23632_v24 = vsel %vm19986_vm2, %v23147_v22, %v28594_v31  ;;  %v23640_v17 = vsel %vm19986_vm2, %v23178_v45, %v28596_v14  ;;  %v28598_v33 = vld [vmem:[#allocation59_spill] sm:$0xff]  ;;  %v28600_v23 = vld [vmem:[#allocation61_spill] sm:$0xff] }
 0x676   :  { %9828 = vmatprep.mubr.bf16.mxu0 %v22874_v1  ;;  %28591 = vst [vmem:[#allocation12_spill] sm:$0xff] %v23616_v8  ;;  %28593 = vst [vmem:[#allocation100_spill] sm:$0xff] %v23624_v4  ;;  %v23648_v22 = vsel %vm19986_vm2, %v23198_v48, %v28598_v33  ;;  %v23656_v45 = vsel %vm19986_vm2, %v23205_v63, %v28600_v23 }
 0x677   :  { %28595 = vst [vmem:[#allocation10_spill] sm:$0xff] %v23632_v24  ;;  %28597 = vst [vmem:[#allocation17_spill] sm:$0xff] %v23640_v17 }
 0x678   :  { %28599 = vst [vmem:[#allocation16_spill] sm:$0xff] %v23648_v22  ;;  %28601 = vst [vmem:[#allocation14_spill] sm:$0xff] %v23656_v45 }
 0x67a   :  { %17581 = vmatmul.mubr.bf16.gmra.mrb[184].mxu1 %v23547_v32 }
 0x67b   :  { %17584 = vmatprep.mubr.bf16.mxu1 %v23554_v5 }
 0x67d   :  { %9829 = vmatmul.mubr.bf16.gmra.mrb[140].mxu0 %v23561_v43 }
 0x67e   :  { %9836 = vmatprep.mubr.bf16.mxu0 %v28296_v10 }
 0x682   :  { %17585 = vmatmul.mubr.bf16.gmra.mrb[188].mxu1 %v28296_v10 }
 0x683   :  { %11185 = vmatprep.mubr.f32.mxu1 %v28577_v59  ;;  %v28606_v59 = vld [vmem:[#allocation65_spill] sm:$0xff] }
 0x684   :  { %v23672_v38 = vsel %vm19986_vm2, %v23219_v12, %v28606_v59 }
 0x685   :  { %9837 = vmatmul.mubr.bf16.gmra.mrb[144].mxu0 %v28296_v10  ;;  %28607 = vst [vmem:[#allocation19_spill] sm:$0xff] %v23672_v38 }
 0x686   :  { %9844 = vmatprep.mubr.bf16.mxu0 %v23301_v28 }
 0x68d   :  { %9845 = vmatmul.mubr.bf16.gmra.mrb[148].mxu0 %v23576_v27 }
 0x68e   :  { %9852 = vmatprep.mubr.bf16.mxu0 %v22961_v20 }
 0x695   :  { %9853 = vmatmul.mubr.bf16.gmra.mrb[152].mxu0 %v23584_v58 }
 0x696   :  { %9860 = vmatprep.mubr.bf16.mxu0 %v22903_v3 }
 0x69d   :  { %9861 = vmatmul.mubr.bf16.gmra.mrb[156].mxu0 %v23592_v53 }
 0x69e   :  { %9868 = vmatprep.mubr.bf16.mxu0 %v22932_v52 }
 0x6a5   :  { %9869 = vmatmul.mubr.bf16.gmra.mrb[160].mxu0 %v23600_v19 }
 0x6a6   :  { %9876 = vmatprep.mubr.bf16.mxu0 %v22967_v29 }
 0x6ad   :  { %9877 = vmatmul.mubr.bf16.gmra.mrb[164].mxu0 %v23608_v15 }
 0x6ae   :  { %9884 = vmatprep.mubr.bf16.mxu0 %v22973_v18 }
 0x6b5   :  { %9885 = vmatmul.mubr.bf16.gmra.mrb[168].mxu0 %v23616_v8 }
 0x6b6   :  { %9892 = vmatprep.mubr.bf16.mxu0 %v23019_v13 }
 0x6bd   :  { %9893 = vmatmul.mubr.bf16.gmra.mrb[172].mxu0 %v23624_v4 }
 0x6be   :  { %9900 = vmatprep.mubr.bf16.mxu0 %v23031_v49 }
 0x6c5   :  { %9901 = vmatmul.mubr.bf16.gmra.mrb[176].mxu0 %v23632_v24 }
 0x6c6   :  { %9908 = vmatprep.mubr.bf16.mxu0 %v23047_v62 }
 0x6cd   :  { %9909 = vmatmul.mubr.bf16.gmra.mrb[180].mxu0 %v23640_v17 }
 0x6ce   :  { %9916 = vmatprep.mubr.bf16.mxu0 %v23053_v25 }
 0x6d2   :  { %v23658_v31 = vpop.f32.mrb[128].mxu1 }
 0x6d3   :  { %28602 = vst [vmem:[#allocation22_spill] sm:$0xff] %v23658_v31  ;;  %v23661_v14 = vpop.f32.mrb[129].mxu1 }
 0x6d4   :  { %28603 = vst [vmem:[#allocation21_spill] sm:$0xff] %v23661_v14  ;;  %v23664_v48 = vpop.f32.mrb[130].mxu1 }
 0x6d5   :  { %9917 = vmatmul.mubr.bf16.gmra.mrb[184].mxu0 %v23648_v22  ;;  %28604 = vst [vmem:[#allocation125_spill] sm:$0xff] %v23664_v48  ;;  %v23666_v33 = vpop.f32.mrb[131].mxu1  ;;  %v28612_v48 = vld [vmem:[#allocation66_spill] sm:$0xff] }
 0x6d6   :  { %9924 = vmatprep.mubr.bf16.mxu0 %v23065_v61  ;;  %28605 = vst [vmem:[#allocation101_spill] sm:$0xff] %v23666_v33  ;;  %v23688_v33 = vsel %vm19986_vm2, %v23243_v56, %v28612_v48 }
 0x6d7   :  { %28613 = vst [vmem:[#allocation117_spill] sm:$0xff] %v23688_v33 }
 0x6da   :  { %v23674_v63 = vpop.f32.mrb[132].mxu1 }
 0x6db   :  { %28608 = vst [vmem:[#allocation87_spill] sm:$0xff] %v23674_v63  ;;  %v23677_v23 = vpop.f32.mrb[133].mxu1 }
 0x6dc   :  { %28609 = vst [vmem:[#allocation25_spill] sm:$0xff] %v23677_v23  ;;  %v23680_v31 = vpop.f32.mrb[134].mxu1 }
 0x6dd   :  { %9925 = vmatmul.mubr.bf16.gmra.mrb[188].mxu0 %v23656_v45  ;;  %28610 = vst [vmem:[#allocation115_spill] sm:$0xff] %v23680_v31  ;;  %v23682_v14 = vpop.f32.mrb[135].mxu1  ;;  %v28618_v31 = vld [vmem:[#allocation69_spill] sm:$0xff] }
 0x6de   :  { %9932 = vmatprep.mubr.bf16.mxu0 %v23123_v34  ;;  %28611 = vst [vmem:[#allocation26_spill] sm:$0xff] %v23682_v14  ;;  %v23704_v14 = vsel %vm19986_vm2, %v23249_v40, %v28618_v31 }
 0x6df   :  { %28619 = vst [vmem:[#allocation28_spill] sm:$0xff] %v23704_v14 }
 0x6e3   :  { %v23690_v12 = vpop.f32.mrb[136].mxu1 }
 0x6e4   :  { %28614 = vst [vmem:[#allocation84_spill] sm:$0xff] %v23690_v12  ;;  %v23693_v59 = vpop.f32.mrb[137].mxu1 }
 0x6e5   :  { %9933 = vmatmul.mubr.bf16.gmra.mrb[64].mxu0 %v23672_v38  ;;  %28615 = vst [vmem:[#allocation94_spill] sm:$0xff] %v23693_v59  ;;  %v23696_v63 = vpop.f32.mrb[138].mxu1 }
 0x6e6   :  { %9940 = vmatprep.mubr.bf16.mxu0 %v23137_v16  ;;  %28616 = vst [vmem:[#allocation24_spill] sm:$0xff] %v23696_v63  ;;  %v23698_v23 = vpop.f32.mrb[139].mxu1  ;;  %v28624_v63 = vld [vmem:[#allocation70_spill] sm:$0xff] }
 0x6e7   :  { %28617 = vst [vmem:[#allocation38_spill] sm:$0xff] %v23698_v23  ;;  %v23720_v23 = vsel %vm19986_vm2, %v23277_v35, %v28624_v63  ;;  %v28632_v63 = vld [vmem:[#allocation128_spill] sm:$0xff] }
 0x6e8   :  { %28625 = vst [vmem:[#allocation52_spill] sm:$0xff] %v23720_v23 }
 0x6ec   :  { %v23706_v56 = vpop.f32.mrb[140].mxu1 }
 0x6ed   :  { %9941 = vmatmul.mubr.bf16.gmra.mrb[68].mxu0 %v23688_v33  ;;  %28620 = vst [vmem:[#allocation43_spill] sm:$0xff] %v23706_v56  ;;  %v23709_v48 = vpop.f32.mrb[141].mxu1 }
 0x6ee   :  { %9948 = vmatprep.mubr.bf16.mxu0 %v23143_v0  ;;  %28621 = vst [vmem:[#allocation46_spill] sm:$0xff] %v23709_v48  ;;  %v23712_v12 = vpop.f32.mrb[142].mxu1 }
 0x6ef   :  { %28622 = vst [vmem:[#allocation33_spill] sm:$0xff] %v23712_v12  ;;  %v23714_v59 = vpop.f32.mrb[143].mxu1  ;;  %v19390_v12 = vld [vmem:[%s27194_s7 + $0x100] sm:$0xff]  }
 0x6f0   :  { %28623 = vst [vmem:[#allocation50_spill] sm:$0xff] %v23714_v59 }
 0x6f5   :  { %9949 = vmatmul.mubr.bf16.gmra.mrb[72].mxu0 %v23704_v14 }
 0x6f6   :  { %9956 = vmatprep.mubr.bf16.mxu0 %v23168_v47  ;;  %v23722_v40 = vpop.f32.mrb[144].mxu1  ;;  %v28666_v47 = vld [vmem:[#allocation124_spill] sm:$0xff] }
 0x6f7   :  { %28626 = vst [vmem:[#allocation35_spill] sm:$0xff] %v23722_v40  ;;  %v23725_v31 = vpop.f32.mrb[145].mxu1 }
 0x6f8   :  { %28627 = vst [vmem:[#allocation56_spill] sm:$0xff] %v23725_v31  ;;  %v23728_v56 = vpop.f32.mrb[146].mxu1  ;;  %v19393_v31 = vld [vmem:[%s27194_s7 + $0x118] sm:$0xff]  }
 0x6f9   :  { %28628 = vst [vmem:[#allocation58_spill] sm:$0xff] %v23728_v56  ;;  %v23730_v48 = vpop.f32.mrb[147].mxu1 }
 0x6fa   :  { %28629 = vst [vmem:[#allocation41_spill] sm:$0xff] %v23730_v48  ;;  %v28639_v48 = vld [vmem:[#allocation31_spill] sm:$0xff] }
 0x6fd   :  { %9957 = vmatmul.mubr.bf16.gmra.mrb[76].mxu0 %v23720_v23 }
 0x6fe   :  { %9997 = vmatprep.mubr.bf16.mxu0 %v22789_v7  ;;  %v19391_v7 = vld [vmem:[%s27194_s7 + $0x108] sm:$0xff]  }
 0x705   :  { %v23735_v59 = vpop.f32.mrb[148].mxu1  ;;  %9998 = vmatmul.mubr.bf16.vlgmr.msra.gmra.mrb[8].mxu0 %v28296_v10 }
 0x706   :  { %28630 = vst [vmem:[#allocation62_spill] sm:$0xff] %v23735_v59  ;;  %v23738_v35 = vpop.f32.mrb[149].mxu1  ;;  %10255 = vmatpush1.bf16.msra.mxu0 %v19390_v12  ;;  %10005 = vmatprep.mubr.bf16.mxu0 %v28632_v63  ;;  %v19392_v59 = vld [vmem:[%s27194_s7 + $0x110] sm:$0xff]   ;;  %v28635_v12 = vld [vmem:[#allocation75_spill] sm:$0xff] }
 0x707   :  { %28631 = vst [vmem:[#allocation64_spill] sm:$0xff] %v23738_v35  ;;  %v23741_v40 = vpop.f32.mrb[150].mxu1  ;;  %10256 = vmatprep.subr.bf16.mxu0 %v28296_v10 }
 0x708   :  { %28633 = vst [vmem:[#allocation44_spill] sm:$0xff] %v23741_v40  ;;  %v23746_v56 = vpop.f32.mrb[151].mxu1  ;;  %v23757_v40 = vsel %vm20262_vm4, %v23306_v42, %v28635_v12  ;;  %v19394_v42 = vld [vmem:[%s27194_s7 + $0x120] sm:$0xff]  }
 0x709   :  { %28634 = vst [vmem:[#allocation67_spill] sm:$0xff] %v23746_v56  ;;  %28636 = vst [vmem:[#allocation68_spill] sm:$0xff] %v23757_v40 }
 0x70a   :  { %10257 = vmatpush1.bf16.msra.mxu0 %v19391_v7 }
 0x70b   :  { %10258 = vmatprep.subr.bf16.mxu0 %v28296_v10 }
 0x70d   :  { %v23759_v35 = vpop.f32.mrb[152].mxu1  ;;  %10006 = vmatmul.mubr.bf16.gmra.mrb[12].mxu0 %v23757_v40 }
 0x70e   :  { %28637 = vst [vmem:[#allocation48_spill] sm:$0xff] %v23759_v35  ;;  %v23762_v56 = vpop.f32.mrb[153].mxu1  ;;  %10013 = vmatprep.mubr.bf16.mxu0 %v28639_v48  ;;  %10259 = vmatpush1.bf16.msra.mxu0 %v19392_v59  ;;  %v28643_v35 = vld [vmem:[#allocation107_spill] sm:$0xff] }
 0x70f   :  { %28638 = vst [vmem:[#allocation71_spill] sm:$0xff] %v23762_v56  ;;  %v23765_v7 = vpop.f32.mrb[154].mxu1  ;;  %10260 = vmatprep.subr.bf16.mxu0 %v28296_v10 }
 0x710   :  { %28640 = vst [vmem:[#allocation72_spill] sm:$0xff] %v23765_v7  ;;  %v23770_v63 = vpop.f32.mrb[155].mxu1  ;;  %v28645_v7 = vld [vmem:[#allocation11_spill] sm:$0xff] }
 0x711   :  { %28641 = vst [vmem:[#allocation51_spill] sm:$0xff] %v23770_v63 }
 0x712   :  { %10261 = vmatpush1.bf16.msra.mxu0 %v19393_v31  ;;  %v19395_v31 = vld [vmem:[%s27194_s7 + $0x128] sm:$0xff]  }
 0x713   :  { %10262 = vmatprep.subr.bf16.mxu0 %v28296_v10 }
 0x715   :  { %v23777_v12 = vpop.f32.mrb[156].mxu1  ;;  %10014 = vmatmul.mubr.bf16.gmra.mrb[16].mxu0 %v28643_v35 }
 0x716   :  { %28642 = vst [vmem:[#allocation74_spill] sm:$0xff] %v23777_v12  ;;  %v23780_v59 = vpop.f32.mrb[157].mxu1  ;;  %10021 = vmatprep.mubr.bf16.mxu0 %v28645_v7  ;;  %10263 = vmatpush1.bf16.msra.mxu0 %v19394_v42  ;;  %v19396_v12 = vld [vmem:[%s27194_s7 + $0x130] sm:$0xff]  }
 0x717   :  { %28644 = vst [vmem:[#allocation57_spill] sm:$0xff] %v23780_v59  ;;  %v23783_v56 = vpop.f32.mrb[158].mxu1  ;;  %10264 = vmatprep.subr.bf16.mxu0 %v28296_v10  ;;  %v28649_v7 = vld [vmem:[#allocation106_spill] sm:$0xff] }
 0x718   :  { %28646 = vst [vmem:[#allocation54_spill] sm:$0xff] %v23783_v56  ;;  %v23788_v63 = vpop.f32.mrb[159].mxu1  ;;  %v28651_v56 = vld [vmem:[#allocation32_spill] sm:$0xff] }
 0x719   :  { %28647 = vst [vmem:[#allocation60_spill] sm:$0xff] %v23788_v63 }
 0x71a   :  { %10265 = vmatpush1.bf16.msra.mxu0 %v19395_v31  ;;  %v19397_v31 = vld [vmem:[%s27194_s7 + $0x138] sm:$0xff]  }
 0x71b   :  { %10266 = vmatprep.subr.bf16.mxu0 %v28296_v10 }
 0x71d   :  { %v23795_v59 = vpop.f32.mrb[160].mxu1  ;;  %10022 = vmatmul.mubr.bf16.gmra.mrb[20].mxu0 %v28649_v7 }
 0x71e   :  { %28648 = vst [vmem:[#allocation63_spill] sm:$0xff] %v23795_v59  ;;  %v23798_v42 = vpop.f32.mrb[161].mxu1  ;;  %10029 = vmatprep.mubr.bf16.mxu0 %v28651_v56  ;;  %10267 = vmatpush1.bf16.msra.mxu0 %v19396_v12  ;;  %v19398_v59 = vld [vmem:[%s27194_s7 + $0x140] sm:$0xff]  }
 0x71f   :  { %28650 = vst [vmem:[#allocation36_spill] sm:$0xff] %v23798_v42  ;;  %v23801_v48 = vpop.f32.mrb[162].mxu1  ;;  %10268 = vmatprep.subr.bf16.mxu0 %v28296_v10  ;;  %v28655_v56 = vld [vmem:[#allocation108_spill] sm:$0xff] }
 0x720   :  { %28652 = vst [vmem:[#allocation39_spill] sm:$0xff] %v23801_v48  ;;  %v23806_v63 = vpop.f32.mrb[163].mxu1  ;;  %v28657_v48 = vld [vmem:[#allocation135_spill] sm:$0xff] }
 0x721   :  { %28653 = vst [vmem:[#allocation42_spill] sm:$0xff] %v23806_v63 }
 0x722   :  { %10269 = vmatpush1.bf16.msra.mxu0 %v19397_v31  ;;  %v19399_v31 = vld [vmem:[%s27194_s7 + $0x148] sm:$0xff]  }
 0x723   :  { %10270 = vmatprep.subr.bf16.mxu0 %v28296_v10 }
 0x725   :  { %v23813_v42 = vpop.f32.mrb[164].mxu1  ;;  %10030 = vmatmul.mubr.bf16.gmra.mrb[24].mxu0 %v28655_v56 }
 0x726   :  { %28654 = vst [vmem:[#allocation47_spill] sm:$0xff] %v23813_v42  ;;  %v23816_v12 = vpop.f32.mrb[165].mxu1  ;;  %10037 = vmatprep.mubr.bf16.mxu0 %v28657_v48  ;;  %10271 = vmatpush1.bf16.msra.mxu0 %v19398_v59  ;;  %v19400_v42 = vld [vmem:[%s27194_s7 + $0x150] sm:$0xff]   ;;  %v28661_v48 = vld [vmem:[#allocation120_spill] sm:$0xff] }
 0x727   :  { %28656 = vst [vmem:[#allocation49_spill] sm:$0xff] %v23816_v12  ;;  %v23819_v5 = vpop.f32.mrb[166].mxu1  ;;  %10272 = vmatprep.subr.bf16.mxu0 %v28296_v10 }
 0x728   :  { %28658 = vst [vmem:[#allocation53_spill] sm:$0xff] %v23819_v5  ;;  %v23824_v63 = vpop.f32.mrb[167].mxu1 }
 0x729   :  { %28659 = vst [vmem:[#allocation55_spill] sm:$0xff] %v23824_v63 }
 0x72a   :  { %10273 = vmatpush1.bf16.msra.mxu0 %v19399_v31 }
 0x72b   :  { %10274 = vmatprep.subr.bf16.mxu0 %v28296_v10 }
 0x72d   :  { %v23831_v12 = vpop.f32.mrb[168].mxu1  ;;  %10038 = vmatmul.mubr.bf16.gmra.mrb[28].mxu0 %v28661_v48 }
 0x72e   :  { %28660 = vst [vmem:[#allocation59_spill] sm:$0xff] %v23831_v12  ;;  %v23834_v59 = vpop.f32.mrb[169].mxu1  ;;  %10045 = vmatprep.mubr.bf16.mxu0 %v23290_v26  ;;  %10275 = vmatpush1.bf16.msra.mxu0 %v19400_v42  ;;  %v19401_v12 = vld [vmem:[%s27194_s7 + $0x158] sm:$0xff]  }
 0x72f   :  { %28662 = vst [vmem:[#allocation61_spill] sm:$0xff] %v23834_v59  ;;  %v23837_v5 = vpop.f32.mrb[170].mxu1  ;;  %10276 = vmatprep.subr.bf16.mxu0 %v28296_v10 }
 0x730   :  { %28663 = vst [vmem:[#allocation65_spill] sm:$0xff] %v23837_v5  ;;  %v23839_v63 = vpop.f32.mrb[171].mxu1 }
 0x731   :  { %28664 = vst [vmem:[#allocation66_spill] sm:$0xff] %v23839_v63 }
 0x732   :  { %10277 = vmatpush1.bf16.msra.mxu0 %v19401_v12  ;;  %v19402_v12 = vld [vmem:[%s27194_s7 + $0x160] sm:$0xff]  }
 0x733   :  { %10278 = vmatprep.subr.bf16.mxu0 %v28296_v10 }
 0x735   :  { %v23842_v31 = vpop.f32.mrb[172].mxu1  ;;  %10046 = vmatmul.mubr.bf16.gmra.mrb[32].mxu0 %v28666_v47 }
 0x736   :  { %28665 = vst [vmem:[#allocation69_spill] sm:$0xff] %v23842_v31  ;;  %v23845_v0 = vpop.f32.mrb[173].mxu1  ;;  %10053 = vmatprep.mubr.bf16.mxu0 %v23336_v60  ;;  %v28671_v31 = vld [vmem:[#allocation132_spill] sm:$0xff]  ;;  %10279 = vmatpush1.bf16.msra.mxu0 %v19402_v12  ;;  %v19403_v12 = vld [vmem:[%s27194_s7 + $0x168] sm:$0xff]  }
 0x737   :  { %28667 = vst [vmem:[#allocation70_spill] sm:$0xff] %v23845_v0  ;;  %v23851_v59 = vpop.f32.mrb[174].mxu1  ;;  %10280 = vmatprep.subr.bf16.mxu0 %v28296_v10 }
 0x738   :  { %28668 = vst [vmem:[#allocation75_spill] sm:$0xff] %v23851_v59  ;;  %v23853_v5 = vpop.f32.mrb[175].mxu1  ;;  %v28676_v59 = vld [vmem:[#allocation131_spill] sm:$0xff] }
 0x739   :  { %28669 = vst [vmem:[#allocation136_spill] sm:$0xff] %v23853_v5 }
 0x73a   :  { %10281 = vmatpush1.bf16.msra.mxu0 %v19403_v12  ;;  %v28689_v12 = vld [vmem:[#allocation134_spill] sm:$0xff] }
 0x73b   :  { %10282 = vmatprep.subr.bf16.mxu0 %v28296_v10 }
 0x73d   :  { %v23856_v42 = vpop.f32.mrb[176].mxu1  ;;  %10054 = vmatmul.mubr.bf16.gmra.mrb[36].mxu0 %v28671_v31 }
 0x73e   :  { %28670 = vst [vmem:[#allocation137_spill] sm:$0xff] %v23856_v42  ;;  %v23859_v63 = vpop.f32.mrb[177].mxu1  ;;  %10061 = vmatprep.mubr.bf16.mxu0 %v23375_v37 }
 0x73f   :  { %28672 = vst [vmem:[#allocation138_spill] sm:$0xff] %v23859_v63  ;;  %v23862_v0 = vpop.f32.mrb[178].mxu1 }
 0x740   :  { %28673 = vst [vmem:[#allocation139_spill] sm:$0xff] %v23862_v0  ;;  %v23864_v26 = vpop.f32.mrb[179].mxu1 }
 0x741   :  { %28674 = vst [vmem:[#allocation140_spill] sm:$0xff] %v23864_v26 }
 0x745   :  { %v23866_v60 = vpop.f32.mrb[180].mxu1  ;;  %10062 = vmatmul.mubr.bf16.gmra.mrb[40].mxu0 %v28676_v59 }
 0x746   :  { %28675 = vst [vmem:[#allocation141_spill] sm:$0xff] %v23866_v60  ;;  %v23869_v5 = vpop.f32.mrb[181].mxu1  ;;  %10069 = vmatprep.mubr.bf16.mxu0 %v23406_v50  ;;  %v28681_v60 = vld [vmem:[#allocation23_spill] sm:$0xff] }
 0x747   :  { %28677 = vst [vmem:[#allocation142_spill] sm:$0xff] %v23869_v5  ;;  %v23875_v42 = vpop.f32.mrb[182].mxu1  ;;  %v28685_v50 = vld [vmem:[#allocation27_spill] sm:$0xff] }
 0x748   :  { %28678 = vst [vmem:[#allocation143_spill] sm:$0xff] %v23875_v42  ;;  %v23877_v63 = vpop.f32.mrb[183].mxu1  ;;  %v28690_v42 = vld [vmem:[#allocation88_spill] sm:$0xff] }
 0x749   :  { %28679 = vst [vmem:[#allocation144_spill] sm:$0xff] %v23877_v63  ;;  %v23911_v63 = vsel %vm19986_vm2, %v23322_v2, %v28690_v42  ;;  %v28698_v42 = vld [vmem:[#allocation77_spill] sm:$0xff] }
 0x74a   :  { %28691 = vst [vmem:[#allocation88_spill] sm:$0xff] %v23911_v63 }
 0x74d   :  { %v23880_v0 = vpop.f32.mrb[184].mxu1  ;;  %10070 = vmatmul.mubr.bf16.gmra.mrb[44].mxu0 %v28681_v60 }
 0x74e   :  { %28680 = vst [vmem:[#allocation145_spill] sm:$0xff] %v23880_v0  ;;  %v23883_v26 = vpop.f32.mrb[185].mxu1  ;;  %10077 = vmatprep.mubr.bf16.mxu0 %v23441_v44  ;;  %v28686_v0 = vld [vmem:[#allocation9_spill] sm:$0xff] }
 0x74f   :  { %28682 = vst [vmem:[#allocation146_spill] sm:$0xff] %v23883_v26  ;;  %v23886_v5 = vpop.f32.mrb[186].mxu1  ;;  %v28687_v26 = vld [vmem:[#allocation45_spill] sm:$0xff] }
 0x750   :  { %28683 = vst [vmem:[#allocation147_spill] sm:$0xff] %v23886_v5  ;;  %v23888_v37 = vpop.f32.mrb[187].mxu1  ;;  %v19404_v5 = vld [vmem:[%s27194_s7 + $0x170] sm:$0xff]  }
 0x751   :  { %28684 = vst [vmem:[#allocation148_spill] sm:$0xff] %v23888_v37  ;;  %10283 = vmatpush1.bf16.msra.mxu0 %v19404_v5  ;;  %v28688_v37 = vld [vmem:[#allocation85_spill] sm:$0xff]  ;;  %v28692_v5 = vld [vmem:[#allocation40_spill] sm:$0xff] }
 0x752   :  { %10284 = vmatprep.subr.bf16.mxu0 %v28296_v10 }
 0x755   :  { %10078 = vmatmul.mubr.bf16.gmra.mrb[48].mxu0 %v28685_v50 }
 0x756   :  { %10085 = vmatprep.mubr.bf16.mxu0 %v23472_v41 }
 0x75d   :  { %10086 = vmatmul.mubr.bf16.gmra.mrb[52].mxu0 %v28686_v0 }
 0x75e   :  { %10093 = vmatprep.mubr.bf16.mxu0 %v23505_v11  ;;  %v19405_v11 = vld [vmem:[%s27194_s7 + $0x178] sm:$0xff]  }
 0x75f   :  { %10285 = vmatpush1.bf16.msra.mxu0 %v19405_v11  ;;  %v28695_v11 = vld [vmem:[#allocation119_spill] sm:$0xff] }
 0x760   :  { %10543 = vmatprep.subr.bf16.mxu0 %v28296_v10 }
 0x765   :  { %10094 = vmatmul.mubr.bf16.gmra.mrb[56].mxu0 %v28687_v26 }
 0x766   :  { %10101 = vmatprep.mubr.bf16.mxu0 %v23533_v21 }
 0x76d   :  { %10102 = vmatmul.mubr.bf16.gmra.mrb[60].mxu0 %v28688_v37 }
 0x76e   :  { %10109 = vmatprep.mubr.bf16.mxu0 %v23561_v43  ;;  %v28693_v43 = vld [vmem:[#allocation30_spill] sm:$0xff] }
 0x76f   :  { %v23926_v2 = vsel %vm20262_vm4, %v23348_v9, %v28693_v43  ;;  %v28696_v9 = vld [vmem:[#allocation93_spill] sm:$0xff]  ;;  %v28697_v43 = vld [vmem:[#allocation114_spill] sm:$0xff] }
 0x770   :  { %28694 = vst [vmem:[#allocation30_spill] sm:$0xff] %v23926_v2 }
 0x775   :  { %10110 = vmatmul.mubr.bf16.gmra.mrb[136].mxu0 %v28689_v12 }
 0x776   :  { %10117 = vmatprep.mubr.bf16.mxu0 %v23911_v63 }
 0x77d   :  { %10118 = vmatmul.mubr.bf16.gmra.mrb[140].mxu0 %v28692_v5 }
 0x77e   :  { %10125 = vmatprep.mubr.bf16.mxu0 %v23576_v27  ;;  %v28699_v27 = vld [vmem:[#allocation122_spill] sm:$0xff] }
 0x785   :  { %10126 = vmatmul.mubr.bf16.gmra.mrb[144].mxu0 %v28296_v10 }
 0x786   :  { %10133 = vmatprep.mubr.bf16.mxu0 %v23584_v58 }
 0x78d   :  { %10134 = vmatmul.mubr.bf16.gmra.mrb[148].mxu0 %v23926_v2 }
 0x78e   :  { %10141 = vmatprep.mubr.bf16.mxu0 %v23592_v53 }
 0x795   :  { %10142 = vmatmul.mubr.bf16.gmra.mrb[152].mxu0 %v23314_v39 }
 0x796   :  { %10149 = vmatprep.mubr.bf16.mxu0 %v23600_v19 }
 0x79d   :  { %10150 = vmatmul.mubr.bf16.gmra.mrb[156].mxu0 %v23356_v54 }
 0x79e   :  { %10157 = vmatprep.mubr.bf16.mxu0 %v23608_v15 }
 0x7a5   :  { %10158 = vmatmul.mubr.bf16.gmra.mrb[160].mxu0 %v23365_v36 }
 0x7a6   :  { %10165 = vmatprep.mubr.bf16.mxu0 %v23616_v8 }
 0x7ad   :  { %10166 = vmatmul.mubr.bf16.gmra.mrb[164].mxu0 %v28695_v11 }
 0x7ae   :  { %10173 = vmatprep.mubr.bf16.mxu0 %v23624_v4 }
 0x7b5   :  { %10174 = vmatmul.mubr.bf16.gmra.mrb[168].mxu0 %v28696_v9 }
 0x7b6   :  { %10181 = vmatprep.mubr.bf16.mxu0 %v23632_v24  ;;  %v28701_v24 = vld [vmem:[#allocation96_spill] sm:$0xff] }
 0x7bd   :  { %10182 = vmatmul.mubr.bf16.gmra.mrb[172].mxu0 %v28697_v43 }
 0x7be   :  { %10189 = vmatprep.mubr.bf16.mxu0 %v23640_v17 }
 0x7c5   :  { %10190 = vmatmul.mubr.bf16.gmra.mrb[176].mxu0 %v28698_v42 }
 0x7c6   :  { %10197 = vmatprep.mubr.bf16.mxu0 %v23648_v22  ;;  %v28702_v22 = vld [vmem:[#allocation73_spill] sm:$0xff] }
 0x7cd   :  { %10198 = vmatmul.mubr.bf16.gmra.mrb[180].mxu0 %v23454_v30 }
 0x7ce   :  { %10205 = vmatprep.mubr.bf16.mxu0 %v23656_v45  ;;  %v28703_v45 = vld [vmem:[#allocation118_spill] sm:$0xff] }
 0x7cf   :  { %v23959_v17 = vsel %vm19986_vm2, %v28703_v45, %v28702_v22  ;;  %v19407_v22 = vld [vmem:[%s27194_s7 + $0x188] sm:$0xff]   ;;  %v19408_v45 = vld [vmem:[%s27194_s7 + $0x190] sm:$0xff]  }
 0x7d0   :  { %28704 = vst [vmem:[#allocation73_spill] sm:$0xff] %v23959_v17 }
 0x7d5   :  { %10206 = vmatmul.mubr.bf16.gmra.mrb[184].mxu0 %v28699_v27 }
 0x7d6   :  { %10213 = vmatprep.mubr.bf16.mxu0 %v23672_v38 }
 0x7dd   :  { %10214 = vmatmul.mubr.bf16.gmra.mrb[188].mxu0 %v28700_v55 }
 0x7de   :  { %10221 = vmatprep.mubr.bf16.mxu0 %v23688_v33  ;;  %v28705_v33 = vld [vmem:[#allocation129_spill] sm:$0xff] }
 0x7e5   :  { %10222 = vmatmul.mubr.bf16.gmra.mrb[64].mxu0 %v28701_v24 }
 0x7e6   :  { %10229 = vmatprep.mubr.bf16.mxu0 %v23704_v14  ;;  %v19406_v14 = vld [vmem:[%s27194_s7 + $0x180] sm:$0xff]  }
 0x7ed   :  { %10230 = vmatmul.mubr.bf16.gmra.mrb[68].mxu0 %v23516_v57 }
 0x7ee   :  { %10237 = vmatprep.mubr.bf16.mxu0 %v23720_v23 }
 0x7f5   :  { %10238 = vmatmul.mubr.bf16.gmra.mrb[72].mxu0 %v23524_v51 }
 0x7f6   :  { %10245 = vmatprep.mubr.bf16.mxu0 %v23959_v17 }
 0x7fd   :  { %10246 = vmatmul.mubr.bf16.gmra.mrb[76].mxu0 %v23547_v32 }
 0x7fe   :  { %10286 = vmatprep.mubr.bf16.mxu0 %v23757_v40  ;;  %v28706_v40 = vld [vmem:[#allocation130_spill] sm:$0xff] }
 0x805   :  { %10287 = vmatmul.mubr.bf16.vlgmr.msra.gmra.mrb[8].mxu0 %v28705_v33  ;;  %v19410_v33 = vld [vmem:[%s27194_s7 + $0x1a0] sm:$0xff]  }
 0x806   :  { %10544 = vmatpush1.bf16.msra.mxu0 %v19406_v14  ;;  %10294 = vmatprep.mubr.bf16.mxu0 %v28643_v35  ;;  %v19409_v14 = vld [vmem:[%s27194_s7 + $0x198] sm:$0xff]  }
 0x807   :  { %10545 = vmatprep.subr.bf16.mxu0 %v28296_v10  ;;  %v28713_v35 = vld [vmem:[#allocation111_spill] sm:$0xff] }
 0x80a   :  { %10546 = vmatpush1.bf16.msra.mxu0 %v19407_v22  ;;  %v28707_v22 = vld [vmem:[#allocation102_spill] sm:$0xff] }
 0x80b   :  { %10547 = vmatprep.subr.bf16.mxu0 %v28296_v10 }
 0x80d   :  { %10295 = vmatmul.mubr.bf16.gmra.mrb[12].mxu0 %v28706_v40 }
 0x80e   :  { %10302 = vmatprep.mubr.bf16.mxu0 %v28649_v7  ;;  %10548 = vmatpush1.bf16.msra.mxu0 %v19408_v45  ;;  %v19411_v45 = vld [vmem:[%s27194_s7 + $0x1a8] sm:$0xff]  }
 0x80f   :  { %10549 = vmatprep.subr.bf16.mxu0 %v28296_v10  ;;  %v28803_v7 = vld [vmem:[#allocation65_spill] sm:$0xff] }
 0x812   :  { %10550 = vmatpush1.bf16.msra.mxu0 %v19409_v14  ;;  %v19412_v14 = vld [vmem:[%s27194_s7 + $0x1b0] sm:$0xff]  }
 0x813   :  { %10551 = vmatprep.subr.bf16.mxu0 %v28296_v10 }
 0x815   :  { %10303 = vmatmul.mubr.bf16.gmra.mrb[16].mxu0 %v28707_v22 }
 0x816   :  { %10310 = vmatprep.mubr.bf16.mxu0 %v28655_v56  ;;  %10552 = vmatpush1.bf16.msra.mxu0 %v19410_v33  ;;  %v19413_v33 = vld [vmem:[%s27194_s7 + $0x1b8] sm:$0xff]   ;;  %v28709_v56 = vld [vmem:[#allocation104_spill] sm:$0xff] }
 0x817   :  { %10553 = vmatprep.subr.bf16.mxu0 %v28296_v10 }
 0x81a   :  { %10554 = vmatpush1.bf16.msra.mxu0 %v19411_v45  ;;  %v19414_v45 = vld [vmem:[%s27194_s7 + $0x1c0] sm:$0xff]  }
 0x81b   :  { %10555 = vmatprep.subr.bf16.mxu0 %v28296_v10 }
 0x81d   :  { %10311 = vmatmul.mubr.bf16.gmra.mrb[20].mxu0 %v28708_v46 }
 0x81e   :  { %10318 = vmatprep.mubr.bf16.mxu0 %v28661_v48  ;;  %10556 = vmatpush1.bf16.msra.mxu0 %v19412_v14  ;;  %v19415_v14 = vld [vmem:[%s27194_s7 + $0x1c8] sm:$0xff]  }
 0x81f   :  { %10557 = vmatprep.subr.bf16.mxu0 %v28296_v10  ;;  %v28710_v48 = vld [vmem:[#allocation105_spill] sm:$0xff] }
 0x822   :  { %10558 = vmatpush1.bf16.msra.mxu0 %v19413_v33  ;;  %v19416_v33 = vld [vmem:[%s27194_s7 + $0x1d0] sm:$0xff]  }
 0x823   :  { %10559 = vmatprep.subr.bf16.mxu0 %v28296_v10 }
 0x825   :  { %10319 = vmatmul.mubr.bf16.gmra.mrb[24].mxu0 %v28709_v56 }
 0x826   :  { %10326 = vmatprep.mubr.bf16.mxu0 %v28666_v47  ;;  %10560 = vmatpush1.bf16.msra.mxu0 %v19414_v45  ;;  %v28711_v45 = vld [vmem:[#allocation133_spill] sm:$0xff]  ;;  %v19417_v47 = vld [vmem:[%s27194_s7 + $0x1d8] sm:$0xff]  }
 0x827   :  { %10561 = vmatprep.subr.bf16.mxu0 %v28296_v10 }
 0x82a   :  { %10562 = vmatpush1.bf16.msra.mxu0 %v19415_v14  ;;  %v28712_v14 = vld [vmem:[#allocation109_spill] sm:$0xff] }
 0x82b   :  { %10563 = vmatprep.subr.bf16.mxu0 %v28296_v10 }
 0x82d   :  { %10327 = vmatmul.mubr.bf16.gmra.mrb[28].mxu0 %v28710_v48 }
 0x82e   :  { %10334 = vmatprep.mubr.bf16.mxu0 %v28671_v31  ;;  %10564 = vmatpush1.bf16.msra.mxu0 %v19416_v33  ;;  %v19418_v33 = vld [vmem:[%s27194_s7 + $0x1e0] sm:$0xff]  }
 0x82f   :  { %10565 = vmatprep.subr.bf16.mxu0 %v28296_v10  ;;  %v28714_v31 = vld [vmem:[#allocation112_spill] sm:$0xff] }
 0x832   :  { %10566 = vmatpush1.bf16.msra.mxu0 %v19417_v47  ;;  %v28715_v47 = vld [vmem:[#allocation123_spill] sm:$0xff] }
 0x833   :  { %10567 = vmatprep.subr.bf16.mxu0 %v28296_v10 }
 0x835   :  { %10335 = vmatmul.mubr.bf16.gmra.mrb[32].mxu0 %v28711_v45 }
 0x836   :  { %10342 = vmatprep.mubr.bf16.mxu0 %v28676_v59  ;;  %10568 = vmatpush1.bf16.msra.mxu0 %v19418_v33  ;;  %v28716_v59 = vld [vmem:[#allocation127_spill] sm:$0xff]  ;;  %v28717_v33 = vld [vmem:[#allocation20_spill] sm:$0xff] }
 0x837   :  { %10569 = vmatprep.subr.bf16.mxu0 %v28296_v10 }
 0x83d   :  { %10343 = vmatmul.mubr.bf16.gmra.mrb[36].mxu0 %v28712_v14 }
 0x83e   :  { %10350 = vmatprep.mubr.bf16.mxu0 %v28681_v60  ;;  %v19419_v60 = vld [vmem:[%s27194_s7 + $0x1e8] sm:$0xff]  }
 0x83f   :  { %10570 = vmatpush1.bf16.msra.mxu0 %v19419_v60  ;;  %v19421_v60 = vld [vmem:[%s27194_s7 + $0x1f8] sm:$0xff]  }
 0x840   :  { %10571 = vmatprep.subr.bf16.mxu0 %v28296_v10 }
 0x845   :  { %10351 = vmatmul.mubr.bf16.gmra.mrb[40].mxu0 %v28713_v35 }
 0x846   :  { %10358 = vmatprep.mubr.bf16.mxu0 %v28685_v50 }
 0x84d   :  { %10359 = vmatmul.mubr.bf16.gmra.mrb[44].mxu0 %v28714_v31 }
 0x84e   :  { %10366 = vmatprep.mubr.bf16.mxu0 %v28686_v0  ;;  %v19420_v0 = vld [vmem:[%s27194_s7 + $0x1f0] sm:$0xff]  }
 0x84f   :  { %10572 = vmatpush1.bf16.msra.mxu0 %v19420_v0  ;;  %v28720_v0 = vld [vmem:[#allocation18_spill] sm:$0xff] }
 0x850   :  { %10573 = vmatprep.subr.bf16.mxu0 %v28296_v10 }
 0x853   :  { %10574 = vmatpush1.bf16.msra.mxu0 %v19421_v60  ;;  %v28722_v60 = vld [vmem:[#allocation6_spill] sm:$0xff] }
 0x855   :  { %10367 = vmatmul.mubr.bf16.gmra.mrb[48].mxu0 %v28715_v47 }
 0x856   :  { %10374 = vmatprep.mubr.bf16.mxu0 %v28687_v26  ;;  %v28719_v26 = vld [vmem:[#allocation13_spill] sm:$0xff] }
 0x85d   :  { %10375 = vmatmul.mubr.bf16.gmra.mrb[52].mxu0 %v28716_v59 }
 0x85e   :  { %10382 = vmatprep.mubr.bf16.mxu0 %v28688_v37  ;;  %v28718_v37 = vld [vmem:[#allocation7_spill] sm:$0xff] }
 0x865   :  { %10383 = vmatmul.mubr.bf16.gmra.mrb[56].mxu0 %v28717_v33 }
 0x866   :  { %10390 = vmatprep.mubr.bf16.mxu0 %v28689_v12  ;;  %v28792_v12 = vld [vmem:[#allocation55_spill] sm:$0xff] }
 0x86d   :  { %10391 = vmatmul.mubr.bf16.gmra.mrb[60].mxu0 %v22849_v6 }
 0x86e   :  { %10398 = vmatprep.mubr.bf16.mxu0 %v28692_v5  ;;  %v28790_v5 = vld [vmem:[#allocation49_spill] sm:$0xff] }
 0x875   :  { %10399 = vmatmul.mubr.bf16.gmra.mrb[136].mxu0 %v22874_v1 }
 0x876   :  { %10406 = vmatprep.mubr.bf16.mxu0 %v28718_v37 }
 0x87d   :  { %10407 = vmatmul.mubr.bf16.gmra.mrb[140].mxu0 %v28719_v26 }
 0x87e   :  { %10414 = vmatprep.mubr.bf16.mxu0 %v23926_v2  ;;  %v28723_v2 = vld [vmem:[#allocation34_spill] sm:$0xff] }
 0x885   :  { %10415 = vmatmul.mubr.bf16.gmra.mrb[144].mxu0 %v23301_v28  ;;  %v28721_v28 = vld [vmem:[#allocation116_spill] sm:$0xff] }
 0x886   :  { %10422 = vmatprep.mubr.bf16.mxu0 %v23314_v39  ;;  %v28787_v39 = vld [vmem:[#allocation63_spill] sm:$0xff] }
 0x88d   :  { %10423 = vmatmul.mubr.bf16.gmra.mrb[148].mxu0 %v22961_v20 }
 0x88e   :  { %10430 = vmatprep.mubr.bf16.mxu0 %v23356_v54  ;;  %v28786_v54 = vmov 0.001953125  }
 0x895   :  { %10431 = vmatmul.mubr.bf16.gmra.mrb[152].mxu0 %v22903_v3 }
 0x896   :  { %10438 = vmatprep.mubr.bf16.mxu0 %v23365_v36 }
 0x89d   :  { %10439 = vmatmul.mubr.bf16.gmra.mrb[156].mxu0 %v22932_v52 }
 0x89e   :  { %10446 = vmatprep.mubr.bf16.mxu0 %v28695_v11 }
 0x8a5   :  { %10447 = vmatmul.mubr.bf16.gmra.mrb[160].mxu0 %v22967_v29 }
 0x8a6   :  { %10454 = vmatprep.mubr.bf16.mxu0 %v28696_v9  ;;  %v28781_v9 = vld [vmem:[#allocation54_spill] sm:$0xff] }
 0x8ad   :  { %10455 = vmatmul.mubr.bf16.gmra.mrb[164].mxu0 %v22973_v18 }
 0x8ae   :  { %10462 = vmatprep.mubr.bf16.mxu0 %v28697_v43 }
 0x8b5   :  { %10463 = vmatmul.mubr.bf16.gmra.mrb[168].mxu0 %v23019_v13 }
 0x8b6   :  { %10470 = vmatprep.mubr.bf16.mxu0 %v28698_v42 }
 0x8bd   :  { %10471 = vmatmul.mubr.bf16.gmra.mrb[172].mxu0 %v23031_v49 }
 0x8be   :  { %10478 = vmatprep.mubr.bf16.mxu0 %v23454_v30 }
 0x8c5   :  { %10479 = vmatmul.mubr.bf16.gmra.mrb[176].mxu0 %v23047_v62 }
 0x8c6   :  { %10486 = vmatprep.mubr.bf16.mxu0 %v28699_v27 }
 0x8cd   :  { %10487 = vmatmul.mubr.bf16.gmra.mrb[180].mxu0 %v23053_v25 }
 0x8ce   :  { %10494 = vmatprep.mubr.bf16.mxu0 %v28700_v55 }
 0x8d5   :  { %10495 = vmatmul.mubr.bf16.gmra.mrb[184].mxu0 %v23065_v61 }
 0x8d6   :  { %10502 = vmatprep.mubr.bf16.mxu0 %v28701_v24  ;;  %v28724_v24 = vld [vmem:[#allocation128_spill] sm:$0xff] }
 0x8dd   :  { %10503 = vmatmul.mubr.bf16.gmra.mrb[188].mxu0 %v23123_v34 }
 0x8de   :  { %10510 = vmatprep.mubr.bf16.mxu0 %v23516_v57  ;;  %v28725_v57 = vld [vmem:[#allocation31_spill] sm:$0xff] }
 0x8e5   :  { %10511 = vmatmul.mubr.bf16.gmra.mrb[64].mxu0 %v23137_v16 }
 0x8e6   :  { %10518 = vmatprep.mubr.bf16.mxu0 %v23524_v51  ;;  %v28726_v51 = vld [vmem:[#allocation11_spill] sm:$0xff] }
 0x8ed   :  { %10519 = vmatmul.mubr.bf16.gmra.mrb[68].mxu0 %v28720_v0 }
 0x8ee   :  { %10526 = vmatprep.mubr.bf16.mxu0 %v23547_v32  ;;  %v28727_v32 = vld [vmem:[#allocation32_spill] sm:$0xff] }
 0x8f5   :  { %10527 = vmatmul.mubr.bf16.gmra.mrb[72].mxu0 %v28721_v28 }
 0x8f6   :  { %10534 = vmatprep.mubr.bf16.mxu0 %v28722_v60  ;;  %v28728_v60 = vld [vmem:[#allocation135_spill] sm:$0xff] }
 0x8fd   :  { %10535 = vmatmul.mubr.bf16.gmra.mrb[76].mxu0 %v28723_v2 }
 0x8fe   :  { %10575 = vmatprep.mubr.bf16.mxu0 %v28706_v40  ;;  %v28729_v40 = vld [vmem:[#allocation15_spill] sm:$0xff] }
 0x905   :  { %10576 = vmatmul.mubr.bf16.vlgmr.msra.gmra.mrb[8].mxu0 %v28724_v24 }
 0x906   :  { %10583 = vmatprep.mubr.bf16.mxu0 %v28707_v22  ;;  %v28730_v22 = vld [vmem:[#allocation89_spill] sm:$0xff] }
 0x90d   :  { %10584 = vmatmul.mubr.bf16.gmra.mrb[12].mxu0 %v28725_v57  ;;  %v28799_v57 = vld [vmem:[#allocation66_spill] sm:$0xff] }
 0x90e   :  { %10591 = vmatprep.mubr.bf16.mxu0 %v28708_v46  ;;  %v28731_v46 = vld [vmem:[#allocation92_spill] sm:$0xff] }
 0x915   :  { %10592 = vmatmul.mubr.bf16.gmra.mrb[16].mxu0 %v28726_v51  ;;  %v28795_v51 = vld [vmem:[#allocation53_spill] sm:$0xff] }
 0x916   :  { %10599 = vmatprep.mubr.bf16.mxu0 %v28709_v56  ;;  %v28732_v56 = vld [vmem:[#allocation113_spill] sm:$0xff] }
 0x91d   :  { %10600 = vmatmul.mubr.bf16.gmra.mrb[20].mxu0 %v28727_v32 }
 0x91e   :  { %10607 = vmatprep.mubr.bf16.mxu0 %v28710_v48  ;;  %v28733_v48 = vld [vmem:[#allocation121_spill] sm:$0xff] }
 0x925   :  { %10608 = vmatmul.mubr.bf16.gmra.mrb[24].mxu0 %v28728_v60 }
 0x926   :  { %10615 = vmatprep.mubr.bf16.mxu0 %v28711_v45 }
 0x92d   :  { %10616 = vmatmul.mubr.bf16.gmra.mrb[28].mxu0 %v28729_v40 }
 0x92e   :  { %10623 = vmatprep.mubr.bf16.mxu0 %v28712_v14 }
 0x935   :  { %10624 = vmatmul.mubr.bf16.gmra.mrb[32].mxu0 %v28730_v22 }
 0x936   :  { %10631 = vmatprep.mubr.bf16.mxu0 %v28713_v35  ;;  %v28734_v35 = vld [vmem:[#allocation126_spill] sm:$0xff] }
 0x93d   :  { %10632 = vmatmul.mubr.bf16.gmra.mrb[36].mxu0 %v28731_v46 }
 0x93e   :  { %10639 = vmatprep.mubr.bf16.mxu0 %v28714_v31 }
 0x945   :  { %10640 = vmatmul.mubr.bf16.gmra.mrb[40].mxu0 %v28732_v56 }
 0x946   :  { %10647 = vmatprep.mubr.bf16.mxu0 %v28715_v47 }
 0x94d   :  { %10648 = vmatmul.mubr.bf16.gmra.mrb[44].mxu0 %v23441_v44  ;;  %v28777_v44 = vld [vmem:[#allocation60_spill] sm:$0xff] }
 0x94e   :  { %10655 = vmatprep.mubr.bf16.mxu0 %v28716_v59 }
 0x955   :  { %10656 = vmatmul.mubr.bf16.gmra.mrb[48].mxu0 %v23472_v41 }
 0x956   :  { %10663 = vmatprep.mubr.bf16.mxu0 %v28717_v33  ;;  %v28742_v33 = vld [vmem:[#allocation22_spill] sm:$0xff] }
 0x95d   :  { %10664 = vmatmul.mubr.bf16.gmra.mrb[52].mxu0 %v28733_v48 }
 0x95e   :  { %10671 = vmatprep.mubr.bf16.mxu0 %v22849_v6  ;;  %v28735_v6 = vld [vmem:[#allocation10_spill] sm:$0xff] }
 0x965   :  { %10672 = vmatmul.mubr.bf16.gmra.mrb[56].mxu0 %v23533_v21 }
 0x966   :  { %10679 = vmatprep.mubr.bf16.mxu0 %v22874_v1  ;;  %v28736_v1 = vld [vmem:[#allocation17_spill] sm:$0xff] }
 0x96d   :  { %10680 = vmatmul.mubr.bf16.gmra.mrb[60].mxu0 %v28734_v35 }
 0x96e   :  { %10687 = vmatprep.mubr.bf16.mxu0 %v28719_v26  ;;  %v28740_v26 = vld [vmem:[#allocation101_spill] sm:$0xff] }
 0x975   :  { %10688 = vmatmul.mubr.bf16.gmra.mrb[136].mxu0 %v23911_v63 }
 0x976   :  { %10695 = vmatprep.mubr.bf16.mxu0 %v28296_v10 }
 0x97d   :  { %10696 = vmatmul.mubr.bf16.gmra.mrb[140].mxu0 %v28296_v10 }
 0x97e   :  { %10703 = vmatprep.mubr.bf16.mxu0 %v22961_v20  ;;  %v24148_v20 = vld [vmem:[%s27197_s8] ss:$0 sm:$0xff] }
 0x985   :  { %10704 = vmatmul.mubr.bf16.gmra.mrb[144].mxu0 %v23584_v58 }
 0x986   :  { %10711 = vmatprep.mubr.bf16.mxu0 %v22903_v3  ;;  %v28738_v3 = vld [vmem:[#allocation14_spill] sm:$0xff] }
 0x98d   :  { %10712 = vmatmul.mubr.bf16.gmra.mrb[148].mxu0 %v23592_v53 }
 0x98e   :  { %10719 = vmatprep.mubr.bf16.mxu0 %v22932_v52 }
 0x995   :  { %10720 = vmatmul.mubr.bf16.gmra.mrb[152].mxu0 %v23600_v19  ;;  %v28761_v19 = vld [vmem:[#allocation41_spill] sm:$0xff] }
 0x996   :  { %10727 = vmatprep.mubr.bf16.mxu0 %v22967_v29  ;;  %v28737_v29 = vld [vmem:[#allocation16_spill] sm:$0xff] }
 0x99d   :  { %10728 = vmatmul.mubr.bf16.gmra.mrb[156].mxu0 %v23608_v15 }
 0x99e   :  { %10735 = vmatprep.mubr.bf16.mxu0 %v22973_v18 }
 0x9a5   :  { %10736 = vmatmul.mubr.bf16.gmra.mrb[160].mxu0 %v23616_v8  ;;  %v28758_v8 = vld [vmem:[#allocation33_spill] sm:$0xff] }
 0x9a6   :  { %10743 = vmatprep.mubr.bf16.mxu0 %v23019_v13 }
 0x9ad   :  { %10744 = vmatmul.mubr.bf16.gmra.mrb[164].mxu0 %v23624_v4 }
 0x9ae   :  { %10751 = vmatprep.mubr.bf16.mxu0 %v23031_v49 }
 0x9b5   :  { %10752 = vmatmul.mubr.bf16.gmra.mrb[168].mxu0 %v28735_v6  ;;  %v28755_v6 = vld [vmem:[#allocation50_spill] sm:$0xff] }
 0x9b6   :  { %10759 = vmatprep.mubr.bf16.mxu0 %v23047_v62  ;;  %v28739_v62 = vld [vmem:[#allocation21_spill] sm:$0xff] }
 0x9bd   :  { %10760 = vmatmul.mubr.bf16.gmra.mrb[172].mxu0 %v28736_v1 }
 0x9be   :  { %10767 = vmatprep.mubr.bf16.mxu0 %v23053_v25 }
 0x9c5   :  { %10768 = vmatmul.mubr.bf16.gmra.mrb[176].mxu0 %v28737_v29  ;;  %v28753_v29 = vld [vmem:[#allocation46_spill] sm:$0xff] }
 0x9c6   :  { %10775 = vmatprep.mubr.bf16.mxu0 %v23065_v61 }
 0x9cd   :  { %10776 = vmatmul.mubr.bf16.gmra.mrb[180].mxu0 %v28738_v3 }
 0x9ce   :  { %10783 = vmatprep.mubr.bf16.mxu0 %v23123_v34 }
 0x9d5   :  { %10784 = vmatmul.mubr.bf16.gmra.mrb[184].mxu0 %v23672_v38  ;;  %v28751_v38 = vld [vmem:[#allocation84_spill] sm:$0xff] }
 0x9d6   :  { %10791 = vmatprep.mubr.bf16.mxu0 %v23137_v16  ;;  %v28741_v16 = vld [vmem:[#allocation117_spill] sm:$0xff] }
 0x9d8   :  { %v10577_v52 = vpop.f32.mrb[8].mxu0 }
 0x9d9   :  { %v18084_v18 = vadd.f32 %v24148_v20, %v10577_v52  ;;  %v10579_v13 = vpop.f32.mrb[9].mxu0 }
 0x9da   :  { %v10580_v49 = vpop.f32.mrb[10].mxu0 }
 0x9db   :  { %v24152_v25 = vadd.f32 %v18084_v18, %v28739_v62  ;;  %v18085_v61 = vadd.f32 %v24148_v20, %v10580_v49  ;;  %v10582_v34 = vpop.f32.mrb[11].mxu0  ;;  %v28743_v49 = vld [vmem:[#allocation125_spill] sm:$0xff] }
 0x9dd   :  { %v24156_v59 = vadd.f32 %v18085_v61, %v28740_v26  ;;  %10792 = vmatmul.mubr.bf16.gmra.mrb[188].mxu0 %v28741_v16  ;;  %v28744_v61 = vld [vmem:[#allocation28_spill] sm:$0xff] }
 0x9de   :  { %10799 = vmatprep.mubr.bf16.mxu0 %v28720_v0 }
 0x9e0   :  { %v10585_v31 = vpop.f32.mrb[12].mxu0 }
 0x9e1   :  { %v18086_v45 = vadd.f32 %v24148_v20, %v10585_v31  ;;  %v10587_v14 = vpop.f32.mrb[13].mxu0 }
 0x9e2   :  { %v10588_v47 = vpop.f32.mrb[14].mxu0  ;;  %v28745_v14 = vld [vmem:[#allocation25_spill] sm:$0xff] }
 0x9e3   :  { %v24162_v52 = vadd.f32 %v18086_v45, %v28742_v33  ;;  %v18087_v18 = vadd.f32 %v24148_v20, %v10588_v47  ;;  %v10590_v13 = vpop.f32.mrb[15].mxu0  ;;  %v28746_v47 = vld [vmem:[#allocation26_spill] sm:$0xff] }
 0x9e5   :  { %v24166_v62 = vadd.f32 %v18087_v18, %v28743_v49  ;;  %10800 = vmatmul.mubr.bf16.gmra.mrb[64].mxu0 %v28744_v61 }
 0x9e6   :  { %10807 = vmatprep.mubr.bf16.mxu0 %v28721_v28 }
 0x9e7   :  { %v17802_v53 = vpack.c.bf16 %v24166_v62, %v24162_v52 }
 0x9e8   :  { %v10593_v34 = vpop.f32.mrb[16].mxu0 }
 0x9e9   :  { %v18088_v0 = vadd.f32 %v24148_v20, %v10593_v34  ;;  %v10595_v26 = vpop.f32.mrb[17].mxu0 }
 0x9ea   :  { %v10596_v31 = vpop.f32.mrb[18].mxu0  ;;  %v28747_v26 = vld [vmem:[#allocation87_spill] sm:$0xff] }
 0x9eb   :  { %v24172_v63 = vadd.f32 %v18088_v0, %v28745_v14  ;;  %v18089_v45 = vadd.f32 %v24148_v20, %v10596_v31  ;;  %v10598_v33 = vpop.f32.mrb[19].mxu0  ;;  %v28748_v31 = vld [vmem:[#allocation115_spill] sm:$0xff] }
 0x9ed   :  { %v24176_v13 = vadd.f32 %v18089_v45, %v28746_v47  ;;  %10808 = vmatmul.mubr.bf16.gmra.mrb[68].mxu0 %v23720_v23 }
 0x9ee   :  { %10815 = vmatprep.mubr.bf16.mxu0 %v28723_v2 }
 0x9ef   :  { %v17806_v35 = vpack.c.bf16 %v24176_v13, %v24172_v63 }
 0x9f0   :  { %v10601_v18 = vpop.f32.mrb[20].mxu0 }
 0x9f1   :  { %v18090_v28 = vadd.f32 %v24148_v20, %v10601_v18  ;;  %v10603_v49 = vpop.f32.mrb[21].mxu0 }
 0x9f2   :  { %v10604_v34 = vpop.f32.mrb[22].mxu0  ;;  %v28749_v49 = vld [vmem:[#allocation94_spill] sm:$0xff] }
 0x9f3   :  { %v24182_v61 = vadd.f32 %v18090_v28, %v28747_v26  ;;  %v18091_v0 = vadd.f32 %v24148_v20, %v10604_v34  ;;  %v10606_v14 = vpop.f32.mrb[23].mxu0  ;;  %v28750_v34 = vld [vmem:[#allocation38_spill] sm:$0xff] }
 0x9f5   :  { %v24186_v33 = vadd.f32 %v18091_v0, %v28748_v31  ;;  %10816 = vmatmul.mubr.bf16.gmra.mrb[72].mxu0 %v23959_v17 }
 0x9f6   :  { %10823 = vmatprep.mubr.bf16.mxu0 %v28296_v10 }
 0x9f7   :  { %v17810_v48 = vpack.c.bf16 %v24186_v33, %v24182_v61 }
 0x9f8   :  { %v10609_v45 = vpop.f32.mrb[24].mxu0 }
 0x9f9   :  { %v18092_v2 = vadd.f32 %v24148_v20, %v10609_v45  ;;  %v10611_v47 = vpop.f32.mrb[25].mxu0 }
 0x9fa   :  { %v10612_v18 = vpop.f32.mrb[26].mxu0 }
 0x9fb   :  { %v24192_v23 = vadd.f32 %v18092_v2, %v28749_v49  ;;  %v18093_v28 = vadd.f32 %v24148_v20, %v10612_v18  ;;  %v10614_v26 = vpop.f32.mrb[27].mxu0  ;;  %v28752_v49 = vld [vmem:[#allocation24_spill] sm:$0xff] }
 0x9fd   :  { %v24196_v14 = vadd.f32 %v18093_v28, %v28750_v34  ;;  %10824 = vmatmul.mubr.bf16.gmra.mrb[76].mxu0 %v28296_v10 }
 0x9ff   :  { %v17814_v41 = vpack.c.bf16 %v24196_v14, %v24192_v23 }
 0xa00   :  { %v10617_v0 = vpop.f32.mrb[28].mxu0 }
 0xa01   :  { %v18094_v31 = vadd.f32 %v24148_v20, %v10617_v0  ;;  %v10619_v17 = vpop.f32.mrb[29].mxu0 }
 0xa02   :  { %v10620_v16 = vpop.f32.mrb[30].mxu0 }
 0xa03   :  { %v24201_v45 = vadd.f32 %v18094_v31, %v28751_v38  ;;  %v18095_v47 = vadd.f32 %v24148_v20, %v10620_v16  ;;  %v10622_v2 = vpop.f32.mrb[31].mxu0 }
 0xa05   :  { %v24205_v3 = vadd.f32 %v18095_v47, %v28752_v49  ;;  %v28756_v49 = vld [vmem:[#allocation43_spill] sm:$0xff] }
 0xa07   :  { %v17818_v30 = vpack.c.bf16 %v24205_v3, %v24201_v45 }
 0xa08   :  { %v10625_v18 = vpop.f32.mrb[32].mxu0 }
 0xa09   :  { %v18096_v28 = vadd.f32 %v24148_v20, %v10625_v18  ;;  %v10627_v26 = vpop.f32.mrb[33].mxu0 }
 0xa0a   :  { %v10628_v34 = vpop.f32.mrb[34].mxu0 }
 0xa0b   :  { %v24209_v1 = vadd.f32 %v18096_v28, %v28753_v29  ;;  %v18097_v17 = vadd.f32 %v24148_v20, %v10628_v34  ;;  %v10630_v0 = vpop.f32.mrb[35].mxu0 }
 0xa0d   :  { %28754 = vst [vmem:[#allocation118_spill] sm:$0xff] %v24209_v1  ;;  %v24213_v38 = vadd.f32 %v18097_v17, %v28755_v6  ;;  %v28760_v17 = vld [vmem:[#allocation56_spill] sm:$0xff] }
 0xa10   :  { %v10633_v31 = vpop.f32.mrb[36].mxu0 }
 0xa11   :  { %v18098_v16 = vadd.f32 %v24148_v20, %v10633_v31  ;;  %v10635_v2 = vpop.f32.mrb[37].mxu0 }
 0xa12   :  { %v10636_v47 = vpop.f32.mrb[38].mxu0 }
 0xa13   :  { %v24217_v4 = vadd.f32 %v18098_v16, %v28756_v49  ;;  %v18099_v18 = vadd.f32 %v24148_v20, %v10636_v47  ;;  %v10638_v26 = vpop.f32.mrb[39].mxu0 }
 0xa15   :  { %28757 = vst [vmem:[#allocation129_spill] sm:$0xff] %v24217_v4  ;;  %v24221_v29 = vadd.f32 %v18099_v18, %v28758_v8  ;;  %v17798_v8 = vpack.c.bf16 %v24156_v59, %v24152_v25 }
 0xa17   :  { %28759 = vst [vmem:[#allocation130_spill] sm:$0xff] %v24221_v29  ;;  %v17826_v36 = vpack.c.bf16 %v24221_v29, %v24217_v4  ;;  %v28807_v4 = vld [vmem:[#allocation136_spill] sm:$0xff] }
 0xa18   :  { %v10641_v28 = vpop.f32.mrb[40].mxu0 }
 0xa19   :  { %v18100_v34 = vadd.f32 %v24148_v20, %v10641_v28  ;;  %v10643_v0 = vpop.f32.mrb[41].mxu0 }
 0xa1a   :  { %v10644_v6 = vpop.f32.mrb[42].mxu0 }
 0xa1b   :  { %v24225_v15 = vadd.f32 %v18100_v34, %v28760_v17  ;;  %v18101_v31 = vadd.f32 %v24148_v20, %v10644_v6  ;;  %v10646_v2 = vpop.f32.mrb[43].mxu0  ;;  %v28762_v34 = vld [vmem:[#allocation35_spill] sm:$0xff]  ;;  %v28763_v17 = vld [vmem:[#allocation58_spill] sm:$0xff] }
 0xa1d   :  { %v24229_v16 = vadd.f32 %v18101_v31, %v28761_v19 }
 0xa1f   :  { %v17796_v47 = vpack.c.bf16 %v24229_v16, %v24225_v15 }
 0xa20   :  { %v10649_v49 = vpop.f32.mrb[44].mxu0 }
 0xa21   :  { %v18102_v18 = vadd.f32 %v24148_v20, %v10649_v49  ;;  %v10651_v26 = vpop.f32.mrb[45].mxu0  ;;  %17797 = vmatprep.subr.bf16.mxu1 %v17796_v47 }
 0xa22   :  { %v10652_v28 = vpop.f32.mrb[46].mxu0  ;;  %17799 = vmatpush3.bf16.msra.mxu1 %v17798_v8 }
 0xa23   :  { %v24237_v0 = vadd.f32 %v18102_v18, %v28762_v34  ;;  %v18103_v6 = vadd.f32 %v24148_v20, %v10652_v28  ;;  %v10654_v19 = vpop.f32.mrb[47].mxu0  ;;  %v28764_v18 = vld [vmem:[#allocation64_spill] sm:$0xff] }
 0xa24   :  { %v28765_v19 = vld [vmem:[#allocation67_spill] sm:$0xff] }
 0xa25   :  { %v24241_v31 = vadd.f32 %v18103_v6, %v28763_v17 }
 0xa27   :  { %v17800_v2 = vpack.c.bf16 %v24241_v31, %v24237_v0 }
 0xa28   :  { %v10657_v49 = vpop.f32.mrb[48].mxu0 }
 0xa29   :  { %v18104_v47 = vadd.f32 %v24148_v20, %v10657_v49  ;;  %v10659_v26 = vpop.f32.mrb[49].mxu0  ;;  %17801 = vmatprep.subr.bf16.mxu1 %v17800_v2 }
 0xa2a   :  { %v10660_v8 = vpop.f32.mrb[50].mxu0  ;;  %17803 = vmatpush3.bf16.msra.mxu1 %v17802_v53 }
 0xa2b   :  { %v24249_v34 = vadd.f32 %v18104_v47, %v28764_v18  ;;  %v18105_v28 = vadd.f32 %v24148_v20, %v10660_v8  ;;  %v10662_v6 = vpop.f32.mrb[51].mxu0  ;;  %v28766_v47 = vld [vmem:[#allocation62_spill] sm:$0xff] }
 0xa2c   :  { %v28767_v6 = vld [vmem:[#allocation44_spill] sm:$0xff] }
 0xa2d   :  { %v24253_v17 = vadd.f32 %v18105_v28, %v28765_v19 }
 0xa2f   :  { %v17804_v58 = vpack.c.bf16 %v24253_v17, %v24249_v34 }
 0xa30   :  { %v10665_v49 = vpop.f32.mrb[52].mxu0 }
 0xa31   :  { %v18106_v2 = vadd.f32 %v24148_v20, %v10665_v49  ;;  %v10667_v26 = vpop.f32.mrb[53].mxu0  ;;  %17805 = vmatprep.subr.bf16.mxu1 %v17804_v58 }
 0xa32   :  { %v10668_v53 = vpop.f32.mrb[54].mxu0  ;;  %17807 = vmatpush3.bf16.msra.mxu1 %v17806_v35 }
 0xa33   :  { %v24261_v18 = vadd.f32 %v18106_v2, %v28766_v47  ;;  %v18107_v8 = vadd.f32 %v24148_v20, %v10668_v53  ;;  %v10670_v28 = vpop.f32.mrb[55].mxu0  ;;  %v28768_v2 = vld [vmem:[#allocation71_spill] sm:$0xff] }
 0xa34   :  { %v28770_v28 = vld [vmem:[#allocation51_spill] sm:$0xff] }
 0xa35   :  { %v24265_v19 = vadd.f32 %v18107_v8, %v28767_v6 }
 0xa37   :  { %v17808_v21 = vpack.c.bf16 %v24265_v19, %v24261_v18 }
 0xa38   :  { %v10673_v49 = vpop.f32.mrb[56].mxu0 }
 0xa39   :  { %v18108_v58 = vadd.f32 %v24148_v20, %v10673_v49  ;;  %v10675_v26 = vpop.f32.mrb[57].mxu0  ;;  %17809 = vmatprep.subr.bf16.mxu1 %v17808_v21 }
 0xa3a   :  { %v10676_v35 = vpop.f32.mrb[58].mxu0  ;;  %17811 = vmatpush3.bf16.msra.mxu1 %v17810_v48 }
 0xa3b   :  { %v24273_v47 = vadd.f32 %v18108_v58, %v28768_v2  ;;  %v18109_v53 = vadd.f32 %v24148_v20, %v10676_v35  ;;  %v10678_v8 = vpop.f32.mrb[59].mxu0  ;;  %v28771_v58 = vld [vmem:[#allocation48_spill] sm:$0xff] }
 0xa3c   :  { %v28773_v8 = vld [vmem:[#allocation72_spill] sm:$0xff] }
 0xa3d   :  { %28769 = vst [vmem:[#allocation102_spill] sm:$0xff] %v24273_v47  ;;  %v24277_v6 = vadd.f32 %v18109_v53, %v28770_v28 }
 0xa3f   :  { %v17812_v55 = vpack.c.bf16 %v24277_v6, %v24273_v47 }
 0xa40   :  { %v10681_v49 = vpop.f32.mrb[60].mxu0 }
 0xa41   :  { %v18110_v21 = vadd.f32 %v24148_v20, %v10681_v49  ;;  %v10683_v26 = vpop.f32.mrb[61].mxu0  ;;  %17813 = vmatprep.subr.bf16.mxu1 %v17812_v55 }
 0xa42   :  { %v10684_v48 = vpop.f32.mrb[62].mxu0  ;;  %17815 = vmatpush3.bf16.msra.mxu1 %v17814_v41  ;;  %v24296_v41 = vpop.f32.mrb[188].mxu1 }
 0xa43   :  { %v24285_v2 = vadd.f32 %v18110_v21, %v28771_v58  ;;  %v18111_v35 = vadd.f32 %v24148_v20, %v10684_v48  ;;  %v10686_v53 = vpop.f32.mrb[63].mxu0  ;;  %v28775_v48 = vld [vmem:[#allocation57_spill] sm:$0xff] }
 0xa45   :  { %28772 = vst [vmem:[#allocation103_spill] sm:$0xff] %v24285_v2  ;;  %v24289_v28 = vadd.f32 %v18111_v35, %v28773_v8  ;;  %v24302_v8 = vpop.f32.mrb[189].mxu1 }
 0xa46   :  { %v24307_v43 = vpop.f32.mrb[190].mxu1 }
 0xa47   :  { %28774 = vst [vmem:[#allocation104_spill] sm:$0xff] %v24289_v28  ;;  %v17816_v27 = vpack.c.bf16 %v24289_v28, %v24285_v2 }
 0xa48   :  { %v10689_v49 = vpop.f32.mrb[136].mxu0 }
 0xa49   :  { %v18112_v55 = vadd.f32 %v24148_v20, %v10689_v49  ;;  %v10691_v26 = vpop.f32.mrb[137].mxu0  ;;  %17817 = vmatprep.subr.bf16.mxu1 %v17816_v27  ;;  %v24309_v49 = vpop.f32.mrb[191].mxu1 }
 0xa4a   :  { %v10692_v21 = vpop.f32.mrb[138].mxu0  ;;  %17819 = vmatpush3.bf16.msra.mxu1 %v17818_v30  ;;  %v17822_v30 = vpack.c.bf16 %v24213_v38, %v24209_v1 }
 0xa4b   :  { %v24299_v58 = vadd.f32 %v18112_v55, %v28775_v48  ;;  %v18113_v35 = vadd.f32 %v24148_v20, %v10692_v21  ;;  %v10694_v53 = vpop.f32.mrb[139].mxu0 }
 0xa4c   :  { %v28779_v53 = vld [vmem:[#allocation74_spill] sm:$0xff] }
 0xa4d   :  { %28776 = vst [vmem:[#allocation105_spill] sm:$0xff] %v24299_v58  ;;  %v24305_v42 = vadd.f32 %v18113_v35, %v28777_v44 }
 0xa4f   :  { %28778 = vst [vmem:[#allocation133_spill] sm:$0xff] %v24305_v42  ;;  %v17820_v27 = vpack.c.bf16 %v24305_v42, %v24299_v58 }
 0xa50   :  { %v10697_v55 = vpop.f32.mrb[140].mxu0 }
 0xa51   :  { %v18114_v26 = vadd.f32 %v24148_v20, %v10697_v55  ;;  %v10699_v21 = vpop.f32.mrb[141].mxu0  ;;  %17821 = vmatprep.subr.bf16.mxu1 %v17820_v27 }
 0xa52   :  { %v10700_v48 = vpop.f32.mrb[142].mxu0  ;;  %17823 = vmatpush3.bf16.msra.mxu1 %v17822_v30 }
 0xa53   :  { %v24317_v44 = vadd.f32 %v18114_v26, %v28779_v53  ;;  %v18115_v35 = vadd.f32 %v24148_v20, %v10700_v48  ;;  %v10702_v56 = vpop.f32.mrb[143].mxu0  ;;  %v28783_v26 = vld [vmem:[#allocation36_spill] sm:$0xff]  ;;  %v28785_v48 = vld [vmem:[#allocation42_spill] sm:$0xff] }
 0xa55   :  { %28780 = vst [vmem:[#allocation109_spill] sm:$0xff] %v24317_v44  ;;  %v24321_v11 = vadd.f32 %v18115_v35, %v28781_v9 }
 0xa57   :  { %28782 = vst [vmem:[#allocation111_spill] sm:$0xff] %v24321_v11  ;;  %v17824_v46 = vpack.c.bf16 %v24321_v11, %v24317_v44  ;;  %v28811_v44 = vld [vmem:[#allocation75_spill] sm:$0xff]  ;;  %v28815_v11 = vld [vmem:[#allocation140_spill] sm:$0xff] }
 0xa58   :  { %v10705_v55 = vpop.f32.mrb[144].mxu0 }
 0xa59   :  { %v18116_v27 = vadd.f32 %v24148_v20, %v10705_v55  ;;  %v10707_v21 = vpop.f32.mrb[145].mxu0  ;;  %17825 = vmatprep.subr.bf16.mxu1 %v17824_v46 }
 0xa5a   :  { %v10708_v30 = vpop.f32.mrb[146].mxu0  ;;  %17827 = vmatpush3.bf16.msra.mxu1 %v17826_v36 }
 0xa5b   :  { %v24329_v53 = vadd.f32 %v18116_v27, %v28783_v26  ;;  %v18117_v56 = vadd.f32 %v24148_v20, %v10708_v30  ;;  %v10710_v9 = vpop.f32.mrb[147].mxu0  ;;  %v28789_v30 = vld [vmem:[#allocation39_spill] sm:$0xff] }
 0xa5d   :  { %28784 = vst [vmem:[#allocation112_spill] sm:$0xff] %v24329_v53  ;;  %v24333_v35 = vadd.f32 %v18117_v56, %v28785_v48  ;;  %11186 = vmatmul.mubr.f32.vlgmr.msra.gmra.mrb[192].mxu1 %v28786_v54 }
 0xa5e   :  { %11255 = vmatprep.mubr.f32.mxu1 %v28786_v54 }
 0xa60   :  { %v10713_v22 = vpop.f32.mrb[148].mxu0 }
 0xa61   :  { %v18118_v55 = vadd.f32 %v24148_v20, %v10713_v22  ;;  %v10715_v21 = vpop.f32.mrb[149].mxu0 }
 0xa62   :  { %v10716_v46 = vpop.f32.mrb[150].mxu0 }
 0xa63   :  { %v24339_v36 = vadd.f32 %v18118_v55, %v28787_v39  ;;  %v18119_v27 = vadd.f32 %v24148_v20, %v10716_v46  ;;  %v10718_v26 = vpop.f32.mrb[151].mxu0 }
 0xa65   :  { %28788 = vst [vmem:[#allocation123_spill] sm:$0xff] %v24339_v36  ;;  %v24343_v9 = vadd.f32 %v18119_v27, %v28789_v30  ;;  %v28793_v30 = vld [vmem:[#allocation47_spill] sm:$0xff] }
 0xa68   :  { %v10721_v56 = vpop.f32.mrb[152].mxu0 }
 0xa69   :  { %v18120_v48 = vadd.f32 %v24148_v20, %v10721_v56  ;;  %v10723_v40 = vpop.f32.mrb[153].mxu0 }
 0xa6a   :  { %v10724_v37 = vpop.f32.mrb[154].mxu0 }
 0xa6b   :  { %v24347_v60 = vadd.f32 %v18120_v48, %v28790_v5  ;;  %v18121_v22 = vadd.f32 %v24148_v20, %v10724_v37  ;;  %v10726_v21 = vpop.f32.mrb[155].mxu0 }
 0xa6d   :  { %28791 = vst [vmem:[#allocation127_spill] sm:$0xff] %v24347_v60  ;;  %v24351_v39 = vadd.f32 %v18121_v22, %v28792_v12  ;;  %v28797_v22 = vld [vmem:[#allocation61_spill] sm:$0xff] }
 0xa70   :  { %v10729_v55 = vpop.f32.mrb[156].mxu0 }
 0xa71   :  { %v18122_v46 = vadd.f32 %v24148_v20, %v10729_v55  ;;  %v10731_v26 = vpop.f32.mrb[157].mxu0 }
 0xa72   :  { %v10732_v27 = vpop.f32.mrb[158].mxu0 }
 0xa73   :  { %v24355_v32 = vadd.f32 %v18122_v46, %v28793_v30  ;;  %v18123_v40 = vadd.f32 %v24148_v20, %v10732_v27  ;;  %v10734_v56 = vpop.f32.mrb[159].mxu0 }
 0xa75   :  { %28794 = vst [vmem:[#allocation20_spill] sm:$0xff] %v24355_v32  ;;  %v24359_v5 = vadd.f32 %v18123_v40, %v28795_v51  ;;  %v28801_v40 = vld [vmem:[#allocation59_spill] sm:$0xff] }
 0xa77   :  { %28796 = vst [vmem:[#allocation13_spill] sm:$0xff] %v24359_v5 }
 0xa78   :  { %v10737_v48 = vpop.f32.mrb[160].mxu0 }
 0xa79   :  { %v18124_v37 = vadd.f32 %v24148_v20, %v10737_v48  ;;  %v10739_v21 = vpop.f32.mrb[161].mxu0 }
 0xa7a   :  { %v10740_v12 = vpop.f32.mrb[162].mxu0 }
 0xa7b   :  { %v24363_v50 = vadd.f32 %v18124_v37, %v28797_v22  ;;  %v18125_v55 = vadd.f32 %v24148_v20, %v10740_v12  ;;  %v10742_v26 = vpop.f32.mrb[163].mxu0 }
 0xa7d   :  { %28798 = vst [vmem:[#allocation18_spill] sm:$0xff] %v24363_v50  ;;  %v24367_v46 = vadd.f32 %v18125_v55, %v28799_v57  ;;  %v28805_v55 = vld [vmem:[#allocation70_spill] sm:$0xff] }
 0xa7f   :  { %28800 = vst [vmem:[#allocation116_spill] sm:$0xff] %v24367_v46 }
 0xa80   :  { %v10745_v30 = vpop.f32.mrb[164].mxu0 }
 0xa81   :  { %v18126_v27 = vadd.f32 %v24148_v20, %v10745_v30  ;;  %v10747_v56 = vpop.f32.mrb[165].mxu0 }
 0xa82   :  { %v10748_v51 = vpop.f32.mrb[166].mxu0 }
 0xa83   :  { %v24371_v24 = vadd.f32 %v18126_v27, %v28801_v40  ;;  %v18127_v48 = vadd.f32 %v24148_v20, %v10748_v51  ;;  %v10750_v21 = vpop.f32.mrb[167].mxu0 }
 0xa85   :  { %28802 = vst [vmem:[#allocation34_spill] sm:$0xff] %v24371_v24  ;;  %v24375_v37 = vadd.f32 %v18127_v48, %v28803_v7  ;;  %v28809_v48 = vld [vmem:[#allocation69_spill] sm:$0xff] }
 0xa87   :  { %28804 = vst [vmem:[#allocation21_spill] sm:$0xff] %v24375_v37 }
 0xa88   :  { %v10753_v22 = vpop.f32.mrb[168].mxu0 }
 0xa89   :  { %v18128_v12 = vadd.f32 %v24148_v20, %v10753_v22  ;;  %v10755_v26 = vpop.f32.mrb[169].mxu0 }
 0xa8a   :  { %v10756_v57 = vpop.f32.mrb[170].mxu0 }
 0xa8b   :  { %v24379_v10 = vadd.f32 %v18128_v12, %v28805_v55  ;;  %v18129_v30 = vadd.f32 %v24148_v20, %v10756_v57  ;;  %v10758_v56 = vpop.f32.mrb[171].mxu0 }
 0xa8d   :  { %28806 = vst [vmem:[#allocation101_spill] sm:$0xff] %v24379_v10  ;;  %v24383_v27 = vadd.f32 %v18129_v30, %v28807_v4  ;;  %v28813_v30 = vld [vmem:[#allocation138_spill] sm:$0xff] }
 0xa8f   :  { %28808 = vst [vmem:[#allocation22_spill] sm:$0xff] %v24383_v27 }
 0xa90   :  { %v10761_v40 = vpop.f32.mrb[172].mxu0 }
 0xa91   :  { %v18130_v51 = vadd.f32 %v24148_v20, %v10761_v40  ;;  %v10763_v21 = vpop.f32.mrb[173].mxu0 }
 0xa92   :  { %v10764_v7 = vpop.f32.mrb[174].mxu0 }
 0xa93   :  { %v24387_v29 = vadd.f32 %v18130_v51, %v28809_v48  ;;  %v18131_v22 = vadd.f32 %v24148_v20, %v10764_v7  ;;  %v10766_v26 = vpop.f32.mrb[175].mxu0 }
 0xa95   :  { %28810 = vst [vmem:[#allocation125_spill] sm:$0xff] %v24387_v29  ;;  %v24391_v12 = vadd.f32 %v18131_v22, %v28811_v44  ;;  %v17830_v44 = vpack.c.bf16 %v24333_v35, %v24329_v53  ;;  %v17834_v53 = vpack.c.bf16 %v24343_v9, %v24339_v36  ;;  %v17838_v36 = vpack.c.bf16 %v24351_v39, %v24347_v60 }
 0xa96   :  { %v17842_v60 = vpack.c.bf16 %v24359_v5, %v24355_v32  ;;  %v17846_v32 = vpack.c.bf16 %v24367_v46, %v24363_v50  ;;  %v17850_v50 = vpack.c.bf16 %v24375_v37, %v24371_v24 }
 0xa97   :  { %28812 = vst [vmem:[#allocation25_spill] sm:$0xff] %v24391_v12 }
 0xa98   :  { %v10769_v55 = vpop.f32.mrb[176].mxu0 }
 0xa99   :  { %v18132_v57 = vadd.f32 %v24148_v20, %v10769_v55  ;;  %v10771_v56 = vpop.f32.mrb[177].mxu0 }
 0xa9a   :  { %v10772_v4 = vpop.f32.mrb[178].mxu0 }
 0xa9b   :  { %v24395_v1 = vadd.f32 %v18132_v57, %v28813_v30  ;;  %v18133_v40 = vadd.f32 %v24148_v20, %v10772_v4  ;;  %v10774_v21 = vpop.f32.mrb[179].mxu0  ;;  %v28817_v57 = vld [vmem:[#allocation137_spill] sm:$0xff]  ;;  %v28819_v30 = vld [vmem:[#allocation139_spill] sm:$0xff] }
 0xa9d   :  { %28814 = vst [vmem:[#allocation26_spill] sm:$0xff] %v24395_v1  ;;  %v24399_v51 = vadd.f32 %v18133_v40, %v28815_v11 }
 0xa9f   :  { %28816 = vst [vmem:[#allocation87_spill] sm:$0xff] %v24399_v51  ;;  %v17828_v7 = vpack.c.bf16 %v24399_v51, %v24395_v1 }
 0xaa0   :  { %v10777_v48 = vpop.f32.mrb[180].mxu0 }
 0xaa1   :  { %v18134_v22 = vadd.f32 %v24148_v20, %v10777_v48  ;;  %v10779_v26 = vpop.f32.mrb[181].mxu0  ;;  %17829 = vmatprep.subr.bf16.mxu1 %v17828_v7 }
 0xaa2   :  { %v10780_v55 = vpop.f32.mrb[182].mxu0  ;;  %17831 = vmatpush3.bf16.msra.mxu1 %v17830_v44 }
 0xaa3   :  { %v24407_v56 = vadd.f32 %v18134_v22, %v28817_v57  ;;  %v18135_v4 = vadd.f32 %v24148_v20, %v10780_v55  ;;  %v10782_v11 = vpop.f32.mrb[183].mxu0  ;;  %v28821_v22 = vld [vmem:[#allocation142_spill] sm:$0xff] }
 0xaa4   :  { %v28823_v11 = vld [vmem:[#allocation144_spill] sm:$0xff] }
 0xaa5   :  { %28818 = vst [vmem:[#allocation115_spill] sm:$0xff] %v24407_v56  ;;  %v24411_v40 = vadd.f32 %v18135_v4, %v28819_v30 }
 0xaa7   :  { %28820 = vst [vmem:[#allocation94_spill] sm:$0xff] %v24411_v40  ;;  %v17832_v21 = vpack.c.bf16 %v24411_v40, %v24407_v56 }
 0xaa8   :  { %v10785_v48 = vpop.f32.mrb[184].mxu0 }
 0xaa9   :  { %v18136_v7 = vadd.f32 %v24148_v20, %v10785_v48  ;;  %v10787_v26 = vpop.f32.mrb[185].mxu0  ;;  %17833 = vmatprep.subr.bf16.mxu1 %v17832_v21 }
 0xaaa   :  { %v10788_v44 = vpop.f32.mrb[186].mxu0  ;;  %17835 = vmatpush3.bf16.msra.mxu1 %v17834_v53 }
 0xaab   :  { %v24419_v57 = vadd.f32 %v18136_v7, %v28821_v22  ;;  %v18137_v55 = vadd.f32 %v24148_v20, %v10788_v44  ;;  %v10790_v4 = vpop.f32.mrb[187].mxu0  ;;  %v28825_v7 = vld [vmem:[#allocation141_spill] sm:$0xff] }
 0xaac   :  { %v28827_v4 = vld [vmem:[#allocation143_spill] sm:$0xff] }
 0xaad   :  { %28822 = vst [vmem:[#allocation38_spill] sm:$0xff] %v24419_v57  ;;  %v24423_v30 = vadd.f32 %v18137_v55, %v28823_v11 }
 0xaaf   :  { %28824 = vst [vmem:[#allocation84_spill] sm:$0xff] %v24423_v30  ;;  %v17836_v56 = vpack.c.bf16 %v24423_v30, %v24419_v57 }
 0xab0   :  { %v10793_v48 = vpop.f32.mrb[188].mxu0 }
 0xab1   :  { %v18138_v21 = vadd.f32 %v24148_v20, %v10793_v48  ;;  %v10795_v26 = vpop.f32.mrb[189].mxu0  ;;  %17837 = vmatprep.subr.bf16.mxu1 %v17836_v56 }
 0xab2   :  { %v10796_v53 = vpop.f32.mrb[190].mxu0  ;;  %17839 = vmatpush3.bf16.msra.mxu1 %v17838_v36 }
 0xab3   :  { %v24431_v22 = vadd.f32 %v18138_v21, %v28825_v7  ;;  %v18139_v44 = vadd.f32 %v24148_v20, %v10796_v53  ;;  %v10798_v55 = vpop.f32.mrb[191].mxu0  ;;  %v28829_v21 = vld [vmem:[#allocation146_spill] sm:$0xff] }
 0xab4   :  { %v28831_v55 = vld [vmem:[#allocation148_spill] sm:$0xff] }
 0xab5   :  { %28826 = vst [vmem:[#allocation24_spill] sm:$0xff] %v24431_v22  ;;  %v24435_v11 = vadd.f32 %v18139_v44, %v28827_v4 }
 0xab7   :  { %28828 = vst [vmem:[#allocation46_spill] sm:$0xff] %v24435_v11  ;;  %v17840_v57 = vpack.c.bf16 %v24435_v11, %v24431_v22 }
 0xab8   :  { %v10801_v48 = vpop.f32.mrb[64].mxu0 }
 0xab9   :  { %v18140_v56 = vadd.f32 %v24148_v20, %v10801_v48  ;;  %v10803_v26 = vpop.f32.mrb[65].mxu0  ;;  %17841 = vmatprep.subr.bf16.mxu1 %v17840_v57 }
 0xaba   :  { %v10804_v36 = vpop.f32.mrb[66].mxu0  ;;  %17843 = vmatpush3.bf16.msra.mxu1 %v17842_v60 }
 0xabb   :  { %v24443_v7 = vadd.f32 %v18140_v56, %v28829_v21  ;;  %v18141_v53 = vadd.f32 %v24148_v20, %v10804_v36  ;;  %v10806_v44 = vpop.f32.mrb[67].mxu0  ;;  %v28833_v56 = vld [vmem:[#allocation145_spill] sm:$0xff] }
 0xabc   :  { %v28834_v44 = vld [vmem:[#allocation147_spill] sm:$0xff] }
 0xabd   :  { %28830 = vst [vmem:[#allocation50_spill] sm:$0xff] %v24443_v7  ;;  %v24447_v4 = vadd.f32 %v18141_v53, %v28831_v55 }
 0xabf   :  { %28832 = vst [vmem:[#allocation43_spill] sm:$0xff] %v24447_v4  ;;  %v17844_v22 = vpack.c.bf16 %v24447_v4, %v24443_v7 }
 0xac0   :  { %v10809_v48 = vpop.f32.mrb[68].mxu0 }
 0xac1   :  { %v18142_v57 = vadd.f32 %v24148_v20, %v10809_v48  ;;  %v10811_v26 = vpop.f32.mrb[69].mxu0  ;;  %17845 = vmatprep.subr.bf16.mxu1 %v17844_v22 }
 0xac2   :  { %v10812_v60 = vpop.f32.mrb[70].mxu0  ;;  %17847 = vmatpush3.bf16.msra.mxu1 %v17846_v32 }
 0xac3   :  { %v24455_v21 = vadd.f32 %v18142_v57, %v28833_v56  ;;  %v18143_v36 = vadd.f32 %v24148_v20, %v10812_v60  ;;  %v10814_v53 = vpop.f32.mrb[71].mxu0 }
 0xac5   :  { %v24459_v55 = vadd.f32 %v18143_v36, %v28834_v44  ;;  %v17854_v44 = vpack.c.bf16 %v24383_v27, %v24379_v10 }
 0xac7   :  { %v17848_v7 = vpack.c.bf16 %v24459_v55, %v24455_v21 }
 0xac8   :  { %v10817_v48 = vpop.f32.mrb[72].mxu0 }
 0xac9   :  { %v18144_v22 = vadd.f32 %v24148_v20, %v10817_v48  ;;  %v10819_v26 = vpop.f32.mrb[73].mxu0  ;;  %17849 = vmatprep.subr.bf16.mxu1 %v17848_v7 }
 0xaca   :  { %v10820_v32 = vpop.f32.mrb[74].mxu0  ;;  %17851 = vmatpush3.bf16.msra.mxu1 %v17850_v50 }
 0xacb   :  { %v18145_v57 = vadd.f32 %v24148_v20, %v10820_v32  ;;  %v24468_v60 = vadd.f32 %v18144_v22, %v24302_v8  ;;  %v10822_v56 = vpop.f32.mrb[75].mxu0 }
 0xacd   :  { %v24471_v36 = vadd.f32 %v18145_v57, %v24309_v49  ;;  %v11278_v57 = vmul.f32 %v24229_v16, %v24229_v16 }
 0xacf   :  { %v17852_v53 = vpack.c.bf16 %v24471_v36, %v24468_v60 }
 0xad0   :  { %v10825_v48 = vpop.f32.mrb[76].mxu0 }
 0xad1   :  { %v18146_v7 = vadd.f32 %v24148_v20, %v10825_v48  ;;  %v10827_v26 = vpop.f32.mrb[77].mxu0  ;;  %17853 = vmatprep.subr.bf16.mxu1 %v17852_v53  ;;  %v11277_v53 = vmul.f32 %v24225_v15, %v24225_v15  ;;  %v11261_v48 = vmul.f32 %v24152_v25, %v24152_v25 }
 0xad2   :  { %v10828_v50 = vpop.f32.mrb[78].mxu0  ;;  %17855 = vmatpush3.bf16.msra.mxu1 %v17854_v44  ;;  %v11262_v44 = vmul.f32 %v24156_v59, %v24156_v59  ;;  %v11264_v26 = vmul.f32 %v24166_v62, %v24166_v62 }
 0xad3   :  { %v24479_v8 = vadd.f32 %v18146_v7, %v24296_v41  ;;  %v18147_v22 = vadd.f32 %v24148_v20, %v10828_v50  ;;  %v10830_v49 = vpop.f32.mrb[79].mxu0  ;;  %v17858_v41 = vpack.c.bf16 %v24391_v12, %v24387_v29  ;;  %v17860_v20 = vpack.c.bf16 %v11278_v57, %v11277_v53 }
 0xad4   :  { %v11279_v7 = vmul.f32 %v24237_v0, %v24237_v0  ;;  %v17862_v50 = vpack.c.bf16 %v11262_v44, %v11261_v48  ;;  %v11282_v49 = vmul.f32 %v24253_v17, %v24253_v17  ;;  %v11263_v57 = vmul.f32 %v24162_v52, %v24162_v52 }
 0xad5   :  { %v24483_v32 = vadd.f32 %v18147_v22, %v24307_v43  ;;  %v11280_v43 = vmul.f32 %v24241_v31, %v24241_v31  ;;  %v11266_v53 = vmul.f32 %v24176_v13, %v24176_v13  ;;  %v11283_v48 = vmul.f32 %v24261_v18, %v24261_v18 }
 0xad6   :  { %v17866_v44 = vpack.c.bf16 %v11264_v26, %v11263_v57  ;;  %v11286_v26 = vmul.f32 %v24277_v6, %v24277_v6  ;;  %v11285_v57 = vmul.f32 %v24273_v47, %v24273_v47  ;;  %v19450_v47 = vld [vmem:[%s27198_s11 + $0xa0] sm:$0xff]  }
 0xad7   :  { %v17856_v56 = vpack.c.bf16 %v24483_v32, %v24479_v8  ;;  %v17864_v22 = vpack.c.bf16 %v11280_v43, %v11279_v7  ;;  %v11265_v43 = vmul.f32 %v24172_v63, %v24172_v63  ;;  %v11268_v7 = vmul.f32 %v24186_v33, %v24186_v33 }
 0xad9   :  { %17857 = vmatprep.subr.bf16.mxu1 %v17856_v56  ;;  %v11281_v56 = vmul.f32 %v24249_v34, %v24249_v34 }
 0xada   :  { %17859 = vmatpush3.bf16.msra.mxu1 %v17858_v41 }
 0xadb   :  { %17861 = vmatprep.subr.bf16.mxu1 %v17860_v20  ;;  %v17868_v41 = vpack.c.bf16 %v11282_v49, %v11281_v56  ;;  %v11284_v20 = vmul.f32 %v24265_v19, %v24265_v19  ;;  %v11267_v49 = vmul.f32 %v24182_v61, %v24182_v61  ;;  %v11270_v56 = vmul.f32 %v24196_v14, %v24196_v14 }
 0xadd   :  { %11256 = vmatmul.mubr.f32.vlgmr.msra.gmra.mrb[194].mxu1 %v28786_v54 }
 0xade   :  { %17863 = vmatpush3.bf16.msra.mxu1 %v17862_v50  ;;  %11389 = vmatprep.mubr.f32.mxu1 %v28786_v54  ;;  %v17870_v50 = vpack.c.bf16 %v11266_v53, %v11265_v43  ;;  %v11288_v53 = vmul.f32 %v24289_v28, %v24289_v28  ;;  %v11287_v43 = vmul.f32 %v24285_v2, %v24285_v2  ;;  %v28835_v28 = vld [vmem:[#allocation111_spill] sm:$0xff] }
 0xadf   :  { %17865 = vmatprep.subr.bf16.mxu1 %v17864_v22  ;;  %v17872_v22 = vpack.c.bf16 %v11284_v20, %v11283_v48  ;;  %v11269_v20 = vmul.f32 %v24192_v23, %v24192_v23  ;;  %v11272_v48 = vmul.f32 %v24205_v3, %v24205_v3 }
 0xae2   :  { %17867 = vmatpush3.bf16.msra.mxu1 %v17866_v44  ;;  %v17874_v44 = vpack.c.bf16 %v11268_v7, %v11267_v49  ;;  %v11290_v7 = vmul.f32 %v24305_v42, %v24305_v42  ;;  %v11289_v49 = vmul.f32 %v24299_v58, %v24299_v58 }
 0xae3   :  { %17869 = vmatprep.subr.bf16.mxu1 %v17868_v41  ;;  %v17876_v41 = vpack.c.bf16 %v11286_v26, %v11285_v57  ;;  %v11271_v26 = vmul.f32 %v24201_v45, %v24201_v45  ;;  %v11274_v57 = vmul.f32 %v24213_v38, %v24213_v38 }
 0xae6   :  { %17871 = vmatpush3.bf16.msra.mxu1 %v17870_v50  ;;  %v17878_v50 = vpack.c.bf16 %v11270_v56, %v11269_v20  ;;  %v11292_v56 = vmul.f32 %v28835_v28, %v28835_v28 }
 0xae7   :  { %17873 = vmatprep.subr.bf16.mxu1 %v17872_v22  ;;  %v17880_v22 = vpack.c.bf16 %v11288_v53, %v11287_v43  ;;  %v28836_v53 = vld [vmem:[#allocation118_spill] sm:$0xff]  ;;  %v28837_v43 = vld [vmem:[#allocation109_spill] sm:$0xff] }
 0xae8   :  { %v11273_v20 = vmul.f32 %v28836_v53, %v28836_v53 }
 0xaea   :  { %17875 = vmatpush3.bf16.msra.mxu1 %v17874_v44  ;;  %v17882_v44 = vpack.c.bf16 %v11272_v48, %v11271_v26  ;;  %v17886_v58 = vpack.c.bf16 %v11274_v57, %v11273_v20  ;;  %v11310_v48 = vmul.f32 %v24399_v51, %v24399_v51  ;;  %v11312_v57 = vmul.f32 %v24411_v40, %v24411_v40 }
 0xaeb   :  { %17877 = vmatprep.subr.bf16.mxu1 %v17876_v41  ;;  %v17884_v41 = vpack.c.bf16 %v11290_v7, %v11289_v49  ;;  %v28839_v7 = vld [vmem:[#allocation129_spill] sm:$0xff]  ;;  %v11309_v49 = vmul.f32 %v24395_v1, %v24395_v1 }
 0xaec   :  { %v11275_v26 = vmul.f32 %v28839_v7, %v28839_v7 }
 0xaed   :  { %v17892_v28 = vpack.c.bf16 %v11310_v48, %v11309_v49  ;;  %v28842_v48 = vld [vmem:[#allocation123_spill] sm:$0xff] }
 0xaee   :  { %17879 = vmatpush3.bf16.msra.mxu1 %v17878_v50  ;;  %v11291_v50 = vmul.f32 %v28837_v43, %v28837_v43 }
 0xaef   :  { %17881 = vmatprep.subr.bf16.mxu1 %v17880_v22  ;;  %v28838_v22 = vld [vmem:[#allocation130_spill] sm:$0xff] }
 0xaf0   :  { %v11276_v42 = vmul.f32 %v28838_v22, %v28838_v22  ;;  %v17888_v2 = vpack.c.bf16 %v11292_v56, %v11291_v50  ;;  %v28840_v56 = vld [vmem:[#allocation112_spill] sm:$0xff]  ;;  %v28841_v50 = vld [vmem:[#allocation115_spill] sm:$0xff] }
 0xaf1   :  { %v11293_v20 = vmul.f32 %v28840_v56, %v28840_v56 }
 0xaf2   :  { %17883 = vmatpush3.bf16.msra.mxu1 %v17882_v44  ;;  %v11294_v44 = vmul.f32 %v24333_v35, %v24333_v35 }
 0xaf3   :  { %17885 = vmatprep.subr.bf16.mxu1 %v17884_v41  ;;  %v17890_v41 = vpack.c.bf16 %v11276_v42, %v11275_v26  ;;  %v11314_v42 = vmul.f32 %v24423_v30, %v24423_v30  ;;  %v11295_v26 = vmul.f32 %v28842_v48, %v28842_v48 }
 0xaf4   :  { %v17894_v51 = vpack.c.bf16 %v11294_v44, %v11293_v20 }
 0xaf6   :  { %17887 = vmatpush3.bf16.msra.mxu1 %v17886_v58  ;;  %v11311_v58 = vmul.f32 %v28841_v50, %v28841_v50 }
 0xaf7   :  { %17889 = vmatprep.subr.bf16.mxu1 %v17888_v2  ;;  %v11296_v2 = vmul.f32 %v24343_v9, %v24343_v9 }
 0xaf8   :  { %v17896_v1 = vpack.c.bf16 %v11312_v57, %v11311_v58  ;;  %v11316_v57 = vmul.f32 %v24435_v11, %v24435_v11  ;;  %v28844_v58 = vld [vmem:[#allocation127_spill] sm:$0xff] }
 0xaf9   :  { %v17898_v44 = vpack.c.bf16 %v11296_v2, %v11295_v26  ;;  %v11297_v30 = vmul.f32 %v28844_v58, %v28844_v58  ;;  %v11318_v2 = vmul.f32 %v24447_v4, %v24447_v4  ;;  %v11322_v4 = vmul.f32 %v24471_v36, %v24471_v36 }
 0xafa   :  { %17891 = vmatpush3.bf16.msra.mxu1 %v17890_v41  ;;  %v11298_v41 = vmul.f32 %v24351_v39, %v24351_v39 }
 0xafb   :  { %17893 = vmatprep.subr.bf16.mxu1 %v17892_v28  ;;  %v28843_v28 = vld [vmem:[#allocation38_spill] sm:$0xff] }
 0xafc   :  { %v11313_v49 = vmul.f32 %v28843_v28, %v28843_v28  ;;  %v17902_v28 = vpack.c.bf16 %v11298_v41, %v11297_v30  ;;  %v11320_v30 = vmul.f32 %v24459_v55, %v24459_v55 }
 0xafd   :  { %11390 = vmatmul.mubr.f32.vlgmr.msra.gmra.mrb[196].mxu1 %v28786_v54 }
 0xafe   :  { %17895 = vmatpush3.bf16.msra.mxu1 %v17894_v51  ;;  %11459 = vmatprep.mubr.f32.mxu1 %v28786_v54  ;;  %v17900_v20 = vpack.c.bf16 %v11314_v42, %v11313_v49  ;;  %v28845_v51 = vld [vmem:[#allocation24_spill] sm:$0xff]  ;;  %v28847_v49 = vld [vmem:[#allocation50_spill] sm:$0xff] }
 0xaff   :  { %17897 = vmatprep.subr.bf16.mxu1 %v17896_v1  ;;  %v11315_v40 = vmul.f32 %v28845_v51, %v28845_v51  ;;  %v11300_v1 = vmul.f32 %v24359_v5, %v24359_v5  ;;  %v28846_v42 = vld [vmem:[#allocation20_spill] sm:$0xff] }
 0xb00   :  { %v11299_v26 = vmul.f32 %v28846_v42, %v28846_v42 }
 0xb01   :  { %v17904_v50 = vpack.c.bf16 %v11316_v57, %v11315_v40  ;;  %v28848_v40 = vld [vmem:[#allocation18_spill] sm:$0xff] }
 0xb02   :  { %17899 = vmatpush3.bf16.msra.mxu1 %v17898_v44  ;;  %v11317_v44 = vmul.f32 %v28847_v49, %v28847_v49  ;;  %v17906_v11 = vpack.c.bf16 %v11300_v1, %v11299_v26  ;;  %v11301_v41 = vmul.f32 %v28848_v40, %v28848_v40  ;;  %v11321_v26 = vmul.f32 %v24468_v60, %v24468_v60  ;;  %v28862_v40 = vld [vmem:[#allocation24_spill] sm:$0xff] }
 0xb03   :  { %17901 = vmatprep.subr.bf16.mxu1 %v17900_v20  ;;  %v11302_v20 = vmul.f32 %v24367_v46, %v24367_v46 }
 0xb04   :  { %v17908_v51 = vpack.c.bf16 %v11318_v2, %v11317_v44  ;;  %v11303_v2 = vmul.f32 %v24371_v24, %v24371_v24  ;;  %v17916_v44 = vpack.c.bf16 %v11322_v4, %v11321_v26 }
 0xb05   :  { %v17910_v57 = vpack.c.bf16 %v11302_v20, %v11301_v41  ;;  %v11324_v20 = vmul.f32 %v24483_v32, %v24483_v32  ;;  %v11305_v41 = vmul.f32 %v24379_v10, %v24379_v10 }
 0xb06   :  { %17903 = vmatpush3.bf16.msra.mxu1 %v17902_v28  ;;  %v11319_v28 = vmul.f32 %v24455_v21, %v24455_v21 }
 0xb07   :  { %17905 = vmatprep.subr.bf16.mxu1 %v17904_v50  ;;  %v11304_v50 = vmul.f32 %v24375_v37, %v24375_v37 }
 0xb08   :  { %v17912_v1 = vpack.c.bf16 %v11320_v30, %v11319_v28  ;;  %v11323_v30 = vmul.f32 %v24479_v8, %v24479_v8  ;;  %v11308_v28 = vmul.f32 %v24391_v12, %v24391_v12  ;;  %v28861_v12 = vld [vmem:[#allocation84_spill] sm:$0xff] }
 0xb0a   :  { %17907 = vmatpush3.bf16.msra.mxu1 %v17906_v11  ;;  %v11306_v11 = vmul.f32 %v24383_v27, %v24383_v27  ;;  %v28859_v27 = vld [vmem:[#allocation94_spill] sm:$0xff] }
 0xb0b   :  { %17909 = vmatprep.subr.bf16.mxu1 %v17908_v51  ;;  %v17914_v51 = vpack.c.bf16 %v11304_v50, %v11303_v2  ;;  %v11307_v50 = vmul.f32 %v24387_v29, %v24387_v29  ;;  %v28849_v2 = vmov 0  }
 0xb0d   :  { %v17922_v4 = vpack.c.bf16 %v11308_v28, %v11307_v50  ;;  %v19427_v28 = vld [vmem:[%s27198_s11 + $0x28] sm:$0xff]   ;;  %v19430_v50 = vld [vmem:[%s27198_s11 + $0x40] sm:$0xff]  }
 0xb0e   :  { %17911 = vmatpush3.bf16.msra.mxu1 %v17910_v57  ;;  %v17918_v57 = vpack.c.bf16 %v11306_v11, %v11305_v41  ;;  %v19422_v11 = vld [vmem:[%s27198_s11] sm:$0xff]   ;;  %v19425_v41 = vld [vmem:[%s27198_s11 + $0x18] sm:$0xff]  }
 0xb0f   :  { %17913 = vmatprep.subr.bf16.mxu1 %v17912_v1  ;;  %v17920_v1 = vpack.c.bf16 %v11324_v20, %v11323_v30  ;;  %v19423_v20 = vld [vmem:[%s27198_s11 + $0x8] sm:$0xff]   ;;  %v19426_v30 = vld [vmem:[%s27198_s11 + $0x20] sm:$0xff]  }
 0xb12   :  { %17915 = vmatpush3.bf16.msra.mxu1 %v17914_v51 }
 0xb13   :  { %17917 = vmatprep.subr.bf16.mxu1 %v17916_v44 }
 0xb16   :  { %17919 = vmatpush3.bf16.msra.mxu1 %v17918_v57  ;;  %v19428_v57 = vld [vmem:[%s27198_s11 + $0x30] sm:$0xff]  }
 0xb17   :  { %17921 = vmatprep.subr.bf16.mxu1 %v17920_v1  ;;  %v19429_v1 = vld [vmem:[%s27198_s11 + $0x38] sm:$0xff]  }
 0xb1a   :  { %17923 = vmatpush3.bf16.msra.mxu1 %v17922_v4  ;;  %v19431_v4 = vld [vmem:[%s27198_s11 + $0x48] sm:$0xff]  }
 0xb1b   :  { %15069 = vmatprep.subr.bf16.mxu1 %v28849_v2 }
 0xb1d   :  { %11460 = vmatmul.mubr.f32.vlgmr.msra.gmra.mrb[198].mxu1 %v28786_v54  ;;  %v19424_v54 = vld [vmem:[%s27198_s11 + $0x10] sm:$0xff]  }
 0xb1e   :  { %15101 = vmatprep.mubr.bf16.mxu1 %v28849_v2  ;;  %15070 = vmatpush1.bf16.msra.mxu1 %v19422_v11 }
 0xb1f   :  { %15071 = vmatprep.subr.bf16.mxu1 %v28849_v2 }
 0xb22   :  { %15072 = vmatpush1.bf16.msra.mxu1 %v19423_v20  ;;  %v19432_v20 = vld [vmem:[%s27198_s11 + $0x50] sm:$0xff]  }
 0xb23   :  { %15073 = vmatprep.subr.bf16.mxu1 %v28849_v2 }
 0xb26   :  { %15074 = vmatpush1.bf16.msra.mxu1 %v19424_v54  ;;  %v19433_v54 = vld [vmem:[%s27198_s11 + $0x200] sm:$0xff]  }
 0xb27   :  { %15075 = vmatprep.subr.bf16.mxu1 %v28849_v2  ;;  %17588 = vmatprep.subr.bf16.mxu0 %v19433_v54 }
 0xb28   :  { %17589 = vmatpush3.bf16.msra.mxu0 %v19433_v54  ;;  %v19444_v54 = vld [vmem:[%s27198_s11 + $0x80] sm:$0xff]  }
 0xb2a   :  { %15076 = vmatpush1.bf16.msra.mxu1 %v19425_v41 }
 0xb2b   :  { %15077 = vmatprep.subr.bf16.mxu1 %v28849_v2 }
 0xb2e   :  { %15078 = vmatpush1.bf16.msra.mxu1 %v19426_v30  ;;  %v19434_v30 = vld [vmem:[%s27198_s11 + $0x58] sm:$0xff]  }
 0xb2f   :  { %15079 = vmatprep.subr.bf16.mxu1 %v28849_v2 }
 0xb30   :  { %v17200_v26 = vpop.f32.mrb[192].mxu1 }
 0xb31   :  { %v17201_v51 = vpop.f32.mrb[193].mxu1 }
 0xb32   :  { %v17202_v44 = vadd.f32 %v17201_v51, %v17200_v26  ;;  %15080 = vmatpush1.bf16.msra.mxu1 %v19427_v28  ;;  %v19435_v28 = vld [vmem:[%s27198_s11 + $0x208] sm:$0xff]  }
 0xb33   :  { %15081 = vmatprep.subr.bf16.mxu1 %v28849_v2  ;;  %17590 = vmatprep.subr.bf16.mxu0 %v19435_v28 }
 0xb34   :  { %17591 = vmatpush3.bf16.msra.mxu0 %v19435_v28 }
 0xb36   :  { %15082 = vmatpush1.bf16.msra.mxu1 %v19428_v57  ;;  %v19437_v57 = vld [vmem:[%s27198_s11 + $0x210] sm:$0xff]  }
 0xb37   :  { %15083 = vmatprep.subr.bf16.mxu1 %v28849_v2  ;;  %17592 = vmatprep.subr.bf16.mxu0 %v19437_v57 }
 0xb38   :  { %17593 = vmatpush3.bf16.msra.mxu0 %v19437_v57 }
 0xb3a   :  { %15084 = vmatpush1.bf16.msra.mxu1 %v19429_v1  ;;  %v19438_v1 = vld [vmem:[%s27198_s11 + $0x68] sm:$0xff]  }
 0xb3b   :  { %15085 = vmatprep.subr.bf16.mxu1 %v28849_v2 }
 0xb3e   :  { %15086 = vmatpush1.bf16.msra.mxu1 %v19430_v50  ;;  %v19439_v50 = vld [vmem:[%s27198_s11 + $0x218] sm:$0xff]  }
 0xb3f   :  { %15087 = vmatprep.subr.bf16.mxu1 %v28849_v2  ;;  %17594 = vmatprep.subr.bf16.mxu0 %v19439_v50 }
 0xb40   :  { %17595 = vmatpush3.bf16.msra.mxu0 %v19439_v50  ;;  %v19448_v50 = vld [vmem:[%s27198_s11 + $0x90] sm:$0xff]  }
 0xb42   :  { %15088 = vmatpush1.bf16.msra.mxu1 %v19431_v4  ;;  %v19440_v4 = vld [vmem:[%s27198_s11 + $0x70] sm:$0xff]  }
 0xb43   :  { %15089 = vmatprep.subr.bf16.mxu1 %v28849_v2 }
 0xb46   :  { %15090 = vmatpush1.bf16.msra.mxu1 %v19432_v20  ;;  %v19445_v20 = vld [vmem:[%s27198_s11 + $0x230] sm:$0xff]  }
 0xb47   :  { %15091 = vmatprep.subr.bf16.mxu1 %v28849_v2 }
 0xb4a   :  { %15092 = vmatpush1.bf16.msra.mxu1 %v19434_v30  ;;  %v19446_v30 = vld [vmem:[%s27198_s11 + $0x238] sm:$0xff]  }
 0xb4b   :  { %15093 = vmatprep.subr.bf16.mxu1 %v28849_v2 }
 0xbb0   :  { %v17235_v26 = vpop.f32.mrb[194].mxu1 }
 0xbb1   :  { %v17236_v51 = vpop.f32.mrb[195].mxu1 }
 0xbb2   :  { %v17237_v11 = vadd.f32 %v17236_v51, %v17235_v26  ;;  %v19441_v26 = vld [vmem:[%s27198_s11 + $0x220] sm:$0xff]   ;;  %v19442_v51 = vld [vmem:[%s27198_s11 + $0x78] sm:$0xff]  }
 0xbb3   :  { %17596 = vmatprep.subr.bf16.mxu0 %v19441_v26 }
 0xbb4   :  { %v11258_v41 = vadd.f32 %v17237_v11, %v17202_v44  ;;  %v19436_v44 = vld [vmem:[%s27198_s11 + $0x60] sm:$0xff]   ;;  %v19443_v11 = vld [vmem:[%s27198_s11 + $0x228] sm:$0xff]   ;;  %17597 = vmatpush3.bf16.msra.mxu0 %v19441_v26 }
 0xbb5   :  { %15094 = vmatpush1.bf16.msra.mxu1 %v19436_v44  ;;  %17598 = vmatprep.subr.bf16.mxu0 %v19443_v11 }
 0xbb6   :  { %15095 = vmatprep.subr.bf16.mxu1 %v28849_v2 }
 0xbb8   :  { %17599 = vmatpush3.bf16.msra.mxu0 %v19443_v11  ;;  %v11465_v11 = vmul.f32 %v11258_v41, %v11258_v41 }
 0xbb9   :  { %15096 = vmatpush1.bf16.msra.mxu1 %v19438_v1  ;;  %17600 = vmatprep.subr.bf16.mxu0 %v19445_v20  ;;  %v19447_v1 = vld [vmem:[%s27198_s11 + $0x88] sm:$0xff]  }
 0xbba   :  { %15097 = vmatprep.subr.bf16.mxu1 %v28849_v2 }
 0xbbc   :  { %17601 = vmatpush3.bf16.msra.mxu0 %v19445_v20  ;;  %v28850_v20 = vld [vmem:[#allocation86_spill] sm:$0xff] }
 0xbbd   :  { %15098 = vmatpush1.bf16.msra.mxu1 %v19440_v4  ;;  %17602 = vmatprep.subr.bf16.mxu0 %v19446_v30 }
 0xbbe   :  { %15099 = vmatprep.subr.bf16.mxu1 %v28849_v2 }
 0xbc0   :  { %17603 = vmatpush3.bf16.msra.mxu0 %v19446_v30 }
 0xbc1   :  { %15100 = vmatpush1.bf16.msra.mxu1 %v19442_v51 }
 0xbc2   :  { %15358 = vmatprep.subr.bf16.mxu1 %v28849_v2 }
 0xbc4   :  { %15102 = vmatmul.mubr.bf16.vlgmr.msra.gmra.mrb[200].mxu1 %v28849_v2 }
 0xbc5   :  { %15359 = vmatpush1.bf16.msra.mxu1 %v19444_v54  ;;  %v24726_v54 = vrot.slane %v11258_v41, %v28850_v20 }
 0xbc6   :  { %15360 = vmatprep.subr.bf16.mxu1 %v28849_v2 }
 0xbc7   :  { %v28870_v29 = vsub.f32 %v24166_v62, %v24726_v54 }
 0xbc9   :  { %15361 = vmatpush1.bf16.msra.mxu1 %v19447_v1  ;;  %v28863_v1 = vld [vmem:[#allocation46_spill] sm:$0xff] }
 0xbca   :  { %15362 = vmatprep.subr.bf16.mxu1 %v28849_v2 }
 0xbcd   :  { %15363 = vmatpush1.bf16.msra.mxu1 %v19448_v50  ;;  %v11537_v50 = vld [vmem:[%s27199_s9] sm:$0x1] }
 0xbce   :  { %15364 = vmatprep.subr.bf16.mxu1 %v28849_v2 }
 0xbd0   :  { %v17270_v28 = vpop.f32.mrb[196].mxu1 }
 0xbd1   :  { %v17271_v44 = vpop.f32.mrb[197].mxu1 }
 0xbd2   :  { %v17272_v57 = vadd.f32 %v17271_v44, %v17270_v28  ;;  %v19449_v28 = vld [vmem:[%s27198_s11 + $0x98] sm:$0xff]  }
 0xbd3   :  { %15365 = vmatpush1.bf16.msra.mxu1 %v19449_v28  ;;  %v28854_v28 = vld [vmem:[#allocation133_spill] sm:$0xff] }
 0xbd4   :  { %15366 = vmatprep.subr.bf16.mxu1 %v28849_v2 }
 0xbd7   :  { %15367 = vmatpush1.bf16.msra.mxu1 %v19450_v47  ;;  %v28869_v47 = vsub.f32 %v24162_v52, %v24726_v54 }
 0xbd8   :  { %15368 = vmatprep.subr.bf16.mxu1 %v28849_v2 }
 0xbf0   :  { %v17305_v4 = vpop.f32.mrb[198].mxu1 }
 0xbf1   :  { %v17306_v26 = vpop.f32.mrb[199].mxu1 }
 0xbf2   :  { %v17307_v51 = vadd.f32 %v17306_v26, %v17305_v4  ;;  %v28860_v4 = vld [vmem:[#allocation38_spill] sm:$0xff]  ;;  %v28864_v26 = vld [vmem:[#allocation43_spill] sm:$0xff] }
 0xbf4   :  { %v11462_v30 = vadd.f32 %v17307_v51, %v17272_v57  ;;  %v28851_v51 = vld [vmem:[#allocation103_spill] sm:$0xff] }
 0xbf5   :  { %v28855_v57 = vld [vmem:[#allocation111_spill] sm:$0xff] }
 0xbf6   :  { %v11466_v44 = vsub.f32 %v11462_v30, %v11465_v11  ;;  %v28852_v11 = vld [vmem:[#allocation104_spill] sm:$0xff]  ;;  %v28853_v30 = vld [vmem:[#allocation105_spill] sm:$0xff] }
 0xbf8   :  { %v11467_v41 = vadd.f32 1e-05, %v11466_v44 }
 0xbfa   :  { %19496 = vrsqrt.f32 %v11467_v41  ;;  %v28858_v41 = vld [vmem:[#allocation115_spill] sm:$0xff] }
 0xc04   :  { %v19497_v44 = vpop.eup %19496 }
 0xc05   :  { %v11538_v46 = vmul.f32 %v19497_v44, %v11537_v50  ;;  %v28865_v50 = vsub.f32 %v24152_v25, %v24726_v54 }
 0xc07   :  { %v24859_v44 = vrot.slane %v11538_v46, %v28850_v20  ;;  %v28867_v20 = vsub.f32 %v24156_v59, %v24726_v54 }
 0xc09   :  { %v24874_v46 = vmul.f32 %v24859_v44, %v28865_v50  ;;  %v24880_v37 = vmul.f32 %v24859_v44, %v28867_v20  ;;  %v24886_v10 = vmul.f32 %v24859_v44, %v28869_v47  ;;  %v24892_v25 = vmul.f32 %v24859_v44, %v28870_v29 }
 0xc0a   :  { %v28871_v50 = vsub.f32 %v24172_v63, %v24726_v54  ;;  %v28872_v20 = vsub.f32 %v24176_v13, %v24726_v54  ;;  %v28873_v47 = vsub.f32 %v24182_v61, %v24726_v54  ;;  %v28874_v29 = vsub.f32 %v24186_v33, %v24726_v54 }
 0xc0b   :  { %28866 = vst [vmem:[#allocation33_spill] sm:$0xff] %v24874_v46  ;;  %28868 = vst [vmem:[#allocation56_spill] sm:$0xff] %v24880_v37 }
 0xc0c   :  { %v24898_v59 = vmul.f32 %v24859_v44, %v28871_v50  ;;  %v24904_v52 = vmul.f32 %v24859_v44, %v28872_v20  ;;  %v24910_v62 = vmul.f32 %v24859_v44, %v28873_v47  ;;  %v24916_v63 = vmul.f32 %v24859_v44, %v28874_v29 }
 0xc0d   :  { %v28875_v50 = vsub.f32 %v24192_v23, %v24726_v54  ;;  %v28876_v20 = vsub.f32 %v24196_v14, %v24726_v54  ;;  %v28877_v47 = vsub.f32 %v24201_v45, %v24726_v54  ;;  %v28878_v29 = vsub.f32 %v24205_v3, %v24726_v54 }
 0xc0f   :  { %v24922_v13 = vmul.f32 %v24859_v44, %v28875_v50  ;;  %v24928_v61 = vmul.f32 %v24859_v44, %v28876_v20  ;;  %v24934_v33 = vmul.f32 %v24859_v44, %v28877_v47  ;;  %v24940_v23 = vmul.f32 %v24859_v44, %v28878_v29 }
 0xc10   :  { %v28879_v50 = vsub.f32 %v28836_v53, %v24726_v54  ;;  %v28880_v20 = vsub.f32 %v24213_v38, %v24726_v54  ;;  %v28881_v47 = vsub.f32 %v28839_v7, %v24726_v54  ;;  %v28882_v29 = vsub.f32 %v28838_v22, %v24726_v54 }
 0xc12   :  { %v24946_v14 = vmul.f32 %v24859_v44, %v28879_v50  ;;  %v24952_v45 = vmul.f32 %v24859_v44, %v28880_v20  ;;  %v24958_v3 = vmul.f32 %v24859_v44, %v28881_v47  ;;  %v24964_v53 = vmul.f32 %v24859_v44, %v28882_v29 }
 0xc13   :  { %v28883_v50 = vsub.f32 %v24225_v15, %v24726_v54  ;;  %v28884_v20 = vsub.f32 %v24229_v16, %v24726_v54  ;;  %v28885_v47 = vsub.f32 %v24237_v0, %v24726_v54  ;;  %v28886_v29 = vsub.f32 %v24241_v31, %v24726_v54 }
 0xc15   :  { %v24970_v38 = vmul.f32 %v24859_v44, %v28883_v50  ;;  %v24976_v7 = vmul.f32 %v24859_v44, %v28884_v20  ;;  %v24982_v22 = vmul.f32 %v24859_v44, %v28885_v47  ;;  %v24988_v15 = vmul.f32 %v24859_v44, %v28886_v29 }
 0xc16   :  { %v28887_v50 = vsub.f32 %v24249_v34, %v24726_v54  ;;  %v28888_v20 = vsub.f32 %v24253_v17, %v24726_v54  ;;  %v28889_v47 = vsub.f32 %v24261_v18, %v24726_v54  ;;  %v28890_v29 = vsub.f32 %v24265_v19, %v24726_v54 }
 0xc18   :  { %v24994_v16 = vmul.f32 %v24859_v44, %v28887_v50  ;;  %v25000_v0 = vmul.f32 %v24859_v44, %v28888_v20  ;;  %v25006_v31 = vmul.f32 %v24859_v44, %v28889_v47  ;;  %v25012_v34 = vmul.f32 %v24859_v44, %v28890_v29  ;;  %v28891_v50 = vld [vmem:[#allocation102_spill] sm:$0xff] }
 0xc19   :  { %v28892_v42 = vsub.f32 %v28891_v50, %v24726_v54  ;;  %v28893_v20 = vsub.f32 %v24277_v6, %v24726_v54  ;;  %v28894_v47 = vsub.f32 %v28851_v51, %v24726_v54  ;;  %v28895_v29 = vsub.f32 %v28852_v11, %v24726_v54 }
 0xc1b   :  { %v25018_v17 = vmul.f32 %v24859_v44, %v28892_v42  ;;  %v25024_v18 = vmul.f32 %v24859_v44, %v28893_v20  ;;  %v25030_v19 = vmul.f32 %v24859_v44, %v28894_v47  ;;  %v25036_v50 = vmul.f32 %v24859_v44, %v28895_v29 }
 0xc1c   :  { %v28896_v42 = vsub.f32 %v28853_v30, %v24726_v54  ;;  %v28897_v20 = vsub.f32 %v28854_v28, %v24726_v54  ;;  %v28898_v47 = vsub.f32 %v28837_v43, %v24726_v54  ;;  %v28899_v29 = vsub.f32 %v28855_v57, %v24726_v54 }
 0xc1e   :  { %v25042_v6 = vmul.f32 %v24859_v44, %v28896_v42  ;;  %v25048_v51 = vmul.f32 %v24859_v44, %v28897_v20  ;;  %v25054_v11 = vmul.f32 %v24859_v44, %v28898_v47  ;;  %v25060_v30 = vmul.f32 %v24859_v44, %v28899_v29 }
 0xc1f   :  { %v28900_v42 = vsub.f32 %v28840_v56, %v24726_v54  ;;  %v28902_v20 = vsub.f32 %v24333_v35, %v24726_v54  ;;  %v28904_v47 = vsub.f32 %v28842_v48, %v24726_v54  ;;  %v28905_v29 = vsub.f32 %v24343_v9, %v24726_v54 }
 0xc21   :  { %v25066_v28 = vmul.f32 %v24859_v44, %v28900_v42  ;;  %v25072_v43 = vmul.f32 %v24859_v44, %v28902_v20  ;;  %v25078_v57 = vmul.f32 %v24859_v44, %v28904_v47  ;;  %v25084_v56 = vmul.f32 %v24859_v44, %v28905_v29  ;;  %v28908_v47 = vld [vmem:[#allocation20_spill] sm:$0xff] }
 0xc22   :  { %v28906_v42 = vsub.f32 %v28844_v58, %v24726_v54  ;;  %v28907_v20 = vsub.f32 %v24351_v39, %v24726_v54  ;;  %v28909_v24 = vsub.f32 %v28908_v47, %v24726_v54  ;;  %v28910_v29 = vmov %v24359_v5 }
 0xc23   :  { %28901 = vst [vmem:[#allocation41_spill] sm:$0xff] %v25066_v28  ;;  %28903 = vst [vmem:[#allocation35_spill] sm:$0xff] %v25072_v43  ;;  %v28911_v5 = vsub.f32 %v28910_v29, %v24726_v54 }
 0xc24   :  { %v25090_v35 = vmul.f32 %v24859_v44, %v28906_v42  ;;  %v25096_v48 = vmul.f32 %v24859_v44, %v28907_v20  ;;  %v25102_v9 = vmul.f32 %v24859_v44, %v28909_v24  ;;  %v28912_v42 = vld [vmem:[#allocation18_spill] sm:$0xff]  ;;  %v28915_v20 = vld [vmem:[#allocation116_spill] sm:$0xff] }
 0xc25   :  { %v25108_v58 = vmul.f32 %v24859_v44, %v28911_v5  ;;  %v28913_v43 = vsub.f32 %v28912_v42, %v24726_v54  ;;  %v28916_v28 = vsub.f32 %v28915_v20, %v24726_v54  ;;  %v28918_v24 = vld [vmem:[#allocation34_spill] sm:$0xff]  ;;  %v28921_v5 = vld [vmem:[#allocation21_spill] sm:$0xff] }
 0xc26   :  { %v28919_v37 = vsub.f32 %v28918_v24, %v24726_v54  ;;  %v28922_v46 = vsub.f32 %v28921_v5, %v24726_v54 }
 0xc27   :  { %v25114_v39 = vmul.f32 %v24859_v44, %v28913_v43  ;;  %v25120_v47 = vmul.f32 %v24859_v44, %v28916_v28  ;;  %v28924_v43 = vld [vmem:[#allocation101_spill] sm:$0xff]  ;;  %v28926_v28 = vld [vmem:[#allocation22_spill] sm:$0xff] }
 0xc28   :  { %v25126_v29 = vmul.f32 %v24859_v44, %v28919_v37  ;;  %v25132_v42 = vmul.f32 %v24859_v44, %v28922_v46  ;;  %v28929_v37 = vld [vmem:[#allocation125_spill] sm:$0xff] }
 0xc29   :  { %28914 = vst [vmem:[#allocation58_spill] sm:$0xff] %v25114_v39  ;;  %28917 = vst [vmem:[#allocation64_spill] sm:$0xff] %v25120_v47  ;;  %v28925_v39 = vsub.f32 %v28924_v43, %v24726_v54  ;;  %v28927_v47 = vsub.f32 %v28926_v28, %v24726_v54  ;;  %v28932_v46 = vld [vmem:[#allocation25_spill] sm:$0xff]  ;;  %v28935_v28 = vld [vmem:[#allocation26_spill] sm:$0xff] }
 0xc2a   :  { %28920 = vst [vmem:[#allocation67_spill] sm:$0xff] %v25126_v29  ;;  %28923 = vst [vmem:[#allocation62_spill] sm:$0xff] %v25132_v42  ;;  %v28930_v29 = vsub.f32 %v28929_v37, %v24726_v54  ;;  %v28933_v42 = vsub.f32 %v28932_v46, %v24726_v54  ;;  %v28937_v37 = vld [vmem:[#allocation87_spill] sm:$0xff] }
 0xc2b   :  { %v25138_v20 = vmul.f32 %v24859_v44, %v28925_v39  ;;  %v25144_v24 = vmul.f32 %v24859_v44, %v28927_v47  ;;  %v19451_v39 = vld [vmem:[%s27198_s11 + $0xa8] sm:$0xff]   ;;  %v28936_v47 = vsub.f32 %v28935_v28, %v24726_v54 }
 0xc2c   :  { %v25150_v5 = vmul.f32 %v24859_v44, %v28930_v29  ;;  %v25156_v43 = vmul.f32 %v24859_v44, %v28933_v42  ;;  %v28938_v29 = vsub.f32 %v28937_v37, %v24726_v54  ;;  %v28939_v42 = vsub.f32 %v28858_v41, %v24726_v54  ;;  %15369 = vmatpush1.bf16.msra.mxu1 %v19451_v39 }
 0xc2d   :  { %28928 = vst [vmem:[#allocation44_spill] sm:$0xff] %v25144_v24  ;;  %v25165_v24 = vmul.f32 %v24859_v44, %v28936_v47  ;;  %v25188_v47 = vld [vmem:[%s27200_s10] ss:$0 sm:$0xff]  ;;  %v28943_v37 = vsub.f32 %v28860_v4, %v24726_v54  ;;  %v28944_v41 = vsub.f32 %v28861_v12, %v24726_v54  ;;  %15370 = vmatprep.subr.bf16.mxu1 %v28849_v2 }
 0xc2e   :  { %28931 = vst [vmem:[#allocation71_spill] sm:$0xff] %v25150_v5  ;;  %28934 = vst [vmem:[#allocation51_spill] sm:$0xff] %v25156_v43  ;;  %v25171_v5 = vmul.f32 %v24859_v44, %v28938_v29  ;;  %v25177_v46 = vmul.f32 %v24859_v44, %v28939_v42  ;;  %v28940_v43 = vsub.f32 %v28859_v27, %v24726_v54 }
 0xc2f   :  { %28942 = vst [vmem:[#allocation72_spill] sm:$0xff] %v25188_v47  ;;  %v25194_v29 = vmul.f32 %v24859_v44, %v28943_v37  ;;  %v25200_v42 = vmul.f32 %v24859_v44, %v28944_v41  ;;  %v28945_v27 = vsub.f32 %v28862_v40, %v24726_v54  ;;  %v28948_v37 = vsub.f32 %v28847_v49, %v24726_v54 }
 0xc30   :  { %v25183_v28 = vmul.f32 %v24859_v44, %v28940_v43  ;;  %v28949_v41 = vsub.f32 %v28864_v26, %v24726_v54  ;;  %v28952_v49 = vsub.f32 %v24468_v60, %v24726_v54  ;;  %v28953_v26 = vsub.f32 %v24471_v36, %v24726_v54 }
 0xc31   :  { %v25206_v43 = vmul.f32 %v24859_v44, %v28945_v27  ;;  %v11599_v12 = vmul.f32 %v24859_v44, %v28948_v37  ;;  %v28950_v27 = vsub.f32 %v24455_v21, %v24726_v54  ;;  %v28954_v21 = vsub.f32 %v24479_v8, %v24726_v54 }
 0xc32   :  { %28941 = vst [vmem:[#allocation48_spill] sm:$0xff] %v25183_v28  ;;  %v28947_v28 = vsub.f32 %v28863_v1, %v24726_v54  ;;  %v11600_v40 = vmul.f32 %v24859_v44, %v28949_v41  ;;  %v28951_v1 = vsub.f32 %v24459_v55, %v24726_v54  ;;  %v11604_v37 = vmul.f32 %v24859_v44, %v28953_v26  ;;  %v28960_v26 = vld [vmem:[#allocation62_spill] sm:$0xff] }
 0xc33   :  { %28946 = vst [vmem:[#allocation57_spill] sm:$0xff] %v25206_v43  ;;  %v11601_v43 = vmul.f32 %v24859_v44, %v28950_v27  ;;  %v11605_v41 = vmul.f32 %v24859_v44, %v28954_v21  ;;  %v28955_v55 = vsub.f32 %v24483_v32, %v24726_v54  ;;  %v25249_v60 = vadd.f32 %v25188_v47, %v24886_v10 }
 0xc34   :  { %v25212_v4 = vmul.f32 %v24859_v44, %v28947_v28  ;;  %v11602_v39 = vmul.f32 %v24859_v44, %v28951_v1  ;;  %v11603_v28 = vmul.f32 %v24859_v44, %v28952_v49  ;;  %v25253_v1 = vadd.f32 %v25188_v47, %v24892_v25  ;;  %v28959_v49 = vld [vmem:[#allocation67_spill] sm:$0xff]  ;;  %v28961_v21 = vld [vmem:[#allocation44_spill] sm:$0xff] }
 0xc35   :  { %v11606_v27 = vmul.f32 %v24859_v44, %v28955_v55  ;;  %v25257_v36 = vadd.f32 %v25188_v47, %v24898_v59  ;;  %v25261_v8 = vadd.f32 %v25188_v47, %v24904_v52  ;;  %v25265_v32 = vadd.f32 %v25188_v47, %v24910_v62 }
 0xc36   :  { %v25269_v10 = vadd.f32 %v25188_v47, %v24916_v63  ;;  %v25273_v54 = vadd.f32 %v25188_v47, %v24922_v13  ;;  %v25277_v44 = vadd.f32 %v25188_v47, %v24928_v61  ;;  %v25281_v25 = vadd.f32 %v25188_v47, %v24934_v33 }
 0xc37   :  { %v25285_v59 = vadd.f32 %v25188_v47, %v24940_v23  ;;  %v25289_v52 = vadd.f32 %v25188_v47, %v24946_v14  ;;  %v25293_v62 = vadd.f32 %v25188_v47, %v24952_v45  ;;  %v25297_v63 = vadd.f32 %v25188_v47, %v24958_v3 }
 0xc38   :  { %v25301_v13 = vadd.f32 %v25188_v47, %v24964_v53  ;;  %v25305_v61 = vadd.f32 %v25188_v47, %v24970_v38  ;;  %v25309_v33 = vadd.f32 %v25188_v47, %v24976_v7  ;;  %v25313_v23 = vadd.f32 %v25188_v47, %v24982_v22 }
 0xc39   :  { %v25317_v14 = vadd.f32 %v25188_v47, %v24988_v15  ;;  %v25321_v45 = vadd.f32 %v25188_v47, %v24994_v16  ;;  %v25325_v3 = vadd.f32 %v25188_v47, %v25000_v0  ;;  %v25329_v53 = vadd.f32 %v25188_v47, %v25006_v31 }
 0xc3a   :  { %v25333_v38 = vadd.f32 %v25188_v47, %v25012_v34  ;;  %v25337_v7 = vadd.f32 %v25188_v47, %v25018_v17  ;;  %v25341_v22 = vadd.f32 %v25188_v47, %v25024_v18  ;;  %v25345_v15 = vadd.f32 %v25188_v47, %v25030_v19 }
 0xc3b   :  { %v25349_v16 = vadd.f32 %v25188_v47, %v25036_v50  ;;  %v25353_v0 = vadd.f32 %v25188_v47, %v25042_v6  ;;  %v25357_v31 = vadd.f32 %v25188_v47, %v25048_v51  ;;  %v25361_v34 = vadd.f32 %v25188_v47, %v25054_v11 }
 0xc3c   :  { %v25365_v17 = vadd.f32 %v25188_v47, %v25060_v30  ;;  %v25369_v18 = vadd.f32 %v25188_v47, %v25078_v57  ;;  %v25373_v19 = vadd.f32 %v25188_v47, %v25084_v56  ;;  %v25377_v50 = vadd.f32 %v25188_v47, %v25090_v35  ;;  %v28956_v30 = vld [vmem:[#allocation58_spill] sm:$0xff]  ;;  %v28957_v56 = vld [vmem:[#allocation64_spill] sm:$0xff] }
 0xc3d   :  { %v25381_v6 = vadd.f32 %v25188_v47, %v25096_v48  ;;  %v25385_v51 = vadd.f32 %v25188_v47, %v25102_v9  ;;  %v25389_v11 = vadd.f32 %v25188_v47, %v25108_v58  ;;  %v25393_v57 = vadd.f32 %v25188_v47, %v28956_v30  ;;  %v28963_v30 = vld [vmem:[#allocation71_spill] sm:$0xff] }
 0xc3e   :  { %v25397_v35 = vadd.f32 %v25188_v47, %v28957_v56  ;;  %v25401_v48 = vadd.f32 %v25188_v47, %v28959_v49  ;;  %v25405_v9 = vadd.f32 %v25188_v47, %v28960_v26  ;;  %v25409_v58 = vadd.f32 %v25188_v47, %v25138_v20 }
 0xc3f   :  { %v25413_v55 = vadd.f32 %v25188_v47, %v28961_v21  ;;  %v25417_v56 = vadd.f32 %v25188_v47, %v28963_v30  ;;  %v25425_v26 = vadd.f32 %v25188_v47, %v25165_v24  ;;  %v25429_v20 = vadd.f32 %v25188_v47, %v25171_v5 }
 0xc40   :  { %28958 = vst [vmem:[#allocation60_spill] sm:$0xff] %v25397_v35  ;;  %v28964_v35 = vld [vmem:[#allocation51_spill] sm:$0xff]  ;;  %v25433_v21 = vadd.f32 %v25188_v47, %v25177_v46  ;;  %v25444_v24 = vadd.f32 %v25188_v47, %v25194_v29  ;;  %v25448_v5 = vadd.f32 %v25188_v47, %v25200_v42  ;;  %v25465_v29 = vadd.f32 %v25188_v47, %v11601_v43 }
 0xc41   :  { %28962 = vst [vmem:[#allocation74_spill] sm:$0xff] %v25413_v55  ;;  %v25421_v49 = vadd.f32 %v25188_v47, %v28964_v35  ;;  %28965 = vst [vmem:[#allocation54_spill] sm:$0xff] %v25429_v20  ;;  %v28967_v55 = vld [vmem:[#allocation48_spill] sm:$0xff]  ;;  %v19452_v35 = vld [vmem:[%s27198_s11 + $0xb0] sm:$0xff]   ;;  %v25468_v42 = vadd.f32 %v25188_v47, %v11602_v39  ;;  %v11680_v43 = vmax.f32 %v25249_v60, 0.0  ;;  %v11682_v39 = vmax.f32 %v25257_v36, 0.0 }
 0xc42   :  { %28966 = vst [vmem:[#allocation36_spill] sm:$0xff] %v25433_v21  ;;  %v25437_v30 = vadd.f32 %v25188_v47, %v28967_v55  ;;  %v28969_v20 = vld [vmem:[#allocation57_spill] sm:$0xff]  ;;  %v25456_v55 = vadd.f32 %v25188_v47, %v25212_v4  ;;  %v25462_v21 = vadd.f32 %v25188_v47, %v11600_v40  ;;  %28971 = vst [vmem:[#allocation39_spill] sm:$0xff] %v25465_v29  ;;  %15371 = vmatpush1.bf16.msra.mxu1 %v19452_v35 }
 0xc43   :  { %v25452_v46 = vadd.f32 %v25188_v47, %v28969_v20  ;;  %28972 = vst [vmem:[#allocation49_spill] sm:$0xff] %v25468_v42  ;;  %v25471_v20 = vadd.f32 %v25188_v47, %v11603_v28  ;;  %v25477_v4 = vadd.f32 %v25188_v47, %v11605_v41  ;;  %15372 = vmatprep.subr.bf16.mxu1 %v28849_v2  ;;  %v11681_v40 = vmax.f32 %v25253_v1, 0.0 }
 0xc44   :  { %28968 = vst [vmem:[#allocation42_spill] sm:$0xff] %v25437_v30  ;;  %v25459_v30 = vadd.f32 %v25188_v47, %v11599_v12  ;;  %v25480_v12 = vadd.f32 %v25188_v47, %v11606_v27  ;;  %v11683_v28 = vmax.f32 %v25261_v8, 0.0  ;;  %v11684_v35 = vmax.f32 %v25265_v32, 0.0 }
 0xc45   :  { %28970 = vst [vmem:[#allocation63_spill] sm:$0xff] %v25452_v46  ;;  %28973 = vst [vmem:[#allocation55_spill] sm:$0xff] %v25471_v20  ;;  %v25474_v46 = vadd.f32 %v25188_v47, %v11604_v37  ;;  %v11685_v37 = vmax.f32 %v25269_v10, 0.0  ;;  %v11686_v41 = vmax.f32 %v25273_v54, 0.0  ;;  %v11688_v27 = vmax.f32 %v25281_v25, 0.0 }
 0xc46   :  { %28975 = vst [vmem:[#allocation53_spill] sm:$0xff] %v25477_v4  ;;  %28976 = vst [vmem:[#allocation61_spill] sm:$0xff] %v25480_v12  ;;  %v11687_v4 = vmax.f32 %v25277_v44, 0.0  ;;  %v11689_v47 = vmax.f32 %v25285_v59, 0.0  ;;  %v11690_v60 = vmax.f32 %v25289_v52, 0.0  ;;  %v11691_v1 = vmax.f32 %v25293_v62, 0.0 }
 0xc47   :  { %28974 = vst [vmem:[#allocation47_spill] sm:$0xff] %v25474_v46  ;;  %v11692_v36 = vmax.f32 %v25297_v63, 0.0  ;;  %v11693_v8 = vmax.f32 %v25301_v13, 0.0  ;;  %v11694_v32 = vmax.f32 %v25305_v61, 0.0  ;;  %v11695_v10 = vmax.f32 %v25309_v33, 0.0  ;;  %v28977_v2 = vld [vmem:[#allocation60_spill] sm:$0xff] }
 0xc48   :  { %v11696_v54 = vmax.f32 %v25313_v23, 0.0  ;;  %v11697_v44 = vmax.f32 %v25317_v14, 0.0  ;;  %v11698_v25 = vmax.f32 %v25321_v45, 0.0  ;;  %v11699_v59 = vmax.f32 %v25325_v3, 0.0  ;;  %v28978_v12 = vld [vmem:[#allocation74_spill] sm:$0xff] }
 0xc49   :  { %v11700_v52 = vmax.f32 %v25329_v53, 0.0  ;;  %v11701_v62 = vmax.f32 %v25333_v38, 0.0  ;;  %v11702_v63 = vmax.f32 %v25337_v7, 0.0  ;;  %v11703_v13 = vmax.f32 %v25341_v22, 0.0  ;;  %v28979_v46 = vld [vmem:[#allocation54_spill] sm:$0xff]  ;;  %v28980_v20 = vld [vmem:[#allocation36_spill] sm:$0xff] }
 0xc4a   :  { %v11704_v61 = vmax.f32 %v25345_v15, 0.0  ;;  %v11705_v33 = vmax.f32 %v25349_v16, 0.0  ;;  %v11706_v23 = vmax.f32 %v25353_v0, 0.0  ;;  %v11707_v14 = vmax.f32 %v25357_v31, 0.0 }
 0xc4b   :  { %v11708_v45 = vmax.f32 %v25361_v34, 0.0  ;;  %v11709_v3 = vmax.f32 %v25365_v17, 0.0  ;;  %v11712_v53 = vmax.f32 %v25369_v18, 0.0  ;;  %v11713_v38 = vmax.f32 %v25373_v19, 0.0  ;;  %v28981_v42 = vld [vmem:[#allocation42_spill] sm:$0xff] }
 0xc4c   :  { %v11714_v7 = vmax.f32 %v25377_v50, 0.0  ;;  %v11715_v22 = vmax.f32 %v25381_v6, 0.0  ;;  %v11716_v15 = vmax.f32 %v25385_v51, 0.0  ;;  %v11717_v16 = vmax.f32 %v25389_v11, 0.0  ;;  %v28982_v29 = vld [vmem:[#allocation63_spill] sm:$0xff] }
 0xc4d   :  { %v11718_v0 = vmax.f32 %v25393_v57, 0.0  ;;  %v11719_v31 = vmax.f32 %v28977_v2, 0.0  ;;  %v11720_v34 = vmax.f32 %v25401_v48, 0.0  ;;  %v11721_v17 = vmax.f32 %v25405_v9, 0.0 }
 0xc4e   :  { %v11722_v18 = vmax.f32 %v25409_v58, 0.0  ;;  %v11723_v19 = vmax.f32 %v28978_v12, 0.0  ;;  %v11724_v50 = vmax.f32 %v25417_v56, 0.0  ;;  %v11725_v6 = vmax.f32 %v25421_v49, 0.0  ;;  %v19453_v56 = vld [vmem:[%s27198_s11 + $0xb8] sm:$0xff]  }
 0xc4f   :  { %v11726_v51 = vmax.f32 %v25425_v26, 0.0  ;;  %v11727_v11 = vmax.f32 %v28979_v46, 0.0  ;;  %v11728_v57 = vmax.f32 %v28980_v20, 0.0  ;;  %v11729_v2 = vmax.f32 %v28981_v42, 0.0  ;;  %v28983_v46 = vld [vmem:[#allocation39_spill] sm:$0xff]  ;;  %v28984_v42 = vld [vmem:[#allocation49_spill] sm:$0xff]  ;;  %15373 = vmatpush1.bf16.msra.mxu1 %v19453_v56 }
 0xc50   :  { %v11730_v48 = vmax.f32 %v25444_v24, 0.0  ;;  %v11731_v9 = vmax.f32 %v25448_v5, 0.0  ;;  %v11732_v58 = vmax.f32 %v28982_v29, 0.0  ;;  %v11733_v12 = vmax.f32 %v25456_v55, 0.0  ;;  %v28985_v5 = vld [vmem:[#allocation55_spill] sm:$0xff] }
 0xc51   :  { %v11734_v49 = vmax.f32 %v25459_v30, 0.0  ;;  %v11735_v26 = vmax.f32 %v25462_v21, 0.0  ;;  %v11736_v20 = vmax.f32 %v28983_v46, 0.0  ;;  %v11737_v24 = vmax.f32 %v28984_v42, 0.0  ;;  %v28986_v55 = vld [vmem:[#allocation47_spill] sm:$0xff]  ;;  %v28987_v21 = vld [vmem:[#allocation53_spill] sm:$0xff] }
 0xc52   :  { %v11738_v29 = vmax.f32 %v28985_v5, 0.0  ;;  %v11739_v30 = vmax.f32 %v28986_v55, 0.0  ;;  %v11740_v46 = vmax.f32 %v28987_v21, 0.0  ;;  %v28988_v42 = vld [vmem:[#allocation61_spill] sm:$0xff]  ;;  %v25546_v55 = vpack.c.bf16 %v11681_v40, %v11680_v43 }
 0xc53   :  { %v11741_v5 = vmax.f32 %v28988_v42, 0.0  ;;  %v25548_v21 = vpack.c.bf16 %v11683_v28, %v11682_v39  ;;  %v25550_v42 = vpack.c.bf16 %v11685_v37, %v11684_v35  ;;  %v25552_v56 = vpack.c.bf16 %v11687_v4, %v11686_v41 }
 0xc54   :  { %28989 = vst [vmem:[#allocation66_spill] sm:$0xff] %v25546_v55  ;;  %v28993_v40 = vmov 0   ;;  %v25555_v43 = vpack.c.bf16 %v11689_v47, %v11688_v27  ;;  %v25557_v55 = vpack.c.bf16 %v11691_v1, %v11690_v60  ;;  %v25559_v28 = vpack.c.bf16 %v11693_v8, %v11692_v36 }
 0xc55   :  { %28990 = vst [vmem:[#allocation59_spill] sm:$0xff] %v25548_v21  ;;  %28991 = vst [vmem:[#allocation65_spill] sm:$0xff] %v25550_v42  ;;  %15374 = vmatprep.subr.bf16.mxu1 %v28993_v40  ;;  %v25561_v39 = vpack.c.bf16 %v11695_v10, %v11694_v32  ;;  %v25563_v21 = vpack.c.bf16 %v11697_v44, %v11696_v54  ;;  %v25565_v35 = vpack.c.bf16 %v11699_v59, %v11698_v25 }
 0xc56   :  { %28992 = vst [vmem:[#allocation70_spill] sm:$0xff] %v25552_v56  ;;  %28994 = vst [vmem:[#allocation136_spill] sm:$0xff] %v25555_v43  ;;  %v25567_v37 = vpack.c.bf16 %v11701_v62, %v11700_v52  ;;  %v25569_v42 = vpack.c.bf16 %v11703_v13, %v11702_v63  ;;  %v25571_v4 = vpack.c.bf16 %v11705_v33, %v11704_v61 }
 0xc57   :  { %28995 = vst [vmem:[#allocation69_spill] sm:$0xff] %v25557_v55  ;;  %28996 = vst [vmem:[#allocation75_spill] sm:$0xff] %v25559_v28  ;;  %v25573_v41 = vpack.c.bf16 %v11707_v14, %v11706_v23  ;;  %v25575_v47 = vpack.c.bf16 %v11709_v3, %v11708_v45  ;;  %v25577_v27 = vpack.c.bf16 %v11713_v38, %v11712_v53  ;;  %v29009_v23 = vld [vmem:[#allocation33_spill] sm:$0xff]  ;;  %v29010_v14 = vld [vmem:[#allocation72_spill] sm:$0xff] }
 0xc58   :  { %28997 = vst [vmem:[#allocation138_spill] sm:$0xff] %v25561_v39  ;;  %28998 = vst [vmem:[#allocation140_spill] sm:$0xff] %v25563_v21  ;;  %v25579_v60 = vpack.c.bf16 %v11715_v22, %v11714_v7  ;;  %v25581_v1 = vpack.c.bf16 %v11717_v16, %v11716_v15  ;;  %v25583_v36 = vpack.c.bf16 %v11719_v31, %v11718_v0  ;;  %v29011_v3 = vld [vmem:[#allocation56_spill] sm:$0xff] }
 0xc59   :  { %28999 = vst [vmem:[#allocation137_spill] sm:$0xff] %v25565_v35  ;;  %29000 = vst [vmem:[#allocation139_spill] sm:$0xff] %v25567_v37  ;;  %v25585_v8 = vpack.c.bf16 %v11721_v17, %v11720_v34  ;;  %v25587_v32 = vpack.c.bf16 %v11723_v19, %v11722_v18  ;;  %v25589_v10 = vpack.c.bf16 %v11725_v6, %v11724_v50 }
 0xc5a   :  { %29001 = vst [vmem:[#allocation142_spill] sm:$0xff] %v25569_v42  ;;  %29002 = vst [vmem:[#allocation144_spill] sm:$0xff] %v25571_v4  ;;  %v25591_v54 = vpack.c.bf16 %v11727_v11, %v11726_v51  ;;  %v25593_v44 = vpack.c.bf16 %v11729_v2, %v11728_v57  ;;  %v25595_v25 = vpack.c.bf16 %v11731_v9, %v11730_v48  ;;  %v27733_v51 = vshll.u32 %v25552_v56, 16  ;;  %v29015_v48 = vld [vmem:[#allocation106_spill] sm:$0xff] }
 0xc5b   :  { %29003 = vst [vmem:[#allocation141_spill] sm:$0xff] %v25575_v47  ;;  %v25597_v59 = vpack.c.bf16 %v11733_v12, %v11732_v58  ;;  %v25599_v52 = vpack.c.bf16 %v11735_v26, %v11734_v49  ;;  %v25601_v62 = vpack.c.bf16 %v11737_v24, %v11736_v20  ;;  %v25603_v63 = vpack.c.bf16 %v11739_v30, %v11738_v29  ;;  %v29012_v38 = vld [vmem:[#allocation66_spill] sm:$0xff]  ;;  %v19454_v49 = vld [vmem:[%s27198_s11 + $0xc0] sm:$0xff]   ;;  %v29018_v20 = vld [vmem:[#allocation107_spill] sm:$0xff] }
 0xc5c   :  { %v25605_v13 = vpack.c.bf16 %v11741_v5, %v11740_v46  ;;  %v29008_v61 = vld [vmem:[#allocation59_spill] sm:$0xff]  ;;  %v11614_v45 = vadd.f32 %v29010_v14, %v29009_v23  ;;  %v11615_v53 = vadd.f32 %v29010_v14, %v29011_v3  ;;  %v11847_v7 = vshll.u32 %v29012_v38, 16  ;;  %v29013_v16 = vld [vmem:[#allocation65_spill] sm:$0xff]  ;;  %15375 = vmatpush1.bf16.msra.mxu1 %v19454_v49  ;;  %v29020_v5 = vld [vmem:[#allocation108_spill] sm:$0xff] }
 0xc5d   :  { %29004 = vst [vmem:[#allocation143_spill] sm:$0xff] %v25599_v52  ;;  %29005 = vst [vmem:[#allocation146_spill] sm:$0xff] %v25601_v62  ;;  %v11854_v33 = vshll.u32 %v29008_v61, 16  ;;  %v11851_v22 = vshrl.u32 %v29008_v61, 16  ;;  %v11861_v0 = vshll.u32 %v29013_v16, 16  ;;  %v11844_v17 = vshrl.u32 %v29012_v38, 16  ;;  %15376 = vmatprep.subr.bf16.mxu1 %v28993_v40 }
 0xc5e   :  { %29006 = vst [vmem:[#allocation148_spill] sm:$0xff] %v25603_v63  ;;  %29007 = vst [vmem:[#allocation145_spill] sm:$0xff] %v25605_v13  ;;  %v11678_v31 = vmax.f32 %v11614_v45, 0.0  ;;  %v11679_v34 = vmax.f32 %v11615_v53, 0.0  ;;  %v12268_v18 = vrot.slane %v11847_v7, 1  ;;  %v11858_v50 = vshrl.u32 %v29013_v16, 16 }
 0xc5f   :  { %v12275_v15 = vrot.slane %v11854_v33, 1  ;;  %v12282_v6 = vrot.slane %v11861_v0, 1  ;;  %v27726_v2 = vshll.u32 %v25555_v43, 16  ;;  %v12289_v29 = vrot.slane %v27733_v51, 1  ;;  %v29025_v49 = vld [vmem:[#allocation120_spill] sm:$0xff] }
 0xc60   :  { %v25622_v11 = vpack.c.bf16 %v11679_v34, %v11678_v31  ;;  %v12269_v57 = vor.u32 %v12268_v18, %v11844_v17  ;;  %v11865_v3 = vshrl.u32 %v25552_v56, 16  ;;  %v27724_v34 = vshll.u32 %v25557_v55, 16  ;;  %v29022_v18 = vld [vmem:[#allocation110_spill] sm:$0xff] }
 0xc61   :  { %v12276_v19 = vor.u32 %v12275_v15, %v11851_v22  ;;  %v12283_v12 = vor.u32 %v12282_v6, %v11858_v50  ;;  %v12296_v45 = vrot.slane %v27726_v2, 1  ;;  %v27730_v15 = vshrl.u32 %v25555_v43, 16 }
 0xc62   :  { %29014 = vst [vmem:[#allocation147_spill] sm:$0xff] %v25622_v11  ;;  %15109 = vmatprep.mubr.bf16.mxu1 %v25622_v11  ;;  %v27720_v26 = vshrl.u32 %v25622_v11, 16  ;;  %v25640_v24 = vsel %vm20262_vm4, %v12269_v57, %v29018_v20  ;;  %v27722_v46 = vshll.u32 %v25622_v11, 16  ;;  %v12290_v31 = vor.u32 %v12289_v29, %v11865_v3 }
 0xc63   :  { %v25628_v58 = vsel %vm20262_vm4, %v12276_v19, %v29015_v48  ;;  %29019 = vst [vmem:[#allocation109_spill] sm:$0xff] %v25640_v24  ;;  %17604 = vmatprep.mubr.bf16.mxu0 %v25640_v24  ;;  %v25652_v23 = vsel %vm20262_vm4, %v12283_v12, %v29020_v5  ;;  %v11846_v57 = vrot.slane %v11844_v17, 7  ;;  %v12297_v48 = vor.u32 %v12296_v45, %v27730_v15  ;;  %v29027_v17 = vld [vmem:[#allocation124_spill] sm:$0xff]  ;;  %v19479_v19 = vld [vmem:[%s27198_s11 + $0x188] sm:$0xff]  }
 0xc64   :  { %29017 = vst [vmem:[#allocation118_spill] sm:$0xff] %v25628_v58  ;;  %v11839_v30 = vrot.slane %v27720_v26, 7  ;;  %17605 = vmatmul.mubr.bf16.vlgmr.msra.gmra.mrb[80].mxu0 %v25628_v58  ;;  %29021 = vst [vmem:[#allocation130_spill] sm:$0xff] %v25652_v23  ;;  %v27721_v12 = vshll.u32 %v25559_v28, 16  ;;  %v25678_v20 = vsel %vm20262_vm4, %v12290_v31, %v29025_v49  ;;  %v12303_v29 = vrot.slane %v27724_v34, 1  ;;  %v29029_v26 = vld [vmem:[#allocation128_spill] sm:$0xff] }
 0xc65   :  { %17608 = vmatprep.mubr.bf16.mxu0 %v25652_v23  ;;  %29026 = vst [vmem:[#allocation112_spill] sm:$0xff] %v25678_v20  ;;  %v25686_v5 = vsel %vm20262_vm4, %v12297_v48, %v29027_v17  ;;  %v27723_v31 = vshrl.u32 %v25559_v28, 16  ;;  %v27729_v49 = vshrl.u32 %v25571_v4, 16  ;;  %v11860_v15 = vrot.slane %v11858_v50, 7 }
 0xc66   :  { %v11842_v53 = vor.u32 %v27722_v46, %v11839_v30  ;;  %v11849_v30 = vor.u32 %v11847_v7, %v11846_v57  ;;  %29028 = vst [vmem:[#allocation123_spill] sm:$0xff] %v25686_v5  ;;  %v12310_v45 = vrot.slane %v27721_v12, 1  ;;  %v27728_v57 = vshll.u32 %v25561_v39, 16  ;;  %v19455_v46 = vld [vmem:[%s27198_s11 + $0xc8] sm:$0xff]  }
 0xc67   :  { %v27727_v12 = vshll.u32 %v25563_v21, 16  ;;  %15377 = vmatpush1.bf16.msra.mxu1 %v19455_v46  ;;  %v27734_v46 = vshrl.u32 %v25563_v21, 16  ;;  %v29089_v24 = vshll.u32 %v25559_v28, 16 }
 0xc68   :  { %v25668_v6 = vsel %vm19986_vm2, %v11842_v53, %v29022_v18  ;;  %v27725_v53 = vshrl.u32 %v25557_v55, 16  ;;  %v11853_v18 = vrot.slane %v11851_v22, 7  ;;  %v25700_v48 = vsel %vm19986_vm2, %v11849_v30, %v29029_v26  ;;  %v29031_v30 = vld [vmem:[#allocation132_spill] sm:$0xff]  ;;  %15378 = vmatprep.subr.bf16.mxu1 %v28993_v40 }
 0xc69   :  { %29024 = vst [vmem:[#allocation129_spill] sm:$0xff] %v25668_v6  ;;  %15110 = vmatmul.mubr.bf16.gmra.mrb[204].mxu1 %v25668_v6  ;;  %29030 = vst [vmem:[#allocation127_spill] sm:$0xff] %v25700_v48  ;;  %v12311_v17 = vor.u32 %v12310_v45, %v27723_v31  ;;  %v11930_v22 = vrot.slane %v27729_v49, 7  ;;  %v12317_v31 = vrot.slane %v27728_v57, 1  ;;  %v27738_v57 = vshll.u32 %v25565_v35, 16 }
 0xc6a   :  { %15117 = vmatprep.mubr.bf16.mxu1 %v29012_v38  ;;  %v12304_v7 = vor.u32 %v12303_v29, %v27725_v53  ;;  %v27732_v29 = vshll.u32 %v25571_v4, 16  ;;  %v11856_v26 = vor.u32 %v11854_v33, %v11853_v18  ;;  %v29033_v53 = vld [vmem:[#allocation131_spill] sm:$0xff]  ;;  %v12324_v33 = vrot.slane %v27727_v12, 1  ;;  %v29046_v38 = vld [vmem:[#allocation45_spill] sm:$0xff] }
 0xc6b   :  { %v25730_v2 = vsel %vm20262_vm4, %v12311_v17, %v29033_v53  ;;  %v27731_v18 = vshrl.u32 %v25577_v27, 16  ;;  %v29035_v53 = vld [vmem:[#allocation31_spill] sm:$0xff]  ;;  %v27735_v49 = vshrl.u32 %v25581_v1, 16 }
 0xc6c   :  { %17609 = vmatmul.mubr.bf16.gmra.mrb[84].mxu0 %v25678_v20  ;;  %v25718_v45 = vsel %vm20262_vm4, %v12304_v7, %v29031_v30  ;;  %v25724_v34 = vor.u32 %v27732_v29, %v11930_v22  ;;  %29034 = vst [vmem:[#allocation86_spill] sm:$0xff] %v25730_v2  ;;  %v27736_v7 = vshrl.u32 %v25561_v39, 16  ;;  %v27737_v30 = vshll.u32 %v25577_v27, 16 }
 0xc6d   :  { %17612 = vmatprep.mubr.bf16.mxu0 %v25686_v5  ;;  %29032 = vst [vmem:[#allocation50_spill] sm:$0xff] %v25718_v45  ;;  %v11951_v22 = vrot.slane %v27731_v18, 7  ;;  %v25745_v17 = vsel %vm19986_vm2, %v11856_v26, %v29035_v53  ;;  %v12325_v18 = vor.u32 %v12324_v33, %v27734_v46  ;;  %v27739_v29 = vshll.u32 %v25567_v37, 16  ;;  %v29037_v53 = vld [vmem:[#allocation23_spill] sm:$0xff] }
 0xc6e   :  { %29036 = vst [vmem:[#allocation103_spill] sm:$0xff] %v25745_v17  ;;  %v12318_v12 = vor.u32 %v12317_v31, %v27736_v7  ;;  %v11965_v31 = vrot.slane %v27735_v49, 7  ;;  %v27740_v26 = vshll.u32 %v25581_v1, 16  ;;  %v12331_v33 = vrot.slane %v27738_v57, 1  ;;  %v29039_v49 = vld [vmem:[#allocation27_spill] sm:$0xff] }
 0xc6f   :  { %v25758_v51 = vor.u32 %v27737_v30, %v11951_v22  ;;  %v27741_v22 = vshrl.u32 %v25585_v8, 16  ;;  %v11863_v46 = vor.u32 %v11861_v0, %v11860_v15  ;;  %v25779_v7 = vsel %vm20262_vm4, %v12325_v18, %v29039_v49 }
 0xc70   :  { %v25768_v50 = vsel %vm20262_vm4, %v12318_v12, %v29037_v53  ;;  %29040 = vst [vmem:[#allocation105_spill] sm:$0xff] %v25779_v7  ;;  %v12338_v30 = vrot.slane %v27739_v29, 1  ;;  %v25785_v12 = vor.u32 %v27740_v26, %v11965_v31  ;;  %v27744_v53 = vshrl.u32 %v25565_v35, 16  ;;  %v29041_v26 = vld [vmem:[#allocation11_spill] sm:$0xff] }
 0xc71   :  { %15118 = vmatmul.mubr.bf16.gmra.mrb[208].mxu1 %v25700_v48  ;;  %29038 = vst [vmem:[#allocation104_spill] sm:$0xff] %v25768_v50  ;;  %v11979_v0 = vrot.slane %v27741_v22, 7  ;;  %v27746_v15 = vshll.u32 %v25585_v8, 16  ;;  %v27745_v57 = vshrl.u32 %v25567_v37, 16  ;;  %v11867_v49 = vrot.slane %v11865_v3, 7  ;;  %v19456_v3 = vld [vmem:[%s27198_s11 + $0xd0] sm:$0xff]  }
 0xc72   :  { %15125 = vmatprep.mubr.bf16.mxu1 %v29008_v61  ;;  %v12332_v18 = vor.u32 %v12331_v33, %v27744_v53  ;;  %v27749_v31 = vshll.u32 %v25569_v42, 16  ;;  %v25805_v22 = vsel %vm19986_vm2, %v11863_v46, %v29041_v26  ;;  %v27748_v61 = vshrl.u32 %v25589_v10, 16  ;;  %v29044_v53 = vld [vmem:[#allocation9_spill] sm:$0xff]  ;;  %15379 = vmatpush1.bf16.msra.mxu1 %v19456_v3 }
 0xc73   :  { %v25800_v29 = vor.u32 %v27746_v15, %v11979_v0  ;;  %29042 = vst [vmem:[#allocation133_spill] sm:$0xff] %v25805_v22  ;;  %v29043_v46 = vshll.u32 %v25552_v56, 16  ;;  %v27756_v15 = vshrl.u32 %v25593_v44, 16  ;;  %15380 = vmatprep.subr.bf16.mxu1 %v28993_v40  ;;  %v11938_v3 = vshll.u32 %v25573_v41, 16 }
 0xc74   :  { %17613 = vmatmul.mubr.bf16.gmra.mrb[88].mxu0 %v25718_v45  ;;  %v11993_v33 = vrot.slane %v27748_v61, 7 }
 0xc75   :  { %17616 = vmatprep.mubr.bf16.mxu0 %v25730_v2  ;;  %v11870_v26 = vor.u32 %v29043_v46, %v11867_v49  ;;  %v29048_v46 = vshll.u32 %v25571_v4, 16  ;;  %v29050_v49 = vshrl.u32 %v25555_v43, 16  ;;  %v29056_v2 = vshll.u32 %v25555_v43, 16 }
 0xc77   :  { %v12352_v0 = vrot.slane %v29048_v46, 1  ;;  %v11874_v46 = vrot.slane %v29050_v49, 7  ;;  %v12359_v49 = vrot.slane %v11938_v3, 1 }
 0xc79   :  { %15126 = vmatmul.mubr.bf16.gmra.mrb[212].mxu1 %v25745_v17 }
 0xc7a   :  { %15133 = vmatprep.mubr.bf16.mxu1 %v29013_v16  ;;  %v12339_v16 = vor.u32 %v12338_v30, %v27745_v57  ;;  %v25823_v30 = vsel %vm20262_vm4, %v12332_v18, %v29044_v53  ;;  %v12345_v57 = vrot.slane %v27749_v31, 1  ;;  %v29049_v53 = vshll.u32 %v25589_v10, 16  ;;  %v29052_v31 = vld [vmem:[#allocation32_spill] sm:$0xff] }
 0xc7b   :  { %29045 = vst [vmem:[#allocation111_spill] sm:$0xff] %v25823_v30 }
 0xc7c   :  { %17617 = vmatmul.mubr.bf16.gmra.mrb[92].mxu0 %v25768_v50  ;;  %v25832_v61 = vsel %vm20262_vm4, %v12339_v16, %v29046_v38  ;;  %v25839_v18 = vor.u32 %v29049_v53, %v11993_v33  ;;  %v12007_v38 = vrot.slane %v27756_v15, 7  ;;  %v27761_v16 = vshll.u32 %v25593_v44, 16 }
 0xc7d   :  { %17620 = vmatprep.mubr.bf16.mxu0 %v25779_v7  ;;  %29047 = vst [vmem:[#allocation115_spill] sm:$0xff] %v25832_v61  ;;  %v11935_v53 = vshrl.u32 %v25573_v41, 16  ;;  %v25861_v15 = vsel %vm19986_vm2, %v11870_v26, %v29052_v31  ;;  %v29054_v7 = vshrl.u32 %v25571_v4, 16  ;;  %v11877_v31 = vor.u32 %v29056_v2, %v11874_v46  ;;  %v29060_v2 = vld [vmem:[#allocation134_spill] sm:$0xff] }
 0xc7e   :  { %29053 = vst [vmem:[#allocation94_spill] sm:$0xff] %v25861_v15  ;;  %v29057_v26 = vshrl.u32 %v25557_v55, 16 }
 0xc7f   :  { %v12353_v50 = vor.u32 %v12352_v0, %v29054_v7  ;;  %v27776_v7 = vshrl.u32 %v25601_v62, 16  ;;  %v29058_v0 = vld [vmem:[#allocation85_spill] sm:$0xff]  ;;  %v11937_v20 = vrot.slane %v11935_v53, 7 }
 0xc80   :  { %v11881_v45 = vrot.slane %v29057_v26, 7 }
 0xc81   :  { %15134 = vmatmul.mubr.bf16.gmra.mrb[216].mxu1 %v25805_v22  ;;  %v25891_v46 = vsel %vm20262_vm4, %v12353_v50, %v29060_v2  ;;  %v12035_v26 = vrot.slane %v27776_v7, 7  ;;  %v29062_v2 = vld [vmem:[#allocation135_spill] sm:$0xff] }
 0xc82   :  { %15141 = vmatprep.mubr.bf16.mxu1 %v25552_v56  ;;  %v29051_v56 = vshrl.u32 %v25569_v42, 16  ;;  %29061 = vst [vmem:[#allocation84_spill] sm:$0xff] %v25891_v46  ;;  %v25910_v7 = vsel %vm19986_vm2, %v11877_v31, %v29062_v2  ;;  %v29068_v31 = vld [vmem:[#allocation40_spill] sm:$0xff]  ;;  %v29070_v2 = vld [vmem:[#allocation7_spill] sm:$0xff] }
 0xc83   :  { %29063 = vst [vmem:[#allocation24_spill] sm:$0xff] %v25910_v7 }
 0xc84   :  { %17621 = vmatmul.mubr.bf16.gmra.mrb[96].mxu0 %v25823_v30  ;;  %v12346_v33 = vor.u32 %v12345_v57, %v29051_v56  ;;  %v27768_v30 = vshrl.u32 %v25597_v59, 16  ;;  %v29055_v56 = vshll.u32 %v25575_v47, 16 }
 0xc85   :  { %17624 = vmatprep.mubr.bf16.mxu0 %v25832_v61  ;;  %v25855_v61 = vor.u32 %v27761_v16, %v12007_v38  ;;  %v27771_v16 = vshll.u32 %v25597_v59, 16 }
 0xc86   :  { %v13176_v57 = vrot.slane %v29055_v56, 1  ;;  %v12021_v38 = vrot.slane %v27768_v30, 7  ;;  %v25880_v5 = vsel %vm20262_vm4, %v12346_v33, %v29058_v0  ;;  %v27777_v56 = vshrl.u32 %v25575_v47, 16 }
 0xc87   :  { %29059 = vst [vmem:[#allocation38_spill] sm:$0xff] %v25880_v5  ;;  %v27778_v33 = vshll.u32 %v25601_v62, 16  ;;  %v12360_v0 = vor.u32 %v12359_v49, %v11935_v53  ;;  %v29064_v53 = vshll.u32 %v25557_v55, 16 }
 0xc88   :  { %v25885_v30 = vor.u32 %v27771_v16, %v12021_v38  ;;  %v13177_v38 = vor.u32 %v13176_v57, %v27777_v56  ;;  %v29065_v56 = vld [vmem:[#allocation41_spill] sm:$0xff]  ;;  %v11959_v16 = vshll.u32 %v25579_v60, 16 }
 0xc89   :  { %15142 = vmatmul.mubr.bf16.gmra.mrb[220].mxu1 %v25861_v15  ;;  %v25905_v50 = vor.u32 %v27778_v33, %v12035_v26  ;;  %v11884_v49 = vor.u32 %v29064_v53, %v11881_v45  ;;  %v29067_v33 = vld [vmem:[#allocation35_spill] sm:$0xff]  ;;  %v25927_v45 = vsel %vm20262_vm4, %v12360_v0, %v29068_v31  ;;  %v27792_v0 = vshll.u32 %v25587_v32, 16 }
 0xc8a   :  { %15149 = vmatprep.mubr.bf16.mxu1 %v25555_v43  ;;  %v25900_v43 = vor.u32 %v11938_v3, %v11937_v20  ;;  %v11646_v20 = vadd.f32 %v29010_v14, %v29065_v56  ;;  %v29066_v3 = vshll.u32 %v25577_v27, 16  ;;  %29069 = vst [vmem:[#allocation46_spill] sm:$0xff] %v25927_v45  ;;  %v25932_v56 = vsel %vm20262_vm4, %v13177_v38, %v29070_v2 }
 0xc8b   :  { %29071 = vst [vmem:[#allocation43_spill] sm:$0xff] %v25932_v56  ;;  %v29073_v26 = vshrl.u32 %v25583_v36, 16  ;;  %v12380_v17 = vrot.slane %v11959_v16, 1 }
 0xc8c   :  { %17625 = vmatmul.mubr.bf16.gmra.mrb[100].mxu0 %v25880_v5  ;;  %v12373_v5 = vrot.slane %v29066_v3, 1  ;;  %v11710_v53 = vmax.f32 %v11646_v20, 0.0  ;;  %v29072_v3 = vshrl.u32 %v25579_v60, 16  ;;  %v29076_v20 = vld [vmem:[#allocation15_spill] sm:$0xff] }
 0xc8d   :  { %17628 = vmatprep.mubr.bf16.mxu0 %v25891_v46  ;;  %v11647_v46 = vadd.f32 %v29010_v14, %v29067_v33  ;;  %v19457_v14 = vld [vmem:[%s27198_s11 + $0xd8] sm:$0xff]   ;;  %v11973_v33 = vshll.u32 %v25583_v36, 16 }
 0xc8e   :  { %v11958_v57 = vrot.slane %v29072_v3, 7  ;;  %15381 = vmatpush1.bf16.msra.mxu1 %v19457_v14  ;;  %v29074_v3 = vshrl.u32 %v25587_v32, 16  ;;  %v29079_v14 = vshrl.u32 %v25595_v25, 16 }
 0xc8f   :  { %v11711_v31 = vmax.f32 %v11647_v46, 0.0  ;;  %15382 = vmatprep.subr.bf16.mxu1 %v28993_v40 }
 0xc90   :  { %v25946_v2 = vor.u32 %v11959_v16, %v11958_v57  ;;  %v11986_v23 = vrot.slane %v29074_v3, 7  ;;  %v25962_v57 = vsel %vm19986_vm2, %v11884_v49, %v29076_v20  ;;  %v27800_v49 = vshll.u32 %v25595_v25, 16 }
 0xc91   :  { %15150 = vmatmul.mubr.bf16.gmra.mrb[224].mxu1 %v25910_v7  ;;  %v11972_v7 = vrot.slane %v29073_v26, 7  ;;  %v25952_v15 = vpack.c.bf16 %v11711_v31, %v11710_v53  ;;  %v29075_v26 = vshrl.u32 %v25591_v54, 16  ;;  %29077 = vst [vmem:[#allocation102_spill] sm:$0xff] %v25962_v57 }
 0xc92   :  { %15157 = vmatprep.mubr.bf16.mxu1 %v25557_v55  ;;  %v27795_v55 = vshll.u32 %v25591_v54, 16  ;;  %v25968_v53 = vor.u32 %v27792_v0, %v11986_v23  ;;  %v29080_v23 = vshrl.u32 %v25599_v52, 16 }
 0xc93   :  { %v25954_v46 = vor.u32 %v11973_v33, %v11972_v7  ;;  %v12000_v38 = vrot.slane %v29075_v26, 7  ;;  %v29078_v7 = vshrl.u32 %v25559_v28, 16  ;;  %v29086_v26 = vshrl.u32 %v25575_v47, 16 }
 0xc94   :  { %17629 = vmatmul.mubr.bf16.gmra.mrb[104].mxu0 %v25927_v45  ;;  %v12028_v0 = vrot.slane %v29080_v23, 7  ;;  %v29084_v23 = vshrl.u32 %v25603_v63, 16 }
 0xc95   :  { %17632 = vmatprep.mubr.bf16.mxu0 %v25932_v56  ;;  %v11888_v31 = vrot.slane %v29078_v7, 7  ;;  %v25976_v45 = vor.u32 %v27795_v55, %v12000_v38  ;;  %v12014_v56 = vrot.slane %v29079_v14, 7  ;;  %v29081_v7 = vshrl.u32 %v25577_v27, 16 }
 0xc96   :  { %v29082_v38 = vshll.u32 %v25952_v15, 16  ;;  %v29083_v14 = vshll.u32 %v25599_v52, 16 }
 0xc97   :  { %v12374_v58 = vor.u32 %v12373_v5, %v29081_v7  ;;  %v25993_v20 = vor.u32 %v27800_v49, %v12014_v56  ;;  %v12042_v5 = vrot.slane %v29084_v23, 7  ;;  %v29085_v7 = vshll.u32 %v25622_v11, 16 }
 0xc98   :  { %v12366_v55 = vrot.slane %v29082_v38, 1  ;;  %v25997_v22 = vor.u32 %v29083_v14, %v12028_v0  ;;  %v29087_v56 = vshrl.u32 %v25952_v15, 16  ;;  %v29088_v0 = vshrl.u32 %v25605_v13, 16 }
 0xc99   :  { %15158 = vmatmul.mubr.bf16.gmra.mrb[228].mxu1 %v25962_v57  ;;  %v12261_v3 = vrot.slane %v29085_v7, 1  ;;  %v12726_v57 = vrot.slane %v29086_v26, 7  ;;  %v11891_v23 = vor.u32 %v29089_v24, %v11888_v31  ;;  %v29090_v7 = vshll.u32 %v25603_v63, 16  ;;  %v29092_v26 = vld [vmem:[#allocation29_spill] sm:$0xff] }
 0xc9a   :  { %15165 = vmatprep.mubr.bf16.mxu1 %v25559_v28  ;;  %v26009_v49 = vor.u32 %v12366_v55, %v29087_v56  ;;  %v12838_v14 = vrot.slane %v29088_v0, 7  ;;  %v29091_v38 = vshrl.u32 %v25622_v11, 16  ;;  %v26027_v55 = vsel %vm20262_vm4, %v12374_v58, %v29092_v26  ;;  %v29118_v11 = vld [vmem:[#allocation113_spill] sm:$0xff] }
 0xc9b   :  { %v26017_v48 = vor.u32 %v29090_v7, %v12042_v5  ;;  %v29093_v56 = vshll.u32 %v25581_v1, 16  ;;  %v29094_v24 = vshll.u32 %v25575_v47, 16  ;;  %v29095_v31 = vshll.u32 %v25605_v13, 16  ;;  %v29098_v7 = vld [vmem:[#allocation89_spill] sm:$0xff] }
 0xc9c   :  { %v26021_v6 = vor.u32 %v12261_v3, %v29091_v38  ;;  %17633 = vmatmul.mubr.bf16.gmra.mrb[108].mxu0 %v28993_v40  ;;  %v29097_v3 = vshrl.u32 %v25579_v60, 16  ;;  %v26045_v58 = vsel %vm19986_vm2, %v11891_v23, %v29098_v7  ;;  %v29100_v26 = vshrl.u32 %v25561_v39, 16 }
 0xc9d   :  { %v12387_v0 = vrot.slane %v29093_v56, 1  ;;  %v26033_v16 = vor.u32 %v29094_v24, %v12726_v57  ;;  %v26037_v5 = vor.u32 %v29095_v31, %v12838_v14  ;;  %17636 = vmatprep.mubr.bf16.mxu0 %v26027_v55  ;;  %29099 = vst [vmem:[#allocation13_spill] sm:$0xff] %v26045_v58  ;;  %v29101_v57 = vshrl.u32 %v25581_v1, 16  ;;  %v19458_v14 = vld [vmem:[%s27198_s11 + $0xe0] sm:$0xff]  }
 0xc9e   :  { %v12381_v38 = vor.u32 %v12380_v17, %v29097_v3  ;;  %v11895_v56 = vrot.slane %v29100_v26, 7  ;;  %v29102_v17 = vld [vmem:[#allocation90_spill] sm:$0xff]  ;;  %v12394_v23 = vrot.slane %v11973_v33, 1  ;;  %15383 = vmatpush1.bf16.msra.mxu1 %v19458_v14  ;;  %v29103_v3 = vshll.u32 %v25561_v39, 16  ;;  %v29107_v14 = vld [vmem:[#allocation92_spill] sm:$0xff] }
 0xc9f   :  { %29096 = vst [vmem:[#allocation20_spill] sm:$0xff] %v26037_v5  ;;  %v12388_v24 = vor.u32 %v12387_v0, %v29101_v57  ;;  %v29104_v0 = vld [vmem:[#allocation91_spill] sm:$0xff]  ;;  %v29105_v57 = vshll.u32 %v25585_v8, 16  ;;  %15384 = vmatprep.subr.bf16.mxu1 %v28993_v40  ;;  %v29106_v33 = vshrl.u32 %v25583_v36, 16  ;;  %v29127_v5 = vshll.u32 %v25593_v44, 16 }
 0xca0   :  { %v26059_v31 = vsel %vm20262_vm4, %v12381_v38, %v29102_v17  ;;  %v11898_v7 = vor.u32 %v29103_v3, %v11895_v56  ;;  %v29109_v17 = vshrl.u32 %v25563_v21, 16 }
 0xca1   :  { %15166 = vmatmul.mubr.bf16.gmra.mrb[232].mxu1 %v26045_v58  ;;  %v26067_v26 = vsel %vm20262_vm4, %v12388_v24, %v29104_v0  ;;  %v12401_v47 = vrot.slane %v29105_v57, 1  ;;  %v12395_v38 = vor.u32 %v12394_v23, %v29106_v33  ;;  %v29110_v24 = vshrl.u32 %v25585_v8, 16  ;;  %v29111_v57 = vld [vmem:[#allocation119_spill] sm:$0xff] }
 0xca2   :  { %15173 = vmatprep.mubr.bf16.mxu1 %v25561_v39  ;;  %v26078_v56 = vsel %vm19986_vm2, %v11898_v7, %v29107_v14  ;;  %v11902_v3 = vrot.slane %v29109_v17, 7  ;;  %v29112_v23 = vshll.u32 %v25587_v32, 16  ;;  %v29113_v7 = vshll.u32 %v25563_v21, 16  ;;  %v29114_v17 = vld [vmem:[#allocation93_spill] sm:$0xff] }
 0xca3   :  { %29108 = vst [vmem:[#allocation18_spill] sm:$0xff] %v26078_v56  ;;  %v12402_v0 = vor.u32 %v12401_v47, %v29110_v24  ;;  %v26089_v39 = vsel %vm20262_vm4, %v12395_v38, %v29111_v57  ;;  %v29116_v24 = vshll.u32 %v25589_v10, 16  ;;  %v29117_v38 = vshrl.u32 %v25587_v32, 16 }
 0xca4   :  { %17637 = vmatmul.mubr.bf16.gmra.mrb[112].mxu0 %v26059_v31  ;;  %v12408_v33 = vrot.slane %v29112_v23, 1  ;;  %v11905_v14 = vor.u32 %v29113_v7, %v11902_v3  ;;  %v29119_v3 = vshrl.u32 %v25565_v35, 16 }
 0xca5   :  { %17640 = vmatprep.mubr.bf16.mxu0 %v26067_v26  ;;  %v26099_v47 = vsel %vm20262_vm4, %v12402_v0, %v29114_v17  ;;  %v12415_v28 = vrot.slane %v29116_v24, 1  ;;  %v19459_v17 = vld [vmem:[%s27198_s11 + $0xe8] sm:$0xff]  }
 0xca6   :  { %29115 = vst [vmem:[#allocation116_spill] sm:$0xff] %v26099_v47  ;;  %v12409_v57 = vor.u32 %v12408_v33, %v29117_v38  ;;  %v26109_v23 = vsel %vm19986_vm2, %v11905_v14, %v29118_v11  ;;  %v11909_v7 = vrot.slane %v29119_v3, 7  ;;  %v29121_v33 = vld [vmem:[#allocation114_spill] sm:$0xff]  ;;  %v29123_v11 = vshll.u32 %v25591_v54, 16  ;;  %15385 = vmatpush1.bf16.msra.mxu1 %v19459_v17 }
 0xca7   :  { %v29124_v38 = vshll.u32 %v25565_v35, 16  ;;  %15386 = vmatprep.subr.bf16.mxu1 %v28993_v40 }
 0xca8   :  { %v26123_v24 = vsel %vm20262_vm4, %v12409_v57, %v29121_v33  ;;  %v12422_v14 = vrot.slane %v29123_v11, 1  ;;  %v29128_v57 = vshrl.u32 %v25591_v54, 16  ;;  %v29129_v33 = vld [vmem:[#allocation76_spill] sm:$0xff]  ;;  %v29130_v11 = vshrl.u32 %v25567_v37, 16 }
 0xca9   :  { %15174 = vmatmul.mubr.bf16.gmra.mrb[236].mxu1 %v26078_v56  ;;  %29122 = vst [vmem:[#allocation34_spill] sm:$0xff] %v26123_v24 }
 0xcaa   :  { %15181 = vmatprep.mubr.bf16.mxu1 %v25563_v21  ;;  %v29120_v21 = vshrl.u32 %v25589_v10, 16  ;;  %v12423_v17 = vor.u32 %v12422_v14, %v29128_v57  ;;  %v29134_v14 = vshll.u32 %v25595_v25, 16 }
 0xcac   :  { %17641 = vmatmul.mubr.bf16.gmra.mrb[116].mxu0 %v26089_v39  ;;  %v12416_v0 = vor.u32 %v12415_v28, %v29120_v21  ;;  %v11912_v21 = vor.u32 %v29124_v38, %v11909_v7  ;;  %v29125_v28 = vld [vmem:[#allocation77_spill] sm:$0xff]  ;;  %v11916_v38 = vrot.slane %v29130_v11, 7  ;;  %v12436_v57 = vrot.slane %v29134_v14, 1  ;;  %v29136_v11 = vld [vmem:[#allocation122_spill] sm:$0xff] }
 0xcad   :  { %17644 = vmatprep.mubr.bf16.mxu0 %v26099_v47  ;;  %v12429_v47 = vrot.slane %v29127_v5, 1  ;;  %v29132_v5 = vld [vmem:[#allocation78_spill] sm:$0xff]  ;;  %v29270_v9 = vld [vmem:[#allocation116_spill] sm:$0xff] }
 0xcae   :  { %v26133_v3 = vsel %vm20262_vm4, %v12416_v0, %v29125_v28  ;;  %v26144_v7 = vsel %vm19986_vm2, %v11912_v21, %v29129_v33  ;;  %v29131_v0 = vshrl.u32 %v25593_v44, 16  ;;  %v29135_v21 = vshll.u32 %v25567_v37, 16 }
 0xcaf   :  { %29126 = vst [vmem:[#allocation21_spill] sm:$0xff] %v26133_v3 }
 0xcb0   :  { %v12430_v28 = vor.u32 %v12429_v47, %v29131_v0  ;;  %v11919_v33 = vor.u32 %v29135_v21, %v11916_v38  ;;  %v29138_v0 = vshll.u32 %v25597_v59, 16  ;;  %v29142_v38 = vshrl.u32 %v25569_v42, 16 }
 0xcb1   :  { %15182 = vmatmul.mubr.bf16.gmra.mrb[240].mxu1 %v26109_v23 }
 0xcb2   :  { %15189 = vmatprep.mubr.bf16.mxu1 %v25565_v35  ;;  %v26155_v35 = vsel %vm20262_vm4, %v12423_v17, %v29132_v5  ;;  %v26165_v47 = vsel %vm20262_vm4, %v12430_v28, %v29136_v11  ;;  %v29139_v17 = vshrl.u32 %v25595_v25, 16  ;;  %v11923_v21 = vrot.slane %v29142_v38, 7  ;;  %v19460_v11 = vld [vmem:[%s27198_s11 + $0xf0] sm:$0xff]  }
 0xcb3   :  { %29133 = vst [vmem:[#allocation101_spill] sm:$0xff] %v26155_v35  ;;  %29137 = vst [vmem:[#allocation22_spill] sm:$0xff] %v26165_v47  ;;  %15387 = vmatpush1.bf16.msra.mxu1 %v19460_v11 }
 0xcb4   :  { %17645 = vmatmul.mubr.bf16.gmra.mrb[120].mxu0 %v26123_v24  ;;  %v12437_v5 = vor.u32 %v12436_v57, %v29139_v17  ;;  %v29140_v24 = vld [vmem:[#allocation95_spill] sm:$0xff]  ;;  %v29144_v57 = vld [vmem:[#allocation5_spill] sm:$0xff]  ;;  %v29146_v17 = vshll.u32 %v25569_v42, 16  ;;  %15388 = vmatprep.subr.bf16.mxu1 %v28993_v40 }
 0xcb5   :  { %17648 = vmatprep.mubr.bf16.mxu0 %v26133_v3  ;;  %v12443_v3 = vrot.slane %v29138_v0, 1  ;;  %v26175_v14 = vsel %vm19986_vm2, %v11919_v33, %v29140_v24  ;;  %v29145_v24 = vshll.u32 %v25599_v52, 16 }
 0xcb6   :  { %29141 = vst [vmem:[#allocation125_spill] sm:$0xff] %v26175_v14  ;;  %v26189_v0 = vsel %vm20262_vm4, %v12437_v5, %v29144_v57  ;;  %v29149_v5 = vshrl.u32 %v25599_v52, 16  ;;  %v29150_v57 = vld [vmem:[#allocation121_spill] sm:$0xff] }
 0xcb7   :  { %v12450_v33 = vrot.slane %v29145_v24, 1  ;;  %v29152_v24 = vshrl.u32 %v25601_v62, 16 }
 0xcb9   :  { %15190 = vmatmul.mubr.bf16.gmra.mrb[244].mxu1 %v26144_v7  ;;  %v12451_v11 = vor.u32 %v12450_v33, %v29149_v5  ;;  %v29155_v5 = vld [vmem:[#allocation97_spill] sm:$0xff] }
 0xcba   :  { %15197 = vmatprep.mubr.bf16.mxu1 %v25567_v37  ;;  %v29143_v37 = vshrl.u32 %v25597_v59, 16 }
 0xcbc   :  { %17649 = vmatmul.mubr.bf16.gmra.mrb[124].mxu0 %v26155_v35  ;;  %v12444_v28 = vor.u32 %v12443_v3, %v29143_v37  ;;  %v11926_v37 = vor.u32 %v29146_v17, %v11923_v21  ;;  %v29147_v3 = vld [vmem:[#allocation96_spill] sm:$0xff] }
 0xcbd   :  { %17652 = vmatprep.mubr.bf16.mxu0 %v26165_v47  ;;  %v29148_v47 = vshll.u32 %v25601_v62, 16 }
 0xcbe   :  { %v26199_v38 = vsel %vm20262_vm4, %v12444_v28, %v29147_v3  ;;  %v26210_v21 = vsel %vm19986_vm2, %v11926_v37, %v29150_v57  ;;  %v29154_v3 = vshll.u32 %v25603_v63, 16 }
 0xcbf   :  { %v12457_v35 = vrot.slane %v29148_v47, 1  ;;  %29151 = vst [vmem:[#allocation25_spill] sm:$0xff] %v26210_v21  ;;  %v29153_v47 = vld [vmem:[#allocation79_spill] sm:$0xff] }
 0xcc0   :  { %v26219_v28 = vsel %vm20262_vm4, %v12451_v11, %v29153_v47  ;;  %v12464_v33 = vrot.slane %v29154_v3, 1  ;;  %v29158_v11 = vld [vmem:[#allocation80_spill] sm:$0xff]  ;;  %v29159_v3 = vshrl.u32 %v25605_v13, 16 }
 0xcc1   :  { %15198 = vmatmul.mubr.bf16.gmra.mrb[248].mxu1 %v26175_v14  ;;  %v12458_v17 = vor.u32 %v12457_v35, %v29152_v24  ;;  %v29156_v35 = vshll.u32 %v25605_v13, 16  ;;  %v29157_v24 = vshrl.u32 %v25603_v63, 16  ;;  %v26238_v47 = vsel %vm19986_vm2, %v25724_v34, %v29158_v11  ;;  %v29161_v34 = vld [vmem:[#allocation6_spill] sm:$0xff] }
 0xcc2   :  { %15205 = vmatprep.mubr.bf16.mxu1 %v25569_v42  ;;  %v29166_v11 = vshll.u32 %v25952_v15, 16 }
 0xcc3   :  { %v26227_v37 = vsel %vm20262_vm4, %v12458_v17, %v29155_v5  ;;  %v13288_v57 = vrot.slane %v29156_v35, 1  ;;  %v19461_v17 = vld [vmem:[%s27198_s11 + $0xf8] sm:$0xff]   ;;  %v29160_v5 = vld [vmem:[#allocation98_spill] sm:$0xff] }
 0xcc4   :  { %17653 = vmatmul.mubr.bf16.gmra.mrb[128].mxu0 %v26189_v0  ;;  %15389 = vmatpush1.bf16.msra.mxu1 %v19461_v17  ;;  %v29167_v17 = vld [vmem:[#allocation99_spill] sm:$0xff] }
 0xcc5   :  { %17656 = vmatprep.mubr.bf16.mxu0 %v26199_v38  ;;  %v13289_v42 = vor.u32 %v13288_v57, %v29159_v3  ;;  %15647 = vmatprep.subr.bf16.mxu1 %v28993_v40  ;;  %v29163_v57 = vld [vmem:[#allocation126_spill] sm:$0xff] }
 0xcc7   :  { %v26256_v35 = vsel %vm20262_vm4, %v13289_v42, %v29161_v34 }
 0xcc8   :  { %29162 = vst [vmem:[#allocation26_spill] sm:$0xff] %v26256_v35 }
 0xcc9   :  { %15206 = vmatmul.mubr.bf16.gmra.mrb[252].mxu1 %v26210_v21 }
 0xcca   :  { %15213 = vmatprep.mubr.bf16.mxu1 %v25571_v4  ;;  %v12465_v4 = vor.u32 %v12464_v33, %v29157_v24  ;;  %v26264_v24 = vsel %vm19986_vm2, %v25900_v43, %v29163_v57  ;;  %v29169_v57 = vld [vmem:[#allocation82_spill] sm:$0xff] }
 0xccb   :  { %29164 = vst [vmem:[#allocation87_spill] sm:$0xff] %v26264_v24 }
 0xccc   :  { %17657 = vmatmul.mubr.bf16.gmra.mrb[132].mxu0 %v26219_v28  ;;  %v26250_v33 = vsel %vm20262_vm4, %v12465_v4, %v29160_v5  ;;  %v29165_v4 = vshrl.u32 %v25952_v15, 16  ;;  %v29168_v5 = vld [vmem:[#allocation81_spill] sm:$0xff] }
 0xccd   :  { %17660 = vmatprep.mubr.bf16.mxu0 %v26227_v37  ;;  %v26286_v34 = vsel %vm19986_vm2, %v25758_v51, %v29168_v5  ;;  %v29174_v5 = vld [vmem:[#allocation10_spill] sm:$0xff] }
 0xcce   :  { %v11944_v42 = vrot.slane %v29165_v4, 7  ;;  %v26294_v4 = vsel %vm19986_vm2, %v25946_v2, %v29169_v57  ;;  %v29175_v57 = vld [vmem:[#allocation17_spill] sm:$0xff] }
 0xcd0   :  { %v11947_v3 = vor.u32 %v29166_v11, %v11944_v42  ;;  %v29170_v42 = vld [vmem:[#allocation8_spill] sm:$0xff]  ;;  %v29171_v11 = vld [vmem:[#allocation83_spill] sm:$0xff] }
 0xcd1   :  { %15214 = vmatmul.mubr.bf16.gmra.mrb[56].mxu1 %v26238_v47  ;;  %v26302_v51 = vsel %vm19986_vm2, %v25785_v12, %v29170_v42  ;;  %v26310_v2 = vsel %vm19986_vm2, %v25954_v46, %v29171_v11  ;;  %v29176_v42 = vld [vmem:[#allocation16_spill] sm:$0xff] }
 0xcd2   :  { %15221 = vmatprep.mubr.bf16.mxu1 %v25573_v41  ;;  %v26278_v43 = vsel %vm19986_vm2, %v11947_v3, %v29167_v17  ;;  %v29172_v3 = vld [vmem:[#allocation12_spill] sm:$0xff] }
 0xcd3   :  { %v26318_v12 = vsel %vm19986_vm2, %v25800_v29, %v29172_v3  ;;  %v29173_v17 = vld [vmem:[#allocation100_spill] sm:$0xff]  ;;  %v26334_v29 = vsel %vm19986_vm2, %v25839_v18, %v29174_v5  ;;  %v26350_v18 = vsel %vm19986_vm2, %v25855_v61, %v29176_v42  ;;  %v29179_v3 = vld [vmem:[#allocation14_spill] sm:$0xff]  ;;  %v29185_v42 = vld [vmem:[#allocation19_spill] sm:$0xff] }
 0xcd4   :  { %17661 = vmatmul.mubr.bf16.gmra.mrb[192].mxu0 %v26250_v33  ;;  %v26326_v46 = vsel %vm19986_vm2, %v25968_v53, %v29173_v17  ;;  %v26342_v53 = vsel %vm19986_vm2, %v25976_v45, %v29175_v57  ;;  %29177 = vst [vmem:[#allocation58_spill] sm:$0xff] %v26350_v18  ;;  %v26360_v45 = vsel %vm19986_vm2, %v25993_v20, %v29179_v3 }
 0xcd5   :  { %17664 = vmatprep.mubr.bf16.mxu0 %v26256_v35  ;;  %29180 = vst [vmem:[#allocation67_spill] sm:$0xff] %v26360_v45 }
 0xcd9   :  { %15222 = vmatmul.mubr.bf16.gmra.mrb[60].mxu1 %v26264_v24 }
 0xcda   :  { %15229 = vmatprep.mubr.bf16.mxu1 %v28993_v40 }
 0xcdc   :  { %17665 = vmatmul.mubr.bf16.gmra.mrb[196].mxu0 %v28993_v40 }
 0xce1   :  { %15230 = vmatmul.mubr.bf16.gmra.mrb[64].mxu1 %v28993_v40 }
 0xce2   :  { %15237 = vmatprep.mubr.bf16.mxu1 %v25952_v15 }
 0xce9   :  { %15238 = vmatmul.mubr.bf16.gmra.mrb[68].mxu1 %v26278_v43 }
 0xcea   :  { %15245 = vmatprep.mubr.bf16.mxu1 %v25577_v27 }
 0xcf1   :  { %15246 = vmatmul.mubr.bf16.gmra.mrb[72].mxu1 %v26286_v34 }
 0xcf2   :  { %15253 = vmatprep.mubr.bf16.mxu1 %v25579_v60 }
 0xcf9   :  { %15254 = vmatmul.mubr.bf16.gmra.mrb[76].mxu1 %v26294_v4 }
 0xcfa   :  { %15261 = vmatprep.mubr.bf16.mxu1 %v25581_v1 }
 0xd01   :  { %15262 = vmatmul.mubr.bf16.gmra.mrb[80].mxu1 %v26302_v51 }
 0xd02   :  { %15269 = vmatprep.mubr.bf16.mxu1 %v25583_v36 }
 0xd09   :  { %15270 = vmatmul.mubr.bf16.gmra.mrb[84].mxu1 %v26310_v2 }
 0xd0a   :  { %15277 = vmatprep.mubr.bf16.mxu1 %v25585_v8 }
 0xd11   :  { %15278 = vmatmul.mubr.bf16.gmra.mrb[88].mxu1 %v26318_v12 }
 0xd12   :  { %15285 = vmatprep.mubr.bf16.mxu1 %v25587_v32 }
 0xd19   :  { %15286 = vmatmul.mubr.bf16.gmra.mrb[92].mxu1 %v26326_v46 }
 0xd1a   :  { %15293 = vmatprep.mubr.bf16.mxu1 %v25589_v10 }
 0xd21   :  { %15294 = vmatmul.mubr.bf16.gmra.mrb[96].mxu1 %v26334_v29 }
 0xd22   :  { %15301 = vmatprep.mubr.bf16.mxu1 %v25591_v54 }
 0xd29   :  { %15302 = vmatmul.mubr.bf16.gmra.mrb[100].mxu1 %v26342_v53 }
 0xd2a   :  { %15309 = vmatprep.mubr.bf16.mxu1 %v25593_v44 }
 0xd31   :  { %15310 = vmatmul.mubr.bf16.gmra.mrb[104].mxu1 %v26350_v18 }
 0xd32   :  { %15317 = vmatprep.mubr.bf16.mxu1 %v25595_v25 }
 0xd37   :  { %v26354_v11 = vpop.f32.mrb[80].mxu0 }
 0xd38   :  { %29178 = vst [vmem:[#allocation64_spill] sm:$0xff] %v26354_v11  ;;  %v26362_v17 = vpop.f32.mrb[81].mxu0  ;;  %v26376_v11 = vsel %vm19986_vm2, %v25885_v30, %v29185_v42 }
 0xd39   :  { %29181 = vst [vmem:[#allocation62_spill] sm:$0xff] %v26362_v17  ;;  %15318 = vmatmul.mubr.bf16.gmra.mrb[108].mxu1 %v26360_v45  ;;  %v26365_v5 = vpop.f32.mrb[82].mxu0 }
 0xd3a   :  { %29182 = vst [vmem:[#allocation44_spill] sm:$0xff] %v26365_v5  ;;  %15325 = vmatprep.mubr.bf16.mxu1 %v25597_v59  ;;  %v26368_v61 = vpop.f32.mrb[83].mxu0 }
 0xd3b   :  { %29183 = vst [vmem:[#allocation71_spill] sm:$0xff] %v26368_v61  ;;  %v29190_v61 = vld [vmem:[#allocation117_spill] sm:$0xff] }
 0xd3f   :  { %v26370_v57 = vpop.f32.mrb[84].mxu0 }
 0xd40   :  { %29184 = vst [vmem:[#allocation51_spill] sm:$0xff] %v26370_v57  ;;  %v26378_v20 = vpop.f32.mrb[85].mxu0  ;;  %v26392_v57 = vsel %vm19986_vm2, %v25997_v22, %v29190_v61 }
 0xd41   :  { %29186 = vst [vmem:[#allocation48_spill] sm:$0xff] %v26378_v20  ;;  %15326 = vmatmul.mubr.bf16.gmra.mrb[112].mxu1 %v26376_v11  ;;  %v26381_v3 = vpop.f32.mrb[86].mxu0  ;;  %29191 = vst [vmem:[#allocation54_spill] sm:$0xff] %v26392_v57 }
 0xd42   :  { %29187 = vst [vmem:[#allocation57_spill] sm:$0xff] %v26381_v3  ;;  %15333 = vmatprep.mubr.bf16.mxu1 %v25599_v52  ;;  %v26384_v5 = vpop.f32.mrb[87].mxu0 }
 0xd43   :  { %29188 = vst [vmem:[#allocation60_spill] sm:$0xff] %v26384_v5  ;;  %v29196_v5 = vld [vmem:[#allocation28_spill] sm:$0xff] }
 0xd47   :  { %v26386_v17 = vpop.f32.mrb[88].mxu0 }
 0xd48   :  { %29189 = vst [vmem:[#allocation74_spill] sm:$0xff] %v26386_v17  ;;  %v26394_v30 = vpop.f32.mrb[89].mxu0  ;;  %v26408_v17 = vsel %vm19986_vm2, %v25905_v50, %v29196_v5 }
 0xd49   :  { %29192 = vst [vmem:[#allocation36_spill] sm:$0xff] %v26394_v30  ;;  %15334 = vmatmul.mubr.bf16.gmra.mrb[116].mxu1 %v26392_v57  ;;  %v26397_v42 = vpop.f32.mrb[90].mxu0  ;;  %29197 = vst [vmem:[#allocation49_spill] sm:$0xff] %v26408_v17 }
 0xd4a   :  { %29193 = vst [vmem:[#allocation42_spill] sm:$0xff] %v26397_v42  ;;  %15341 = vmatprep.mubr.bf16.mxu1 %v25601_v62  ;;  %v26400_v3 = vpop.f32.mrb[91].mxu0 }
 0xd4b   :  { %29194 = vst [vmem:[#allocation63_spill] sm:$0xff] %v26400_v3  ;;  %v29202_v3 = vld [vmem:[#allocation52_spill] sm:$0xff] }
 0xd4f   :  { %v26402_v20 = vpop.f32.mrb[92].mxu0 }
 0xd50   :  { %29195 = vst [vmem:[#allocation39_spill] sm:$0xff] %v26402_v20  ;;  %v26410_v22 = vpop.f32.mrb[93].mxu0  ;;  %v26424_v20 = vsel %vm19986_vm2, %v26017_v48, %v29202_v3  ;;  %v29210_v3 = vld [vmem:[#allocation127_spill] sm:$0xff] }
 0xd51   :  { %29198 = vst [vmem:[#allocation55_spill] sm:$0xff] %v26410_v22  ;;  %15342 = vmatmul.mubr.bf16.gmra.mrb[120].mxu1 %v26408_v17  ;;  %v26413_v61 = vpop.f32.mrb[94].mxu0  ;;  %v29205_v22 = vld [vmem:[#allocation129_spill] sm:$0xff] }
 0xd52   :  { %29199 = vst [vmem:[#allocation47_spill] sm:$0xff] %v26413_v61  ;;  %15349 = vmatprep.mubr.bf16.mxu1 %v25603_v63  ;;  %v26416_v42 = vpop.f32.mrb[95].mxu0 }
 0xd53   :  { %29200 = vst [vmem:[#allocation53_spill] sm:$0xff] %v26416_v42 }
 0xd57   :  { %v26418_v30 = vpop.f32.mrb[96].mxu0 }
 0xd58   :  { %29201 = vst [vmem:[#allocation61_spill] sm:$0xff] %v26418_v30  ;;  %v26426_v50 = vpop.f32.mrb[97].mxu0  ;;  %v19462_v30 = vld [vmem:[%s27198_s11 + $0x100] sm:$0xff]  }
 0xd59   :  { %29203 = vst [vmem:[#allocation33_spill] sm:$0xff] %v26426_v50  ;;  %15350 = vmatmul.mubr.bf16.gmra.mrb[124].mxu1 %v26424_v20  ;;  %v26429_v5 = vpop.f32.mrb[98].mxu0 }
 0xd5a   :  { %29204 = vst [vmem:[#allocation72_spill] sm:$0xff] %v26429_v5  ;;  %15390 = vmatprep.mubr.bf16.mxu1 %v29205_v22  ;;  %v26432_v61 = vpop.f32.mrb[99].mxu0  ;;  %v19463_v22 = vld [vmem:[%s27198_s11 + $0x108] sm:$0xff]  }
 0xd5b   :  { %29206 = vst [vmem:[#allocation56_spill] sm:$0xff] %v26432_v61 }
 0xd5f   :  { %v26437_v42 = vpop.f32.mrb[100].mxu0 }
 0xd60   :  { %29207 = vst [vmem:[#allocation106_spill] sm:$0xff] %v26437_v42  ;;  %v26439_v13 = vpop.f32.mrb[101].mxu0  ;;  %v19464_v42 = vld [vmem:[%s27198_s11 + $0x110] sm:$0xff]  }
 0xd61   :  { %29208 = vst [vmem:[#allocation37_spill] sm:$0xff] %v26439_v13  ;;  %15391 = vmatmul.mubr.bf16.vlgmr.msra.gmra.mrb[200].mxu1 %v28993_v40  ;;  %v26442_v48 = vpop.f32.mrb[102].mxu0 }
 0xd62   :  { %29209 = vst [vmem:[#allocation107_spill] sm:$0xff] %v26442_v48  ;;  %15648 = vmatpush1.bf16.msra.mxu1 %v19462_v30  ;;  %15398 = vmatprep.mubr.bf16.mxu1 %v29210_v3  ;;  %v26445_v5 = vpop.f32.mrb[103].mxu0  ;;  %v29213_v30 = vld [vmem:[#allocation68_spill] sm:$0xff] }
 0xd63   :  { %29211 = vst [vmem:[#allocation108_spill] sm:$0xff] %v26445_v5  ;;  %15649 = vmatprep.subr.bf16.mxu1 %v28993_v40  ;;  %v26461_v48 = vsel %vm20262_vm4, %v26021_v6, %v29213_v30  ;;  %v19466_v6 = vld [vmem:[%s27198_s11 + $0x120] sm:$0xff]  }
 0xd66   :  { %15650 = vmatpush1.bf16.msra.mxu1 %v19463_v22  ;;  %v29216_v22 = vld [vmem:[#allocation103_spill] sm:$0xff] }
 0xd67   :  { %v26454_v13 = vpop.f32.mrb[104].mxu0  ;;  %15651 = vmatprep.subr.bf16.mxu1 %v28993_v40 }
 0xd68   :  { %29212 = vst [vmem:[#allocation110_spill] sm:$0xff] %v26454_v13  ;;  %v26463_v5 = vpop.f32.mrb[105].mxu0  ;;  %v19465_v13 = vld [vmem:[%s27198_s11 + $0x118] sm:$0xff]  }
 0xd69   :  { %29214 = vst [vmem:[#allocation4_spill] sm:$0xff] %v26463_v5  ;;  %15399 = vmatmul.mubr.bf16.gmra.mrb[204].mxu1 %v26461_v48  ;;  %v26466_v61 = vpop.f32.mrb[106].mxu0  ;;  %v29220_v5 = vld [vmem:[#allocation109_spill] sm:$0xff] }
 0xd6a   :  { %29215 = vst [vmem:[#allocation120_spill] sm:$0xff] %v26466_v61  ;;  %15406 = vmatprep.mubr.bf16.mxu1 %v29216_v22  ;;  %v26469_v50 = vpop.f32.mrb[107].mxu0  ;;  %15652 = vmatpush1.bf16.msra.mxu1 %v19464_v42 }
 0xd6b   :  { %29217 = vst [vmem:[#allocation124_spill] sm:$0xff] %v26469_v50  ;;  %15653 = vmatprep.subr.bf16.mxu1 %v28993_v40  ;;  %v29222_v50 = vld [vmem:[#allocation133_spill] sm:$0xff] }
 0xd6e   :  { %15654 = vmatpush1.bf16.msra.mxu1 %v19465_v13  ;;  %v19467_v13 = vld [vmem:[%s27198_s11 + $0x128] sm:$0xff]  }
 0xd6f   :  { %v26478_v30 = vpop.f32.mrb[108].mxu0  ;;  %15655 = vmatprep.subr.bf16.mxu1 %v28993_v40 }
 0xd70   :  { %29218 = vst [vmem:[#allocation128_spill] sm:$0xff] %v26478_v30  ;;  %v26481_v61 = vpop.f32.mrb[109].mxu0  ;;  %v19468_v30 = vld [vmem:[%s27198_s11 + $0x130] sm:$0xff]  }
 0xd71   :  { %29219 = vst [vmem:[#allocation132_spill] sm:$0xff] %v26481_v61  ;;  %15407 = vmatmul.mubr.bf16.gmra.mrb[208].mxu1 %v29220_v5  ;;  %v26484_v42 = vpop.f32.mrb[110].mxu0 }
 0xd72   :  { %29221 = vst [vmem:[#allocation131_spill] sm:$0xff] %v26484_v42  ;;  %15414 = vmatprep.mubr.bf16.mxu1 %v29222_v50  ;;  %v26487_v22 = vpop.f32.mrb[111].mxu0  ;;  %15656 = vmatpush1.bf16.msra.mxu1 %v19466_v6  ;;  %v29226_v50 = vld [vmem:[#allocation118_spill] sm:$0xff] }
 0xd73   :  { %29223 = vst [vmem:[#allocation31_spill] sm:$0xff] %v26487_v22  ;;  %15657 = vmatprep.subr.bf16.mxu1 %v28993_v40  ;;  %v29228_v22 = vld [vmem:[#allocation94_spill] sm:$0xff] }
 0xd76   :  { %15658 = vmatpush1.bf16.msra.mxu1 %v19467_v13  ;;  %v19469_v13 = vld [vmem:[%s27198_s11 + $0x138] sm:$0xff]  }
 0xd77   :  { %v26496_v61 = vpop.f32.mrb[112].mxu0  ;;  %15659 = vmatprep.subr.bf16.mxu1 %v28993_v40 }
 0xd78   :  { %29224 = vst [vmem:[#allocation23_spill] sm:$0xff] %v26496_v61  ;;  %v26499_v42 = vpop.f32.mrb[113].mxu0  ;;  %v19470_v61 = vld [vmem:[%s27198_s11 + $0x140] sm:$0xff]  }
 0xd79   :  { %29225 = vst [vmem:[#allocation27_spill] sm:$0xff] %v26499_v42  ;;  %15415 = vmatmul.mubr.bf16.gmra.mrb[212].mxu1 %v29226_v50  ;;  %v26502_v6 = vpop.f32.mrb[114].mxu0 }
 0xd7a   :  { %29227 = vst [vmem:[#allocation11_spill] sm:$0xff] %v26502_v6  ;;  %15422 = vmatprep.mubr.bf16.mxu1 %v29228_v22  ;;  %v26505_v3 = vpop.f32.mrb[115].mxu0  ;;  %15660 = vmatpush1.bf16.msra.mxu1 %v19468_v30  ;;  %v29232_v22 = vld [vmem:[#allocation130_spill] sm:$0xff] }
 0xd7b   :  { %29229 = vst [vmem:[#allocation9_spill] sm:$0xff] %v26505_v3  ;;  %15661 = vmatprep.subr.bf16.mxu1 %v28993_v40  ;;  %v29234_v3 = vld [vmem:[#allocation24_spill] sm:$0xff] }
 0xd7e   :  { %15662 = vmatpush1.bf16.msra.mxu1 %v19469_v13  ;;  %v19471_v13 = vld [vmem:[%s27198_s11 + $0x148] sm:$0xff]  }
 0xd7f   :  { %v26514_v42 = vpop.f32.mrb[116].mxu0  ;;  %15663 = vmatprep.subr.bf16.mxu1 %v28993_v40 }
 0xd80   :  { %29230 = vst [vmem:[#allocation45_spill] sm:$0xff] %v26514_v42  ;;  %v26517_v6 = vpop.f32.mrb[117].mxu0  ;;  %v19472_v42 = vld [vmem:[%s27198_s11 + $0x150] sm:$0xff]  }
 0xd81   :  { %29231 = vst [vmem:[#allocation32_spill] sm:$0xff] %v26517_v6  ;;  %15423 = vmatmul.mubr.bf16.gmra.mrb[216].mxu1 %v29232_v22  ;;  %v26520_v30 = vpop.f32.mrb[118].mxu0 }
 0xd82   :  { %29233 = vst [vmem:[#allocation85_spill] sm:$0xff] %v26520_v30  ;;  %15430 = vmatprep.mubr.bf16.mxu1 %v29234_v3  ;;  %v26523_v35 = vpop.f32.mrb[119].mxu0  ;;  %15664 = vmatpush1.bf16.msra.mxu1 %v19470_v61  ;;  %v29238_v3 = vld [vmem:[#allocation112_spill] sm:$0xff] }
 0xd83   :  { %29235 = vst [vmem:[#allocation134_spill] sm:$0xff] %v26523_v35  ;;  %15665 = vmatprep.subr.bf16.mxu1 %v28993_v40  ;;  %v29240_v35 = vld [vmem:[#allocation102_spill] sm:$0xff] }
 0xd86   :  { %15666 = vmatpush1.bf16.msra.mxu1 %v19471_v13 }
 0xd87   :  { %v26532_v6 = vpop.f32.mrb[120].mxu0  ;;  %15667 = vmatprep.subr.bf16.mxu1 %v28993_v40 }
 0xd88   :  { %29236 = vst [vmem:[#allocation135_spill] sm:$0xff] %v26532_v6  ;;  %v26535_v30 = vpop.f32.mrb[121].mxu0  ;;  %v29244_v6 = vld [vmem:[#allocation123_spill] sm:$0xff] }
 0xd89   :  { %29237 = vst [vmem:[#allocation41_spill] sm:$0xff] %v26535_v30  ;;  %15431 = vmatmul.mubr.bf16.gmra.mrb[220].mxu1 %v29238_v3  ;;  %v26538_v61 = vpop.f32.mrb[122].mxu0  ;;  %v19473_v30 = vld [vmem:[%s27198_s11 + $0x158] sm:$0xff]  }
 0xd8a   :  { %29239 = vst [vmem:[#allocation35_spill] sm:$0xff] %v26538_v61  ;;  %15438 = vmatprep.mubr.bf16.mxu1 %v29240_v35  ;;  %v26541_v63 = vpop.f32.mrb[123].mxu0  ;;  %15668 = vmatpush1.bf16.msra.mxu1 %v19472_v42 }
 0xd8b   :  { %29241 = vst [vmem:[#allocation40_spill] sm:$0xff] %v26541_v63  ;;  %15669 = vmatprep.subr.bf16.mxu1 %v28993_v40 }
 0xd8e   :  { %15670 = vmatpush1.bf16.msra.mxu1 %v19473_v30 }
 0xd8f   :  { %v26544_v13 = vpop.f32.mrb[124].mxu0  ;;  %15671 = vmatprep.subr.bf16.mxu1 %v28993_v40 }
 0xd90   :  { %29242 = vst [vmem:[#allocation7_spill] sm:$0xff] %v26544_v13  ;;  %v26546_v62 = vpop.f32.mrb[125].mxu0 }
 0xd91   :  { %29243 = vst [vmem:[#allocation15_spill] sm:$0xff] %v26546_v62  ;;  %15439 = vmatmul.mubr.bf16.gmra.mrb[224].mxu1 %v29244_v6  ;;  %v26549_v52 = vpop.f32.mrb[126].mxu0  ;;  %v29249_v62 = vld [vmem:[#allocation50_spill] sm:$0xff] }
 0xd92   :  { %29245 = vst [vmem:[#allocation29_spill] sm:$0xff] %v26549_v52  ;;  %15446 = vmatprep.mubr.bf16.mxu1 %v26045_v58  ;;  %v26555_v61 = vpop.f32.mrb[127].mxu0 }
 0xd93   :  { %29246 = vst [vmem:[#allocation89_spill] sm:$0xff] %v26555_v61  ;;  %v29254_v61 = vld [vmem:[#allocation86_spill] sm:$0xff] }
 0xd97   :  { %v26558_v42 = vpop.f32.mrb[128].mxu0 }
 0xd98   :  { %29247 = vst [vmem:[#allocation90_spill] sm:$0xff] %v26558_v42  ;;  %v26560_v13 = vpop.f32.mrb[129].mxu0  ;;  %v19474_v42 = vld [vmem:[%s27198_s11 + $0x160] sm:$0xff]  }
 0xd99   :  { %29248 = vst [vmem:[#allocation91_spill] sm:$0xff] %v26560_v13  ;;  %15447 = vmatmul.mubr.bf16.gmra.mrb[228].mxu1 %v29249_v62  ;;  %v26563_v63 = vpop.f32.mrb[130].mxu0 }
 0xd9a   :  { %29250 = vst [vmem:[#allocation92_spill] sm:$0xff] %v26563_v63  ;;  %15454 = vmatprep.mubr.bf16.mxu1 %v26078_v56  ;;  %v26566_v52 = vpop.f32.mrb[131].mxu0  ;;  %15672 = vmatpush1.bf16.msra.mxu1 %v19474_v42  ;;  %v29262_v56 = vld [vmem:[#allocation105_spill] sm:$0xff] }
 0xd9b   :  { %29251 = vst [vmem:[#allocation119_spill] sm:$0xff] %v26566_v52  ;;  %15673 = vmatprep.subr.bf16.mxu1 %v28993_v40  ;;  %v19475_v42 = vld [vmem:[%s27198_s11 + $0x168] sm:$0xff]  }
 0xd9e   :  { %15674 = vmatpush1.bf16.msra.mxu1 %v19475_v42  ;;  %v29266_v42 = vld [vmem:[#allocation84_spill] sm:$0xff] }
 0xd9f   :  { %v26568_v35 = vpop.f32.mrb[132].mxu0  ;;  %15675 = vmatprep.subr.bf16.mxu1 %v28993_v40 }
 0xda0   :  { %29252 = vst [vmem:[#allocation93_spill] sm:$0xff] %v26568_v35  ;;  %v26570_v58 = vpop.f32.mrb[133].mxu0 }
 0xda1   :  { %29253 = vst [vmem:[#allocation113_spill] sm:$0xff] %v26570_v58  ;;  %15455 = vmatmul.mubr.bf16.gmra.mrb[232].mxu1 %v29254_v61  ;;  %v26573_v30 = vpop.f32.mrb[134].mxu0  ;;  %v29259_v58 = vld [vmem:[#allocation104_spill] sm:$0xff] }
 0xda2   :  { %29255 = vst [vmem:[#allocation114_spill] sm:$0xff] %v26573_v30  ;;  %15462 = vmatprep.mubr.bf16.mxu1 %v26109_v23  ;;  %v26579_v13 = vpop.f32.mrb[135].mxu0 }
 0xda3   :  { %29256 = vst [vmem:[#allocation77_spill] sm:$0xff] %v26579_v13  ;;  %v29267_v13 = vld [vmem:[#allocation88_spill] sm:$0xff] }
 0xda7   :  { %v26582_v63 = vpop.f32.mrb[192].mxu0 }
 0xda8   :  { %29257 = vst [vmem:[#allocation76_spill] sm:$0xff] %v26582_v63  ;;  %v26584_v35 = vpop.f32.mrb[193].mxu0  ;;  %v29263_v63 = vld [vmem:[#allocation111_spill] sm:$0xff] }
 0xda9   :  { %29258 = vst [vmem:[#allocation78_spill] sm:$0xff] %v26584_v35  ;;  %15463 = vmatmul.mubr.bf16.gmra.mrb[236].mxu1 %v29259_v58  ;;  %v26587_v52 = vpop.f32.mrb[194].mxu0  ;;  %v29265_v35 = vld [vmem:[#allocation38_spill] sm:$0xff] }
 0xdaa   :  { %29260 = vst [vmem:[#allocation122_spill] sm:$0xff] %v26587_v52  ;;  %15470 = vmatprep.mubr.bf16.mxu1 %v26144_v7  ;;  %v26590_v30 = vpop.f32.mrb[195].mxu0  ;;  %v29264_v52 = vld [vmem:[#allocation115_spill] sm:$0xff] }
 0xdab   :  { %29261 = vst [vmem:[#allocation95_spill] sm:$0xff] %v26590_v30  ;;  %v19476_v30 = vld [vmem:[%s27198_s11 + $0x170] sm:$0xff]  }
 0xdac   :  { %15676 = vmatpush1.bf16.msra.mxu1 %v19476_v30  ;;  %v29268_v30 = vld [vmem:[#allocation46_spill] sm:$0xff] }
 0xdad   :  { %15677 = vmatprep.subr.bf16.mxu1 %v28993_v40 }
 0xdb1   :  { %15471 = vmatmul.mubr.bf16.gmra.mrb[240].mxu1 %v29262_v56 }
 0xdb2   :  { %15478 = vmatprep.mubr.bf16.mxu1 %v26175_v14  ;;  %v19477_v14 = vld [vmem:[%s27198_s11 + $0x178] sm:$0xff]  }
 0xdb3   :  { %15678 = vmatpush1.bf16.msra.mxu1 %v19477_v14  ;;  %v29272_v14 = vld [vmem:[#allocation21_spill] sm:$0xff] }
 0xdb4   :  { %15936 = vmatprep.subr.bf16.mxu1 %v28993_v40 }
 0xdb9   :  { %15479 = vmatmul.mubr.bf16.gmra.mrb[244].mxu1 %v29263_v63 }
 0xdba   :  { %15486 = vmatprep.mubr.bf16.mxu1 %v26210_v21  ;;  %v26613_v21 = vsel %vm19986_vm2, %v26033_v16, %v29267_v13  ;;  %v29275_v13 = vld [vmem:[#allocation73_spill] sm:$0xff] }
 0xdc1   :  { %15487 = vmatmul.mubr.bf16.gmra.mrb[248].mxu1 %v29264_v52 }
 0xdc2   :  { %15494 = vmatprep.mubr.bf16.mxu1 %v26238_v47 }
 0xdc9   :  { %15495 = vmatmul.mubr.bf16.gmra.mrb[252].mxu1 %v29265_v35 }
 0xdca   :  { %15502 = vmatprep.mubr.bf16.mxu1 %v26264_v24  ;;  %v29269_v24 = vld [vmem:[#allocation30_spill] sm:$0xff] }
 0xdcb   :  { %v26628_v16 = vsel %vm20262_vm4, %v26009_v49, %v29269_v24  ;;  %v29271_v49 = vld [vmem:[#allocation34_spill] sm:$0xff]  ;;  %v29273_v24 = vld [vmem:[#allocation101_spill] sm:$0xff] }
 0xdd1   :  { %15503 = vmatmul.mubr.bf16.gmra.mrb[56].mxu1 %v29266_v42 }
 0xdd2   :  { %15510 = vmatprep.mubr.bf16.mxu1 %v26613_v21 }
 0xdd9   :  { %15511 = vmatmul.mubr.bf16.gmra.mrb[60].mxu1 %v29268_v30 }
 0xdda   :  { %15518 = vmatprep.mubr.bf16.mxu1 %v26278_v43  ;;  %v29274_v43 = vld [vmem:[#allocation22_spill] sm:$0xff] }
 0xde1   :  { %15519 = vmatmul.mubr.bf16.gmra.mrb[64].mxu1 %v28993_v40 }
 0xde2   :  { %15526 = vmatprep.mubr.bf16.mxu1 %v26286_v34 }
 0xde9   :  { %15527 = vmatmul.mubr.bf16.gmra.mrb[68].mxu1 %v26628_v16 }
 0xdea   :  { %15534 = vmatprep.mubr.bf16.mxu1 %v26294_v4 }
 0xdf1   :  { %15535 = vmatmul.mubr.bf16.gmra.mrb[72].mxu1 %v26027_v55 }
 0xdf2   :  { %15542 = vmatprep.mubr.bf16.mxu1 %v26302_v51 }
 0xdf9   :  { %15543 = vmatmul.mubr.bf16.gmra.mrb[76].mxu1 %v26059_v31 }
 0xdfa   :  { %15550 = vmatprep.mubr.bf16.mxu1 %v26310_v2 }
 0xe01   :  { %15551 = vmatmul.mubr.bf16.gmra.mrb[80].mxu1 %v26067_v26 }
 0xe02   :  { %15558 = vmatprep.mubr.bf16.mxu1 %v26318_v12 }
 0xe09   :  { %15559 = vmatmul.mubr.bf16.gmra.mrb[84].mxu1 %v26089_v39 }
 0xe0a   :  { %15566 = vmatprep.mubr.bf16.mxu1 %v26326_v46 }
 0xe11   :  { %15567 = vmatmul.mubr.bf16.gmra.mrb[88].mxu1 %v29270_v9 }
 0xe12   :  { %15574 = vmatprep.mubr.bf16.mxu1 %v26334_v29 }
 0xe19   :  { %15575 = vmatmul.mubr.bf16.gmra.mrb[92].mxu1 %v29271_v49 }
 0xe1a   :  { %15582 = vmatprep.mubr.bf16.mxu1 %v26342_v53 }
 0xe21   :  { %15583 = vmatmul.mubr.bf16.gmra.mrb[96].mxu1 %v29272_v14 }
 0xe22   :  { %15590 = vmatprep.mubr.bf16.mxu1 %v26350_v18 }
 0xe29   :  { %15591 = vmatmul.mubr.bf16.gmra.mrb[100].mxu1 %v29273_v24 }
 0xe2a   :  { %15598 = vmatprep.mubr.bf16.mxu1 %v26360_v45  ;;  %v29276_v45 = vld [vmem:[#allocation20_spill] sm:$0xff] }
 0xe2b   :  { %v26661_v18 = vsel %vm19986_vm2, %v29276_v45, %v29275_v13  ;;  %v19480_v45 = vld [vmem:[%s27198_s11 + $0x190] sm:$0xff]  }
 0xe2c   :  { %v19484_v13 = vld [vmem:[%s27198_s11 + $0x1b0] sm:$0xff]  }
 0xe31   :  { %15599 = vmatmul.mubr.bf16.gmra.mrb[104].mxu1 %v29274_v43 }
 0xe32   :  { %15606 = vmatprep.mubr.bf16.mxu1 %v26376_v11 }
 0xe39   :  { %15607 = vmatmul.mubr.bf16.gmra.mrb[108].mxu1 %v26189_v0 }
 0xe3a   :  { %15614 = vmatprep.mubr.bf16.mxu1 %v26392_v57  ;;  %v29277_v57 = vld [vmem:[#allocation147_spill] sm:$0xff] }
 0xe41   :  { %15615 = vmatmul.mubr.bf16.gmra.mrb[112].mxu1 %v26199_v38 }
 0xe42   :  { %15622 = vmatprep.mubr.bf16.mxu1 %v26408_v17  ;;  %v19478_v17 = vld [vmem:[%s27198_s11 + $0x180] sm:$0xff]  }
 0xe49   :  { %15623 = vmatmul.mubr.bf16.gmra.mrb[116].mxu1 %v26219_v28 }
 0xe4a   :  { %15630 = vmatprep.mubr.bf16.mxu1 %v26424_v20 }
 0xe51   :  { %15631 = vmatmul.mubr.bf16.gmra.mrb[120].mxu1 %v26227_v37 }
 0xe52   :  { %15638 = vmatprep.mubr.bf16.mxu1 %v26661_v18 }
 0xe59   :  { %15639 = vmatmul.mubr.bf16.gmra.mrb[124].mxu1 %v26250_v33 }
 0xe5a   :  { %15679 = vmatprep.mubr.bf16.mxu1 %v26461_v48  ;;  %v29278_v48 = vld [vmem:[#allocation66_spill] sm:$0xff] }
 0xe61   :  { %15680 = vmatmul.mubr.bf16.vlgmr.msra.gmra.mrb[200].mxu1 %v29277_v57  ;;  %v19482_v57 = vld [vmem:[%s27198_s11 + $0x1a0] sm:$0xff]  }
 0xe62   :  { %15937 = vmatpush1.bf16.msra.mxu1 %v19478_v17  ;;  %15687 = vmatprep.mubr.bf16.mxu1 %v29220_v5  ;;  %v19481_v17 = vld [vmem:[%s27198_s11 + $0x198] sm:$0xff]  }
 0xe63   :  { %15938 = vmatprep.subr.bf16.mxu1 %v28993_v40  ;;  %v29279_v5 = vld [vmem:[#allocation59_spill] sm:$0xff] }
 0xe66   :  { %15939 = vmatpush1.bf16.msra.mxu1 %v19479_v19  ;;  %v29280_v19 = vld [vmem:[#allocation65_spill] sm:$0xff] }
 0xe67   :  { %15940 = vmatprep.subr.bf16.mxu1 %v28993_v40 }
 0xe69   :  { %15688 = vmatmul.mubr.bf16.gmra.mrb[204].mxu1 %v29278_v48 }
 0xe6a   :  { %15695 = vmatprep.mubr.bf16.mxu1 %v29226_v50  ;;  %15941 = vmatpush1.bf16.msra.mxu1 %v19480_v45  ;;  %v19483_v50 = vld [vmem:[%s27198_s11 + $0x1a8] sm:$0xff]   ;;  %v19486_v45 = vld [vmem:[%s27198_s11 + $0x1c0] sm:$0xff]  }
 0xe6b   :  { %15942 = vmatprep.subr.bf16.mxu1 %v28993_v40 }
 0xe6e   :  { %15943 = vmatpush1.bf16.msra.mxu1 %v19481_v17  ;;  %v29281_v17 = vld [vmem:[#allocation70_spill] sm:$0xff] }
 0xe6f   :  { %15944 = vmatprep.subr.bf16.mxu1 %v28993_v40 }
 0xe71   :  { %15696 = vmatmul.mubr.bf16.gmra.mrb[208].mxu1 %v29279_v5 }
 0xe72   :  { %15703 = vmatprep.mubr.bf16.mxu1 %v29232_v22  ;;  %15945 = vmatpush1.bf16.msra.mxu1 %v19482_v57  ;;  %v19485_v22 = vld [vmem:[%s27198_s11 + $0x1b8] sm:$0xff]   ;;  %v19488_v57 = vld [vmem:[%s27198_s11 + $0x1d0] sm:$0xff]  }
 0xe73   :  { %15946 = vmatprep.subr.bf16.mxu1 %v28993_v40 }
 0xe76   :  { %15947 = vmatpush1.bf16.msra.mxu1 %v19483_v50  ;;  %v29282_v50 = vld [vmem:[#allocation136_spill] sm:$0xff] }
 0xe77   :  { %15948 = vmatprep.subr.bf16.mxu1 %v28993_v40 }
 0xe79   :  { %15704 = vmatmul.mubr.bf16.gmra.mrb[212].mxu1 %v29280_v19 }
 0xe7a   :  { %15711 = vmatprep.mubr.bf16.mxu1 %v29238_v3  ;;  %15949 = vmatpush1.bf16.msra.mxu1 %v19484_v13  ;;  %v19487_v3 = vld [vmem:[%s27198_s11 + $0x1c8] sm:$0xff]   ;;  %v19489_v13 = vld [vmem:[%s27198_s11 + $0x1d8] sm:$0xff]  }
 0xe7b   :  { %15950 = vmatprep.subr.bf16.mxu1 %v28993_v40 }
 0xe7e   :  { %15951 = vmatpush1.bf16.msra.mxu1 %v19485_v22  ;;  %v29284_v22 = vld [vmem:[#allocation75_spill] sm:$0xff] }
 0xe7f   :  { %15952 = vmatprep.subr.bf16.mxu1 %v28993_v40 }
 0xe81   :  { %15712 = vmatmul.mubr.bf16.gmra.mrb[216].mxu1 %v29281_v17 }
 0xe82   :  { %15719 = vmatprep.mubr.bf16.mxu1 %v29244_v6  ;;  %15953 = vmatpush1.bf16.msra.mxu1 %v19486_v45  ;;  %v29283_v6 = vld [vmem:[#allocation69_spill] sm:$0xff]  ;;  %v29285_v45 = vld [vmem:[#allocation138_spill] sm:$0xff] }
 0xe83   :  { %15954 = vmatprep.subr.bf16.mxu1 %v28993_v40 }
 0xe86   :  { %15955 = vmatpush1.bf16.msra.mxu1 %v19487_v3  ;;  %v29286_v3 = vld [vmem:[#allocation140_spill] sm:$0xff] }
 0xe87   :  { %15956 = vmatprep.subr.bf16.mxu1 %v28993_v40 }
 0xe89   :  { %15720 = vmatmul.mubr.bf16.gmra.mrb[220].mxu1 %v29282_v50 }
 0xe8a   :  { %15727 = vmatprep.mubr.bf16.mxu1 %v29249_v62  ;;  %15957 = vmatpush1.bf16.msra.mxu1 %v19488_v57  ;;  %v19490_v62 = vld [vmem:[%s27198_s11 + $0x1e0] sm:$0xff]   ;;  %v29288_v57 = vld [vmem:[#allocation139_spill] sm:$0xff] }
 0xe8b   :  { %15958 = vmatprep.subr.bf16.mxu1 %v28993_v40 }
 0xe8e   :  { %15959 = vmatpush1.bf16.msra.mxu1 %v19489_v13  ;;  %v29290_v13 = vld [vmem:[#allocation144_spill] sm:$0xff] }
 0xe8f   :  { %15960 = vmatprep.subr.bf16.mxu1 %v28993_v40 }
 0xe91   :  { %15728 = vmatmul.mubr.bf16.gmra.mrb[224].mxu1 %v29283_v6 }
 0xe92   :  { %15735 = vmatprep.mubr.bf16.mxu1 %v29254_v61  ;;  %15961 = vmatpush1.bf16.msra.mxu1 %v19490_v62  ;;  %v29287_v61 = vld [vmem:[#allocation137_spill] sm:$0xff] }
 0xe93   :  { %15962 = vmatprep.subr.bf16.mxu1 %v28993_v40  ;;  %v29292_v62 = vld [vmem:[#allocation141_spill] sm:$0xff] }
 0xe99   :  { %15736 = vmatmul.mubr.bf16.gmra.mrb[228].mxu1 %v29284_v22 }
 0xe9a   :  { %15743 = vmatprep.mubr.bf16.mxu1 %v29259_v58  ;;  %v19491_v58 = vld [vmem:[%s27198_s11 + $0x1e8] sm:$0xff]  }
 0xe9b   :  { %15963 = vmatpush1.bf16.msra.mxu1 %v19491_v58 }
 0xe9c   :  { %15964 = vmatprep.subr.bf16.mxu1 %v28993_v40 }
 0xea1   :  { %15744 = vmatmul.mubr.bf16.gmra.mrb[232].mxu1 %v29285_v45 }
 0xea2   :  { %15751 = vmatprep.mubr.bf16.mxu1 %v29262_v56  ;;  %v29289_v56 = vld [vmem:[#allocation142_spill] sm:$0xff] }
 0xea9   :  { %15752 = vmatmul.mubr.bf16.gmra.mrb[236].mxu1 %v29286_v3 }
 0xeaa   :  { %15759 = vmatprep.mubr.bf16.mxu1 %v29263_v63  ;;  %v19492_v63 = vld [vmem:[%s27198_s11 + $0x1f0] sm:$0xff]  }
 0xeab   :  { %15965 = vmatpush1.bf16.msra.mxu1 %v19492_v63 }
 0xeac   :  { %15966 = vmatprep.subr.bf16.mxu1 %v28993_v40 }
 0xeb1   :  { %15760 = vmatmul.mubr.bf16.gmra.mrb[240].mxu1 %v29287_v61 }
 0xeb2   :  { %15767 = vmatprep.mubr.bf16.mxu1 %v29264_v52  ;;  %v19493_v52 = vld [vmem:[%s27198_s11 + $0x1f8] sm:$0xff]  }
 0xeb3   :  { %15967 = vmatpush1.bf16.msra.mxu1 %v19493_v52 }
 0xeb9   :  { %15768 = vmatmul.mubr.bf16.gmra.mrb[244].mxu1 %v29288_v57 }
 0xeba   :  { %15775 = vmatprep.mubr.bf16.mxu1 %v29265_v35  ;;  %v29291_v35 = vld [vmem:[#allocation43_spill] sm:$0xff] }
 0xec1   :  { %15776 = vmatmul.mubr.bf16.gmra.mrb[248].mxu1 %v29289_v56 }
 0xec2   :  { %15783 = vmatprep.mubr.bf16.mxu1 %v29266_v42  ;;  %v29303_v42 = vld [vmem:[#allocation102_spill] sm:$0xff] }
 0xec9   :  { %15784 = vmatmul.mubr.bf16.gmra.mrb[252].mxu1 %v29290_v13 }
 0xeca   :  { %15791 = vmatprep.mubr.bf16.mxu1 %v29268_v30  ;;  %v29304_v30 = vld [vmem:[#allocation13_spill] sm:$0xff] }
 0xed1   :  { %15792 = vmatmul.mubr.bf16.gmra.mrb[56].mxu1 %v25573_v41 }
 0xed2   :  { %15799 = vmatprep.mubr.bf16.mxu1 %v29291_v35  ;;  %v29319_v35 = vld [vmem:[#allocation51_spill] sm:$0xff] }
 0xed9   :  { %15800 = vmatmul.mubr.bf16.gmra.mrb[60].mxu1 %v29292_v62 }
 0xeda   :  { %15807 = vmatprep.mubr.bf16.mxu1 %v26628_v16  ;;  %v29305_v16 = vld [vmem:[#allocation18_spill] sm:$0xff] }
 0xee1   :  { %15808 = vmatmul.mubr.bf16.gmra.mrb[64].mxu1 %v25952_v15  ;;  %v29294_v15 = vld [vmem:[#allocation146_spill] sm:$0xff] }
 0xee2   :  { %15815 = vmatprep.mubr.bf16.mxu1 %v26027_v55  ;;  %v29295_v55 = vld [vmem:[#allocation148_spill] sm:$0xff] }
 0xee9   :  { %15816 = vmatmul.mubr.bf16.gmra.mrb[68].mxu1 %v25577_v27 }
 0xeea   :  { %15823 = vmatprep.mubr.bf16.mxu1 %v26059_v31  ;;  %v29296_v31 = vld [vmem:[#allocation26_spill] sm:$0xff] }
 0xef1   :  { %15824 = vmatmul.mubr.bf16.gmra.mrb[72].mxu1 %v25579_v60 }
 0xef2   :  { %15831 = vmatprep.mubr.bf16.mxu1 %v26067_v26  ;;  %v29297_v26 = vld [vmem:[#allocation145_spill] sm:$0xff] }
 0xef9   :  { %15832 = vmatmul.mubr.bf16.gmra.mrb[76].mxu1 %v25581_v1 }
 0xefa   :  { %15839 = vmatprep.mubr.bf16.mxu1 %v26089_v39  ;;  %v29293_v39 = vld [vmem:[#allocation143_spill] sm:$0xff] }
 0xf01   :  { %15840 = vmatmul.mubr.bf16.gmra.mrb[80].mxu1 %v25583_v36 }
 0xf02   :  { %15847 = vmatprep.mubr.bf16.mxu1 %v29270_v9  ;;  %v29306_v9 = vld [vmem:[#allocation125_spill] sm:$0xff] }
 0xf09   :  { %15848 = vmatmul.mubr.bf16.gmra.mrb[84].mxu1 %v25585_v8 }
 0xf0a   :  { %15855 = vmatprep.mubr.bf16.mxu1 %v29271_v49  ;;  %v29307_v49 = vld [vmem:[#allocation25_spill] sm:$0xff] }
 0xf11   :  { %15856 = vmatmul.mubr.bf16.gmra.mrb[88].mxu1 %v25587_v32 }
 0xf12   :  { %15863 = vmatprep.mubr.bf16.mxu1 %v29272_v14  ;;  %v29308_v14 = vld [vmem:[#allocation87_spill] sm:$0xff] }
 0xf19   :  { %15864 = vmatmul.mubr.bf16.gmra.mrb[92].mxu1 %v25589_v10 }
 0xf1a   :  { %15871 = vmatprep.mubr.bf16.mxu1 %v29273_v24 }
 0xf21   :  { %15872 = vmatmul.mubr.bf16.gmra.mrb[96].mxu1 %v25591_v54 }
 0xf22   :  { %15879 = vmatprep.mubr.bf16.mxu1 %v29274_v43 }
 0xf29   :  { %15880 = vmatmul.mubr.bf16.gmra.mrb[100].mxu1 %v25593_v44 }
 0xf2a   :  { %15887 = vmatprep.mubr.bf16.mxu1 %v26189_v0  ;;  %v29298_v0 = vld [vmem:[#allocation127_spill] sm:$0xff] }
 0xf31   :  { %15888 = vmatmul.mubr.bf16.gmra.mrb[104].mxu1 %v25595_v25 }
 0xf32   :  { %15895 = vmatprep.mubr.bf16.mxu1 %v26199_v38  ;;  %v29299_v38 = vld [vmem:[#allocation103_spill] sm:$0xff] }
 0xf39   :  { %15896 = vmatmul.mubr.bf16.gmra.mrb[108].mxu1 %v25597_v59 }
 0xf3a   :  { %15903 = vmatprep.mubr.bf16.mxu1 %v26219_v28  ;;  %v29300_v28 = vld [vmem:[#allocation133_spill] sm:$0xff] }
 0xf41   :  { %15904 = vmatmul.mubr.bf16.gmra.mrb[112].mxu1 %v29293_v39 }
 0xf42   :  { %15911 = vmatprep.mubr.bf16.mxu1 %v26227_v37  ;;  %v29301_v37 = vld [vmem:[#allocation94_spill] sm:$0xff] }
 0xf49   :  { %15912 = vmatmul.mubr.bf16.gmra.mrb[116].mxu1 %v29294_v15 }
 0xf4a   :  { %15919 = vmatprep.mubr.bf16.mxu1 %v26250_v33  ;;  %v29302_v33 = vld [vmem:[#allocation24_spill] sm:$0xff] }
 0xf51   :  { %15920 = vmatmul.mubr.bf16.gmra.mrb[120].mxu1 %v29295_v55 }
 0xf52   :  { %15927 = vmatprep.mubr.bf16.mxu1 %v29296_v31 }
 0xf59   :  { %15928 = vmatmul.mubr.bf16.gmra.mrb[124].mxu1 %v29297_v26 }
 0xf5a   :  { %15968 = vmatprep.mubr.bf16.mxu1 %v29278_v48 }
 0xf61   :  { %15969 = vmatmul.mubr.bf16.vlgmr.msra.gmra.mrb[200].mxu1 %v29298_v0 }
 0xf62   :  { %15976 = vmatprep.mubr.bf16.mxu1 %v29279_v5 }
 0xf69   :  { %15977 = vmatmul.mubr.bf16.gmra.mrb[204].mxu1 %v29299_v38 }
 0xf6a   :  { %15984 = vmatprep.mubr.bf16.mxu1 %v29280_v19 }
 0xf71   :  { %15985 = vmatmul.mubr.bf16.gmra.mrb[208].mxu1 %v29300_v28 }
 0xf72   :  { %15992 = vmatprep.mubr.bf16.mxu1 %v29281_v17 }
 0xf79   :  { %15993 = vmatmul.mubr.bf16.gmra.mrb[212].mxu1 %v29301_v37 }
 0xf7a   :  { %16000 = vmatprep.mubr.bf16.mxu1 %v29282_v50  ;;  %v29317_v50 = vld [vmem:[#allocation48_spill] sm:$0xff] }
 0xf81   :  { %16001 = vmatmul.mubr.bf16.gmra.mrb[216].mxu1 %v29302_v33  ;;  %v29321_v33 = vld [vmem:[#allocation36_spill] sm:$0xff] }
 0xf82   :  { %16008 = vmatprep.mubr.bf16.mxu1 %v29283_v6 }
 0xf89   :  { %16009 = vmatmul.mubr.bf16.gmra.mrb[220].mxu1 %v29303_v42 }
 0xf8a   :  { %16016 = vmatprep.mubr.bf16.mxu1 %v29284_v22 }
 0xf91   :  { %16017 = vmatmul.mubr.bf16.gmra.mrb[224].mxu1 %v29304_v30 }
 0xf92   :  { %16024 = vmatprep.mubr.bf16.mxu1 %v29285_v45 }
 0xf99   :  { %16025 = vmatmul.mubr.bf16.gmra.mrb[228].mxu1 %v29305_v16  ;;  %v29322_v16 = vld [vmem:[#allocation63_spill] sm:$0xff] }
 0xf9a   :  { %16032 = vmatprep.mubr.bf16.mxu1 %v29286_v3  ;;  %v29318_v3 = vld [vmem:[#allocation60_spill] sm:$0xff] }
 0xfa1   :  { %16033 = vmatmul.mubr.bf16.gmra.mrb[232].mxu1 %v26109_v23 }
 0xfa2   :  { %16040 = vmatprep.mubr.bf16.mxu1 %v29287_v61 }
 0xfa9   :  { %16041 = vmatmul.mubr.bf16.gmra.mrb[236].mxu1 %v26144_v7  ;;  %v29313_v7 = vld [vmem:[#allocation54_spill] sm:$0xff] }
 0xfaa   :  { %16048 = vmatprep.mubr.bf16.mxu1 %v29288_v57 }
 0xfb1   :  { %16049 = vmatmul.mubr.bf16.gmra.mrb[240].mxu1 %v29306_v9 }
 0xfb2   :  { %16056 = vmatprep.mubr.bf16.mxu1 %v29289_v56 }
 0xfb9   :  { %16057 = vmatmul.mubr.bf16.gmra.mrb[244].mxu1 %v29307_v49 }
 0xfba   :  { %16064 = vmatprep.mubr.bf16.mxu1 %v29290_v13 }
 0xfc1   :  { %16065 = vmatmul.mubr.bf16.gmra.mrb[248].mxu1 %v26238_v47 }
 0xfc2   :  { %16072 = vmatprep.mubr.bf16.mxu1 %v25573_v41  ;;  %v29309_v41 = vld [vmem:[#allocation58_spill] sm:$0xff] }
 0xfc9   :  { %16073 = vmatmul.mubr.bf16.gmra.mrb[252].mxu1 %v29308_v14 }
 0xfca   :  { %16080 = vmatprep.mubr.bf16.mxu1 %v29292_v62 }
 0xfd1   :  { %16081 = vmatmul.mubr.bf16.gmra.mrb[56].mxu1 %v26613_v21 }
 0xfd2   :  { %16088 = vmatprep.mubr.bf16.mxu1 %v28993_v40 }
 0xfd9   :  { %16089 = vmatmul.mubr.bf16.gmra.mrb[60].mxu1 %v28993_v40 }
 0xfda   :  { %16096 = vmatprep.mubr.bf16.mxu1 %v25577_v27  ;;  %v29310_v27 = vld [vmem:[#allocation67_spill] sm:$0xff] }
 0xfe1   :  { %16097 = vmatmul.mubr.bf16.gmra.mrb[64].mxu1 %v26286_v34 }
 0xfe2   :  { %16104 = vmatprep.mubr.bf16.mxu1 %v25579_v60  ;;  %v26850_v60 = vld [vmem:[%s27201_s12] ss:$0 sm:$0xff] }
 0xfe9   :  { %16105 = vmatmul.mubr.bf16.gmra.mrb[68].mxu1 %v26294_v4 }
 0xfea   :  { %16112 = vmatprep.mubr.bf16.mxu1 %v25581_v1 }
 0xff1   :  { %16113 = vmatmul.mubr.bf16.gmra.mrb[72].mxu1 %v26302_v51  ;;  %v29314_v51 = vld [vmem:[#allocation64_spill] sm:$0xff] }
 0xff2   :  { %16120 = vmatprep.mubr.bf16.mxu1 %v25583_v36 }
 0xff9   :  { %16121 = vmatmul.mubr.bf16.gmra.mrb[76].mxu1 %v26310_v2 }
 0xffa   :  { %16128 = vmatprep.mubr.bf16.mxu1 %v25585_v8 }
0x1001   :  { %16129 = vmatmul.mubr.bf16.gmra.mrb[80].mxu1 %v26318_v12 }
0x1002   :  { %16136 = vmatprep.mubr.bf16.mxu1 %v25587_v32 }
0x1009   :  { %16137 = vmatmul.mubr.bf16.gmra.mrb[84].mxu1 %v26326_v46 }
0x100a   :  { %16144 = vmatprep.mubr.bf16.mxu1 %v25589_v10  ;;  %v29311_v10 = vld [vmem:[#allocation62_spill] sm:$0xff] }
0x1011   :  { %16145 = vmatmul.mubr.bf16.gmra.mrb[88].mxu1 %v26334_v29  ;;  %v29315_v29 = vld [vmem:[#allocation44_spill] sm:$0xff] }
0x1012   :  { %16152 = vmatprep.mubr.bf16.mxu1 %v25591_v54 }
0x1019   :  { %16153 = vmatmul.mubr.bf16.gmra.mrb[92].mxu1 %v26342_v53 }
0x101a   :  { %16160 = vmatprep.mubr.bf16.mxu1 %v25593_v44 }
0x1021   :  { %16161 = vmatmul.mubr.bf16.gmra.mrb[96].mxu1 %v29309_v41 }
0x1022   :  { %16168 = vmatprep.mubr.bf16.mxu1 %v25595_v25 }
0x1029   :  { %16169 = vmatmul.mubr.bf16.gmra.mrb[100].mxu1 %v29310_v27 }
0x102a   :  { %16176 = vmatprep.mubr.bf16.mxu1 %v25597_v59  ;;  %v29312_v59 = vld [vmem:[#allocation71_spill] sm:$0xff] }
0x1031   :  { %16177 = vmatmul.mubr.bf16.gmra.mrb[104].mxu1 %v26376_v11  ;;  %v29316_v11 = vld [vmem:[#allocation49_spill] sm:$0xff] }
0x1032   :  { %16184 = vmatprep.mubr.bf16.mxu1 %v29293_v39 }
0x1034   :  { %v15970_v1 = vpop.f32.mrb[200].mxu1 }
0x1035   :  { %v18148_v36 = vadd.f32 %v26850_v60, %v15970_v1  ;;  %v15972_v8 = vpop.f32.mrb[201].mxu1 }
0x1036   :  { %v15973_v32 = vpop.f32.mrb[202].mxu1  ;;  %v29323_v8 = vld [vmem:[#allocation74_spill] sm:$0xff] }
0x1037   :  { %v16260_v54 = vadd.f32 %v18148_v36, %v29311_v10  ;;  %v18149_v44 = vadd.f32 %v26850_v60, %v15973_v32  ;;  %v15975_v25 = vpop.f32.mrb[203].mxu1 }
0x1039   :  { %19498 = vtanh.f32 %v16260_v54  ;;  %v16263_v23 = vadd.f32 %v18149_v44, %v29312_v59  ;;  %16185 = vmatmul.mubr.bf16.gmra.mrb[108].mxu1 %v29313_v7  ;;  %v29324_v54 = vld [vmem:[#allocation42_spill] sm:$0xff] }
0x103a   :  { %16192 = vmatprep.mubr.bf16.mxu1 %v29294_v15  ;;  %v29320_v15 = vld [vmem:[#allocation57_spill] sm:$0xff] }
0x103b   :  { %19500 = vtanh.f32 %v16263_v23 }
0x103c   :  { %v15978_v21 = vpop.f32.mrb[204].mxu1 }
0x103d   :  { %v18150_v47 = vadd.f32 %v26850_v60, %v15978_v21  ;;  %v15980_v34 = vpop.f32.mrb[205].mxu1 }
0x103e   :  { %v15981_v4 = vpop.f32.mrb[206].mxu1  ;;  %v29325_v34 = vld [vmem:[#allocation55_spill] sm:$0xff] }
0x103f   :  { %v16268_v2 = vadd.f32 %v18150_v47, %v29314_v51  ;;  %v18151_v12 = vadd.f32 %v26850_v60, %v15981_v4  ;;  %v15983_v46 = vpop.f32.mrb[207].mxu1 }
0x1041   :  { %19502 = vtanh.f32 %v16268_v2  ;;  %v16271_v53 = vadd.f32 %v18151_v12, %v29315_v29  ;;  %16193 = vmatmul.mubr.bf16.gmra.mrb[112].mxu1 %v29316_v11  ;;  %v29326_v12 = vld [vmem:[#allocation53_spill] sm:$0xff] }
0x1042   :  { %16200 = vmatprep.mubr.bf16.mxu1 %v29295_v55 }
0x1043   :  { %v19499_v24 = vpop.eup %19498  ;;  %19504 = vtanh.f32 %v16271_v53 }
0x1044   :  { %16578 = vst [vmem:[%s27202_s13] sm:$0xff] %v19499_v24  ;;  %v15986_v43 = vpop.f32.mrb[208].mxu1 }
0x1045   :  { %v19501_v48 = vpop.eup %19500  ;;  %v18152_v5 = vadd.f32 %v26850_v60, %v15986_v43  ;;  %v15988_v19 = vpop.f32.mrb[209].mxu1 }
0x1046   :  { %16579 = vst [vmem:[%s27202_s13 + $0x8] sm:$0xff] %v19501_v48  ;;  %v15989_v17 = vpop.f32.mrb[210].mxu1 }
0x1047   :  { %v16276_v6 = vadd.f32 %v18152_v5, %v29317_v50  ;;  %v18153_v22 = vadd.f32 %v26850_v60, %v15989_v17  ;;  %v15991_v45 = vpop.f32.mrb[211].mxu1  ;;  %v29327_v5 = vld [vmem:[#allocation39_spill] sm:$0xff] }
0x1049   :  { %19506 = vtanh.f32 %v16276_v6  ;;  %v16279_v61 = vadd.f32 %v18153_v22, %v29318_v3  ;;  %16201 = vmatmul.mubr.bf16.gmra.mrb[116].mxu1 %v26424_v20  ;;  %v29328_v6 = vld [vmem:[#allocation47_spill] sm:$0xff] }
0x104a   :  { %16208 = vmatprep.mubr.bf16.mxu1 %v29297_v26 }
0x104b   :  { %v19503_v58 = vpop.eup %19502  ;;  %19508 = vtanh.f32 %v16279_v61 }
0x104c   :  { %16580 = vst [vmem:[%s27202_s13 + $0x10] sm:$0xff] %v19503_v58  ;;  %v15994_v57 = vpop.f32.mrb[212].mxu1 }
0x104d   :  { %v19505_v56 = vpop.eup %19504  ;;  %v18154_v63 = vadd.f32 %v26850_v60, %v15994_v57  ;;  %v15996_v13 = vpop.f32.mrb[213].mxu1 }
0x104e   :  { %16581 = vst [vmem:[%s27202_s13 + $0x18] sm:$0xff] %v19505_v56  ;;  %v15997_v52 = vpop.f32.mrb[214].mxu1 }
0x104f   :  { %v16284_v20 = vadd.f32 %v18154_v63, %v29319_v35  ;;  %v18155_v62 = vadd.f32 %v26850_v60, %v15997_v52  ;;  %v15999_v39 = vpop.f32.mrb[215].mxu1  ;;  %v29329_v63 = vld [vmem:[#allocation33_spill] sm:$0xff] }
0x1051   :  { %19510 = vtanh.f32 %v16284_v20  ;;  %v16287_v55 = vadd.f32 %v18155_v62, %v29320_v15  ;;  %16209 = vmatmul.mubr.bf16.gmra.mrb[120].mxu1 %v26661_v18  ;;  %v29330_v20 = vld [vmem:[#allocation56_spill] sm:$0xff] }
0x1052   :  { %16216 = vmatprep.mubr.bf16.mxu1 %v28993_v40 }
0x1053   :  { %v19507_v31 = vpop.eup %19506  ;;  %19512 = vtanh.f32 %v16287_v55 }
0x1054   :  { %16582 = vst [vmem:[%s27202_s13 + $0x20] sm:$0xff] %v19507_v31  ;;  %v16002_v26 = vpop.f32.mrb[216].mxu1 }
0x1055   :  { %v19509_v0 = vpop.eup %19508  ;;  %v18156_v38 = vadd.f32 %v26850_v60, %v16002_v26  ;;  %v16004_v28 = vpop.f32.mrb[217].mxu1 }
0x1056   :  { %16583 = vst [vmem:[%s27202_s13 + $0x28] sm:$0xff] %v19509_v0  ;;  %v16005_v37 = vpop.f32.mrb[218].mxu1 }
0x1057   :  { %v16292_v18 = vadd.f32 %v18156_v38, %v29321_v33  ;;  %v18157_v42 = vadd.f32 %v26850_v60, %v16005_v37  ;;  %v16007_v30 = vpop.f32.mrb[219].mxu1  ;;  %v29331_v38 = vld [vmem:[#allocation61_spill] sm:$0xff] }
0x1059   :  { %19514 = vtanh.f32 %v16292_v18  ;;  %v16295_v9 = vadd.f32 %v18157_v42, %v29322_v16  ;;  %16217 = vmatmul.mubr.bf16.gmra.mrb[124].mxu1 %v28993_v40  ;;  %v29332_v18 = vld [vmem:[#allocation72_spill] sm:$0xff] }
0x105b   :  { %v19511_v49 = vpop.eup %19510  ;;  %19516 = vtanh.f32 %v16295_v9 }
0x105c   :  { %16584 = vst [vmem:[%s27202_s13 + $0x30] sm:$0xff] %v19511_v49  ;;  %v16010_v14 = vpop.f32.mrb[220].mxu1 }
0x105d   :  { %v19513_v41 = vpop.eup %19512  ;;  %v18158_v27 = vadd.f32 %v26850_v60, %v16010_v14  ;;  %v16012_v1 = vpop.f32.mrb[221].mxu1 }
0x105e   :  { %16585 = vst [vmem:[%s27202_s13 + $0x38] sm:$0xff] %v19513_v41  ;;  %v16013_v36 = vpop.f32.mrb[222].mxu1 }
0x105f   :  { %v16300_v32 = vadd.f32 %v18158_v27, %v29323_v8  ;;  %v18159_v40 = vadd.f32 %v26850_v60, %v16013_v36  ;;  %v16015_v10 = vpop.f32.mrb[223].mxu1  ;;  %v29333_v27 = vld [vmem:[#allocation37_spill] sm:$0xff] }
0x1061   :  { %19518 = vtanh.f32 %v16300_v32  ;;  %v16303_v44 = vadd.f32 %v18159_v40, %v29324_v54  ;;  %v29334_v32 = vld [vmem:[#allocation108_spill] sm:$0xff] }
0x1063   :  { %v19515_v25 = vpop.eup %19514  ;;  %19520 = vtanh.f32 %v16303_v44 }
0x1064   :  { %16586 = vst [vmem:[%s27202_s13 + $0x40] sm:$0xff] %v19515_v25  ;;  %v16018_v59 = vpop.f32.mrb[224].mxu1 }
0x1065   :  { %v19517_v23 = vpop.eup %19516  ;;  %v18160_v7 = vadd.f32 %v26850_v60, %v16018_v59  ;;  %v16020_v21 = vpop.f32.mrb[225].mxu1 }
0x1066   :  { %16587 = vst [vmem:[%s27202_s13 + $0x48] sm:$0xff] %v19517_v23  ;;  %v16021_v47 = vpop.f32.mrb[226].mxu1 }
0x1067   :  { %v16308_v4 = vadd.f32 %v18160_v7, %v29325_v34  ;;  %v18161_v51 = vadd.f32 %v26850_v60, %v16021_v47  ;;  %v16023_v2 = vpop.f32.mrb[227].mxu1  ;;  %v29335_v7 = vld [vmem:[#allocation106_spill] sm:$0xff] }
0x1069   :  { %19522 = vtanh.f32 %v16308_v4  ;;  %v16311_v46 = vadd.f32 %v18161_v51, %v29326_v12  ;;  %v29336_v4 = vld [vmem:[#allocation107_spill] sm:$0xff] }
0x106b   :  { %v19519_v29 = vpop.eup %19518  ;;  %19524 = vtanh.f32 %v16311_v46 }
0x106c   :  { %16588 = vst [vmem:[%s27202_s13 + $0x50] sm:$0xff] %v19519_v29  ;;  %v16026_v53 = vpop.f32.mrb[228].mxu1 }
0x106d   :  { %v19521_v11 = vpop.eup %19520  ;;  %v18162_v24 = vadd.f32 %v26850_v60, %v16026_v53  ;;  %v16028_v43 = vpop.f32.mrb[229].mxu1 }
0x106e   :  { %16589 = vst [vmem:[%s27202_s13 + $0x58] sm:$0xff] %v19521_v11  ;;  %v16029_v48 = vpop.f32.mrb[230].mxu1 }
0x106f   :  { %v16316_v19 = vadd.f32 %v18162_v24, %v29327_v5  ;;  %v18163_v17 = vadd.f32 %v26850_v60, %v16029_v48  ;;  %v16031_v50 = vpop.f32.mrb[231].mxu1  ;;  %v29337_v24 = vld [vmem:[#allocation4_spill] sm:$0xff] }
0x1071   :  { %19526 = vtanh.f32 %v16316_v19  ;;  %v16319_v22 = vadd.f32 %v18163_v17, %v29328_v6  ;;  %v29338_v19 = vld [vmem:[#allocation124_spill] sm:$0xff] }
0x1073   :  { %v19523_v45 = vpop.eup %19522  ;;  %19528 = vtanh.f32 %v16319_v22 }
0x1074   :  { %16590 = vst [vmem:[%s27202_s13 + $0x60] sm:$0xff] %v19523_v45  ;;  %v16034_v3 = vpop.f32.mrb[232].mxu1 }
0x1075   :  { %v19525_v61 = vpop.eup %19524  ;;  %v18164_v58 = vadd.f32 %v26850_v60, %v16034_v3  ;;  %v16036_v57 = vpop.f32.mrb[233].mxu1 }
0x1076   :  { %16591 = vst [vmem:[%s27202_s13 + $0x68] sm:$0xff] %v19525_v61  ;;  %v16037_v56 = vpop.f32.mrb[234].mxu1 }
0x1077   :  { %v16324_v13 = vadd.f32 %v18164_v58, %v29329_v63  ;;  %v18165_v52 = vadd.f32 %v26850_v60, %v16037_v56  ;;  %v16039_v35 = vpop.f32.mrb[235].mxu1  ;;  %v29339_v58 = vld [vmem:[#allocation110_spill] sm:$0xff] }
0x1079   :  { %19530 = vtanh.f32 %v16324_v13  ;;  %v16327_v62 = vadd.f32 %v18165_v52, %v29330_v20  ;;  %v29340_v13 = vld [vmem:[#allocation120_spill] sm:$0xff] }
0x107b   :  { %v19527_v39 = vpop.eup %19526  ;;  %19532 = vtanh.f32 %v16327_v62 }
0x107c   :  { %16592 = vst [vmem:[%s27202_s13 + $0x70] sm:$0xff] %v19527_v39  ;;  %v16042_v15 = vpop.f32.mrb[236].mxu1 }
0x107d   :  { %v19529_v55 = vpop.eup %19528  ;;  %v18166_v31 = vadd.f32 %v26850_v60, %v16042_v15  ;;  %v16044_v26 = vpop.f32.mrb[237].mxu1 }
0x107e   :  { %16593 = vst [vmem:[%s27202_s13 + $0x78] sm:$0xff] %v19529_v55  ;;  %v16045_v0 = vpop.f32.mrb[238].mxu1 }
0x107f   :  { %v16332_v28 = vadd.f32 %v18166_v31, %v29331_v38  ;;  %v18167_v37 = vadd.f32 %v26850_v60, %v16045_v0  ;;  %v16047_v33 = vpop.f32.mrb[239].mxu1  ;;  %v29341_v31 = vld [vmem:[#allocation132_spill] sm:$0xff] }
0x1081   :  { %19534 = vtanh.f32 %v16332_v28  ;;  %v16335_v42 = vadd.f32 %v18167_v37, %v29332_v18  ;;  %v29342_v28 = vld [vmem:[#allocation31_spill] sm:$0xff] }
0x1083   :  { %v19531_v30 = vpop.eup %19530  ;;  %19536 = vtanh.f32 %v16335_v42 }
0x1084   :  { %16594 = vst [vmem:[%s27202_s13 + $0x80] sm:$0xff] %v19531_v30  ;;  %v16050_v16 = vpop.f32.mrb[240].mxu1 }
0x1085   :  { %v19533_v9 = vpop.eup %19532  ;;  %v18168_v49 = vadd.f32 %v26850_v60, %v16050_v16  ;;  %v16052_v14 = vpop.f32.mrb[241].mxu1 }
0x1086   :  { %16595 = vst [vmem:[%s27202_s13 + $0x88] sm:$0xff] %v19533_v9  ;;  %v16053_v41 = vpop.f32.mrb[242].mxu1  ;;  %v29343_v14 = vld [vmem:[#allocation128_spill] sm:$0xff] }
0x1087   :  { %v16340_v1 = vadd.f32 %v18168_v49, %v29333_v27  ;;  %v18169_v36 = vadd.f32 %v26850_v60, %v16053_v41  ;;  %v16055_v8 = vpop.f32.mrb[243].mxu1  ;;  %v27006_v49 = vpop.f32.mrb[196].mxu0 }
0x1088   :  { %v29344_v8 = vld [vmem:[#allocation131_spill] sm:$0xff] }
0x1089   :  { %19538 = vtanh.f32 %v16340_v1  ;;  %v16343_v40 = vadd.f32 %v18169_v36, %v29334_v32  ;;  %v27010_v36 = vpop.f32.mrb[197].mxu0 }
0x108b   :  { %v19535_v10 = vpop.eup %19534  ;;  %19540 = vtanh.f32 %v16343_v40 }
0x108c   :  { %16596 = vst [vmem:[%s27202_s13 + $0x90] sm:$0xff] %v19535_v10  ;;  %v16058_v54 = vpop.f32.mrb[244].mxu1 }
0x108d   :  { %v19537_v44 = vpop.eup %19536  ;;  %v18170_v25 = vadd.f32 %v26850_v60, %v16058_v54  ;;  %v16060_v59 = vpop.f32.mrb[245].mxu1 }
0x108e   :  { %16597 = vst [vmem:[%s27202_s13 + $0x98] sm:$0xff] %v19537_v44  ;;  %v16061_v23 = vpop.f32.mrb[246].mxu1  ;;  %v27016_v54 = vpop.f32.mrb[198].mxu0 }
0x108f   :  { %v16348_v21 = vadd.f32 %v18170_v25, %v29335_v7  ;;  %v18171_v47 = vadd.f32 %v26850_v60, %v16061_v23  ;;  %v16063_v34 = vpop.f32.mrb[247].mxu1  ;;  %v27019_v23 = vpop.f32.mrb[199].mxu0 }
0x1091   :  { %19542 = vtanh.f32 %v16348_v21  ;;  %v16351_v51 = vadd.f32 %v18171_v47, %v29336_v4  ;;  %v29345_v21 = vld [vmem:[#allocation27_spill] sm:$0xff] }
0x1093   :  { %v19539_v2 = vpop.eup %19538  ;;  %19544 = vtanh.f32 %v16351_v51  ;;  %v29346_v51 = vld [vmem:[#allocation9_spill] sm:$0xff] }
0x1094   :  { %16598 = vst [vmem:[%s27202_s13 + $0xa0] sm:$0xff] %v19539_v2  ;;  %v16066_v12 = vpop.f32.mrb[248].mxu1 }
0x1095   :  { %v19541_v46 = vpop.eup %19540  ;;  %v18172_v29 = vadd.f32 %v26850_v60, %v16066_v12  ;;  %v16068_v53 = vpop.f32.mrb[249].mxu1 }
0x1096   :  { %16599 = vst [vmem:[%s27202_s13 + $0xa8] sm:$0xff] %v19541_v46  ;;  %v16069_v11 = vpop.f32.mrb[250].mxu1 }
0x1097   :  { %v16356_v43 = vadd.f32 %v18172_v29, %v29337_v24  ;;  %v18173_v48 = vadd.f32 %v26850_v60, %v16069_v11  ;;  %v16071_v5 = vpop.f32.mrb[251].mxu1 }
0x1099   :  { %19546 = vtanh.f32 %v16356_v43  ;;  %v16359_v17 = vadd.f32 %v18173_v48, %v29338_v19  ;;  %v29347_v43 = vld [vmem:[#allocation23_spill] sm:$0xff] }
0x109b   :  { %v19543_v50 = vpop.eup %19542  ;;  %19548 = vtanh.f32 %v16359_v17  ;;  %v29348_v17 = vld [vmem:[#allocation11_spill] sm:$0xff] }
0x109c   :  { %16600 = vst [vmem:[%s27202_s13 + $0xb0] sm:$0xff] %v19543_v50  ;;  %v16074_v6 = vpop.f32.mrb[252].mxu1 }
0x109d   :  { %v19545_v22 = vpop.eup %19544  ;;  %v18174_v45 = vadd.f32 %v26850_v60, %v16074_v6  ;;  %v16076_v3 = vpop.f32.mrb[253].mxu1 }
0x109e   :  { %16601 = vst [vmem:[%s27202_s13 + $0xb8] sm:$0xff] %v19545_v22  ;;  %v16077_v61 = vpop.f32.mrb[254].mxu1 }
0x109f   :  { %v16364_v57 = vadd.f32 %v18174_v45, %v29339_v58  ;;  %v18175_v56 = vadd.f32 %v26850_v60, %v16077_v61  ;;  %v16079_v63 = vpop.f32.mrb[255].mxu1 }
0x10a1   :  { %19550 = vtanh.f32 %v16364_v57  ;;  %v16367_v52 = vadd.f32 %v18175_v56, %v29340_v13  ;;  %v29349_v57 = vld [vmem:[#allocation32_spill] sm:$0xff] }
0x10a3   :  { %v19547_v35 = vpop.eup %19546  ;;  %19552 = vtanh.f32 %v16367_v52  ;;  %v29350_v52 = vld [vmem:[#allocation134_spill] sm:$0xff] }
0x10a4   :  { %16602 = vst [vmem:[%s27202_s13 + $0xc0] sm:$0xff] %v19547_v35  ;;  %v16082_v20 = vpop.f32.mrb[56].mxu1 }
0x10a5   :  { %v19549_v62 = vpop.eup %19548  ;;  %v18176_v39 = vadd.f32 %v26850_v60, %v16082_v20  ;;  %v16084_v15 = vpop.f32.mrb[57].mxu1 }
0x10a6   :  { %16603 = vst [vmem:[%s27202_s13 + $0xc8] sm:$0xff] %v19549_v62  ;;  %v16085_v55 = vpop.f32.mrb[58].mxu1 }
0x10a7   :  { %v16372_v26 = vadd.f32 %v18176_v39, %v29341_v31  ;;  %v18177_v0 = vadd.f32 %v26850_v60, %v16085_v55  ;;  %v16087_v38 = vpop.f32.mrb[59].mxu1 }
0x10a9   :  { %19554 = vtanh.f32 %v16372_v26  ;;  %v16375_v37 = vadd.f32 %v18177_v0, %v29342_v28  ;;  %v29351_v26 = vld [vmem:[#allocation45_spill] sm:$0xff] }
0x10ab   :  { %v19551_v33 = vpop.eup %19550  ;;  %19556 = vtanh.f32 %v16375_v37  ;;  %v29352_v37 = vld [vmem:[#allocation85_spill] sm:$0xff] }
0x10ac   :  { %16604 = vst [vmem:[%s27202_s13 + $0xd0] sm:$0xff] %v19551_v33  ;;  %v16090_v18 = vpop.f32.mrb[60].mxu1 }
0x10ad   :  { %v19553_v42 = vpop.eup %19552  ;;  %v18178_v30 = vadd.f32 %v26850_v60, %v16090_v18  ;;  %v16092_v16 = vpop.f32.mrb[61].mxu1 }
0x10ae   :  { %16605 = vst [vmem:[%s27202_s13 + $0xd8] sm:$0xff] %v19553_v42  ;;  %v16093_v9 = vpop.f32.mrb[62].mxu1 }
0x10af   :  { %v16380_v41 = vadd.f32 %v18178_v30, %v29343_v14  ;;  %v18179_v27 = vadd.f32 %v26850_v60, %v16093_v9  ;;  %v16095_v1 = vpop.f32.mrb[63].mxu1 }
0x10b1   :  { %19558 = vtanh.f32 %v16380_v41  ;;  %v16383_v32 = vadd.f32 %v18179_v27, %v29344_v8  ;;  %v29353_v41 = vld [vmem:[#allocation41_spill] sm:$0xff] }
0x10b3   :  { %v19555_v40 = vpop.eup %19554  ;;  %19560 = vtanh.f32 %v16383_v32  ;;  %v29354_v32 = vld [vmem:[#allocation40_spill] sm:$0xff] }
0x10b4   :  { %16606 = vst [vmem:[%s27202_s13 + $0xe0] sm:$0xff] %v19555_v40  ;;  %v16098_v10 = vpop.f32.mrb[64].mxu1 }
0x10b5   :  { %v19557_v44 = vpop.eup %19556  ;;  %v18180_v25 = vadd.f32 %v26850_v60, %v16098_v10  ;;  %v16100_v59 = vpop.f32.mrb[65].mxu1 }
0x10b6   :  { %16607 = vst [vmem:[%s27202_s13 + $0xe8] sm:$0xff] %v19557_v44  ;;  %v16101_v7 = vpop.f32.mrb[66].mxu1 }
0x10b7   :  { %v16388_v47 = vadd.f32 %v18180_v25, %v29345_v21  ;;  %v18181_v34 = vadd.f32 %v26850_v60, %v16101_v7  ;;  %v16103_v4 = vpop.f32.mrb[67].mxu1 }
0x10b9   :  { %19562 = vtanh.f32 %v16388_v47  ;;  %v16391_v2 = vadd.f32 %v18181_v34, %v29346_v51  ;;  %v29355_v47 = vld [vmem:[#allocation135_spill] sm:$0xff] }
0x10bb   :  { %v19559_v12 = vpop.eup %19558  ;;  %19564 = vtanh.f32 %v16391_v2  ;;  %v29356_v2 = vld [vmem:[#allocation35_spill] sm:$0xff] }
0x10bc   :  { %16608 = vst [vmem:[%s27202_s13 + $0xf0] sm:$0xff] %v19559_v12  ;;  %v16106_v46 = vpop.f32.mrb[68].mxu1 }
0x10bd   :  { %v19561_v29 = vpop.eup %19560  ;;  %v18182_v53 = vadd.f32 %v26850_v60, %v16106_v46  ;;  %v16108_v11 = vpop.f32.mrb[69].mxu1 }
0x10be   :  { %16609 = vst [vmem:[%s27202_s13 + $0xf8] sm:$0xff] %v19561_v29  ;;  %v16109_v24 = vpop.f32.mrb[70].mxu1 }
0x10bf   :  { %v16396_v48 = vadd.f32 %v18182_v53, %v29347_v43  ;;  %v18183_v5 = vadd.f32 %v26850_v60, %v16109_v24  ;;  %v16111_v19 = vpop.f32.mrb[71].mxu1 }
0x10c1   :  { %19566 = vtanh.f32 %v16396_v48  ;;  %v16399_v50 = vadd.f32 %v18183_v5, %v29348_v17  ;;  %v29357_v48 = vld [vmem:[#allocation15_spill] sm:$0xff] }
0x10c3   :  { %v19563_v6 = vpop.eup %19562  ;;  %19568 = vtanh.f32 %v16399_v50  ;;  %v29358_v50 = vld [vmem:[#allocation89_spill] sm:$0xff] }
0x10c4   :  { %16610 = vst [vmem:[%s27202_s13 + $0x100] sm:$0xff] %v19563_v6  ;;  %v16114_v22 = vpop.f32.mrb[72].mxu1 }
0x10c5   :  { %v19565_v45 = vpop.eup %19564  ;;  %v18184_v3 = vadd.f32 %v26850_v60, %v16114_v22  ;;  %v16116_v61 = vpop.f32.mrb[73].mxu1 }
0x10c6   :  { %16611 = vst [vmem:[%s27202_s13 + $0x108] sm:$0xff] %v19565_v45  ;;  %v16117_v58 = vpop.f32.mrb[74].mxu1 }
0x10c7   :  { %v16404_v56 = vadd.f32 %v18184_v3, %v29349_v57  ;;  %v18185_v63 = vadd.f32 %v26850_v60, %v16117_v58  ;;  %v16119_v13 = vpop.f32.mrb[75].mxu1 }
0x10c9   :  { %19570 = vtanh.f32 %v16404_v56  ;;  %v16407_v35 = vadd.f32 %v18185_v63, %v29350_v52  ;;  %v29359_v56 = vld [vmem:[#allocation7_spill] sm:$0xff] }
0x10cb   :  { %v19567_v20 = vpop.eup %19566  ;;  %19572 = vtanh.f32 %v16407_v35  ;;  %v29360_v35 = vld [vmem:[#allocation29_spill] sm:$0xff] }
0x10cc   :  { %16612 = vst [vmem:[%s27202_s13 + $0x110] sm:$0xff] %v19567_v20  ;;  %v16122_v62 = vpop.f32.mrb[76].mxu1 }
0x10cd   :  { %v19569_v39 = vpop.eup %19568  ;;  %v18186_v15 = vadd.f32 %v26850_v60, %v16122_v62  ;;  %v16124_v55 = vpop.f32.mrb[77].mxu1 }
0x10ce   :  { %16613 = vst [vmem:[%s27202_s13 + $0x118] sm:$0xff] %v19569_v39  ;;  %v16125_v31 = vpop.f32.mrb[78].mxu1 }
0x10cf   :  { %v16412_v0 = vadd.f32 %v18186_v15, %v29351_v26  ;;  %v18187_v38 = vadd.f32 %v26850_v60, %v16125_v31  ;;  %v16127_v28 = vpop.f32.mrb[79].mxu1 }
0x10d1   :  { %19574 = vtanh.f32 %v16412_v0  ;;  %v16415_v33 = vadd.f32 %v18187_v38, %v29352_v37  ;;  %v29361_v0 = vld [vmem:[#allocation91_spill] sm:$0xff] }
0x10d3   :  { %v19571_v18 = vpop.eup %19570  ;;  %19576 = vtanh.f32 %v16415_v33  ;;  %v29362_v33 = vld [vmem:[#allocation119_spill] sm:$0xff] }
0x10d4   :  { %16614 = vst [vmem:[%s27202_s13 + $0x120] sm:$0xff] %v19571_v18  ;;  %v16130_v42 = vpop.f32.mrb[80].mxu1 }
0x10d5   :  { %v19573_v30 = vpop.eup %19572  ;;  %v18188_v16 = vadd.f32 %v26850_v60, %v16130_v42  ;;  %v16132_v9 = vpop.f32.mrb[81].mxu1 }
0x10d6   :  { %16615 = vst [vmem:[%s27202_s13 + $0x128] sm:$0xff] %v19573_v30  ;;  %v16133_v14 = vpop.f32.mrb[82].mxu1 }
0x10d7   :  { %v16420_v27 = vadd.f32 %v18188_v16, %v29353_v41  ;;  %v18189_v1 = vadd.f32 %v26850_v60, %v16133_v14  ;;  %v16135_v8 = vpop.f32.mrb[83].mxu1 }
0x10d9   :  { %19578 = vtanh.f32 %v16420_v27  ;;  %v16423_v40 = vadd.f32 %v18189_v1, %v29354_v32  ;;  %v29363_v27 = vld [vmem:[#allocation90_spill] sm:$0xff] }
0x10db   :  { %v19575_v10 = vpop.eup %19574  ;;  %19580 = vtanh.f32 %v16423_v40  ;;  %v29364_v40 = vld [vmem:[#allocation92_spill] sm:$0xff] }
0x10dc   :  { %16616 = vst [vmem:[%s27202_s13 + $0x130] sm:$0xff] %v19575_v10  ;;  %v16138_v44 = vpop.f32.mrb[84].mxu1 }
0x10dd   :  { %v19577_v25 = vpop.eup %19576  ;;  %v18190_v59 = vadd.f32 %v26850_v60, %v16138_v44  ;;  %v16140_v7 = vpop.f32.mrb[85].mxu1 }
0x10de   :  { %16617 = vst [vmem:[%s27202_s13 + $0x138] sm:$0xff] %v19577_v25  ;;  %v16141_v21 = vpop.f32.mrb[86].mxu1 }
0x10df   :  { %v16428_v34 = vadd.f32 %v18190_v59, %v29355_v47  ;;  %v18191_v4 = vadd.f32 %v26850_v60, %v16141_v21  ;;  %v16143_v51 = vpop.f32.mrb[87].mxu1 }
0x10e1   :  { %19582 = vtanh.f32 %v16428_v34  ;;  %v16431_v12 = vadd.f32 %v18191_v4, %v29356_v2  ;;  %v29365_v34 = vld [vmem:[#allocation113_spill] sm:$0xff] }
0x10e3   :  { %v19579_v46 = vpop.eup %19578  ;;  %19584 = vtanh.f32 %v16431_v12  ;;  %v29366_v12 = vld [vmem:[#allocation77_spill] sm:$0xff] }
0x10e4   :  { %16618 = vst [vmem:[%s27202_s13 + $0x140] sm:$0xff] %v19579_v46  ;;  %v16146_v29 = vpop.f32.mrb[88].mxu1 }
0x10e5   :  { %v19581_v53 = vpop.eup %19580  ;;  %v18192_v11 = vadd.f32 %v26850_v60, %v16146_v29  ;;  %v16148_v24 = vpop.f32.mrb[89].mxu1 }
0x10e6   :  { %16619 = vst [vmem:[%s27202_s13 + $0x148] sm:$0xff] %v19581_v53  ;;  %v16149_v43 = vpop.f32.mrb[90].mxu1 }
0x10e7   :  { %v16436_v5 = vadd.f32 %v18192_v11, %v29357_v48  ;;  %v18193_v19 = vadd.f32 %v26850_v60, %v16149_v43  ;;  %v16151_v17 = vpop.f32.mrb[91].mxu1 }
0x10e9   :  { %19586 = vtanh.f32 %v16436_v5  ;;  %v16439_v6 = vadd.f32 %v18193_v19, %v29358_v50  ;;  %v29367_v5 = vld [vmem:[#allocation93_spill] sm:$0xff] }
0x10eb   :  { %v19583_v22 = vpop.eup %19582  ;;  %19588 = vtanh.f32 %v16439_v6  ;;  %v29368_v6 = vld [vmem:[#allocation114_spill] sm:$0xff] }
0x10ec   :  { %16620 = vst [vmem:[%s27202_s13 + $0x150] sm:$0xff] %v19583_v22  ;;  %v16154_v45 = vpop.f32.mrb[92].mxu1 }
0x10ed   :  { %v19585_v3 = vpop.eup %19584  ;;  %v18194_v61 = vadd.f32 %v26850_v60, %v16154_v45  ;;  %v16156_v58 = vpop.f32.mrb[93].mxu1 }
0x10ee   :  { %16621 = vst [vmem:[%s27202_s13 + $0x158] sm:$0xff] %v19585_v3  ;;  %v16157_v57 = vpop.f32.mrb[94].mxu1 }
0x10ef   :  { %v16444_v63 = vadd.f32 %v18194_v61, %v29359_v56  ;;  %v18195_v13 = vadd.f32 %v26850_v60, %v16157_v57  ;;  %v16159_v52 = vpop.f32.mrb[95].mxu1 }
0x10f1   :  { %19590 = vtanh.f32 %v16444_v63  ;;  %v16447_v20 = vadd.f32 %v18195_v13, %v29360_v35  ;;  %v29369_v63 = vld [vmem:[#allocation78_spill] sm:$0xff] }
0x10f3   :  { %v19587_v62 = vpop.eup %19586  ;;  %19592 = vtanh.f32 %v16447_v20  ;;  %v29370_v20 = vld [vmem:[#allocation95_spill] sm:$0xff] }
0x10f4   :  { %16622 = vst [vmem:[%s27202_s13 + $0x160] sm:$0xff] %v19587_v62  ;;  %v16162_v39 = vpop.f32.mrb[96].mxu1 }
0x10f5   :  { %v19589_v15 = vpop.eup %19588  ;;  %v18196_v55 = vadd.f32 %v26850_v60, %v16162_v39  ;;  %v16164_v31 = vpop.f32.mrb[97].mxu1 }
0x10f6   :  { %16623 = vst [vmem:[%s27202_s13 + $0x168] sm:$0xff] %v19589_v15  ;;  %v16165_v26 = vpop.f32.mrb[98].mxu1 }
0x10f7   :  { %v16452_v38 = vadd.f32 %v18196_v55, %v29361_v0  ;;  %v18197_v28 = vadd.f32 %v26850_v60, %v16165_v26  ;;  %v16167_v37 = vpop.f32.mrb[99].mxu1 }
0x10f9   :  { %19594 = vtanh.f32 %v16452_v38  ;;  %v16455_v18 = vadd.f32 %v18197_v28, %v29362_v33  ;;  %v29371_v38 = vld [vmem:[#allocation76_spill] sm:$0xff] }
0x10fb   :  { %v19591_v42 = vpop.eup %19590  ;;  %19596 = vtanh.f32 %v16455_v18  ;;  %v29372_v18 = vld [vmem:[#allocation122_spill] sm:$0xff] }
0x10fc   :  { %16624 = vst [vmem:[%s27202_s13 + $0x170] sm:$0xff] %v19591_v42  ;;  %v16170_v30 = vpop.f32.mrb[100].mxu1 }
0x10fd   :  { %v19593_v16 = vpop.eup %19592  ;;  %v18198_v9 = vadd.f32 %v26850_v60, %v16170_v30  ;;  %v16172_v14 = vpop.f32.mrb[101].mxu1 }
0x10fe   :  { %16625 = vst [vmem:[%s27202_s13 + $0x178] sm:$0xff] %v19593_v16  ;;  %v16173_v41 = vpop.f32.mrb[102].mxu1 }
0x10ff   :  { %v16460_v1 = vadd.f32 %v18198_v9, %v29363_v27  ;;  %v18199_v8 = vadd.f32 %v26850_v60, %v16173_v41  ;;  %v16175_v32 = vpop.f32.mrb[103].mxu1 }
0x1101   :  { %19598 = vtanh.f32 %v16460_v1  ;;  %v16463_v10 = vadd.f32 %v18199_v8, %v29364_v40 }
0x1103   :  { %v19595_v44 = vpop.eup %19594  ;;  %19600 = vtanh.f32 %v16463_v10 }
0x1104   :  { %16626 = vst [vmem:[%s27202_s13 + $0x180] sm:$0xff] %v19595_v44  ;;  %v16178_v25 = vpop.f32.mrb[104].mxu1 }
0x1105   :  { %v19597_v59 = vpop.eup %19596  ;;  %v18200_v7 = vadd.f32 %v26850_v60, %v16178_v25  ;;  %v16180_v21 = vpop.f32.mrb[105].mxu1 }
0x1106   :  { %16627 = vst [vmem:[%s27202_s13 + $0x188] sm:$0xff] %v19597_v59  ;;  %v16181_v47 = vpop.f32.mrb[106].mxu1 }
0x1107   :  { %v16468_v4 = vadd.f32 %v18200_v7, %v29365_v34  ;;  %v18201_v51 = vadd.f32 %v26850_v60, %v16181_v47  ;;  %v16183_v2 = vpop.f32.mrb[107].mxu1 }
0x1109   :  { %19602 = vtanh.f32 %v16468_v4  ;;  %v16471_v46 = vadd.f32 %v18201_v51, %v29366_v12 }
0x110b   :  { %v19599_v29 = vpop.eup %19598  ;;  %19604 = vtanh.f32 %v16471_v46 }
0x110c   :  { %16628 = vst [vmem:[%s27202_s13 + $0x190] sm:$0xff] %v19599_v29  ;;  %v16186_v53 = vpop.f32.mrb[108].mxu1 }
0x110d   :  { %v19601_v11 = vpop.eup %19600  ;;  %v18202_v24 = vadd.f32 %v26850_v60, %v16186_v53  ;;  %v16188_v43 = vpop.f32.mrb[109].mxu1 }
0x110e   :  { %16629 = vst [vmem:[%s27202_s13 + $0x198] sm:$0xff] %v19601_v11  ;;  %v16189_v48 = vpop.f32.mrb[110].mxu1 }
0x110f   :  { %v16476_v19 = vadd.f32 %v18202_v24, %v29367_v5  ;;  %v18203_v17 = vadd.f32 %v26850_v60, %v16189_v48  ;;  %v16191_v50 = vpop.f32.mrb[111].mxu1 }
0x1111   :  { %19606 = vtanh.f32 %v16476_v19  ;;  %v16479_v22 = vadd.f32 %v18203_v17, %v29368_v6 }
0x1113   :  { %v19603_v45 = vpop.eup %19602  ;;  %19608 = vtanh.f32 %v16479_v22 }
0x1114   :  { %16630 = vst [vmem:[%s27202_s13 + $0x1a0] sm:$0xff] %v19603_v45  ;;  %v16194_v3 = vpop.f32.mrb[112].mxu1 }
0x1115   :  { %v19605_v61 = vpop.eup %19604  ;;  %v18204_v58 = vadd.f32 %v26850_v60, %v16194_v3  ;;  %v16196_v57 = vpop.f32.mrb[113].mxu1 }
0x1116   :  { %16631 = vst [vmem:[%s27202_s13 + $0x1a8] sm:$0xff] %v19605_v61  ;;  %v16197_v56 = vpop.f32.mrb[114].mxu1 }
0x1117   :  { %v16484_v13 = vadd.f32 %v18204_v58, %v29369_v63  ;;  %v18205_v52 = vadd.f32 %v26850_v60, %v16197_v56  ;;  %v16199_v35 = vpop.f32.mrb[115].mxu1 }
0x1119   :  { %19610 = vtanh.f32 %v16484_v13  ;;  %v16487_v62 = vadd.f32 %v18205_v52, %v29370_v20 }
0x111b   :  { %v19607_v39 = vpop.eup %19606  ;;  %19612 = vtanh.f32 %v16487_v62 }
0x111c   :  { %16632 = vst [vmem:[%s27202_s13 + $0x1b0] sm:$0xff] %v19607_v39  ;;  %v16202_v15 = vpop.f32.mrb[116].mxu1 }
0x111d   :  { %v19609_v55 = vpop.eup %19608  ;;  %v18206_v31 = vadd.f32 %v26850_v60, %v16202_v15  ;;  %v16204_v26 = vpop.f32.mrb[117].mxu1 }
0x111e   :  { %16633 = vst [vmem:[%s27202_s13 + $0x1b8] sm:$0xff] %v19609_v55  ;;  %v16205_v0 = vpop.f32.mrb[118].mxu1 }
0x111f   :  { %v16492_v28 = vadd.f32 %v18206_v31, %v29371_v38  ;;  %v18207_v37 = vadd.f32 %v26850_v60, %v16205_v0  ;;  %v16207_v33 = vpop.f32.mrb[119].mxu1 }
0x1121   :  { %19614 = vtanh.f32 %v16492_v28  ;;  %v16495_v42 = vadd.f32 %v18207_v37, %v29372_v18 }
0x1123   :  { %v19611_v30 = vpop.eup %19610  ;;  %19616 = vtanh.f32 %v16495_v42 }
0x1124   :  { %16634 = vst [vmem:[%s27202_s13 + $0x1c0] sm:$0xff] %v19611_v30  ;;  %v16210_v16 = vpop.f32.mrb[120].mxu1 }
0x1125   :  { %v19613_v9 = vpop.eup %19612  ;;  %v18208_v14 = vadd.f32 %v26850_v60, %v16210_v16  ;;  %v16212_v41 = vpop.f32.mrb[121].mxu1 }
0x1126   :  { %16635 = vst [vmem:[%s27202_s13 + $0x1c8] sm:$0xff] %v19613_v9  ;;  %v16213_v27 = vpop.f32.mrb[122].mxu1 }
0x1127   :  { %v18209_v1 = vadd.f32 %v26850_v60, %v16213_v27  ;;  %v16500_v8 = vadd.f32 %v18208_v14, %v27010_v36  ;;  %v16215_v32 = vpop.f32.mrb[123].mxu1 }
0x1129   :  { %19618 = vtanh.f32 %v16500_v8  ;;  %v16503_v40 = vadd.f32 %v18209_v1, %v27019_v23 }
0x112b   :  { %v19615_v10 = vpop.eup %19614  ;;  %19620 = vtanh.f32 %v16503_v40 }
0x112c   :  { %16636 = vst [vmem:[%s27202_s13 + $0x1d0] sm:$0xff] %v19615_v10  ;;  %v16218_v44 = vpop.f32.mrb[124].mxu1 }
0x112d   :  { %v19617_v25 = vpop.eup %19616  ;;  %v18210_v59 = vadd.f32 %v26850_v60, %v16218_v44  ;;  %v16220_v7 = vpop.f32.mrb[125].mxu1 }
0x112e   :  { %16637 = vst [vmem:[%s27202_s13 + $0x1d8] sm:$0xff] %v19617_v25  ;;  %v16221_v36 = vpop.f32.mrb[126].mxu1 }
0x112f   :  { %v16508_v21 = vadd.f32 %v18210_v59, %v27006_v49  ;;  %v18211_v23 = vadd.f32 %v26850_v60, %v16221_v36  ;;  %v16223_v47 = vpop.f32.mrb[127].mxu1 }
0x1131   :  { %19622 = vtanh.f32 %v16508_v21  ;;  %v16511_v34 = vadd.f32 %v18211_v23, %v27016_v54 }
0x1133   :  { %v19619_v4 = vpop.eup %19618  ;;  %19624 = vtanh.f32 %v16511_v34 }
0x1134   :  { %16638 = vst [vmem:[%s27202_s13 + $0x1e0] sm:$0xff] %v19619_v4 }
0x1135   :  { %v19621_v51 = vpop.eup %19620 }
0x1136   :  { %16639 = vst [vmem:[%s27202_s13 + $0x1e8] sm:$0xff] %v19621_v51 }
0x113b   :  { %v19623_v2 = vpop.eup %19622 }
0x113c   :  { %16640 = vst [vmem:[%s27202_s13 + $0x1f0] sm:$0xff] %v19623_v2 }
0x113d   :  { %v19625_v60 = vpop.eup %19624 }
0x113e   :  { %16641 = vst [vmem:[%s27202_s13 + $0x1f8] sm:$0xff] %v19625_v60 }

</bundles_post_ra>
